<compile_context>
chip_gen: v5e
topology: v5e:2x2
jax: 0.10.0
libtpu: 0.0.40
codegen_flags: <defaults>
</compile_context>

<pallas_src>
import jax
import jax.numpy as jnp
import numpy as np
from jax.experimental import pallas as pl
from jax.experimental.pallas import tpu as pltpu

_VMEM = pl.BlockSpec(memory_space=pltpu.MemorySpace.VMEM)


# ---------------------------------------------------------------------------
# Fused HARNN kernel (whole forward pass, no grid, everything in VMEM)
# ---------------------------------------------------------------------------
def _lstm_gates(g, c, H):
    """Standard torch LSTM cell pointwise part; g = [B, 4H] pre-activations."""
    i = jax.nn.sigmoid(g[:, 0 * H:1 * H])
    f = jax.nn.sigmoid(g[:, 1 * H:2 * H])
    gg = jnp.tanh(g[:, 2 * H:3 * H])
    o = jax.nn.sigmoid(g[:, 3 * H:4 * H])
    c_new = f * c + i * gg
    h_new = o * jnp.tanh(c_new)
    return h_new, c_new


def _make_harnn_kernel(*, T, B, H, FC, num_layers, num_classes_list):
    U = 2 * H
    n_levels = len(num_classes_list)

    def kernel(*refs):
        it = iter(refs)
        # ---- inputs ----
        x_ref = next(it)                                              # [T, B, E]
        lstm_p = [(next(it), next(it), next(it)) for _ in range(num_layers)]
        h0_ref, c0_ref = next(it), next(it)                           # [2L, B, H]
        lvl_p = [(next(it), next(it), next(it), next(it)) for _ in range(n_levels)]
        wham_ref, wglob_ref = next(it), next(it)
        # ---- outputs ----
        logits_refs = [next(it) for _ in range(n_levels)]
        glob_ref = next(it)
        # ---- scratch ----
        lstm_buf = next(it)        # VMEM [T*B, 2H], time-major rows (row = t*B + b)

        # ================= Bi-LSTM stack (time loop fully unrolled) =================
        E = x_ref.shape[-1]
        inp2d = x_ref[...].reshape(T * B, E)                          # time-major rows

        for l, (wih_ref, whh_ref, b_ref) in enumerate(lstm_p):
            # Hoisted input->hidden projection: all timesteps, both directions, one dot.
            gx = (jnp.dot(inp2d, wih_ref[...], preferred_element_type=jnp.float32)
                  + b_ref[...])                                       # [T*B, 8H]
            whh = whh_ref[...]                                        # [2H, 8H] block-diag
            h_f, c_f = h0_ref[2 * l], c0_ref[2 * l]
            h_b, c_b = h0_ref[2 * l + 1], c0_ref[2 * l + 1]
            for s in range(T):                                        # unrolled recurrence
                # one MXU push for both directions (block-diagonal W_hh)
                g_hh = jnp.dot(jnp.concatenate([h_f, h_b], axis=1), whh,
                               preferred_element_type=jnp.float32)    # [B, 8H]
                g_f = g_hh[:, :4 * H] + gx[s * B:(s + 1) * B, :4 * H]
                g_b = g_hh[:, 4 * H:] + gx[(T - 1 - s) * B:(T - s) * B, 4 * H:]
                h_f, c_f = _lstm_gates(g_f, c_f, H)
                h_b, c_b = _lstm_gates(g_b, c_b, H)
                # forward writes timestep s, backward writes timestep T-1-s
                lstm_buf[s * B:(s + 1) * B, :H] = h_f
                lstm_buf[(T - 1 - s) * B:(T - s) * B, H:] = h_b
            inp2d = lstm_buf[...]                                     # feeds next layer

        lstm2d = inp2d                                                # [T*B, U]
        lstm_tm = lstm2d.reshape(T, B, U)                             # time-major [T, B, U]
        pool = jnp.mean(lstm_tm, axis=0)                              # [B, U]  (computed once)

        # ================= HAM levels (attention + fc + local), fused =================
        visual = None                                                 # level 1: no reweighting
        fcs = []
        for (ws1t_ref, ws2t_ref, wfc_ref, wloc_ref), lg_ref in zip(lvl_p, logits_refs):
            att_in = lstm_tm if visual is None else lstm_tm * visual[:, :, None]
            att2d = att_in.reshape(T * B, U)
            n = jnp.tanh(jnp.dot(att2d, ws1t_ref[...],
                                 preferred_element_type=jnp.float32))           # [T*B, A]
            am = jnp.dot(n, ws2t_ref[...], preferred_element_type=jnp.float32)  # [T*B, C]
            C = am.shape[-1]
            am = am.reshape(T, B, C)
            # F.softmax with implicit dim on a 3-D tensor -> softmax over batch (axis 1 here)
            e = jnp.exp(am - jnp.max(am, axis=1, keepdims=True))
            att_w = e / jnp.sum(e, axis=1, keepdims=True)                       # [T, B, C]

            # attention_out = mean_C(att_w @ att_in) == sum_t mean_c(att_w) * att_in
            wbar = jnp.mean(att_w, axis=2)                                      # [T, B]
            att_out = jnp.sum(wbar[:, :, None] * att_in, axis=0)                # [B, U]

            # fc layer on concat([pool, att_out]) expressed as a split matmul
            wfc = wfc_ref[...]                                                  # [2U, FC]
            fc = jnp.maximum(
                jnp.dot(pool, wfc[:U], preferred_element_type=jnp.float32)
                + jnp.dot(att_out, wfc[U:], preferred_element_type=jnp.float32),
                0.0)                                                            # [B, FC]

            # local layer
            logits = jnp.dot(fc, wloc_ref[...], preferred_element_type=jnp.float32)
            lg_ref[...] = logits                                                # [B, C]
            scores = jax.nn.sigmoid(logits)
            vis = att_w * scores[None, :, :]                                    # [T, B, C]
            ev = jnp.exp(vis - jnp.max(vis, axis=1, keepdims=True))             # softmax dim 0
            vis = ev / jnp.sum(ev, axis=1, keepdims=True)
            visual = jnp.mean(vis, axis=2)                                      # [T, B]
            fcs.append(fc)

        # ================= global head =================
        wham = wham_ref[...]                                                    # [n*FC, FC]
        h = jnp.dot(fcs[0], wham[:FC], preferred_element_type=jnp.float32)
        for k in range(1, n_levels):
            h = h + jnp.dot(fcs[k], wham[k * FC:(k + 1) * FC],
                            preferred_element_type=jnp.float32)
        h = jnp.maximum(h, 0.0)
        glob_ref[...] = jnp.dot(h, wglob_ref[...], preferred_element_type=jnp.float32)

    return kernel


# ---------------------------------------------------------------------------
# Wrapper: builds fused per-direction weights and calls the single kernel
# ---------------------------------------------------------------------------
def harnn_forward(x_bte, params):
    B, T, E = x_bte.shape
    H = params["lstm"][0][0]["whh_t"].shape[0]
    FC = params["w_ham"].shape[1]
    num_layers = len(params["lstm"])
    num_classes_list = [lvl["w_local"].shape[1] for lvl in params["levels"]]
    total = params["w_global"].shape[1]

    x_tm = jnp.transpose(x_bte, (1, 0, 2))                         # [T, B, E]

    # One-time (constant-folded under jit) weight packing:
    #   wih_cat [D, 8H], whh_blk block-diagonal [2H, 8H], b_cat [1, 8H]
    lstm_in = []
    zeros = jnp.zeros((H, 4 * H), jnp.float32)
    for p_f, p_b in params["lstm"]:
        wih_cat = jnp.concatenate([p_f["wih_t"], p_b["wih_t"]], axis=1)
        whh_blk = jnp.concatenate(
            [jnp.concatenate([p_f["whh_t"], zeros], axis=1),
             jnp.concatenate([zeros, p_b["whh_t"]], axis=1)], axis=0)
        b_cat = jnp.concatenate([p_f["b"], p_b["b"]], axis=1)
        lstm_in += [wih_cat, whh_blk, b_cat]

    lvl_in = []
    for lvl in params["levels"]:
        lvl_in += [lvl["w_s1"].T, lvl["w_s2"].T, lvl["w_fc"], lvl["w_local"]]

    kernel = _make_harnn_kernel(T=T, B=B, H=H, FC=FC,
                                num_layers=num_layers,
                                num_classes_list=num_classes_list)

    n_in = 1 + 3 * num_layers + 2 + 4 * len(num_classes_list) + 2
    out_shape = ([jax.ShapeDtypeStruct((B, c), jnp.float32) for c in num_classes_list]
                 + [jax.ShapeDtypeStruct((B, total), jnp.float32)])

    outs = pl.pallas_call(
        kernel,
        in_specs=[_VMEM] * n_in,
        out_specs=[_VMEM] * len(out_shape),
        out_shape=out_shape,
        scratch_shapes=[pltpu.VMEM((T * B, 2 * H), jnp.float32)],
    )(x_tm, *lstm_in, params["h0"], params["c0"], *lvl_in,
      params["w_ham"], params["w_global"])
    return tuple(outs)


# ---------------------------------------------------------------------------
# Pure-JAX reference (mirrors PyTorch semantics) for a sanity check
# ---------------------------------------------------------------------------
def _lstm_cell_scan(p):
    def step(carry, x_t):
        h, c = carry
        gates = x_t @ p["wih_t"] + h @ p["whh_t"] + p["b"]
        i, f, g, o = jnp.split(gates, 4, axis=-1)
        c_new = jax.nn.sigmoid(f) * c + jax.nn.sigmoid(i) * jnp.tanh(g)
        h_new = jax.nn.sigmoid(o) * jnp.tanh(c_new)
        return (h_new, c_new), h_new
    return step


def harnn_forward_ref(x_bte, params):
    B, T, _ = x_bte.shape
    h = jnp.transpose(x_bte, (1, 0, 2))
    for l, (p_f, p_b) in enumerate(params["lstm"]):
        _, out_f = jax.lax.scan(_lstm_cell_scan(p_f),
                                (params["h0"][2 * l], params["c0"][2 * l]), h)
        _, out_b_rev = jax.lax.scan(_lstm_cell_scan(p_b),
                                    (params["h0"][2 * l + 1], params["c0"][2 * l + 1]),
                                    h[::-1])
        h = jnp.concatenate([out_f, out_b_rev[::-1]], axis=-1)
    lstm_out = jnp.transpose(h, (1, 0, 2))
    pool = jnp.mean(lstm_out, axis=1)

    def softmax0(a):
        e = jnp.exp(a - jnp.max(a, axis=0, keepdims=True))
        return e / jnp.sum(e, axis=0, keepdims=True)

    visual = jnp.ones((B, T), jnp.float32)
    fc_outs, logits_all = [], []
    for lvl in params["levels"]:
        att_in = lstm_out * visual[:, :, None]
        am = jnp.einsum("ca,bat->bct", lvl["w_s2"],
                        jnp.tanh(jnp.einsum("au,btu->bat", lvl["w_s1"], att_in)))
        att_w = softmax0(am)                                   # [B, C, T]
        att_out = jnp.mean(jnp.einsum("bct,btu->bcu", att_w, att_in), axis=1)
        local_in = jnp.concatenate([pool, att_out], axis=1)
        fc = jax.nn.relu(local_in @ lvl["w_fc"])
        logits = fc @ lvl["w_local"]
        scores = jax.nn.sigmoid(logits)
        vis = softmax0(att_w * scores[:, :, None])
        visual = jnp.mean(vis, axis=1)
        fc_outs.append(fc)
        logits_all.append(logits)

    ham = jnp.concatenate(fc_outs, axis=1)
    fc2 = jax.nn.relu(ham @ params["w_ham"])
    glob = fc2 @ params["w_global"]
    return (*logits_all, glob)


# ---------------------------------------------------------------------------
# Deterministic parameter construction
# ---------------------------------------------------------------------------
def init_params(key, *, B, E, H, A, FC, num_classes_list, total_classes, num_layers):
    U = 2 * H
    keys = iter(jax.random.split(key, 256))

    def nrm(shape, scale):
        return scale * jax.random.normal(next(keys), shape, jnp.float32)

    lstm = []
    in_dim = E
    for _ in range(num_layers):
        def direction(din):
            wih = nrm((4 * H, din), 1.0 / np.sqrt(din))   # torch layout [4H, in]
            whh = nrm((4 * H, H), 1.0 / np.sqrt(H))
            b = nrm((4 * H,), 0.1) + nrm((4 * H,), 0.1)   # b_ih + b_hh
            return {"wih_t": wih.T, "whh_t": whh.T, "b": b.reshape(1, 4 * H)}
        lstm.append((direction(in_dim), direction(in_dim)))
        in_dim = 2 * H

    h0 = nrm((2 * num_layers, B, H), 0.5)
    c0 = nrm((2 * num_layers, B, H), 0.5)

    levels = []
    for C in num_classes_list:
        levels.append({
            "w_s1": nrm((A, U), 1.0 / np.sqrt(U)),
            "w_s2": nrm((C, A), 1.0 / np.sqrt(A)),
            "w_fc": nrm((2 * U, FC), 1.0 / np.sqrt(2 * U)),
            "w_local": nrm((FC, C), 1.0 / np.sqrt(FC)),
        })

    w_ham = nrm((4 * FC, FC), 1.0 / np.sqrt(4 * FC))
    w_global = nrm((FC, total_classes), 1.0 / np.sqrt(FC))
    return {"lstm": lstm, "h0": h0, "c0": c0, "levels": levels,
            "w_ham": w_ham, "w_global": w_global}


if __name__ == "__main__":
    B, T, E = 2, 8, 16            # batch, pad_seq_len, embedding_dim
    H, A, FC = 32, 16, 32         # lstm_dim, attention_dim, fc_dim
    NUM_LAYERS = 1                # lstm_layers
    NUM_CLASSES = [3, 4, 5, 6]    # num_classes_list
    TOTAL = 18                    # total_classes

    key = jax.random.PRNGKey(0)
    k_param, k_x = jax.random.split(key)
    params = init_params(k_param, B=B, E=E, H=H, A=A, FC=FC,
                         num_classes_list=NUM_CLASSES, total_classes=TOTAL,
                         num_layers=NUM_LAYERS)
    x = jax.random.normal(k_x, (B, T, E), jnp.float32)

    outs = jax.jit(lambda xx: harnn_forward(xx, params))(x)
    outs = jax.block_until_ready(outs)

    # Reference at full precision; kernel uses default MXU precision, so allow 3e-2.
    with jax.default_matmul_precision("highest"):
        refs = harnn_forward_ref(x, params)
    for o, r in zip(outs, refs):
        np.testing.assert_allclose(np.asarray(o), np.asarray(r),
                                   rtol=3e-2, atol=3e-2)

    print("KERNEL_OK")
</pallas_src>

<mosaic_0001>
module attributes {stable_mosaic.version = 11 : i64} {
  func.func @kernel(%arg0: memref<8x2x16xf32, #tpu.memory_space<vmem>>, %arg1: memref<16x256xf32, #tpu.memory_space<vmem>>, %arg2: memref<64x256xf32, #tpu.memory_space<vmem>>, %arg3: memref<1x256xf32, #tpu.memory_space<vmem>>, %arg4: memref<2x2x32xf32, #tpu.memory_space<vmem>>, %arg5: memref<2x2x32xf32, #tpu.memory_space<vmem>>, %arg6: memref<64x16xf32, #tpu.memory_space<vmem>>, %arg7: memref<16x3xf32, #tpu.memory_space<vmem>>, %arg8: memref<128x32xf32, #tpu.memory_space<vmem>>, %arg9: memref<32x3xf32, #tpu.memory_space<vmem>>, %arg10: memref<64x16xf32, #tpu.memory_space<vmem>>, %arg11: memref<16x4xf32, #tpu.memory_space<vmem>>, %arg12: memref<128x32xf32, #tpu.memory_space<vmem>>, %arg13: memref<32x4xf32, #tpu.memory_space<vmem>>, %arg14: memref<64x16xf32, #tpu.memory_space<vmem>>, %arg15: memref<16x5xf32, #tpu.memory_space<vmem>>, %arg16: memref<128x32xf32, #tpu.memory_space<vmem>>, %arg17: memref<32x5xf32, #tpu.memory_space<vmem>>, %arg18: memref<64x16xf32, #tpu.memory_space<vmem>>, %arg19: memref<16x6xf32, #tpu.memory_space<vmem>>, %arg20: memref<128x32xf32, #tpu.memory_space<vmem>>, %arg21: memref<32x6xf32, #tpu.memory_space<vmem>>, %arg22: memref<128x32xf32, #tpu.memory_space<vmem>>, %arg23: memref<32x18xf32, #tpu.memory_space<vmem>>, %arg24: memref<2x3xf32, #tpu.memory_space<vmem>>, %arg25: memref<2x4xf32, #tpu.memory_space<vmem>>, %arg26: memref<2x5xf32, #tpu.memory_space<vmem>>, %arg27: memref<2x6xf32, #tpu.memory_space<vmem>>, %arg28: memref<2x18xf32, #tpu.memory_space<vmem>>, %arg29: memref<16x64xf32, #tpu.memory_space<vmem>>) attributes {dimension_semantics = [], scalar_prefetch = 0 : i64, scratch_operands = 1 : i64, tpu.core_type = #tpu.core_type<tc>} {
    %c0 = arith.constant 0 : index
    %c0_0 = arith.constant 0 : index
    %c0_1 = arith.constant 0 : index
    %0 = vector.load %arg0[%c0, %c0_0, %c0_1] : memref<8x2x16xf32, #tpu.memory_space<vmem>>, vector<8x2x16xf32>
    %1 = vector.shape_cast %0 : vector<8x2x16xf32> to vector<16x16xf32>
    %c0_2 = arith.constant 0 : index
    %c0_3 = arith.constant 0 : index
    %2 = vector.load %arg1[%c0_2, %c0_3] : memref<16x256xf32, #tpu.memory_space<vmem>>, vector<16x256xf32>
    %cst = arith.constant dense<0.000000e+00> : vector<16x256xf32>
    %3 = tpu.matmul %1, %2, %cst {dimension_numbers = #tpu.dot_dimension_numbers<[1], [0], [0], [1], [0, 0, 1, 1], [], []>} : vector<16x16xf32>, vector<16x256xf32>, vector<16x256xf32> -> vector<16x256xf32>
    %c0_4 = arith.constant 0 : index
    %c0_5 = arith.constant 0 : index
    %4 = vector.load %arg3[%c0_4, %c0_5] : memref<1x256xf32, #tpu.memory_space<vmem>>, vector<1x256xf32>
    %5 = vector.broadcast %4 : vector<1x256xf32> to vector<16x256xf32>
    %6 = arith.addf %3, %5 : vector<16x256xf32>
    %c0_6 = arith.constant 0 : index
    %c0_7 = arith.constant 0 : index
    %7 = vector.load %arg2[%c0_6, %c0_7] : memref<64x256xf32, #tpu.memory_space<vmem>>, vector<64x256xf32>
    %c0_8 = arith.constant 0 : index
    %c0_9 = arith.constant 0 : index
    %c0_10 = arith.constant 0 : index
    %8 = vector.load %arg4[%c0_8, %c0_9, %c0_10] : memref<2x2x32xf32, #tpu.memory_space<vmem>>, vector<1x2x32xf32>
    %9 = vector.shape_cast %8 : vector<1x2x32xf32> to vector<2x32xf32>
    %c0_11 = arith.constant 0 : index
    %c0_12 = arith.constant 0 : index
    %c0_13 = arith.constant 0 : index
    %10 = vector.load %arg5[%c0_11, %c0_12, %c0_13] : memref<2x2x32xf32, #tpu.memory_space<vmem>>, vector<1x2x32xf32>
    %11 = vector.shape_cast %10 : vector<1x2x32xf32> to vector<2x32xf32>
    %c1 = arith.constant 1 : index
    %c0_14 = arith.constant 0 : index
    %c0_15 = arith.constant 0 : index
    %12 = vector.load %arg4[%c1, %c0_14, %c0_15] : memref<2x2x32xf32, #tpu.memory_space<vmem>>, vector<1x2x32xf32>
    %13 = vector.shape_cast %12 : vector<1x2x32xf32> to vector<2x32xf32>
    %c1_16 = arith.constant 1 : index
    %c0_17 = arith.constant 0 : index
    %c0_18 = arith.constant 0 : index
    %14 = vector.load %arg5[%c1_16, %c0_17, %c0_18] : memref<2x2x32xf32, #tpu.memory_space<vmem>>, vector<1x2x32xf32>
    %15 = vector.shape_cast %14 : vector<1x2x32xf32> to vector<2x32xf32>
    %16 = tpu.concatenate %9, %13 in 1 : vector<2x32xf32>, vector<2x32xf32> -> vector<2x64xf32>
    %cst_19 = arith.constant dense<0.000000e+00> : vector<2x256xf32>
    %17 = tpu.matmul %16, %7, %cst_19 {dimension_numbers = #tpu.dot_dimension_numbers<[1], [0], [0], [1], [0, 0, 1, 1], [], []>} : vector<2x64xf32>, vector<64x256xf32>, vector<2x256xf32> -> vector<2x256xf32>
    %18 = vector.extract_strided_slice %17 {offsets = [0, 0], sizes = [2, 128], strides = [1, 1]} : vector<2x256xf32> to vector<2x128xf32>
    %19 = vector.extract_strided_slice %6 {offsets = [0, 0], sizes = [2, 128], strides = [1, 1]} : vector<16x256xf32> to vector<2x128xf32>
    %20 = arith.addf %18, %19 : vector<2x128xf32>
    %21 = vector.extract_strided_slice %17 {offsets = [0, 128], sizes = [2, 128], strides = [1, 1]} : vector<2x256xf32> to vector<2x128xf32>
    %22 = vector.extract_strided_slice %6 {offsets = [14, 128], sizes = [2, 128], strides = [1, 1]} : vector<16x256xf32> to vector<2x128xf32>
    %23 = arith.addf %21, %22 : vector<2x128xf32>
    %24 = vector.extract_strided_slice %20 {offsets = [0, 0], sizes = [2, 32], strides = [1, 1]} : vector<2x128xf32> to vector<2x32xf32>
    %25 = arith.negf %24 : vector<2x32xf32>
    %26 = math.exp %25 : vector<2x32xf32>
    %cst_20 = arith.constant 1.000000e+00 : f32
    %27 = vector.broadcast %cst_20 : f32 to vector<2x32xf32>
    %28 = arith.addf %27, %26 : vector<2x32xf32>
    %29 = arith.divf %27, %28 : vector<2x32xf32>
    %30 = vector.extract_strided_slice %20 {offsets = [0, 32], sizes = [2, 32], strides = [1, 1]} : vector<2x128xf32> to vector<2x32xf32>
    %31 = arith.negf %30 : vector<2x32xf32>
    %32 = math.exp %31 : vector<2x32xf32>
    %cst_21 = arith.constant 1.000000e+00 : f32
    %33 = vector.broadcast %cst_21 : f32 to vector<2x32xf32>
    %34 = arith.addf %33, %32 : vector<2x32xf32>
    %35 = arith.divf %33, %34 : vector<2x32xf32>
    %36 = vector.extract_strided_slice %20 {offsets = [0, 64], sizes = [2, 32], strides = [1, 1]} : vector<2x128xf32> to vector<2x32xf32>
    %37 = math.tanh %36 : vector<2x32xf32>
    %38 = vector.extract_strided_slice %20 {offsets = [0, 96], sizes = [2, 32], strides = [1, 1]} : vector<2x128xf32> to vector<2x32xf32>
    %39 = arith.negf %38 : vector<2x32xf32>
    %40 = math.exp %39 : vector<2x32xf32>
    %cst_22 = arith.constant 1.000000e+00 : f32
    %41 = vector.broadcast %cst_22 : f32 to vector<2x32xf32>
    %42 = arith.addf %41, %40 : vector<2x32xf32>
    %43 = arith.divf %41, %42 : vector<2x32xf32>
    %44 = arith.mulf %35, %11 : vector<2x32xf32>
    %45 = arith.mulf %29, %37 : vector<2x32xf32>
    %46 = arith.addf %44, %45 : vector<2x32xf32>
    %47 = math.tanh %46 : vector<2x32xf32>
    %48 = arith.mulf %43, %47 : vector<2x32xf32>
    %49 = vector.extract_strided_slice %23 {offsets = [0, 0], sizes = [2, 32], strides = [1, 1]} : vector<2x128xf32> to vector<2x32xf32>
    %50 = arith.negf %49 : vector<2x32xf32>
    %51 = math.exp %50 : vector<2x32xf32>
    %cst_23 = arith.constant 1.000000e+00 : f32
    %52 = vector.broadcast %cst_23 : f32 to vector<2x32xf32>
    %53 = arith.addf %52, %51 : vector<2x32xf32>
    %54 = arith.divf %52, %53 : vector<2x32xf32>
    %55 = vector.extract_strided_slice %23 {offsets = [0, 32], sizes = [2, 32], strides = [1, 1]} : vector<2x128xf32> to vector<2x32xf32>
    %56 = arith.negf %55 : vector<2x32xf32>
    %57 = math.exp %56 : vector<2x32xf32>
    %cst_24 = arith.constant 1.000000e+00 : f32
    %58 = vector.broadcast %cst_24 : f32 to vector<2x32xf32>
    %59 = arith.addf %58, %57 : vector<2x32xf32>
    %60 = arith.divf %58, %59 : vector<2x32xf32>
    %61 = vector.extract_strided_slice %23 {offsets = [0, 64], sizes = [2, 32], strides = [1, 1]} : vector<2x128xf32> to vector<2x32xf32>
    %62 = math.tanh %61 : vector<2x32xf32>
    %63 = vector.extract_strided_slice %23 {offsets = [0, 96], sizes = [2, 32], strides = [1, 1]} : vector<2x128xf32> to vector<2x32xf32>
    %64 = arith.negf %63 : vector<2x32xf32>
    %65 = math.exp %64 : vector<2x32xf32>
    %cst_25 = arith.constant 1.000000e+00 : f32
    %66 = vector.broadcast %cst_25 : f32 to vector<2x32xf32>
    %67 = arith.addf %66, %65 : vector<2x32xf32>
    %68 = arith.divf %66, %67 : vector<2x32xf32>
    %69 = arith.mulf %60, %15 : vector<2x32xf32>
    %70 = arith.mulf %54, %62 : vector<2x32xf32>
    %71 = arith.addf %69, %70 : vector<2x32xf32>
    %72 = math.tanh %71 : vector<2x32xf32>
    %73 = arith.mulf %68, %72 : vector<2x32xf32>
    %c0_26 = arith.constant 0 : index
    %c0_27 = arith.constant 0 : index
    %74 = vector.load %arg29[%c0_26, %c0_27] : memref<16x64xf32, #tpu.memory_space<vmem>>, vector<2x32xf32>
    tpu.vector_store %arg29[%c0_26, %c0_27], %48 {strides = array<i32>} : memref<16x64xf32, #tpu.memory_space<vmem>>, vector<2x32xf32>,
    %c14 = arith.constant 14 : index
    %c32 = arith.constant 32 : index
    %75 = vector.load %arg29[%c14, %c32] : memref<16x64xf32, #tpu.memory_space<vmem>>, vector<2x32xf32>
    tpu.vector_store %arg29[%c14, %c32], %73 {strides = array<i32>} : memref<16x64xf32, #tpu.memory_space<vmem>>, vector<2x32xf32>,
    %76 = tpu.concatenate %48, %73 in 1 : vector<2x32xf32>, vector<2x32xf32> -> vector<2x64xf32>
    %cst_28 = arith.constant dense<0.000000e+00> : vector<2x256xf32>
    %77 = tpu.matmul %76, %7, %cst_28 {dimension_numbers = #tpu.dot_dimension_numbers<[1], [0], [0], [1], [0, 0, 1, 1], [], []>} : vector<2x64xf32>, vector<64x256xf32>, vector<2x256xf32> -> vector<2x256xf32>
    %78 = vector.extract_strided_slice %77 {offsets = [0, 0], sizes = [2, 128], strides = [1, 1]} : vector<2x256xf32> to vector<2x128xf32>
    %79 = vector.extract_strided_slice %6 {offsets = [2, 0], sizes = [2, 128], strides = [1, 1]} : vector<16x256xf32> to vector<2x128xf32>
    %80 = arith.addf %78, %79 : vector<2x128xf32>
    %81 = vector.extract_strided_slice %77 {offsets = [0, 128], sizes = [2, 128], strides = [1, 1]} : vector<2x256xf32> to vector<2x128xf32>
    %82 = vector.extract_strided_slice %6 {offsets = [12, 128], sizes = [2, 128], strides = [1, 1]} : vector<16x256xf32> to vector<2x128xf32>
    %83 = arith.addf %81, %82 : vector<2x128xf32>
    %84 = vector.extract_strided_slice %80 {offsets = [0, 0], sizes = [2, 32], strides = [1, 1]} : vector<2x128xf32> to vector<2x32xf32>
    %85 = arith.negf %84 : vector<2x32xf32>
    %86 = math.exp %85 : vector<2x32xf32>
    %cst_29 = arith.constant 1.000000e+00 : f32
    %87 = vector.broadcast %cst_29 : f32 to vector<2x32xf32>
    %88 = arith.addf %87, %86 : vector<2x32xf32>
    %89 = arith.divf %87, %88 : vector<2x32xf32>
    %90 = vector.extract_strided_slice %80 {offsets = [0, 32], sizes = [2, 32], strides = [1, 1]} : vector<2x128xf32> to vector<2x32xf32>
    %91 = arith.negf %90 : vector<2x32xf32>
    %92 = math.exp %91 : vector<2x32xf32>
    %cst_30 = arith.constant 1.000000e+00 : f32
    %93 = vector.broadcast %cst_30 : f32 to vector<2x32xf32>
    %94 = arith.addf %93, %92 : vector<2x32xf32>
    %95 = arith.divf %93, %94 : vector<2x32xf32>
    %96 = vector.extract_strided_slice %80 {offsets = [0, 64], sizes = [2, 32], strides = [1, 1]} : vector<2x128xf32> to vector<2x32xf32>
    %97 = math.tanh %96 : vector<2x32xf32>
    %98 = vector.extract_strided_slice %80 {offsets = [0, 96], sizes = [2, 32], strides = [1, 1]} : vector<2x128xf32> to vector<2x32xf32>
    %99 = arith.negf %98 : vector<2x32xf32>
    %100 = math.exp %99 : vector<2x32xf32>
    %cst_31 = arith.constant 1.000000e+00 : f32
    %101 = vector.broadcast %cst_31 : f32 to vector<2x32xf32>
    %102 = arith.addf %101, %100 : vector<2x32xf32>
    %103 = arith.divf %101, %102 : vector<2x32xf32>
    %104 = arith.mulf %95, %46 : vector<2x32xf32>
    %105 = arith.mulf %89, %97 : vector<2x32xf32>
    %106 = arith.addf %104, %105 : vector<2x32xf32>
    %107 = math.tanh %106 : vector<2x32xf32>
    %108 = arith.mulf %103, %107 : vector<2x32xf32>
    %109 = vector.extract_strided_slice %83 {offsets = [0, 0], sizes = [2, 32], strides = [1, 1]} : vector<2x128xf32> to vector<2x32xf32>
    %110 = arith.negf %109 : vector<2x32xf32>
    %111 = math.exp %110 : vector<2x32xf32>
    %cst_32 = arith.constant 1.000000e+00 : f32
    %112 = vector.broadcast %cst_32 : f32 to vector<2x32xf32>
    %113 = arith.addf %112, %111 : vector<2x32xf32>
    %114 = arith.divf %112, %113 : vector<2x32xf32>
    %115 = vector.extract_strided_slice %83 {offsets = [0, 32], sizes = [2, 32], strides = [1, 1]} : vector<2x128xf32> to vector<2x32xf32>
    %116 = arith.negf %115 : vector<2x32xf32>
    %117 = math.exp %116 : vector<2x32xf32>
    %cst_33 = arith.constant 1.000000e+00 : f32
    %118 = vector.broadcast %cst_33 : f32 to vector<2x32xf32>
    %119 = arith.addf %118, %117 : vector<2x32xf32>
    %120 = arith.divf %118, %119 : vector<2x32xf32>
    %121 = vector.extract_strided_slice %83 {offsets = [0, 64], sizes = [2, 32], strides = [1, 1]} : vector<2x128xf32> to vector<2x32xf32>
    %122 = math.tanh %121 : vector<2x32xf32>
    %123 = vector.extract_strided_slice %83 {offsets = [0, 96], sizes = [2, 32], strides = [1, 1]} : vector<2x128xf32> to vector<2x32xf32>
    %124 = arith.negf %123 : vector<2x32xf32>
    %125 = math.exp %124 : vector<2x32xf32>
    %cst_34 = arith.constant 1.000000e+00 : f32
    %126 = vector.broadcast %cst_34 : f32 to vector<2x32xf32>
    %127 = arith.addf %126, %125 : vector<2x32xf32>
    %128 = arith.divf %126, %127 : vector<2x32xf32>
    %129 = arith.mulf %120, %71 : vector<2x32xf32>
    %130 = arith.mulf %114, %122 : vector<2x32xf32>
    %131 = arith.addf %129, %130 : vector<2x32xf32>
    %132 = math.tanh %131 : vector<2x32xf32>
    %133 = arith.mulf %128, %132 : vector<2x32xf32>
    %c2 = arith.constant 2 : index
    %c0_35 = arith.constant 0 : index
    %134 = vector.load %arg29[%c2, %c0_35] : memref<16x64xf32, #tpu.memory_space<vmem>>, vector<2x32xf32>
    tpu.vector_store %arg29[%c2, %c0_35], %108 {strides = array<i32>} : memref<16x64xf32, #tpu.memory_space<vmem>>, vector<2x32xf32>,
    %c12 = arith.constant 12 : index
    %c32_36 = arith.constant 32 : index
    %135 = vector.load %arg29[%c12, %c32_36] : memref<16x64xf32, #tpu.memory_space<vmem>>, vector<2x32xf32>
    tpu.vector_store %arg29[%c12, %c32_36], %133 {strides = array<i32>} : memref<16x64xf32, #tpu.memory_space<vmem>>, vector<2x32xf32>,
    %136 = tpu.concatenate %108, %133 in 1 : vector<2x32xf32>, vector<2x32xf32> -> vector<2x64xf32>
    %cst_37 = arith.constant dense<0.000000e+00> : vector<2x256xf32>
    %137 = tpu.matmul %136, %7, %cst_37 {dimension_numbers = #tpu.dot_dimension_numbers<[1], [0], [0], [1], [0, 0, 1, 1], [], []>} : vector<2x64xf32>, vector<64x256xf32>, vector<2x256xf32> -> vector<2x256xf32>
    %138 = vector.extract_strided_slice %137 {offsets = [0, 0], sizes = [2, 128], strides = [1, 1]} : vector<2x256xf32> to vector<2x128xf32>
    %139 = vector.extract_strided_slice %6 {offsets = [4, 0], sizes = [2, 128], strides = [1, 1]} : vector<16x256xf32> to vector<2x128xf32>
    %140 = arith.addf %138, %139 : vector<2x128xf32>
    %141 = vector.extract_strided_slice %137 {offsets = [0, 128], sizes = [2, 128], strides = [1, 1]} : vector<2x256xf32> to vector<2x128xf32>
    %142 = vector.extract_strided_slice %6 {offsets = [10, 128], sizes = [2, 128], strides = [1, 1]} : vector<16x256xf32> to vector<2x128xf32>
    %143 = arith.addf %141, %142 : vector<2x128xf32>
    %144 = vector.extract_strided_slice %140 {offsets = [0, 0], sizes = [2, 32], strides = [1, 1]} : vector<2x128xf32> to vector<2x32xf32>
    %145 = arith.negf %144 : vector<2x32xf32>
    %146 = math.exp %145 : vector<2x32xf32>
    %cst_38 = arith.constant 1.000000e+00 : f32
    %147 = vector.broadcast %cst_38 : f32 to vector<2x32xf32>
    %148 = arith.addf %147, %146 : vector<2x32xf32>
    %149 = arith.divf %147, %148 : vector<2x32xf32>
    %150 = vector.extract_strided_slice %140 {offsets = [0, 32], sizes = [2, 32], strides = [1, 1]} : vector<2x128xf32> to vector<2x32xf32>
    %151 = arith.negf %150 : vector<2x32xf32>
    %152 = math.exp %151 : vector<2x32xf32>
    %cst_39 = arith.constant 1.000000e+00 : f32
    %153 = vector.broadcast %cst_39 : f32 to vector<2x32xf32>
    %154 = arith.addf %153, %152 : vector<2x32xf32>
    %155 = arith.divf %153, %154 : vector<2x32xf32>
    %156 = vector.extract_strided_slice %140 {offsets = [0, 64], sizes = [2, 32], strides = [1, 1]} : vector<2x128xf32> to vector<2x32xf32>
    %157 = math.tanh %156 : vector<2x32xf32>
    %158 = vector.extract_strided_slice %140 {offsets = [0, 96], sizes = [2, 32], strides = [1, 1]} : vector<2x128xf32> to vector<2x32xf32>
    %159 = arith.negf %158 : vector<2x32xf32>
    %160 = math.exp %159 : vector<2x32xf32>
    %cst_40 = arith.constant 1.000000e+00 : f32
    %161 = vector.broadcast %cst_40 : f32 to vector<2x32xf32>
    %162 = arith.addf %161, %160 : vector<2x32xf32>
    %163 = arith.divf %161, %162 : vector<2x32xf32>
    %164 = arith.mulf %155, %106 : vector<2x32xf32>
    %165 = arith.mulf %149, %157 : vector<2x32xf32>
    %166 = arith.addf %164, %165 : vector<2x32xf32>
    %167 = math.tanh %166 : vector<2x32xf32>
    %168 = arith.mulf %163, %167 : vector<2x32xf32>
    %169 = vector.extract_strided_slice %143 {offsets = [0, 0], sizes = [2, 32], strides = [1, 1]} : vector<2x128xf32> to vector<2x32xf32>
    %170 = arith.negf %169 : vector<2x32xf32>
    %171 = math.exp %170 : vector<2x32xf32>
    %cst_41 = arith.constant 1.000000e+00 : f32
    %172 = vector.broadcast %cst_41 : f32 to vector<2x32xf32>
    %173 = arith.addf %172, %171 : vector<2x32xf32>
    %174 = arith.divf %172, %173 : vector<2x32xf32>
    %175 = vector.extract_strided_slice %143 {offsets = [0, 32], sizes = [2, 32], strides = [1, 1]} : vector<2x128xf32> to vector<2x32xf32>
    %176 = arith.negf %175 : vector<2x32xf32>
    %177 = math.exp %176 : vector<2x32xf32>
    %cst_42 = arith.constant 1.000000e+00 : f32
    %178 = vector.broadcast %cst_42 : f32 to vector<2x32xf32>
    %179 = arith.addf %178, %177 : vector<2x32xf32>
    %180 = arith.divf %178, %179 : vector<2x32xf32>
    %181 = vector.extract_strided_slice %143 {offsets = [0, 64], sizes = [2, 32], strides = [1, 1]} : vector<2x128xf32> to vector<2x32xf32>
    %182 = math.tanh %181 : vector<2x32xf32>
    %183 = vector.extract_strided_slice %143 {offsets = [0, 96], sizes = [2, 32], strides = [1, 1]} : vector<2x128xf32> to vector<2x32xf32>
    %184 = arith.negf %183 : vector<2x32xf32>
    %185 = math.exp %184 : vector<2x32xf32>
    %cst_43 = arith.constant 1.000000e+00 : f32
    %186 = vector.broadcast %cst_43 : f32 to vector<2x32xf32>
    %187 = arith.addf %186, %185 : vector<2x32xf32>
    %188 = arith.divf %186, %187 : vector<2x32xf32>
    %189 = arith.mulf %180, %131 : vector<2x32xf32>
    %190 = arith.mulf %174, %182 : vector<2x32xf32>
    %191 = arith.addf %189, %190 : vector<2x32xf32>
    %192 = math.tanh %191 : vector<2x32xf32>
    %193 = arith.mulf %188, %192 : vector<2x32xf32>
    %c4 = arith.constant 4 : index
    %c0_44 = arith.constant 0 : index
    %194 = vector.load %arg29[%c4, %c0_44] : memref<16x64xf32, #tpu.memory_space<vmem>>, vector<2x32xf32>
    tpu.vector_store %arg29[%c4, %c0_44], %168 {strides = array<i32>} : memref<16x64xf32, #tpu.memory_space<vmem>>, vector<2x32xf32>,
    %c10 = arith.constant 10 : index
    %c32_45 = arith.constant 32 : index
    %195 = vector.load %arg29[%c10, %c32_45] : memref<16x64xf32, #tpu.memory_space<vmem>>, vector<2x32xf32>
    tpu.vector_store %arg29[%c10, %c32_45], %193 {strides = array<i32>} : memref<16x64xf32, #tpu.memory_space<vmem>>, vector<2x32xf32>,
    %196 = tpu.concatenate %168, %193 in 1 : vector<2x32xf32>, vector<2x32xf32> -> vector<2x64xf32>
    %cst_46 = arith.constant dense<0.000000e+00> : vector<2x256xf32>
    %197 = tpu.matmul %196, %7, %cst_46 {dimension_numbers = #tpu.dot_dimension_numbers<[1], [0], [0], [1], [0, 0, 1, 1], [], []>} : vector<2x64xf32>, vector<64x256xf32>, vector<2x256xf32> -> vector<2x256xf32>
    %198 = vector.extract_strided_slice %197 {offsets = [0, 0], sizes = [2, 128], strides = [1, 1]} : vector<2x256xf32> to vector<2x128xf32>
    %199 = vector.extract_strided_slice %6 {offsets = [6, 0], sizes = [2, 128], strides = [1, 1]} : vector<16x256xf32> to vector<2x128xf32>
    %200 = arith.addf %198, %199 : vector<2x128xf32>
    %201 = vector.extract_strided_slice %197 {offsets = [0, 128], sizes = [2, 128], strides = [1, 1]} : vector<2x256xf32> to vector<2x128xf32>
    %202 = vector.extract_strided_slice %6 {offsets = [8, 128], sizes = [2, 128], strides = [1, 1]} : vector<16x256xf32> to vector<2x128xf32>
    %203 = arith.addf %201, %202 : vector<2x128xf32>
    %204 = vector.extract_strided_slice %200 {offsets = [0, 0], sizes = [2, 32], strides = [1, 1]} : vector<2x128xf32> to vector<2x32xf32>
    %205 = arith.negf %204 : vector<2x32xf32>
    %206 = math.exp %205 : vector<2x32xf32>
    %cst_47 = arith.constant 1.000000e+00 : f32
    %207 = vector.broadcast %cst_47 : f32 to vector<2x32xf32>
    %208 = arith.addf %207, %206 : vector<2x32xf32>
    %209 = arith.divf %207, %208 : vector<2x32xf32>
    %210 = vector.extract_strided_slice %200 {offsets = [0, 32], sizes = [2, 32], strides = [1, 1]} : vector<2x128xf32> to vector<2x32xf32>
    %211 = arith.negf %210 : vector<2x32xf32>
    %212 = math.exp %211 : vector<2x32xf32>
    %cst_48 = arith.constant 1.000000e+00 : f32
    %213 = vector.broadcast %cst_48 : f32 to vector<2x32xf32>
    %214 = arith.addf %213, %212 : vector<2x32xf32>
    %215 = arith.divf %213, %214 : vector<2x32xf32>
    %216 = vector.extract_strided_slice %200 {offsets = [0, 64], sizes = [2, 32], strides = [1, 1]} : vector<2x128xf32> to vector<2x32xf32>
    %217 = math.tanh %216 : vector<2x32xf32>
    %218 = vector.extract_strided_slice %200 {offsets = [0, 96], sizes = [2, 32], strides = [1, 1]} : vector<2x128xf32> to vector<2x32xf32>
    %219 = arith.negf %218 : vector<2x32xf32>
    %220 = math.exp %219 : vector<2x32xf32>
    %cst_49 = arith.constant 1.000000e+00 : f32
    %221 = vector.broadcast %cst_49 : f32 to vector<2x32xf32>
    %222 = arith.addf %221, %220 : vector<2x32xf32>
    %223 = arith.divf %221, %222 : vector<2x32xf32>
    %224 = arith.mulf %215, %166 : vector<2x32xf32>
    %225 = arith.mulf %209, %217 : vector<2x32xf32>
    %226 = arith.addf %224, %225 : vector<2x32xf32>
    %227 = math.tanh %226 : vector<2x32xf32>
    %228 = arith.mulf %223, %227 : vector<2x32xf32>
    %229 = vector.extract_strided_slice %203 {offsets = [0, 0], sizes = [2, 32], strides = [1, 1]} : vector<2x128xf32> to vector<2x32xf32>
    %230 = arith.negf %229 : vector<2x32xf32>
    %231 = math.exp %230 : vector<2x32xf32>
    %cst_50 = arith.constant 1.000000e+00 : f32
    %232 = vector.broadcast %cst_50 : f32 to vector<2x32xf32>
    %233 = arith.addf %232, %231 : vector<2x32xf32>
    %234 = arith.divf %232, %233 : vector<2x32xf32>
    %235 = vector.extract_strided_slice %203 {offsets = [0, 32], sizes = [2, 32], strides = [1, 1]} : vector<2x128xf32> to vector<2x32xf32>
    %236 = arith.negf %235 : vector<2x32xf32>
    %237 = math.exp %236 : vector<2x32xf32>
    %cst_51 = arith.constant 1.000000e+00 : f32
    %238 = vector.broadcast %cst_51 : f32 to vector<2x32xf32>
    %239 = arith.addf %238, %237 : vector<2x32xf32>
    %240 = arith.divf %238, %239 : vector<2x32xf32>
    %241 = vector.extract_strided_slice %203 {offsets = [0, 64], sizes = [2, 32], strides = [1, 1]} : vector<2x128xf32> to vector<2x32xf32>
    %242 = math.tanh %241 : vector<2x32xf32>
    %243 = vector.extract_strided_slice %203 {offsets = [0, 96], sizes = [2, 32], strides = [1, 1]} : vector<2x128xf32> to vector<2x32xf32>
    %244 = arith.negf %243 : vector<2x32xf32>
    %245 = math.exp %244 : vector<2x32xf32>
    %cst_52 = arith.constant 1.000000e+00 : f32
    %246 = vector.broadcast %cst_52 : f32 to vector<2x32xf32>
    %247 = arith.addf %246, %245 : vector<2x32xf32>
    %248 = arith.divf %246, %247 : vector<2x32xf32>
    %249 = arith.mulf %240, %191 : vector<2x32xf32>
    %250 = arith.mulf %234, %242 : vector<2x32xf32>
    %251 = arith.addf %249, %250 : vector<2x32xf32>
    %252 = math.tanh %251 : vector<2x32xf32>
    %253 = arith.mulf %248, %252 : vector<2x32xf32>
    %c6 = arith.constant 6 : index
    %c0_53 = arith.constant 0 : index
    %254 = vector.load %arg29[%c6, %c0_53] : memref<16x64xf32, #tpu.memory_space<vmem>>, vector<2x32xf32>
    tpu.vector_store %arg29[%c6, %c0_53], %228 {strides = array<i32>} : memref<16x64xf32, #tpu.memory_space<vmem>>, vector<2x32xf32>,
    %c8 = arith.constant 8 : index
    %c32_54 = arith.constant 32 : index
    %255 = vector.load %arg29[%c8, %c32_54] : memref<16x64xf32, #tpu.memory_space<vmem>>, vector<2x32xf32>
    tpu.vector_store %arg29[%c8, %c32_54], %253 {strides = array<i32>} : memref<16x64xf32, #tpu.memory_space<vmem>>, vector<2x32xf32>,
    %256 = tpu.concatenate %228, %253 in 1 : vector<2x32xf32>, vector<2x32xf32> -> vector<2x64xf32>
    %cst_55 = arith.constant dense<0.000000e+00> : vector<2x256xf32>
    %257 = tpu.matmul %256, %7, %cst_55 {dimension_numbers = #tpu.dot_dimension_numbers<[1], [0], [0], [1], [0, 0, 1, 1], [], []>} : vector<2x64xf32>, vector<64x256xf32>, vector<2x256xf32> -> vector<2x256xf32>
    %258 = vector.extract_strided_slice %257 {offsets = [0, 0], sizes = [2, 128], strides = [1, 1]} : vector<2x256xf32> to vector<2x128xf32>
    %259 = vector.extract_strided_slice %6 {offsets = [8, 0], sizes = [2, 128], strides = [1, 1]} : vector<16x256xf32> to vector<2x128xf32>
    %260 = arith.addf %258, %259 : vector<2x128xf32>
    %261 = vector.extract_strided_slice %257 {offsets = [0, 128], sizes = [2, 128], strides = [1, 1]} : vector<2x256xf32> to vector<2x128xf32>
    %262 = vector.extract_strided_slice %6 {offsets = [6, 128], sizes = [2, 128], strides = [1, 1]} : vector<16x256xf32> to vector<2x128xf32>
    %263 = arith.addf %261, %262 : vector<2x128xf32>
    %264 = vector.extract_strided_slice %260 {offsets = [0, 0], sizes = [2, 32], strides = [1, 1]} : vector<2x128xf32> to vector<2x32xf32>
    %265 = arith.negf %264 : vector<2x32xf32>
    %266 = math.exp %265 : vector<2x32xf32>
    %cst_56 = arith.constant 1.000000e+00 : f32
    %267 = vector.broadcast %cst_56 : f32 to vector<2x32xf32>
    %268 = arith.addf %267, %266 : vector<2x32xf32>
    %269 = arith.divf %267, %268 : vector<2x32xf32>
    %270 = vector.extract_strided_slice %260 {offsets = [0, 32], sizes = [2, 32], strides = [1, 1]} : vector<2x128xf32> to vector<2x32xf32>
    %271 = arith.negf %270 : vector<2x32xf32>
    %272 = math.exp %271 : vector<2x32xf32>
    %cst_57 = arith.constant 1.000000e+00 : f32
    %273 = vector.broadcast %cst_57 : f32 to vector<2x32xf32>
    %274 = arith.addf %273, %272 : vector<2x32xf32>
    %275 = arith.divf %273, %274 : vector<2x32xf32>
    %276 = vector.extract_strided_slice %260 {offsets = [0, 64], sizes = [2, 32], strides = [1, 1]} : vector<2x128xf32> to vector<2x32xf32>
    %277 = math.tanh %276 : vector<2x32xf32>
    %278 = vector.extract_strided_slice %260 {offsets = [0, 96], sizes = [2, 32], strides = [1, 1]} : vector<2x128xf32> to vector<2x32xf32>
    %279 = arith.negf %278 : vector<2x32xf32>
    %280 = math.exp %279 : vector<2x32xf32>
    %cst_58 = arith.constant 1.000000e+00 : f32
    %281 = vector.broadcast %cst_58 : f32 to vector<2x32xf32>
    %282 = arith.addf %281, %280 : vector<2x32xf32>
    %283 = arith.divf %281, %282 : vector<2x32xf32>
    %284 = arith.mulf %275, %226 : vector<2x32xf32>
    %285 = arith.mulf %269, %277 : vector<2x32xf32>
    %286 = arith.addf %284, %285 : vector<2x32xf32>
    %287 = math.tanh %286 : vector<2x32xf32>
    %288 = arith.mulf %283, %287 : vector<2x32xf32>
    %289 = vector.extract_strided_slice %263 {offsets = [0, 0], sizes = [2, 32], strides = [1, 1]} : vector<2x128xf32> to vector<2x32xf32>
    %290 = arith.negf %289 : vector<2x32xf32>
    %291 = math.exp %290 : vector<2x32xf32>
    %cst_59 = arith.constant 1.000000e+00 : f32
    %292 = vector.broadcast %cst_59 : f32 to vector<2x32xf32>
    %293 = arith.addf %292, %291 : vector<2x32xf32>
    %294 = arith.divf %292, %293 : vector<2x32xf32>
    %295 = vector.extract_strided_slice %263 {offsets = [0, 32], sizes = [2, 32], strides = [1, 1]} : vector<2x128xf32> to vector<2x32xf32>
    %296 = arith.negf %295 : vector<2x32xf32>
    %297 = math.exp %296 : vector<2x32xf32>
    %cst_60 = arith.constant 1.000000e+00 : f32
    %298 = vector.broadcast %cst_60 : f32 to vector<2x32xf32>
    %299 = arith.addf %298, %297 : vector<2x32xf32>
    %300 = arith.divf %298, %299 : vector<2x32xf32>
    %301 = vector.extract_strided_slice %263 {offsets = [0, 64], sizes = [2, 32], strides = [1, 1]} : vector<2x128xf32> to vector<2x32xf32>
    %302 = math.tanh %301 : vector<2x32xf32>
    %303 = vector.extract_strided_slice %263 {offsets = [0, 96], sizes = [2, 32], strides = [1, 1]} : vector<2x128xf32> to vector<2x32xf32>
    %304 = arith.negf %303 : vector<2x32xf32>
    %305 = math.exp %304 : vector<2x32xf32>
    %cst_61 = arith.constant 1.000000e+00 : f32
    %306 = vector.broadcast %cst_61 : f32 to vector<2x32xf32>
    %307 = arith.addf %306, %305 : vector<2x32xf32>
    %308 = arith.divf %306, %307 : vector<2x32xf32>
    %309 = arith.mulf %300, %251 : vector<2x32xf32>
    %310 = arith.mulf %294, %302 : vector<2x32xf32>
    %311 = arith.addf %309, %310 : vector<2x32xf32>
    %312 = math.tanh %311 : vector<2x32xf32>
    %313 = arith.mulf %308, %312 : vector<2x32xf32>
    %c8_62 = arith.constant 8 : index
    %c0_63 = arith.constant 0 : index
    %314 = vector.load %arg29[%c8_62, %c0_63] : memref<16x64xf32, #tpu.memory_space<vmem>>, vector<2x32xf32>
    tpu.vector_store %arg29[%c8_62, %c0_63], %288 {strides = array<i32>} : memref<16x64xf32, #tpu.memory_space<vmem>>, vector<2x32xf32>,
    %c6_64 = arith.constant 6 : index
    %c32_65 = arith.constant 32 : index
    %315 = vector.load %arg29[%c6_64, %c32_65] : memref<16x64xf32, #tpu.memory_space<vmem>>, vector<2x32xf32>
    tpu.vector_store %arg29[%c6_64, %c32_65], %313 {strides = array<i32>} : memref<16x64xf32, #tpu.memory_space<vmem>>, vector<2x32xf32>,
    %316 = tpu.concatenate %288, %313 in 1 : vector<2x32xf32>, vector<2x32xf32> -> vector<2x64xf32>
    %cst_66 = arith.constant dense<0.000000e+00> : vector<2x256xf32>
    %317 = tpu.matmul %316, %7, %cst_66 {dimension_numbers = #tpu.dot_dimension_numbers<[1], [0], [0], [1], [0, 0, 1, 1], [], []>} : vector<2x64xf32>, vector<64x256xf32>, vector<2x256xf32> -> vector<2x256xf32>
    %318 = vector.extract_strided_slice %317 {offsets = [0, 0], sizes = [2, 128], strides = [1, 1]} : vector<2x256xf32> to vector<2x128xf32>
    %319 = vector.extract_strided_slice %6 {offsets = [10, 0], sizes = [2, 128], strides = [1, 1]} : vector<16x256xf32> to vector<2x128xf32>
    %320 = arith.addf %318, %319 : vector<2x128xf32>
    %321 = vector.extract_strided_slice %317 {offsets = [0, 128], sizes = [2, 128], strides = [1, 1]} : vector<2x256xf32> to vector<2x128xf32>
    %322 = vector.extract_strided_slice %6 {offsets = [4, 128], sizes = [2, 128], strides = [1, 1]} : vector<16x256xf32> to vector<2x128xf32>
    %323 = arith.addf %321, %322 : vector<2x128xf32>
    %324 = vector.extract_strided_slice %320 {offsets = [0, 0], sizes = [2, 32], strides = [1, 1]} : vector<2x128xf32> to vector<2x32xf32>
    %325 = arith.negf %324 : vector<2x32xf32>
    %326 = math.exp %325 : vector<2x32xf32>
    %cst_67 = arith.constant 1.000000e+00 : f32
    %327 = vector.broadcast %cst_67 : f32 to vector<2x32xf32>
    %328 = arith.addf %327, %326 : vector<2x32xf32>
    %329 = arith.divf %327, %328 : vector<2x32xf32>
    %330 = vector.extract_strided_slice %320 {offsets = [0, 32], sizes = [2, 32], strides = [1, 1]} : vector<2x128xf32> to vector<2x32xf32>
    %331 = arith.negf %330 : vector<2x32xf32>
    %332 = math.exp %331 : vector<2x32xf32>
    %cst_68 = arith.constant 1.000000e+00 : f32
    %333 = vector.broadcast %cst_68 : f32 to vector<2x32xf32>
    %334 = arith.addf %333, %332 : vector<2x32xf32>
    %335 = arith.divf %333, %334 : vector<2x32xf32>
    %336 = vector.extract_strided_slice %320 {offsets = [0, 64], sizes = [2, 32], strides = [1, 1]} : vector<2x128xf32> to vector<2x32xf32>
    %337 = math.tanh %336 : vector<2x32xf32>
    %338 = vector.extract_strided_slice %320 {offsets = [0, 96], sizes = [2, 32], strides = [1, 1]} : vector<2x128xf32> to vector<2x32xf32>
    %339 = arith.negf %338 : vector<2x32xf32>
    %340 = math.exp %339 : vector<2x32xf32>
    %cst_69 = arith.constant 1.000000e+00 : f32
    %341 = vector.broadcast %cst_69 : f32 to vector<2x32xf32>
    %342 = arith.addf %341, %340 : vector<2x32xf32>
    %343 = arith.divf %341, %342 : vector<2x32xf32>
    %344 = arith.mulf %335, %286 : vector<2x32xf32>
    %345 = arith.mulf %329, %337 : vector<2x32xf32>
    %346 = arith.addf %344, %345 : vector<2x32xf32>
    %347 = math.tanh %346 : vector<2x32xf32>
    %348 = arith.mulf %343, %347 : vector<2x32xf32>
    %349 = vector.extract_strided_slice %323 {offsets = [0, 0], sizes = [2, 32], strides = [1, 1]} : vector<2x128xf32> to vector<2x32xf32>
    %350 = arith.negf %349 : vector<2x32xf32>
    %351 = math.exp %350 : vector<2x32xf32>
    %cst_70 = arith.constant 1.000000e+00 : f32
    %352 = vector.broadcast %cst_70 : f32 to vector<2x32xf32>
    %353 = arith.addf %352, %351 : vector<2x32xf32>
    %354 = arith.divf %352, %353 : vector<2x32xf32>
    %355 = vector.extract_strided_slice %323 {offsets = [0, 32], sizes = [2, 32], strides = [1, 1]} : vector<2x128xf32> to vector<2x32xf32>
    %356 = arith.negf %355 : vector<2x32xf32>
    %357 = math.exp %356 : vector<2x32xf32>
    %cst_71 = arith.constant 1.000000e+00 : f32
    %358 = vector.broadcast %cst_71 : f32 to vector<2x32xf32>
    %359 = arith.addf %358, %357 : vector<2x32xf32>
    %360 = arith.divf %358, %359 : vector<2x32xf32>
    %361 = vector.extract_strided_slice %323 {offsets = [0, 64], sizes = [2, 32], strides = [1, 1]} : vector<2x128xf32> to vector<2x32xf32>
    %362 = math.tanh %361 : vector<2x32xf32>
    %363 = vector.extract_strided_slice %323 {offsets = [0, 96], sizes = [2, 32], strides = [1, 1]} : vector<2x128xf32> to vector<2x32xf32>
    %364 = arith.negf %363 : vector<2x32xf32>
    %365 = math.exp %364 : vector<2x32xf32>
    %cst_72 = arith.constant 1.000000e+00 : f32
    %366 = vector.broadcast %cst_72 : f32 to vector<2x32xf32>
    %367 = arith.addf %366, %365 : vector<2x32xf32>
    %368 = arith.divf %366, %367 : vector<2x32xf32>
    %369 = arith.mulf %360, %311 : vector<2x32xf32>
    %370 = arith.mulf %354, %362 : vector<2x32xf32>
    %371 = arith.addf %369, %370 : vector<2x32xf32>
    %372 = math.tanh %371 : vector<2x32xf32>
    %373 = arith.mulf %368, %372 : vector<2x32xf32>
    %c10_73 = arith.constant 10 : index
    %c0_74 = arith.constant 0 : index
    %374 = vector.load %arg29[%c10_73, %c0_74] : memref<16x64xf32, #tpu.memory_space<vmem>>, vector<2x32xf32>
    tpu.vector_store %arg29[%c10_73, %c0_74], %348 {strides = array<i32>} : memref<16x64xf32, #tpu.memory_space<vmem>>, vector<2x32xf32>,
    %c4_75 = arith.constant 4 : index
    %c32_76 = arith.constant 32 : index
    %375 = vector.load %arg29[%c4_75, %c32_76] : memref<16x64xf32, #tpu.memory_space<vmem>>, vector<2x32xf32>
    tpu.vector_store %arg29[%c4_75, %c32_76], %373 {strides = array<i32>} : memref<16x64xf32, #tpu.memory_space<vmem>>, vector<2x32xf32>,
    %376 = tpu.concatenate %348, %373 in 1 : vector<2x32xf32>, vector<2x32xf32> -> vector<2x64xf32>
    %cst_77 = arith.constant dense<0.000000e+00> : vector<2x256xf32>
    %377 = tpu.matmul %376, %7, %cst_77 {dimension_numbers = #tpu.dot_dimension_numbers<[1], [0], [0], [1], [0, 0, 1, 1], [], []>} : vector<2x64xf32>, vector<64x256xf32>, vector<2x256xf32> -> vector<2x256xf32>
    %378 = vector.extract_strided_slice %377 {offsets = [0, 0], sizes = [2, 128], strides = [1, 1]} : vector<2x256xf32> to vector<2x128xf32>
    %379 = vector.extract_strided_slice %6 {offsets = [12, 0], sizes = [2, 128], strides = [1, 1]} : vector<16x256xf32> to vector<2x128xf32>
    %380 = arith.addf %378, %379 : vector<2x128xf32>
    %381 = vector.extract_strided_slice %377 {offsets = [0, 128], sizes = [2, 128], strides = [1, 1]} : vector<2x256xf32> to vector<2x128xf32>
    %382 = vector.extract_strided_slice %6 {offsets = [2, 128], sizes = [2, 128], strides = [1, 1]} : vector<16x256xf32> to vector<2x128xf32>
    %383 = arith.addf %381, %382 : vector<2x128xf32>
    %384 = vector.extract_strided_slice %380 {offsets = [0, 0], sizes = [2, 32], strides = [1, 1]} : vector<2x128xf32> to vector<2x32xf32>
    %385 = arith.negf %384 : vector<2x32xf32>
    %386 = math.exp %385 : vector<2x32xf32>
    %cst_78 = arith.constant 1.000000e+00 : f32
    %387 = vector.broadcast %cst_78 : f32 to vector<2x32xf32>
    %388 = arith.addf %387, %386 : vector<2x32xf32>
    %389 = arith.divf %387, %388 : vector<2x32xf32>
    %390 = vector.extract_strided_slice %380 {offsets = [0, 32], sizes = [2, 32], strides = [1, 1]} : vector<2x128xf32> to vector<2x32xf32>
    %391 = arith.negf %390 : vector<2x32xf32>
    %392 = math.exp %391 : vector<2x32xf32>
    %cst_79 = arith.constant 1.000000e+00 : f32
    %393 = vector.broadcast %cst_79 : f32 to vector<2x32xf32>
    %394 = arith.addf %393, %392 : vector<2x32xf32>
    %395 = arith.divf %393, %394 : vector<2x32xf32>
    %396 = vector.extract_strided_slice %380 {offsets = [0, 64], sizes = [2, 32], strides = [1, 1]} : vector<2x128xf32> to vector<2x32xf32>
    %397 = math.tanh %396 : vector<2x32xf32>
    %398 = vector.extract_strided_slice %380 {offsets = [0, 96], sizes = [2, 32], strides = [1, 1]} : vector<2x128xf32> to vector<2x32xf32>
    %399 = arith.negf %398 : vector<2x32xf32>
    %400 = math.exp %399 : vector<2x32xf32>
    %cst_80 = arith.constant 1.000000e+00 : f32
    %401 = vector.broadcast %cst_80 : f32 to vector<2x32xf32>
    %402 = arith.addf %401, %400 : vector<2x32xf32>
    %403 = arith.divf %401, %402 : vector<2x32xf32>
    %404 = arith.mulf %395, %346 : vector<2x32xf32>
    %405 = arith.mulf %389, %397 : vector<2x32xf32>
    %406 = arith.addf %404, %405 : vector<2x32xf32>
    %407 = math.tanh %406 : vector<2x32xf32>
    %408 = arith.mulf %403, %407 : vector<2x32xf32>
    %409 = vector.extract_strided_slice %383 {offsets = [0, 0], sizes = [2, 32], strides = [1, 1]} : vector<2x128xf32> to vector<2x32xf32>
    %410 = arith.negf %409 : vector<2x32xf32>
    %411 = math.exp %410 : vector<2x32xf32>
    %cst_81 = arith.constant 1.000000e+00 : f32
    %412 = vector.broadcast %cst_81 : f32 to vector<2x32xf32>
    %413 = arith.addf %412, %411 : vector<2x32xf32>
    %414 = arith.divf %412, %413 : vector<2x32xf32>
    %415 = vector.extract_strided_slice %383 {offsets = [0, 32], sizes = [2, 32], strides = [1, 1]} : vector<2x128xf32> to vector<2x32xf32>
    %416 = arith.negf %415 : vector<2x32xf32>
    %417 = math.exp %416 : vector<2x32xf32>
    %cst_82 = arith.constant 1.000000e+00 : f32
    %418 = vector.broadcast %cst_82 : f32 to vector<2x32xf32>
    %419 = arith.addf %418, %417 : vector<2x32xf32>
    %420 = arith.divf %418, %419 : vector<2x32xf32>
    %421 = vector.extract_strided_slice %383 {offsets = [0, 64], sizes = [2, 32], strides = [1, 1]} : vector<2x128xf32> to vector<2x32xf32>
    %422 = math.tanh %421 : vector<2x32xf32>
    %423 = vector.extract_strided_slice %383 {offsets = [0, 96], sizes = [2, 32], strides = [1, 1]} : vector<2x128xf32> to vector<2x32xf32>
    %424 = arith.negf %423 : vector<2x32xf32>
    %425 = math.exp %424 : vector<2x32xf32>
    %cst_83 = arith.constant 1.000000e+00 : f32
    %426 = vector.broadcast %cst_83 : f32 to vector<2x32xf32>
    %427 = arith.addf %426, %425 : vector<2x32xf32>
    %428 = arith.divf %426, %427 : vector<2x32xf32>
    %429 = arith.mulf %420, %371 : vector<2x32xf32>
    %430 = arith.mulf %414, %422 : vector<2x32xf32>
    %431 = arith.addf %429, %430 : vector<2x32xf32>
    %432 = math.tanh %431 : vector<2x32xf32>
    %433 = arith.mulf %428, %432 : vector<2x32xf32>
    %c12_84 = arith.constant 12 : index
    %c0_85 = arith.constant 0 : index
    %434 = vector.load %arg29[%c12_84, %c0_85] : memref<16x64xf32, #tpu.memory_space<vmem>>, vector<2x32xf32>
    tpu.vector_store %arg29[%c12_84, %c0_85], %408 {strides = array<i32>} : memref<16x64xf32, #tpu.memory_space<vmem>>, vector<2x32xf32>,
    %c2_86 = arith.constant 2 : index
    %c32_87 = arith.constant 32 : index
    %435 = vector.load %arg29[%c2_86, %c32_87] : memref<16x64xf32, #tpu.memory_space<vmem>>, vector<2x32xf32>
    tpu.vector_store %arg29[%c2_86, %c32_87], %433 {strides = array<i32>} : memref<16x64xf32, #tpu.memory_space<vmem>>, vector<2x32xf32>,
    %436 = tpu.concatenate %408, %433 in 1 : vector<2x32xf32>, vector<2x32xf32> -> vector<2x64xf32>
    %cst_88 = arith.constant dense<0.000000e+00> : vector<2x256xf32>
    %437 = tpu.matmul %436, %7, %cst_88 {dimension_numbers = #tpu.dot_dimension_numbers<[1], [0], [0], [1], [0, 0, 1, 1], [], []>} : vector<2x64xf32>, vector<64x256xf32>, vector<2x256xf32> -> vector<2x256xf32>
    %438 = vector.extract_strided_slice %437 {offsets = [0, 0], sizes = [2, 128], strides = [1, 1]} : vector<2x256xf32> to vector<2x128xf32>
    %439 = vector.extract_strided_slice %6 {offsets = [14, 0], sizes = [2, 128], strides = [1, 1]} : vector<16x256xf32> to vector<2x128xf32>
    %440 = arith.addf %438, %439 : vector<2x128xf32>
    %441 = vector.extract_strided_slice %437 {offsets = [0, 128], sizes = [2, 128], strides = [1, 1]} : vector<2x256xf32> to vector<2x128xf32>
    %442 = vector.extract_strided_slice %6 {offsets = [0, 128], sizes = [2, 128], strides = [1, 1]} : vector<16x256xf32> to vector<2x128xf32>
    %443 = arith.addf %441, %442 : vector<2x128xf32>
    %444 = vector.extract_strided_slice %440 {offsets = [0, 0], sizes = [2, 32], strides = [1, 1]} : vector<2x128xf32> to vector<2x32xf32>
    %445 = arith.negf %444 : vector<2x32xf32>
    %446 = math.exp %445 : vector<2x32xf32>
    %cst_89 = arith.constant 1.000000e+00 : f32
    %447 = vector.broadcast %cst_89 : f32 to vector<2x32xf32>
    %448 = arith.addf %447, %446 : vector<2x32xf32>
    %449 = arith.divf %447, %448 : vector<2x32xf32>
    %450 = vector.extract_strided_slice %440 {offsets = [0, 32], sizes = [2, 32], strides = [1, 1]} : vector<2x128xf32> to vector<2x32xf32>
    %451 = arith.negf %450 : vector<2x32xf32>
    %452 = math.exp %451 : vector<2x32xf32>
    %cst_90 = arith.constant 1.000000e+00 : f32
    %453 = vector.broadcast %cst_90 : f32 to vector<2x32xf32>
    %454 = arith.addf %453, %452 : vector<2x32xf32>
    %455 = arith.divf %453, %454 : vector<2x32xf32>
    %456 = vector.extract_strided_slice %440 {offsets = [0, 64], sizes = [2, 32], strides = [1, 1]} : vector<2x128xf32> to vector<2x32xf32>
    %457 = math.tanh %456 : vector<2x32xf32>
    %458 = vector.extract_strided_slice %440 {offsets = [0, 96], sizes = [2, 32], strides = [1, 1]} : vector<2x128xf32> to vector<2x32xf32>
    %459 = arith.negf %458 : vector<2x32xf32>
    %460 = math.exp %459 : vector<2x32xf32>
    %cst_91 = arith.constant 1.000000e+00 : f32
    %461 = vector.broadcast %cst_91 : f32 to vector<2x32xf32>
    %462 = arith.addf %461, %460 : vector<2x32xf32>
    %463 = arith.divf %461, %462 : vector<2x32xf32>
    %464 = arith.mulf %455, %406 : vector<2x32xf32>
    %465 = arith.mulf %449, %457 : vector<2x32xf32>
    %466 = arith.addf %464, %465 : vector<2x32xf32>
    %467 = math.tanh %466 : vector<2x32xf32>
    %468 = arith.mulf %463, %467 : vector<2x32xf32>
    %469 = vector.extract_strided_slice %443 {offsets = [0, 0], sizes = [2, 32], strides = [1, 1]} : vector<2x128xf32> to vector<2x32xf32>
    %470 = arith.negf %469 : vector<2x32xf32>
    %471 = math.exp %470 : vector<2x32xf32>
    %cst_92 = arith.constant 1.000000e+00 : f32
    %472 = vector.broadcast %cst_92 : f32 to vector<2x32xf32>
    %473 = arith.addf %472, %471 : vector<2x32xf32>
    %474 = arith.divf %472, %473 : vector<2x32xf32>
    %475 = vector.extract_strided_slice %443 {offsets = [0, 32], sizes = [2, 32], strides = [1, 1]} : vector<2x128xf32> to vector<2x32xf32>
    %476 = arith.negf %475 : vector<2x32xf32>
    %477 = math.exp %476 : vector<2x32xf32>
    %cst_93 = arith.constant 1.000000e+00 : f32
    %478 = vector.broadcast %cst_93 : f32 to vector<2x32xf32>
    %479 = arith.addf %478, %477 : vector<2x32xf32>
    %480 = arith.divf %478, %479 : vector<2x32xf32>
    %481 = vector.extract_strided_slice %443 {offsets = [0, 64], sizes = [2, 32], strides = [1, 1]} : vector<2x128xf32> to vector<2x32xf32>
    %482 = math.tanh %481 : vector<2x32xf32>
    %483 = vector.extract_strided_slice %443 {offsets = [0, 96], sizes = [2, 32], strides = [1, 1]} : vector<2x128xf32> to vector<2x32xf32>
    %484 = arith.negf %483 : vector<2x32xf32>
    %485 = math.exp %484 : vector<2x32xf32>
    %cst_94 = arith.constant 1.000000e+00 : f32
    %486 = vector.broadcast %cst_94 : f32 to vector<2x32xf32>
    %487 = arith.addf %486, %485 : vector<2x32xf32>
    %488 = arith.divf %486, %487 : vector<2x32xf32>
    %489 = arith.mulf %480, %431 : vector<2x32xf32>
    %490 = arith.mulf %474, %482 : vector<2x32xf32>
    %491 = arith.addf %489, %490 : vector<2x32xf32>
    %492 = math.tanh %491 : vector<2x32xf32>
    %493 = arith.mulf %488, %492 : vector<2x32xf32>
    %c14_95 = arith.constant 14 : index
    %c0_96 = arith.constant 0 : index
    %494 = vector.load %arg29[%c14_95, %c0_96] : memref<16x64xf32, #tpu.memory_space<vmem>>, vector<2x32xf32>
    tpu.vector_store %arg29[%c14_95, %c0_96], %468 {strides = array<i32>} : memref<16x64xf32, #tpu.memory_space<vmem>>, vector<2x32xf32>,
    %c0_97 = arith.constant 0 : index
    %c32_98 = arith.constant 32 : index
    %495 = vector.load %arg29[%c0_97, %c32_98] : memref<16x64xf32, #tpu.memory_space<vmem>>, vector<2x32xf32>
    tpu.vector_store %arg29[%c0_97, %c32_98], %493 {strides = array<i32>} : memref<16x64xf32, #tpu.memory_space<vmem>>, vector<2x32xf32>,
    %c0_99 = arith.constant 0 : index
    %c0_100 = arith.constant 0 : index
    %496 = vector.load %arg29[%c0_99, %c0_100] : memref<16x64xf32, #tpu.memory_space<vmem>>, vector<16x64xf32>
    %497 = vector.shape_cast %496 : vector<16x64xf32> to vector<8x2x64xf32>
    %cst_101 = arith.constant dense<0.000000e+00> : vector<2x64xf32>
    %498 = vector.multi_reduction <add>, %497, %cst_101 [0] : vector<8x2x64xf32> to vector<2x64xf32>
    %cst_102 = arith.constant 8.000000e+00 : f32
    %499 = vector.broadcast %cst_102 : f32 to vector<2x64xf32>
    %500 = arith.divf %498, %499 : vector<2x64xf32>
    %501 = vector.shape_cast %497 : vector<8x2x64xf32> to vector<16x64xf32>
    %c0_103 = arith.constant 0 : index
    %c0_104 = arith.constant 0 : index
    %502 = vector.load %arg6[%c0_103, %c0_104] : memref<64x16xf32, #tpu.memory_space<vmem>>, vector<64x16xf32>
    %cst_105 = arith.constant dense<0.000000e+00> : vector<16x16xf32>
    %503 = tpu.matmul %501, %502, %cst_105 {dimension_numbers = #tpu.dot_dimension_numbers<[1], [0], [0], [1], [0, 0, 1, 1], [], []>} : vector<16x64xf32>, vector<64x16xf32>, vector<16x16xf32> -> vector<16x16xf32>
    %504 = math.tanh %503 : vector<16x16xf32>
    %c0_106 = arith.constant 0 : index
    %c0_107 = arith.constant 0 : index
    %505 = vector.load %arg7[%c0_106, %c0_107] : memref<16x3xf32, #tpu.memory_space<vmem>>, vector<16x3xf32>
    %cst_108 = arith.constant dense<0.000000e+00> : vector<16x3xf32>
    %506 = tpu.matmul %504, %505, %cst_108 {dimension_numbers = #tpu.dot_dimension_numbers<[1], [0], [0], [1], [0, 0, 1, 1], [], []>} : vector<16x16xf32>, vector<16x3xf32>, vector<16x3xf32> -> vector<16x3xf32>
    %507 = vector.shape_cast %506 : vector<16x3xf32> to vector<8x2x3xf32>
    %cst_109 = arith.constant dense<0xFF800000> : vector<8x3xf32>
    %508 = vector.multi_reduction <maximumf>, %507, %cst_109 [1] : vector<8x2x3xf32> to vector<8x3xf32>
    %509 = vector.shape_cast %508 : vector<8x3xf32> to vector<8x1x3xf32>
    %510 = vector.broadcast %509 : vector<8x1x3xf32> to vector<8x2x3xf32>
    %511 = arith.subf %507, %510 : vector<8x2x3xf32>
    %512 = math.exp %511 : vector<8x2x3xf32>
    %cst_110 = arith.constant dense<0.000000e+00> : vector<8x3xf32>
    %513 = vector.multi_reduction <add>, %512, %cst_110 [1] : vector<8x2x3xf32> to vector<8x3xf32>
    %514 = vector.shape_cast %513 : vector<8x3xf32> to vector<8x1x3xf32>
    %515 = vector.broadcast %514 : vector<8x1x3xf32> to vector<8x2x3xf32>
    %516 = arith.divf %512, %515 : vector<8x2x3xf32>
    %cst_111 = arith.constant dense<0.000000e+00> : vector<8x2xf32>
    %517 = vector.multi_reduction <add>, %516, %cst_111 [2] : vector<8x2x3xf32> to vector<8x2xf32>
    %cst_112 = arith.constant 3.000000e+00 : f32
    %518 = vector.broadcast %cst_112 : f32 to vector<8x2xf32>
    %519 = arith.divf %517, %518 : vector<8x2xf32>
    %520 = vector.shape_cast %519 : vector<8x2xf32> to vector<8x2x1xf32>
    %521 = vector.broadcast %520 : vector<8x2x1xf32> to vector<8x2x64xf32>
    %522 = arith.mulf %521, %497 : vector<8x2x64xf32>
    %cst_113 = arith.constant dense<0.000000e+00> : vector<2x64xf32>
    %523 = vector.multi_reduction <add>, %522, %cst_113 [0] : vector<8x2x64xf32> to vector<2x64xf32>
    %c0_114 = arith.constant 0 : index
    %c0_115 = arith.constant 0 : index
    %524 = vector.load %arg8[%c0_114, %c0_115] : memref<128x32xf32, #tpu.memory_space<vmem>>, vector<128x32xf32>
    %525 = vector.extract_strided_slice %524 {offsets = [0, 0], sizes = [64, 32], strides = [1, 1]} : vector<128x32xf32> to vector<64x32xf32>
    %cst_116 = arith.constant dense<0.000000e+00> : vector<2x32xf32>
    %526 = tpu.matmul %500, %525, %cst_116 {dimension_numbers = #tpu.dot_dimension_numbers<[1], [0], [0], [1], [0, 0, 1, 1], [], []>} : vector<2x64xf32>, vector<64x32xf32>, vector<2x32xf32> -> vector<2x32xf32>
    %527 = vector.extract_strided_slice %524 {offsets = [64, 0], sizes = [64, 32], strides = [1, 1]} : vector<128x32xf32> to vector<64x32xf32>
    %cst_117 = arith.constant dense<0.000000e+00> : vector<2x32xf32>
    %528 = tpu.matmul %523, %527, %cst_117 {dimension_numbers = #tpu.dot_dimension_numbers<[1], [0], [0], [1], [0, 0, 1, 1], [], []>} : vector<2x64xf32>, vector<64x32xf32>, vector<2x32xf32> -> vector<2x32xf32>
    %529 = arith.addf %526, %528 : vector<2x32xf32>
    %cst_118 = arith.constant 0.000000e+00 : f32
    %530 = vector.broadcast %cst_118 : f32 to vector<2x32xf32>
    %531 = arith.maximumf %529, %530 : vector<2x32xf32>
    %c0_119 = arith.constant 0 : index
    %c0_120 = arith.constant 0 : index
    %532 = vector.load %arg9[%c0_119, %c0_120] : memref<32x3xf32, #tpu.memory_space<vmem>>, vector<32x3xf32>
    %cst_121 = arith.constant dense<0.000000e+00> : vector<2x3xf32>
    %533 = tpu.matmul %531, %532, %cst_121 {dimension_numbers = #tpu.dot_dimension_numbers<[1], [0], [0], [1], [0, 0, 1, 1], [], []>} : vector<2x32xf32>, vector<32x3xf32>, vector<2x3xf32> -> vector<2x3xf32>
    %c0_122 = arith.constant 0 : index
    %c0_123 = arith.constant 0 : index
    %534 = vector.load %arg24[%c0_122, %c0_123] : memref<2x3xf32, #tpu.memory_space<vmem>>, vector<2x3xf32>
    tpu.vector_store %arg24[%c0_122, %c0_123], %533 {strides = array<i32>} : memref<2x3xf32, #tpu.memory_space<vmem>>, vector<2x3xf32>,
    %535 = arith.negf %533 : vector<2x3xf32>
    %536 = math.exp %535 : vector<2x3xf32>
    %cst_124 = arith.constant 1.000000e+00 : f32
    %537 = vector.broadcast %cst_124 : f32 to vector<2x3xf32>
    %538 = arith.addf %537, %536 : vector<2x3xf32>
    %539 = arith.divf %537, %538 : vector<2x3xf32>
    %540 = vector.shape_cast %539 : vector<2x3xf32> to vector<1x2x3xf32>
    %541 = vector.broadcast %540 : vector<1x2x3xf32> to vector<8x2x3xf32>
    %542 = arith.mulf %516, %541 : vector<8x2x3xf32>
    %cst_125 = arith.constant dense<0xFF800000> : vector<8x3xf32>
    %543 = vector.multi_reduction <maximumf>, %542, %cst_125 [1] : vector<8x2x3xf32> to vector<8x3xf32>
    %544 = vector.shape_cast %543 : vector<8x3xf32> to vector<8x1x3xf32>
    %545 = vector.broadcast %544 : vector<8x1x3xf32> to vector<8x2x3xf32>
    %546 = arith.subf %542, %545 : vector<8x2x3xf32>
    %547 = math.exp %546 : vector<8x2x3xf32>
    %cst_126 = arith.constant dense<0.000000e+00> : vector<8x3xf32>
    %548 = vector.multi_reduction <add>, %547, %cst_126 [1] : vector<8x2x3xf32> to vector<8x3xf32>
    %549 = vector.shape_cast %548 : vector<8x3xf32> to vector<8x1x3xf32>
    %550 = vector.broadcast %549 : vector<8x1x3xf32> to vector<8x2x3xf32>
    %551 = arith.divf %547, %550 : vector<8x2x3xf32>
    %cst_127 = arith.constant dense<0.000000e+00> : vector<8x2xf32>
    %552 = vector.multi_reduction <add>, %551, %cst_127 [2] : vector<8x2x3xf32> to vector<8x2xf32>
    %cst_128 = arith.constant 3.000000e+00 : f32
    %553 = vector.broadcast %cst_128 : f32 to vector<8x2xf32>
    %554 = arith.divf %552, %553 : vector<8x2xf32>
    %555 = vector.shape_cast %554 : vector<8x2xf32> to vector<8x2x1xf32>
    %556 = vector.broadcast %555 : vector<8x2x1xf32> to vector<8x2x64xf32>
    %557 = arith.mulf %497, %556 : vector<8x2x64xf32>
    %558 = vector.shape_cast %557 : vector<8x2x64xf32> to vector<16x64xf32>
    %c0_129 = arith.constant 0 : index
    %c0_130 = arith.constant 0 : index
    %559 = vector.load %arg10[%c0_129, %c0_130] : memref<64x16xf32, #tpu.memory_space<vmem>>, vector<64x16xf32>
    %cst_131 = arith.constant dense<0.000000e+00> : vector<16x16xf32>
    %560 = tpu.matmul %558, %559, %cst_131 {dimension_numbers = #tpu.dot_dimension_numbers<[1], [0], [0], [1], [0, 0, 1, 1], [], []>} : vector<16x64xf32>, vector<64x16xf32>, vector<16x16xf32> -> vector<16x16xf32>
    %561 = math.tanh %560 : vector<16x16xf32>
    %c0_132 = arith.constant 0 : index
    %c0_133 = arith.constant 0 : index
    %562 = vector.load %arg11[%c0_132, %c0_133] : memref<16x4xf32, #tpu.memory_space<vmem>>, vector<16x4xf32>
    %cst_134 = arith.constant dense<0.000000e+00> : vector<16x4xf32>
    %563 = tpu.matmul %561, %562, %cst_134 {dimension_numbers = #tpu.dot_dimension_numbers<[1], [0], [0], [1], [0, 0, 1, 1], [], []>} : vector<16x16xf32>, vector<16x4xf32>, vector<16x4xf32> -> vector<16x4xf32>
    %564 = vector.shape_cast %563 : vector<16x4xf32> to vector<8x2x4xf32>
    %cst_135 = arith.constant dense<0xFF800000> : vector<8x4xf32>
    %565 = vector.multi_reduction <maximumf>, %564, %cst_135 [1] : vector<8x2x4xf32> to vector<8x4xf32>
    %566 = vector.shape_cast %565 : vector<8x4xf32> to vector<8x1x4xf32>
    %567 = vector.broadcast %566 : vector<8x1x4xf32> to vector<8x2x4xf32>
    %568 = arith.subf %564, %567 : vector<8x2x4xf32>
    %569 = math.exp %568 : vector<8x2x4xf32>
    %cst_136 = arith.constant dense<0.000000e+00> : vector<8x4xf32>
    %570 = vector.multi_reduction <add>, %569, %cst_136 [1] : vector<8x2x4xf32> to vector<8x4xf32>
    %571 = vector.shape_cast %570 : vector<8x4xf32> to vector<8x1x4xf32>
    %572 = vector.broadcast %571 : vector<8x1x4xf32> to vector<8x2x4xf32>
    %573 = arith.divf %569, %572 : vector<8x2x4xf32>
    %cst_137 = arith.constant dense<0.000000e+00> : vector<8x2xf32>
    %574 = vector.multi_reduction <add>, %573, %cst_137 [2] : vector<8x2x4xf32> to vector<8x2xf32>
    %cst_138 = arith.constant 4.000000e+00 : f32
    %575 = vector.broadcast %cst_138 : f32 to vector<8x2xf32>
    %576 = arith.divf %574, %575 : vector<8x2xf32>
    %577 = vector.shape_cast %576 : vector<8x2xf32> to vector<8x2x1xf32>
    %578 = vector.broadcast %577 : vector<8x2x1xf32> to vector<8x2x64xf32>
    %579 = arith.mulf %578, %557 : vector<8x2x64xf32>
    %cst_139 = arith.constant dense<0.000000e+00> : vector<2x64xf32>
    %580 = vector.multi_reduction <add>, %579, %cst_139 [0] : vector<8x2x64xf32> to vector<2x64xf32>
    %c0_140 = arith.constant 0 : index
    %c0_141 = arith.constant 0 : index
    %581 = vector.load %arg12[%c0_140, %c0_141] : memref<128x32xf32, #tpu.memory_space<vmem>>, vector<128x32xf32>
    %582 = vector.extract_strided_slice %581 {offsets = [0, 0], sizes = [64, 32], strides = [1, 1]} : vector<128x32xf32> to vector<64x32xf32>
    %cst_142 = arith.constant dense<0.000000e+00> : vector<2x32xf32>
    %583 = tpu.matmul %500, %582, %cst_142 {dimension_numbers = #tpu.dot_dimension_numbers<[1], [0], [0], [1], [0, 0, 1, 1], [], []>} : vector<2x64xf32>, vector<64x32xf32>, vector<2x32xf32> -> vector<2x32xf32>
    %584 = vector.extract_strided_slice %581 {offsets = [64, 0], sizes = [64, 32], strides = [1, 1]} : vector<128x32xf32> to vector<64x32xf32>
    %cst_143 = arith.constant dense<0.000000e+00> : vector<2x32xf32>
    %585 = tpu.matmul %580, %584, %cst_143 {dimension_numbers = #tpu.dot_dimension_numbers<[1], [0], [0], [1], [0, 0, 1, 1], [], []>} : vector<2x64xf32>, vector<64x32xf32>, vector<2x32xf32> -> vector<2x32xf32>
    %586 = arith.addf %583, %585 : vector<2x32xf32>
    %cst_144 = arith.constant 0.000000e+00 : f32
    %587 = vector.broadcast %cst_144 : f32 to vector<2x32xf32>
    %588 = arith.maximumf %586, %587 : vector<2x32xf32>
    %c0_145 = arith.constant 0 : index
    %c0_146 = arith.constant 0 : index
    %589 = vector.load %arg13[%c0_145, %c0_146] : memref<32x4xf32, #tpu.memory_space<vmem>>, vector<32x4xf32>
    %cst_147 = arith.constant dense<0.000000e+00> : vector<2x4xf32>
    %590 = tpu.matmul %588, %589, %cst_147 {dimension_numbers = #tpu.dot_dimension_numbers<[1], [0], [0], [1], [0, 0, 1, 1], [], []>} : vector<2x32xf32>, vector<32x4xf32>, vector<2x4xf32> -> vector<2x4xf32>
    %c0_148 = arith.constant 0 : index
    %c0_149 = arith.constant 0 : index
    %591 = vector.load %arg25[%c0_148, %c0_149] : memref<2x4xf32, #tpu.memory_space<vmem>>, vector<2x4xf32>
    tpu.vector_store %arg25[%c0_148, %c0_149], %590 {strides = array<i32>} : memref<2x4xf32, #tpu.memory_space<vmem>>, vector<2x4xf32>,
    %592 = arith.negf %590 : vector<2x4xf32>
    %593 = math.exp %592 : vector<2x4xf32>
    %cst_150 = arith.constant 1.000000e+00 : f32
    %594 = vector.broadcast %cst_150 : f32 to vector<2x4xf32>
    %595 = arith.addf %594, %593 : vector<2x4xf32>
    %596 = arith.divf %594, %595 : vector<2x4xf32>
    %597 = vector.shape_cast %596 : vector<2x4xf32> to vector<1x2x4xf32>
    %598 = vector.broadcast %597 : vector<1x2x4xf32> to vector<8x2x4xf32>
    %599 = arith.mulf %573, %598 : vector<8x2x4xf32>
    %cst_151 = arith.constant dense<0xFF800000> : vector<8x4xf32>
    %600 = vector.multi_reduction <maximumf>, %599, %cst_151 [1] : vector<8x2x4xf32> to vector<8x4xf32>
    %601 = vector.shape_cast %600 : vector<8x4xf32> to vector<8x1x4xf32>
    %602 = vector.broadcast %601 : vector<8x1x4xf32> to vector<8x2x4xf32>
    %603 = arith.subf %599, %602 : vector<8x2x4xf32>
    %604 = math.exp %603 : vector<8x2x4xf32>
    %cst_152 = arith.constant dense<0.000000e+00> : vector<8x4xf32>
    %605 = vector.multi_reduction <add>, %604, %cst_152 [1] : vector<8x2x4xf32> to vector<8x4xf32>
    %606 = vector.shape_cast %605 : vector<8x4xf32> to vector<8x1x4xf32>
    %607 = vector.broadcast %606 : vector<8x1x4xf32> to vector<8x2x4xf32>
    %608 = arith.divf %604, %607 : vector<8x2x4xf32>
    %cst_153 = arith.constant dense<0.000000e+00> : vector<8x2xf32>
    %609 = vector.multi_reduction <add>, %608, %cst_153 [2] : vector<8x2x4xf32> to vector<8x2xf32>
    %cst_154 = arith.constant 4.000000e+00 : f32
    %610 = vector.broadcast %cst_154 : f32 to vector<8x2xf32>
    %611 = arith.divf %609, %610 : vector<8x2xf32>
    %612 = vector.shape_cast %611 : vector<8x2xf32> to vector<8x2x1xf32>
    %613 = vector.broadcast %612 : vector<8x2x1xf32> to vector<8x2x64xf32>
    %614 = arith.mulf %497, %613 : vector<8x2x64xf32>
    %615 = vector.shape_cast %614 : vector<8x2x64xf32> to vector<16x64xf32>
    %c0_155 = arith.constant 0 : index
    %c0_156 = arith.constant 0 : index
    %616 = vector.load %arg14[%c0_155, %c0_156] : memref<64x16xf32, #tpu.memory_space<vmem>>, vector<64x16xf32>
    %cst_157 = arith.constant dense<0.000000e+00> : vector<16x16xf32>
    %617 = tpu.matmul %615, %616, %cst_157 {dimension_numbers = #tpu.dot_dimension_numbers<[1], [0], [0], [1], [0, 0, 1, 1], [], []>} : vector<16x64xf32>, vector<64x16xf32>, vector<16x16xf32> -> vector<16x16xf32>
    %618 = math.tanh %617 : vector<16x16xf32>
    %c0_158 = arith.constant 0 : index
    %c0_159 = arith.constant 0 : index
    %619 = vector.load %arg15[%c0_158, %c0_159] : memref<16x5xf32, #tpu.memory_space<vmem>>, vector<16x5xf32>
    %cst_160 = arith.constant dense<0.000000e+00> : vector<16x5xf32>
    %620 = tpu.matmul %618, %619, %cst_160 {dimension_numbers = #tpu.dot_dimension_numbers<[1], [0], [0], [1], [0, 0, 1, 1], [], []>} : vector<16x16xf32>, vector<16x5xf32>, vector<16x5xf32> -> vector<16x5xf32>
    %621 = vector.shape_cast %620 : vector<16x5xf32> to vector<8x2x5xf32>
    %cst_161 = arith.constant dense<0xFF800000> : vector<8x5xf32>
    %622 = vector.multi_reduction <maximumf>, %621, %cst_161 [1] : vector<8x2x5xf32> to vector<8x5xf32>
    %623 = vector.shape_cast %622 : vector<8x5xf32> to vector<8x1x5xf32>
    %624 = vector.broadcast %623 : vector<8x1x5xf32> to vector<8x2x5xf32>
    %625 = arith.subf %621, %624 : vector<8x2x5xf32>
    %626 = math.exp %625 : vector<8x2x5xf32>
    %cst_162 = arith.constant dense<0.000000e+00> : vector<8x5xf32>
    %627 = vector.multi_reduction <add>, %626, %cst_162 [1] : vector<8x2x5xf32> to vector<8x5xf32>
    %628 = vector.shape_cast %627 : vector<8x5xf32> to vector<8x1x5xf32>
    %629 = vector.broadcast %628 : vector<8x1x5xf32> to vector<8x2x5xf32>
    %630 = arith.divf %626, %629 : vector<8x2x5xf32>
    %cst_163 = arith.constant dense<0.000000e+00> : vector<8x2xf32>
    %631 = vector.multi_reduction <add>, %630, %cst_163 [2] : vector<8x2x5xf32> to vector<8x2xf32>
    %cst_164 = arith.constant 5.000000e+00 : f32
    %632 = vector.broadcast %cst_164 : f32 to vector<8x2xf32>
    %633 = arith.divf %631, %632 : vector<8x2xf32>
    %634 = vector.shape_cast %633 : vector<8x2xf32> to vector<8x2x1xf32>
    %635 = vector.broadcast %634 : vector<8x2x1xf32> to vector<8x2x64xf32>
    %636 = arith.mulf %635, %614 : vector<8x2x64xf32>
    %cst_165 = arith.constant dense<0.000000e+00> : vector<2x64xf32>
    %637 = vector.multi_reduction <add>, %636, %cst_165 [0] : vector<8x2x64xf32> to vector<2x64xf32>
    %c0_166 = arith.constant 0 : index
    %c0_167 = arith.constant 0 : index
    %638 = vector.load %arg16[%c0_166, %c0_167] : memref<128x32xf32, #tpu.memory_space<vmem>>, vector<128x32xf32>
    %639 = vector.extract_strided_slice %638 {offsets = [0, 0], sizes = [64, 32], strides = [1, 1]} : vector<128x32xf32> to vector<64x32xf32>
    %cst_168 = arith.constant dense<0.000000e+00> : vector<2x32xf32>
    %640 = tpu.matmul %500, %639, %cst_168 {dimension_numbers = #tpu.dot_dimension_numbers<[1], [0], [0], [1], [0, 0, 1, 1], [], []>} : vector<2x64xf32>, vector<64x32xf32>, vector<2x32xf32> -> vector<2x32xf32>
    %641 = vector.extract_strided_slice %638 {offsets = [64, 0], sizes = [64, 32], strides = [1, 1]} : vector<128x32xf32> to vector<64x32xf32>
    %cst_169 = arith.constant dense<0.000000e+00> : vector<2x32xf32>
    %642 = tpu.matmul %637, %641, %cst_169 {dimension_numbers = #tpu.dot_dimension_numbers<[1], [0], [0], [1], [0, 0, 1, 1], [], []>} : vector<2x64xf32>, vector<64x32xf32>, vector<2x32xf32> -> vector<2x32xf32>
    %643 = arith.addf %640, %642 : vector<2x32xf32>
    %cst_170 = arith.constant 0.000000e+00 : f32
    %644 = vector.broadcast %cst_170 : f32 to vector<2x32xf32>
    %645 = arith.maximumf %643, %644 : vector<2x32xf32>
    %c0_171 = arith.constant 0 : index
    %c0_172 = arith.constant 0 : index
    %646 = vector.load %arg17[%c0_171, %c0_172] : memref<32x5xf32, #tpu.memory_space<vmem>>, vector<32x5xf32>
    %cst_173 = arith.constant dense<0.000000e+00> : vector<2x5xf32>
    %647 = tpu.matmul %645, %646, %cst_173 {dimension_numbers = #tpu.dot_dimension_numbers<[1], [0], [0], [1], [0, 0, 1, 1], [], []>} : vector<2x32xf32>, vector<32x5xf32>, vector<2x5xf32> -> vector<2x5xf32>
    %c0_174 = arith.constant 0 : index
    %c0_175 = arith.constant 0 : index
    %648 = vector.load %arg26[%c0_174, %c0_175] : memref<2x5xf32, #tpu.memory_space<vmem>>, vector<2x5xf32>
    tpu.vector_store %arg26[%c0_174, %c0_175], %647 {strides = array<i32>} : memref<2x5xf32, #tpu.memory_space<vmem>>, vector<2x5xf32>,
    %649 = arith.negf %647 : vector<2x5xf32>
    %650 = math.exp %649 : vector<2x5xf32>
    %cst_176 = arith.constant 1.000000e+00 : f32
    %651 = vector.broadcast %cst_176 : f32 to vector<2x5xf32>
    %652 = arith.addf %651, %650 : vector<2x5xf32>
    %653 = arith.divf %651, %652 : vector<2x5xf32>
    %654 = vector.shape_cast %653 : vector<2x5xf32> to vector<1x2x5xf32>
    %655 = vector.broadcast %654 : vector<1x2x5xf32> to vector<8x2x5xf32>
    %656 = arith.mulf %630, %655 : vector<8x2x5xf32>
    %cst_177 = arith.constant dense<0xFF800000> : vector<8x5xf32>
    %657 = vector.multi_reduction <maximumf>, %656, %cst_177 [1] : vector<8x2x5xf32> to vector<8x5xf32>
    %658 = vector.shape_cast %657 : vector<8x5xf32> to vector<8x1x5xf32>
    %659 = vector.broadcast %658 : vector<8x1x5xf32> to vector<8x2x5xf32>
    %660 = arith.subf %656, %659 : vector<8x2x5xf32>
    %661 = math.exp %660 : vector<8x2x5xf32>
    %cst_178 = arith.constant dense<0.000000e+00> : vector<8x5xf32>
    %662 = vector.multi_reduction <add>, %661, %cst_178 [1] : vector<8x2x5xf32> to vector<8x5xf32>
    %663 = vector.shape_cast %662 : vector<8x5xf32> to vector<8x1x5xf32>
    %664 = vector.broadcast %663 : vector<8x1x5xf32> to vector<8x2x5xf32>
    %665 = arith.divf %661, %664 : vector<8x2x5xf32>
    %cst_179 = arith.constant dense<0.000000e+00> : vector<8x2xf32>
    %666 = vector.multi_reduction <add>, %665, %cst_179 [2] : vector<8x2x5xf32> to vector<8x2xf32>
    %cst_180 = arith.constant 5.000000e+00 : f32
    %667 = vector.broadcast %cst_180 : f32 to vector<8x2xf32>
    %668 = arith.divf %666, %667 : vector<8x2xf32>
    %669 = vector.shape_cast %668 : vector<8x2xf32> to vector<8x2x1xf32>
    %670 = vector.broadcast %669 : vector<8x2x1xf32> to vector<8x2x64xf32>
    %671 = arith.mulf %497, %670 : vector<8x2x64xf32>
    %672 = vector.shape_cast %671 : vector<8x2x64xf32> to vector<16x64xf32>
    %c0_181 = arith.constant 0 : index
    %c0_182 = arith.constant 0 : index
    %673 = vector.load %arg18[%c0_181, %c0_182] : memref<64x16xf32, #tpu.memory_space<vmem>>, vector<64x16xf32>
    %cst_183 = arith.constant dense<0.000000e+00> : vector<16x16xf32>
    %674 = tpu.matmul %672, %673, %cst_183 {dimension_numbers = #tpu.dot_dimension_numbers<[1], [0], [0], [1], [0, 0, 1, 1], [], []>} : vector<16x64xf32>, vector<64x16xf32>, vector<16x16xf32> -> vector<16x16xf32>
    %675 = math.tanh %674 : vector<16x16xf32>
    %c0_184 = arith.constant 0 : index
    %c0_185 = arith.constant 0 : index
    %676 = vector.load %arg19[%c0_184, %c0_185] : memref<16x6xf32, #tpu.memory_space<vmem>>, vector<16x6xf32>
    %cst_186 = arith.constant dense<0.000000e+00> : vector<16x6xf32>
    %677 = tpu.matmul %675, %676, %cst_186 {dimension_numbers = #tpu.dot_dimension_numbers<[1], [0], [0], [1], [0, 0, 1, 1], [], []>} : vector<16x16xf32>, vector<16x6xf32>, vector<16x6xf32> -> vector<16x6xf32>
    %678 = vector.shape_cast %677 : vector<16x6xf32> to vector<8x2x6xf32>
    %cst_187 = arith.constant dense<0xFF800000> : vector<8x6xf32>
    %679 = vector.multi_reduction <maximumf>, %678, %cst_187 [1] : vector<8x2x6xf32> to vector<8x6xf32>
    %680 = vector.shape_cast %679 : vector<8x6xf32> to vector<8x1x6xf32>
    %681 = vector.broadcast %680 : vector<8x1x6xf32> to vector<8x2x6xf32>
    %682 = arith.subf %678, %681 : vector<8x2x6xf32>
    %683 = math.exp %682 : vector<8x2x6xf32>
    %cst_188 = arith.constant dense<0.000000e+00> : vector<8x6xf32>
    %684 = vector.multi_reduction <add>, %683, %cst_188 [1] : vector<8x2x6xf32> to vector<8x6xf32>
    %685 = vector.shape_cast %684 : vector<8x6xf32> to vector<8x1x6xf32>
    %686 = vector.broadcast %685 : vector<8x1x6xf32> to vector<8x2x6xf32>
    %687 = arith.divf %683, %686 : vector<8x2x6xf32>
    %cst_189 = arith.constant dense<0.000000e+00> : vector<8x2xf32>
    %688 = vector.multi_reduction <add>, %687, %cst_189 [2] : vector<8x2x6xf32> to vector<8x2xf32>
    %cst_190 = arith.constant 6.000000e+00 : f32
    %689 = vector.broadcast %cst_190 : f32 to vector<8x2xf32>
    %690 = arith.divf %688, %689 : vector<8x2xf32>
    %691 = vector.shape_cast %690 : vector<8x2xf32> to vector<8x2x1xf32>
    %692 = vector.broadcast %691 : vector<8x2x1xf32> to vector<8x2x64xf32>
    %693 = arith.mulf %692, %671 : vector<8x2x64xf32>
    %cst_191 = arith.constant dense<0.000000e+00> : vector<2x64xf32>
    %694 = vector.multi_reduction <add>, %693, %cst_191 [0] : vector<8x2x64xf32> to vector<2x64xf32>
    %c0_192 = arith.constant 0 : index
    %c0_193 = arith.constant 0 : index
    %695 = vector.load %arg20[%c0_192, %c0_193] : memref<128x32xf32, #tpu.memory_space<vmem>>, vector<128x32xf32>
    %696 = vector.extract_strided_slice %695 {offsets = [0, 0], sizes = [64, 32], strides = [1, 1]} : vector<128x32xf32> to vector<64x32xf32>
    %cst_194 = arith.constant dense<0.000000e+00> : vector<2x32xf32>
    %697 = tpu.matmul %500, %696, %cst_194 {dimension_numbers = #tpu.dot_dimension_numbers<[1], [0], [0], [1], [0, 0, 1, 1], [], []>} : vector<2x64xf32>, vector<64x32xf32>, vector<2x32xf32> -> vector<2x32xf32>
    %698 = vector.extract_strided_slice %695 {offsets = [64, 0], sizes = [64, 32], strides = [1, 1]} : vector<128x32xf32> to vector<64x32xf32>
    %cst_195 = arith.constant dense<0.000000e+00> : vector<2x32xf32>
    %699 = tpu.matmul %694, %698, %cst_195 {dimension_numbers = #tpu.dot_dimension_numbers<[1], [0], [0], [1], [0, 0, 1, 1], [], []>} : vector<2x64xf32>, vector<64x32xf32>, vector<2x32xf32> -> vector<2x32xf32>
    %700 = arith.addf %697, %699 : vector<2x32xf32>
    %cst_196 = arith.constant 0.000000e+00 : f32
    %701 = vector.broadcast %cst_196 : f32 to vector<2x32xf32>
    %702 = arith.maximumf %700, %701 : vector<2x32xf32>
    %c0_197 = arith.constant 0 : index
    %c0_198 = arith.constant 0 : index
    %703 = vector.load %arg21[%c0_197, %c0_198] : memref<32x6xf32, #tpu.memory_space<vmem>>, vector<32x6xf32>
    %cst_199 = arith.constant dense<0.000000e+00> : vector<2x6xf32>
    %704 = tpu.matmul %702, %703, %cst_199 {dimension_numbers = #tpu.dot_dimension_numbers<[1], [0], [0], [1], [0, 0, 1, 1], [], []>} : vector<2x32xf32>, vector<32x6xf32>, vector<2x6xf32> -> vector<2x6xf32>
    %c0_200 = arith.constant 0 : index
    %c0_201 = arith.constant 0 : index
    %705 = vector.load %arg27[%c0_200, %c0_201] : memref<2x6xf32, #tpu.memory_space<vmem>>, vector<2x6xf32>
    tpu.vector_store %arg27[%c0_200, %c0_201], %704 {strides = array<i32>} : memref<2x6xf32, #tpu.memory_space<vmem>>, vector<2x6xf32>,
    %c0_202 = arith.constant 0 : index
    %c0_203 = arith.constant 0 : index
    %706 = vector.load %arg22[%c0_202, %c0_203] : memref<128x32xf32, #tpu.memory_space<vmem>>, vector<128x32xf32>
    %707 = vector.extract_strided_slice %706 {offsets = [0, 0], sizes = [32, 32], strides = [1, 1]} : vector<128x32xf32> to vector<32x32xf32>
    %cst_204 = arith.constant dense<0.000000e+00> : vector<2x32xf32>
    %708 = tpu.matmul %531, %707, %cst_204 {dimension_numbers = #tpu.dot_dimension_numbers<[1], [0], [0], [1], [0, 0, 1, 1], [], []>} : vector<2x32xf32>, vector<32x32xf32>, vector<2x32xf32> -> vector<2x32xf32>
    %709 = vector.extract_strided_slice %706 {offsets = [32, 0], sizes = [32, 32], strides = [1, 1]} : vector<128x32xf32> to vector<32x32xf32>
    %cst_205 = arith.constant dense<0.000000e+00> : vector<2x32xf32>
    %710 = tpu.matmul %588, %709, %cst_205 {dimension_numbers = #tpu.dot_dimension_numbers<[1], [0], [0], [1], [0, 0, 1, 1], [], []>} : vector<2x32xf32>, vector<32x32xf32>, vector<2x32xf32> -> vector<2x32xf32>
    %711 = arith.addf %708, %710 : vector<2x32xf32>
    %712 = vector.extract_strided_slice %706 {offsets = [64, 0], sizes = [32, 32], strides = [1, 1]} : vector<128x32xf32> to vector<32x32xf32>
    %cst_206 = arith.constant dense<0.000000e+00> : vector<2x32xf32>
    %713 = tpu.matmul %645, %712, %cst_206 {dimension_numbers = #tpu.dot_dimension_numbers<[1], [0], [0], [1], [0, 0, 1, 1], [], []>} : vector<2x32xf32>, vector<32x32xf32>, vector<2x32xf32> -> vector<2x32xf32>
    %714 = arith.addf %711, %713 : vector<2x32xf32>
    %715 = vector.extract_strided_slice %706 {offsets = [96, 0], sizes = [32, 32], strides = [1, 1]} : vector<128x32xf32> to vector<32x32xf32>
    %cst_207 = arith.constant dense<0.000000e+00> : vector<2x32xf32>
    %716 = tpu.matmul %702, %715, %cst_207 {dimension_numbers = #tpu.dot_dimension_numbers<[1], [0], [0], [1], [0, 0, 1, 1], [], []>} : vector<2x32xf32>, vector<32x32xf32>, vector<2x32xf32> -> vector<2x32xf32>
    %717 = arith.addf %714, %716 : vector<2x32xf32>
    %cst_208 = arith.constant 0.000000e+00 : f32
    %718 = vector.broadcast %cst_208 : f32 to vector<2x32xf32>
    %719 = arith.maximumf %717, %718 : vector<2x32xf32>
    %c0_209 = arith.constant 0 : index
    %c0_210 = arith.constant 0 : index
    %720 = vector.load %arg23[%c0_209, %c0_210] : memref<32x18xf32, #tpu.memory_space<vmem>>, vector<32x18xf32>
    %cst_211 = arith.constant dense<0.000000e+00> : vector<2x18xf32>
    %721 = tpu.matmul %719, %720, %cst_211 {dimension_numbers = #tpu.dot_dimension_numbers<[1], [0], [0], [1], [0, 0, 1, 1], [], []>} : vector<2x32xf32>, vector<32x18xf32>, vector<2x18xf32> -> vector<2x18xf32>
    %c0_212 = arith.constant 0 : index
    %c0_213 = arith.constant 0 : index
    %722 = vector.load %arg28[%c0_212, %c0_213] : memref<2x18xf32, #tpu.memory_space<vmem>>, vector<2x18xf32>
    tpu.vector_store %arg28[%c0_212, %c0_213], %721 {strides = array<i32>} : memref<2x18xf32, #tpu.memory_space<vmem>>, vector<2x18xf32>,
    return
  }
}

</mosaic_0001>

<bundles_post_ra>
// kernel: _lambda_.1
= control target key start
LH: loop header
LB: loop body
LE: loop exit
PB: predicated region body
PF: predicated region fallthrough
CT: control target
= control target key end

     0   :  { %s8121_s0 = inlined_call_operand.vmem [shape: f32[8,2,16], index: 0, kind: input, shape index: {}]   ;;  %s8122_s1 = inlined_call_operand.hbm [shape: f32[16,256], index: 1, kind: input, shape index: {}]   ;;  %s8123_s2 = inlined_call_operand.hbm [shape: f32[64,256], index: 2, kind: input, shape index: {}]   ;;  %s8124_s3 = inlined_call_operand.vmem [shape: f32[1,256], index: 3, kind: input, shape index: {}]   ;;  %s8125_s4 = inlined_call_operand.hbm [shape: f32[2,2,32], index: 4, kind: input, shape index: {}]   ;;  %s8126_s5 = inlined_call_operand.vmem [shape: f32[2,2,32], index: 5, kind: input, shape index: {}]   ;;  %s8127_s6 = inlined_call_operand.hbm [shape: f32[64,16], index: 6, kind: input, shape index: {}]   ;;  %s8128_s7 = inlined_call_operand.vmem [shape: f32[16,3], index: 7, kind: input, shape index: {}]   ;;  %s8129_s8 = inlined_call_operand.hbm [shape: f32[128,32], index: 8, kind: input, shape index: {}]   ;;  %s8130_s9 = inlined_call_operand.hbm [shape: f32[32,3], index: 9, kind: input, shape index: {}]   ;;  %s8131_s10 = inlined_call_operand.hbm [shape: f32[64,16], index: 10, kind: input, shape index: {}]   ;;  %s8132_s11 = inlined_call_operand.hbm [shape: f32[16,4], index: 11, kind: input, shape index: {}]   ;;  %s8133_s12 = inlined_call_operand.hbm [shape: f32[128,32], index: 12, kind: input, shape index: {}]   ;;  %s8134_s13 = inlined_call_operand.hbm [shape: f32[32,4], index: 13, kind: input, shape index: {}]   ;;  %s8135_s14 = inlined_call_operand.hbm [shape: f32[64,16], index: 14, kind: input, shape index: {}]   ;;  %s8136_s15 = inlined_call_operand.hbm [shape: f32[16,5], index: 15, kind: input, shape index: {}]   ;;  %s8137_s16 = inlined_call_operand.hbm [shape: f32[128,32], index: 16, kind: input, shape index: {}]   ;;  %s8138_s17 = inlined_call_operand.hbm [shape: f32[32,5], index: 17, kind: input, shape index: {}]   ;;  %s8139_s18 = inlined_call_operand.hbm [shape: f32[64,16], index: 18, kind: input, shape index: {}]   ;;  %s8140_s19 = inlined_call_operand.hbm [shape: f32[16,6], index: 19, kind: input, shape index: {}]   ;;  %s8141_s20 = inlined_call_operand.hbm [shape: f32[128,32], index: 20, kind: input, shape index: {}]   ;;  %s8142_s21 = inlined_call_operand.hbm [shape: f32[32,6], index: 21, kind: input, shape index: {}]   ;;  %s8143_s22 = inlined_call_operand.hbm [shape: f32[128,32], index: 22, kind: input, shape index: {}]   ;;  %s8144_s23 = inlined_call_operand.vmem [shape: f32[32,18], index: 23, kind: input, shape index: {}]   ;;  %s8145_s24 = inlined_call_operand.hbm [shape: f32[2,3], index: 24, kind: output, shape index: {0}]   ;;  %s8146_s25 = inlined_call_operand.hbm [shape: f32[2,4], index: 25, kind: output, shape index: {1}]   ;;  %s8147_s26 = inlined_call_operand.hbm [shape: f32[2,5], index: 26, kind: output, shape index: {2}]   ;;  %s8148_s27 = inlined_call_operand.hbm [shape: f32[2,6], index: 27, kind: output, shape index: {3}]   ;;  %s8149_s28 = inlined_call_operand.hbm [shape: f32[2,18], index: 28, kind: output, shape index: {4}]  }
   0x1   :  { %8159 = sst [smem:[#allocation53_spill]] %s8121_s0 }
   0x2   :  { %8160 = sst [smem:[#allocation54_spill]] %s8122_s1 }
   0x3   :  { %8161 = sst [smem:[#allocation55_spill]] %s8123_s2 }
   0x4   :  { %8162 = sst [smem:[#allocation56_spill]] %s8124_s3 }
   0x5   :  { %8163 = sst [smem:[#allocation57_spill]] %s8125_s4 }
   0x6   :  { %8164 = sst [smem:[#allocation58_spill]] %s8126_s5 }
   0x7   :  { %8165 = sst [smem:[#allocation59_spill]] %s8127_s6 }
   0x8   :  { %8166 = sst [smem:[#allocation60_spill]] %s8128_s7 }
   0x9   :  { %8167 = sst [smem:[#allocation61_spill]] %s8129_s8 }
   0xa   :  { %8168 = sst [smem:[#allocation62_spill]] %s8130_s9 }
   0xb   :  { %8169 = sst [smem:[#allocation63_spill]] %s8131_s10 }
   0xc   :  { %8170 = sst [smem:[#allocation64_spill]] %s8132_s11 }
   0xd   :  { %8171 = sst [smem:[#allocation65_spill]] %s8133_s12 }
   0xe   :  { %8172 = sst [smem:[#allocation66_spill]] %s8149_s28 }
   0xf   :  { %34 = vsyncpa [#allocation4], 0 }
  0x10   :  { %35 = vsyncpa [#allocation7], 0 }
  0x11   :  { %36 = vsyncpa [#allocation10], 0 }
  0x12   :  { %37 = vsyncpa [#allocation13], 0 }
  0x13   :  { %38 = vsyncpa [#allocation16], 0 }
  0x14   :  { %39 = vsyncpa [#allocation19], 0 }
  0x15   :  { %40 = vsyncpa [#allocation22], 0 }
  0x16   :  { %41 = vsyncpa [#allocation25], 0 }
  0x17   :  { %42 = vsyncpa [#allocation28], 0 }
  0x18   :  { %43 = vsyncpa [#allocation31], 0 }
  0x19   :  { %44 = vsyncpa [#allocation5], 0 }
  0x1a   :  { %45 = vsyncpa [#allocation35], 0 }
  0x1b   :  { %46 = vsyncpa [#allocation38], 0  ;;  %s8173_s9 = sld [smem:[#allocation55_spill]]  ;;  %s5946_s3 = smov [#allocation6]  }
  0x1c   :  { %s68_s6 = sshll.u32 %s5946_s3, 4  ;;  %s8174_s11 = sld [smem:[#allocation59_spill]]  ;;  %s69_s6 = int_to_ptr.vmem [resolvable:$true] %s68_s6 }
  0x1d   :  { %s8153_s2 = smov 256   ;;  %s8154_s7 = smov 16  }
  0x1e   :  { %s5949_s12 = smov [#allocation9]   ;;  %s5950_s4 = smov 128  }
  0x1f   :  { %s98_s1 = sshll.u32 %s5949_s12, 4  ;;  %s5951_s8 = smov 8   ;;  %s99_s1 = int_to_ptr.vmem [resolvable:$true] %s98_s1 }
  0x20   :  { %s8175_s3 = sld [smem:[#allocation62_spill]]  ;;  %s5952_s0 = smov [#allocation12]  }
  0x21   :  { %s66_s30 = sshll.u32 %s8173_s9, 4  ;;  %s5953_s12 = smov [#allocation15]   ;;  %s67_s30 = int_to_ptr.hbm [resolvable:$true] %s66_s30 }
  0x22   :  { %s96_s29 = sshll.u32 %s8174_s11, 4  ;;  %s126_s11 = sshll.u32 %s5952_s0, 4  ;;  %s97_s29 = int_to_ptr.hbm [resolvable:$true] %s96_s29  ;;  %s127_s11 = int_to_ptr.vmem [resolvable:$true] %s126_s11 }
  0x23   :  { %74 = dma.hbm_to_vmem [thread:$0]  %s67_s30, 2048, %s69_s6, [#allocation7], %s8153_s2, %s8153_s2, %s8154_s7  }
  0x24   :  { %104 = dma.hbm_to_vmem [thread:$0]  %s97_s29, 1024, %s99_s1, [#allocation10], %s5950_s4, %s5950_s4, %s5951_s8  }
  0x25   :  { %s8176_s6 = sld [smem:[#allocation64_spill]]  ;;  %s152_s7 = sshll.u32 %s5953_s12, 4  ;;  %s153_s7 = int_to_ptr.vmem [resolvable:$true] %s152_s7 }
  0x26   :  { %s124_s10 = sshll.u32 %s8175_s3, 4  ;;  %s176_s5 = sshll.u32 %s8134_s13, 4  ;;  %s125_s10 = int_to_ptr.hbm [resolvable:$true] %s124_s10  ;;  %s177_s5 = int_to_ptr.hbm [resolvable:$true] %s176_s5 }
  0x27   :  { %132 = dma.hbm_to_vmem [thread:$0]  %s125_s10, 512, %s127_s11, [#allocation13], %s5950_s4, %s5950_s4, %s5951_s8  }
  0x28   :  { %s202_s3 = sshll.u32 %s8136_s15, 4  ;;  %s5954_s0 = smov [#allocation18]   ;;  %s203_s3 = int_to_ptr.hbm [resolvable:$true] %s202_s3 }
  0x29   :  { %s178_s30 = sshll.u32 %s5954_s0, 4  ;;  %s5955_s10 = smov [#allocation21]   ;;  %s179_s30 = int_to_ptr.vmem [resolvable:$true] %s178_s30 }
  0x2a   :  { %184 = dma.hbm_to_vmem [thread:$0]  %s177_s5, 512, %s179_s30, [#allocation19], %s5950_s4, %s5950_s4, %s5951_s8  }
  0x2b   :  { %s150_s2 = sshll.u32 %s8176_s6, 4  ;;  %s204_s13 = sshll.u32 %s5955_s10, 4  ;;  %s151_s2 = int_to_ptr.hbm [resolvable:$true] %s150_s2  ;;  %s205_s13 = int_to_ptr.vmem [resolvable:$true] %s204_s13 }
  0x2c   :  { %158 = dma.hbm_to_vmem [thread:$0]  %s151_s2, 256, %s153_s7, [#allocation16], %s5950_s4, %s5950_s4, %s5951_s8  }
  0x2d   :  { %s228_s12 = sshll.u32 %s8138_s17, 4  ;;  %s254_s7 = sshll.u32 %s8140_s19, 4  ;;  %s229_s12 = int_to_ptr.hbm [resolvable:$true] %s228_s12  ;;  %s255_s7 = int_to_ptr.hbm [resolvable:$true] %s254_s7 }
  0x2e   :  { %210 = dma.hbm_to_vmem [thread:$0]  %s203_s3, 256, %s205_s13, [#allocation22], %s5950_s4, %s5950_s4, %s5951_s8  }
  0x2f   :  { %s5956_s29 = smov [#allocation24]   ;;  %s5957_s5 = smov [#allocation27]  }
  0x30   :  { %s230_s1 = sshll.u32 %s5956_s29, 4  ;;  %s256_s17 = sshll.u32 %s5957_s5, 4  ;;  %s231_s1 = int_to_ptr.vmem [resolvable:$true] %s230_s1  ;;  %s257_s17 = int_to_ptr.vmem [resolvable:$true] %s256_s17 }
  0x31   :  { %236 = dma.hbm_to_vmem [thread:$0]  %s229_s12, 512, %s231_s1, [#allocation25], %s5950_s4, %s5950_s4, %s5951_s8  }
  0x32   :  { %s280_s0 = sshll.u32 %s8142_s21, 4  ;;  %s8177_s30 = sld [smem:[#allocation54_spill]]  ;;  %s281_s0 = int_to_ptr.hbm [resolvable:$true] %s280_s0 }
  0x33   :  { %262 = dma.hbm_to_vmem [thread:$0]  %s255_s7, 256, %s257_s17, [#allocation28], %s5950_s4, %s5950_s4, %s5951_s8  }
  0x34   :  { %s5958_s13 = smov [#allocation30]   ;;  %s5959_s6 = smov [#allocation3]  }
  0x35   :  { %s282_s11 = sshll.u32 %s5958_s13, 4  ;;  %s55_s21 = sshll.u32 %s5959_s6, 4  ;;  %s283_s11 = int_to_ptr.vmem [resolvable:$true] %s282_s11  ;;  %s56_s21 = int_to_ptr.vmem [resolvable:$true] %s55_s21 }
  0x36   :  { %288 = dma.hbm_to_vmem [thread:$0]  %s281_s0, 512, %s283_s11, [#allocation31], %s5950_s4, %s5950_s4, %s5951_s8  }
  0x37   :  { %s8178_s2 = sld [smem:[#allocation57_spill]]  ;;  %s8179_s7 = smov 16  }
  0x38   :  { %s53_s10 = sshll.u32 %s8177_s30, 4  ;;  %s8180_s1 = smov 256   ;;  %s54_s10 = int_to_ptr.hbm [resolvable:$true] %s53_s10 }
  0x39   :  { %61 = dma.hbm_to_vmem [thread:$0]  %s54_s10, 512, %s56_s21, [#allocation4], %s8180_s1, %s8180_s1, %s8179_s7  }
  0x3a   :  { %s5960_s5 = smov [#allocation8]   ;;  %s8181_s19 = sld [smem:[#allocation61_spill]] }
  0x3b   :  { %s83_s17 = sshll.u32 %s5960_s5, 4  ;;  %s5961_s0 = smov 32   ;;  %s84_s17 = int_to_ptr.vmem [resolvable:$true] %s83_s17 }
  0x3c   :  { %s5962_s30 = smov 2   ;;  %s5963_s13 = smov [#allocation11]  }
  0x3d   :  { %s81_s29 = sshll.u32 %s8178_s2, 4  ;;  %s113_s11 = sshll.u32 %s5963_s13, 4  ;;  %s82_s29 = int_to_ptr.hbm [resolvable:$true] %s81_s29  ;;  %s114_s11 = int_to_ptr.vmem [resolvable:$true] %s113_s11 }
  0x3e   :  { %89 = dma.hbm_to_vmem [thread:$0]  %s82_s29, 64, %s84_s17, [#allocation7], %s5961_s0, %s5961_s0, %s5962_s30  }
  0x3f   :  { %s8182_s15 = sld [smem:[#allocation63_spill]]  ;;  %s5964_s5 = smov [#allocation14]  }
  0x40   :  { %s111_s3 = sshll.u32 %s8181_s19, 4  ;;  %s8183_s7 = sld [smem:[#allocation65_spill]]  ;;  %s112_s3 = int_to_ptr.hbm [resolvable:$true] %s111_s3 }
  0x41   :  { %119 = dma.hbm_to_vmem [thread:$0]  %s112_s3, 2048, %s114_s11, [#allocation10], %s5950_s4, %s5950_s4, %s5951_s8  }
  0x42   :  { %s139_s9 = sshll.u32 %s5964_s5, 4  ;;  %s5965_s29 = smov [#allocation17]   ;;  %s140_s9 = int_to_ptr.vmem [resolvable:$true] %s139_s9 }
  0x43   :  { %s165_s17 = sshll.u32 %s5965_s29, 4  ;;  %s189_s30 = sshll.u32 %s8135_s14, 4  ;;  %s166_s17 = int_to_ptr.vmem [resolvable:$true] %s165_s17  ;;  %s190_s30 = int_to_ptr.hbm [resolvable:$true] %s189_s30 }
  0x44   :  { %s215_s11 = sshll.u32 %s8137_s16, 4  ;;  %s5966_s6 = smov [#allocation20]   ;;  %s216_s11 = int_to_ptr.hbm [resolvable:$true] %s215_s11 }
  0x45   :  { %s137_s2 = sshll.u32 %s8182_s15, 4  ;;  %s191_s12 = sshll.u32 %s5966_s6, 4  ;;  %s138_s2 = int_to_ptr.hbm [resolvable:$true] %s137_s2  ;;  %s192_s12 = int_to_ptr.vmem [resolvable:$true] %s191_s12 }
  0x46   :  { %s163_s1 = sshll.u32 %s8183_s7, 4  ;;  %s5967_s15 = smov [#allocation23]   ;;  %s164_s1 = int_to_ptr.hbm [resolvable:$true] %s163_s1 }
  0x47   :  { %145 = dma.hbm_to_vmem [thread:$0]  %s138_s2, 1024, %s140_s9, [#allocation13], %s5950_s4, %s5950_s4, %s5951_s8  }
  0x48   :  { %171 = dma.hbm_to_vmem [thread:$0]  %s164_s1, 2048, %s166_s17, [#allocation16], %s5950_s4, %s5950_s4, %s5951_s8  }
  0x49   :  { %197 = dma.hbm_to_vmem [thread:$0]  %s190_s30, 1024, %s192_s12, [#allocation19], %s5950_s4, %s5950_s4, %s5951_s8  }
  0x4a   :  { %s217_s14 = sshll.u32 %s5967_s15, 4  ;;  %s241_s21 = sshll.u32 %s8139_s18, 4  ;;  %s218_s14 = int_to_ptr.vmem [resolvable:$true] %s217_s14  ;;  %s242_s21 = int_to_ptr.hbm [resolvable:$true] %s241_s21 }
  0x4b   :  { %223 = dma.hbm_to_vmem [thread:$0]  %s216_s11, 2048, %s218_s14, [#allocation22], %s5950_s4, %s5950_s4, %s5951_s8  }
  0x4c   :  { %s267_s1 = sshll.u32 %s8141_s20, 4  ;;  %s5968_s5 = smov [#allocation26]   ;;  %s268_s1 = int_to_ptr.hbm [resolvable:$true] %s267_s1 }
  0x4d   :  { %s243_s9 = sshll.u32 %s5968_s5, 4  ;;  %s5969_s29 = smov [#allocation29]   ;;  %s244_s9 = int_to_ptr.vmem [resolvable:$true] %s243_s9 }
  0x4e   :  { %249 = dma.hbm_to_vmem [thread:$0]  %s242_s21, 1024, %s244_s9, [#allocation25], %s5950_s4, %s5950_s4, %s5951_s8  }
  0x4f   :  { %s269_s18 = sshll.u32 %s5969_s29, 4  ;;  %s293_s19 = sshll.u32 %s8143_s22, 4  ;;  %s270_s18 = int_to_ptr.vmem [resolvable:$true] %s269_s18  ;;  %s294_s19 = int_to_ptr.hbm [resolvable:$true] %s293_s19 }
  0x50   :  { %275 = dma.hbm_to_vmem [thread:$0]  %s268_s1, 2048, %s270_s18, [#allocation28], %s5950_s4, %s5950_s4, %s5951_s8  }
  0x51   :  { %s5970_s20 = smov [#allocation32]  }
  0x52   :  { %s295_s30 = sshll.u32 %s5970_s20, 4  ;;  %s296_s30 = int_to_ptr.vmem [resolvable:$true] %s295_s30 }
  0x53   :  { %301 = dma.hbm_to_vmem [thread:$0]  %s294_s19, 2048, %s296_s30, [#allocation31], %s5950_s4, %s5950_s4, %s5951_s8  }
  0x54   :  { %5920 = dma.done.wait [#allocation4], 512  }
  0x55   :  { %5921 = vsyncadd [#allocation4], 4294966784 }
  0x56   :  { %5922 = dma.done.wait [#allocation7], 2112  }
  0x57   :  { %5923 = vsyncadd [#allocation7], 4294965184 }
  0x58   :  { %5924 = dma.done.wait [#allocation10], 3072  }
  0x59   :  { %5925 = vsyncadd [#allocation10], 4294964224 }
  0x5a   :  { %5926 = dma.done.wait [#allocation13], 1536  }
  0x5b   :  { %5927 = vsyncadd [#allocation13], 4294965760 }
  0x5c   :  { %5928 = dma.done.wait [#allocation16], 2304  }
  0x5d   :  { %5929 = vsyncadd [#allocation16], 4294964992 }
  0x5e   :  { %5930 = dma.done.wait [#allocation19], 1536  }
  0x5f   :  { %5931 = vsyncadd [#allocation19], 4294965760 }
  0x60   :  { %5932 = dma.done.wait [#allocation22], 2304  }
  0x61   :  { %5933 = vsyncadd [#allocation22], 4294964992 }
  0x62   :  { %5934 = dma.done.wait [#allocation25], 1536  }
  0x63   :  { %5935 = vsyncadd [#allocation25], 4294965760 }
  0x64   :  { %5936 = dma.done.wait [#allocation28], 2304  }
  0x65   :  { %5937 = vsyncadd [#allocation28], 4294964992 }
  0x66   :  { %5938 = dma.done.wait [#allocation31], 2560  }
  0x67   :  { %5939 = vsyncadd [#allocation31], 4294964736  ;;  %v493_v0 = vld [vmem:[#allocation8 + $0x2] sm:$0x3]  ;;  %v6240_v1 = vld [vmem:[#allocation6 + $0x70] sm:$0xff]  ;;  %s8184_s8 = sld [smem:[#allocation53_spill]] }
  0x68   :  { %v6242_v2 = vld [vmem:[#allocation6 + $0x78] sm:$0xff]  ;;  %497 = vrot.lane.b32.xlu0 %v493_v0, %s5961_s0  ;;  %514 = vmatpush.msra.mxu2 %v6240_v1  ;;  %v6246_v3 = vld [vmem:[#allocation6 + $0x60] sm:$0xff]  ;;  %v6248_v4 = vld [vmem:[#allocation6 + $0x68] sm:$0xff]  ;;  %vm8157_vm0 = vcmask 130048   ;;  %s8185_s18 = sld [smem:[#allocation58_spill]]  ;;  %vm8155_vm1 = vcmask 261120  }
  0x69   :  { %534 = vmatpush.msra.mxu3 %v6242_v2  ;;  %v6251_v5 = vld [vmem:[#allocation6 + $0x50] sm:$0xff]  ;;  %v391_v6 = vld [vmem:[#allocation3 + $0x18] sm:$0xff]  ;;  %v6256_v8 = vld [vmem:[#allocation6 + $0x40] sm:$0xff]  ;;  %vm8158_vm2 = vcmask 523264   ;;  %s8186_s19 = sld [smem:[#allocation56_spill]]  ;;  %s5971_s20 = smov 64  }
  0x6a   :  { %515 = vmatpush.msra.mxu2 %v6246_v3  ;;  %v6254_v7 = vld [vmem:[#allocation6 + $0x58] sm:$0xff]  ;;  %465 = vmatpush.msra.mxu1 %v391_v6  ;;  %v389_v9 = vld [vmem:[#allocation3 + $0x8] sm:$0xff]  ;;  %v6275_v15 = vld [vmem:[#allocation6 + $0x30] sm:$0xff]  ;;  %vm637_vm11 = vcmask 254976   ;;  %vm643_vm12 = vcmask 517376   ;;  %s4769_s1 = sshll.u32 %s8146_s25, 4  ;;  %s4770_s1 = int_to_ptr.hbm [resolvable:$true] %s4769_s1 }
  0x6b   :  { %535 = vmatpush.msra.mxu3 %v6248_v4  ;;  %v6259_v10 = vld [vmem:[#allocation6 + $0x48] sm:$0xff]  ;;  %v6279_v16 = vld [vmem:[#allocation6 + $0x38] sm:$0xff]  ;;  %v6282_v17 = vld [vmem:[#allocation6 + $0x20] sm:$0xff]  ;;  %s5978_s9 = smov [#allocation37]   ;;  %s4791_s28 = sshll.u32 %s8148_s27, 4  ;;  %s4792_s28 = int_to_ptr.hbm [resolvable:$true] %s4791_s28 }
  0x6c   :  { %516 = vmatpush.msra.mxu2 %v6251_v5  ;;  %466 = vmatpush.msra.mxu1 %v389_v9  ;;  %v6286_v18 = vld [vmem:[#allocation6 + $0x28] sm:$0xff]  ;;  %v6289_v19 = vld [vmem:[#allocation6 + $0x10] sm:$0xff]  ;;  %v6293_v20 = vld [vmem:[#allocation6 + $0x18] sm:$0xff]  ;;  %s4789_s29 = sshll.u32 %s5978_s9, 4  ;;  %s4758_s30 = sshll.u32 %s8145_s24, 4  ;;  %s4790_s29 = int_to_ptr.vmem [resolvable:$true] %s4789_s29  ;;  %s4759_s30 = int_to_ptr.hbm [resolvable:$true] %s4758_s30 }
  0x6d   :  { %v380_v11 = vld [vmem:[%s8184_s8] sm:$0x3]  ;;  %v381_v12 = vld [vmem:[%s8184_s8 + $0x2] sm:$0x3]  ;;  %v382_v13 = vld [vmem:[%s8184_s8 + $0x4] sm:$0x3]  ;;  %536 = vmatpush.msra.mxu3 %v6254_v7 }
  0x6e   :  { %v383_v14 = vld [vmem:[%s8184_s8 + $0x6] sm:$0x3]  ;;  %406 = vst [vmem:[#allocation1] ss:$4 sm:$0xff] %v380_v11  ;;  %677 = vmatpush.msrb.mxu1 %v6242_v2  ;;  %517 = vmatpush.msra.mxu2 %v6256_v8  ;;  %v384_v22 = vld [vmem:[%s8184_s8 + $0x8] sm:$0x3] }
  0x6f   :  { %408 = vst [vmem:[#allocation1 + $0x1] ss:$4 sm:$0xff] %v381_v12  ;;  %537 = vmatpush.msra.mxu3 %v6259_v10  ;;  %v385_v23 = vld [vmem:[%s8184_s8 + $0xa] sm:$0x3]  ;;  %v386_v24 = vld [vmem:[%s8184_s8 + $0xc] sm:$0x3] }
  0x70   :  { %410 = vst [vmem:[#allocation1 + $0x2] ss:$4 sm:$0xff] %v382_v13  ;;  %678 = vmatpush.msrb.mxu1 %v6248_v4  ;;  %518 = vmatpush.msra.mxu2 %v6275_v15  ;;  %v387_v25 = vld [vmem:[%s8184_s8 + $0xe] sm:$0x3]  ;;  %v6315_v26 = vld [vmem:[#allocation6] sm:$0xff]  ;;  %v6317_v27 = vld [vmem:[#allocation6 + $0x8] sm:$0xff] }
  0x71   :  { %412 = vst [vmem:[#allocation1 + $0x3] ss:$4 sm:$0xff] %v383_v14  ;;  %538 = vmatpush.msra.mxu3 %v6279_v16  ;;  %v390_v28 = vld [vmem:[#allocation3 + $0x10] sm:$0xff]  ;;  %v388_v29 = vld [vmem:[#allocation3] sm:$0xff]  ;;  %v4843_v30 = vld [vmem:[%s8185_s18 + $0x2] sm:$0x3] }
  0x72   :  { %679 = vmatpush.msrb.mxu1 %v6254_v7  ;;  %519 = vmatpush.msra.mxu2 %v6282_v17  ;;  %414 = vst [vmem:[#allocation1 + $0x20] ss:$4 sm:$0xff] %v384_v22  ;;  %v490_v32 = vld [vmem:[#allocation8] sm:$0x3]  ;;  %v6393_v36 = vld [vmem:[%s8186_s19] sm:$0x3] }
  0x73   :  { %539 = vmatpush.msra.mxu3 %v6286_v18  ;;  %416 = vst [vmem:[#allocation1 + $0x21] ss:$4 sm:$0xff] %v385_v23  ;;  %442 = vmatpush.msra.mxu0 %v390_v28  ;;  %v395_v38 = vperm.slane %v6393_v36, 1  ;;  %v394_v40 = vperm.slane %v6393_v36, 0  ;;  %v491_v50 = vld [vmem:[%s8185_s18] sm:$0x3] }
  0x74   :  { %680 = vmatpush.msrb.mxu1 %v6259_v10  ;;  %520 = vmatpush.msra.mxu2 %v6289_v19  ;;  %418 = vst [vmem:[#allocation1 + $0x22] ss:$4 sm:$0xff] %v386_v24  ;;  %s8187_s8 = sld [smem:[#allocation60_spill]]  ;;  %s5979_s22 = smov [#allocation33]  }
  0x75   :  { %540 = vmatpush.msra.mxu3 %v6293_v20  ;;  %420 = vst [vmem:[#allocation1 + $0x23] ss:$4 sm:$0xff] %v387_v25  ;;  %613 = vrot.lane.b32.xlu2 %v4843_v30, %s5961_s0  ;;  %s4756_s25 = sshll.u32 %s5979_s22, 4  ;;  %s4780_s13 = sshll.u32 %s8147_s26, 4  ;;  %s4757_s25 = int_to_ptr.vmem [resolvable:$true] %s4756_s25  ;;  %s4781_s13 = int_to_ptr.hbm [resolvable:$true] %s4780_s13 }
  0x76   :  { %681 = vmatpush.msrb.mxu1 %v6279_v16  ;;  %521 = vmatpush.msra.mxu2 %v6315_v26  ;;  %s5981_s27 = smov [#allocation39]   ;;  %s8296_s15 = sld [smem:[#allocation66_spill]] }
  0x77   :  { %541 = vmatpush.msra.mxu3 %v6317_v27  ;;  %443 = vmatpush.msra.mxu0 %v388_v29  ;;  %s4800_s11 = sshll.u32 %s5981_s27, 4  ;;  %s4801_s11 = int_to_ptr.vmem [resolvable:$true] %s4800_s11 }
  0x78   :  { %v421_v21 = vld.sshfl [vmem:[#allocation1] sm:$0xff pattern:$0x73625140]  ;;  %682 = vmatpush.msrb.mxu1 %v6286_v18  ;;  %792 = vmatpush.msrb.mxu2 %v6240_v1 }
  0x79   :  { %4841 = vmatmul.msk.f32.vlgmr.msra.gmra.mxu1 %vm8157_vm0, %v421_v21  ;;  %812 = vmatpush.msrb.mxu3 %v6242_v2 }
  0x7a   :  { %683 = vmatpush.msrb.mxu1 %v6293_v20  ;;  %793 = vmatpush.msrb.mxu2 %v6246_v3 }
  0x7b   :  { %4839 = vmatmul.msk.f32.vlgmr.msra.gmra.mxu0 %vm8157_vm0, %v421_v21  ;;  %813 = vmatpush.msrb.mxu3 %v6248_v4 }
  0x7c   :  { %684 = vmatpush.msrb.mxu1 %v6317_v27  ;;  %v422_v31 = vld.sshfl [vmem:[#allocation1 + $0x20] sm:$0xff pattern:$0x73625140]  ;;  %657 = vmatpush.msrb.mxu0 %v6240_v1  ;;  %s4802_s24 = sshll.u32 %s8296_s15, 4  ;;  %s4803_s24 = int_to_ptr.hbm [resolvable:$true] %s4802_s24 }
  0x7d   :  { %794 = vmatpush.msrb.mxu2 %v6251_v5  ;;  %814 = vmatpush.msrb.mxu3 %v6254_v7 }
  0x7e   :  { %946 = vmatpush.msra.mxu1 %v6242_v2  ;;  %658 = vmatpush.msrb.mxu0 %v6246_v3 }
  0x7f   :  { %795 = vmatpush.msrb.mxu2 %v6256_v8  ;;  %815 = vmatpush.msrb.mxu3 %v6259_v10 }
  0x80   :  { %947 = vmatpush.msra.mxu1 %v6248_v4  ;;  %659 = vmatpush.msrb.mxu0 %v6251_v5 }
  0x81   :  { %4842 = vmatmul.msk.f32.gmra.mxu1 %vm8157_vm0, %v422_v31  ;;  %796 = vmatpush.msrb.mxu2 %v6275_v15 }
  0x82   :  { %948 = vmatpush.msra.mxu1 %v6254_v7  ;;  %816 = vmatpush.msrb.mxu3 %v6279_v16 }
  0x83   :  { %660 = vmatpush.msrb.mxu0 %v6256_v8  ;;  %797 = vmatpush.msrb.mxu2 %v6282_v17 }
  0x84   :  { %949 = vmatpush.msra.mxu1 %v6259_v10  ;;  %4840 = vmatmul.msk.f32.gmra.mxu0 %vm8157_vm0, %v422_v31 }
  0x85   :  { %661 = vmatpush.msrb.mxu0 %v6275_v15  ;;  %817 = vmatpush.msrb.mxu3 %v6286_v18 }
  0x86   :  { %798 = vmatpush.msrb.mxu2 %v6289_v19  ;;  %950 = vmatpush.msra.mxu1 %v6279_v16 }
  0x87   :  { %662 = vmatpush.msrb.mxu0 %v6282_v17  ;;  %818 = vmatpush.msrb.mxu3 %v6293_v20 }
  0x88   :  { %799 = vmatpush.msrb.mxu2 %v6315_v26  ;;  %951 = vmatpush.msra.mxu1 %v6286_v18 }
  0x89   :  { %663 = vmatpush.msrb.mxu0 %v6289_v19  ;;  %819 = vmatpush.msrb.mxu3 %v6317_v27 }
  0x8a   :  { %952 = vmatpush.msra.mxu1 %v6293_v20 }
  0x8b   :  { %664 = vmatpush.msrb.mxu0 %v6315_v26 }
  0x8c   :  { %953 = vmatpush.msra.mxu1 %v6317_v27 }
  0x8d   :  { %926 = vmatpush.msra.mxu0 %v6240_v1 }
  0x8f   :  { %927 = vmatpush.msra.mxu0 %v6246_v3 }
  0x91   :  { %928 = vmatpush.msra.mxu0 %v6251_v5 }
  0x93   :  { %929 = vmatpush.msra.mxu0 %v6256_v8 }
  0x95   :  { %930 = vmatpush.msra.mxu0 %v6275_v15 }
  0x97   :  { %931 = vmatpush.msra.mxu0 %v6282_v17 }
  0x99   :  { %932 = vmatpush.msra.mxu0 %v6289_v19 }
  0x9b   :  { %933 = vmatpush.msra.mxu0 %v6315_v26 }
  0xda   :  { %v498_v33 = vpop.permute.xlu0 %497 }
  0xdb   :  { %v501_v34 = vsel %vm8155_vm1, %v490_v32, %v498_v33  ;;  %v614_v33 = vpop.permute.xlu2 %613 }
  0xdc   :  { %4844 = vmatmul.msk.f32.vlgmr.msra.gmra.mxu2 %vm8158_vm2, %v501_v34  ;;  %4845 = vmatmul.msk.f32.vlgmr.msra.gmra.mxu3 %vm8158_vm2, %v501_v34 }
  0xdd   :  { %1058 = vmatpush.msra.mxu2 %v6240_v1  ;;  %1078 = vmatpush.msra.mxu3 %v6242_v2 }
  0xdf   :  { %1059 = vmatpush.msra.mxu2 %v6246_v3  ;;  %1079 = vmatpush.msra.mxu3 %v6248_v4 }
  0xe1   :  { %1060 = vmatpush.msra.mxu2 %v6251_v5  ;;  %1080 = vmatpush.msra.mxu3 %v6254_v7 }
  0xe3   :  { %1061 = vmatpush.msra.mxu2 %v6256_v8  ;;  %1081 = vmatpush.msra.mxu3 %v6259_v10 }
  0xe5   :  { %1062 = vmatpush.msra.mxu2 %v6275_v15  ;;  %1082 = vmatpush.msra.mxu3 %v6279_v16 }
  0xe7   :  { %1063 = vmatpush.msra.mxu2 %v6282_v17  ;;  %1083 = vmatpush.msra.mxu3 %v6286_v18 }
  0xe9   :  { %1064 = vmatpush.msra.mxu2 %v6289_v19  ;;  %1084 = vmatpush.msra.mxu3 %v6293_v20 }
  0xeb   :  { %1065 = vmatpush.msra.mxu2 %v6315_v26  ;;  %1085 = vmatpush.msra.mxu3 %v6317_v27 }
  0xf6   :  { %v6388_v35 = vpop.f32.mrf.mxu1 }
  0xf8   :  { %v445_v41 = vpop.f32.mrf.mxu0 }
  0xf9   :  { %v6403_v42 = vadd.f32 %v445_v41, %v394_v40 }
  0xfe   :  { %v471_v37 = vpop.f32.mrf.mxu1 }
  0xff   :  { %v6398_v39 = vadd.f32 %v471_v37, %v395_v38 }
 0x101   :  { %v548_v43 = vrot.slane %v6398_v39, 6 }
 0x15f   :  { %v523_v44 = vpop.f32.mrf.mxu2  ;;  %v543_v45 = vpop.f32.mrf.mxu3 }
 0x160   :  { %v546_v46 = vadd.f32 %v523_v44, %v6403_v42  ;;  %v550_v47 = vadd.f32 %v548_v43, %v543_v45 }
 0x162   :  { %4948 = vtanh.f32 %v546_v46  ;;  %v4846_v51 = vmul.f32 -1.442695, %v546_v46  ;;  %v4847_v52 = vmul.f32 -1.442695, %v550_v47 }
 0x163   :  { %4950 = vtanh.f32 %v550_v47 }
 0x164   :  { %4952 = vpow2.f32 %v4846_v51 }
 0x165   :  { %4954 = vpow2.f32 %v4847_v52 }
 0x168   :  { %v4949_v48 = vpop.eup %4948 }
 0x169   :  { %v4951_v49 = vpop.eup %4950  ;;  %577 = vrot.lane.b32.xlu0 %v4949_v48, %s5971_s20 }
 0x16a   :  { %618 = vrot.lane.b32.xlu1 %v4951_v49, %s5971_s20  ;;  %v4953_v53 = vpop.eup %4952 }
 0x16b   :  { %v4955_v54 = vpop.eup %4954  ;;  %v554_v55 = vadd.f32 1.0, %v4953_v53 }
 0x16c   :  { %v595_v56 = vadd.f32 1.0, %v4955_v54 }
 0x16d   :  { %4956 = vrcp.f32 %v554_v55  ;;  %v566_v11 = vand.u32 2147483648, %v554_v55  ;;  %vm560_vm5 = vweird.f32 %v554_v55  ;;  %v564_v13 = vand.u32 2147483647, %v554_v55 }
 0x16e   :  { %4958 = vrcp.f32 %v595_v56  ;;  %v607_v12 = vand.u32 2147483648, %v595_v56  ;;  %vm601_vm6 = vweird.f32 %v595_v56  ;;  %v605_v14 = vand.u32 2147483647, %v595_v56 }
 0x16f   :  { %v567_v23 = vor.u32 1.1754944e-38, %v566_v11  ;;  %vm565_vm9 = vcmp.eq.f32.partialorder %v564_v13, 8.507059e+37 }
 0x170   :  { %v608_v24 = vor.u32 1.1754944e-38, %v607_v12  ;;  %vm606_vm10 = vcmp.eq.f32.partialorder %v605_v14, 8.507059e+37 }
 0x172   :  { %572 = vrot.lane.b32.xlu1 %v491_v50, %s5961_s0 }
 0x173   :  { %v4957_v57 = vpop.eup %4956 }
 0x174   :  { %v4959_v58 = vpop.eup %4958  ;;  %v556_v59 = vmul.f32 %v4957_v57, %v554_v55  ;;  %vm561_vm3 = vweird.f32 %v4957_v57 }
 0x175   :  { %v597_v60 = vmul.f32 %v4959_v58, %v595_v56  ;;  %vm602_vm4 = vweird.f32 %v4959_v58  ;;  %vm562_vm7 = vmor %vm560_vm5, %vm561_vm3  ;;  %v6446_v56 = vpop.f32.mrf.mxu0 }
 0x176   :  { %v557_v61 = vsub.f32 1.0, %v556_v59  ;;  %vm603_vm8 = vmor %vm601_vm6, %vm602_vm4 }
 0x177   :  { %v598_v62 = vsub.f32 1.0, %v597_v60 }
 0x178   :  { %v558_v63 = vmul.f32 %v4957_v57, %v557_v61 }
 0x179   :  { %v599_v0 = vmul.f32 %v4959_v58, %v598_v62 }
 0x17a   :  { %v559_v6 = vadd.f32 %v4957_v57, %v558_v63 }
 0x17b   :  { %v600_v9 = vadd.f32 %v4959_v58, %v599_v0 }
 0x17c   :  { %v563_v21 = vsel %vm562_vm7, %v4957_v57, %v559_v6  ;;  %v690_v57 = vrot.slane %v6403_v42, 2 }
 0x17d   :  { %v604_v22 = vsel %vm603_vm8, %v4959_v58, %v600_v9  ;;  %v568_v28 = vsel %vm565_vm9, %v567_v23, %v563_v21  ;;  %v693_v58 = vrot.slane %v6398_v39, 4 }
 0x17e   :  { %v609_v29 = vsel %vm606_vm10, %v608_v24, %v604_v22 }
 0x17f   :  { %v616_v45 = vmul.f32 %v614_v33, %v609_v29 }
 0x1db   :  { %v578_v25 = vpop.permute.xlu0 %577 }
 0x1dc   :  { %v619_v30 = vpop.permute.xlu1 %618  ;;  %v580_v31 = vmul.f32 %v578_v25, %v568_v28 }
 0x1dd   :  { %v621_v32 = vmul.f32 %v619_v30, %v609_v29 }
 0x1de   :  { %582 = vrot.lane.b32.xlu2 %v580_v31, %s5961_s0 }
 0x1df   :  { %623 = vrot.lane.b32.xlu0 %v621_v32, %s5961_s0 }
 0x1e4   :  { %v573_v34 = vpop.permute.xlu1 %572 }
 0x1e5   :  { %v575_v37 = vmul.f32 %v573_v34, %v568_v28 }
 0x238   :  { %v583_v41 = vpop.permute.xlu2 %582 }
 0x239   :  { %v6415_v43 = vadd.f32 %v583_v41, %v575_v37 }
 0x23b   :  { %4960 = vtanh.f32 %v6415_v43 }
 0x241   :  { %v4961_v44 = vpop.eup %4960 }
 0x242   :  { %588 = vrot.lane.b32.xlu1 %v4961_v44, %s5971_s20 }
 0x251   :  { %v624_v46 = vpop.permute.xlu0 %623 }
 0x252   :  { %v6419_v47 = vadd.f32 %v624_v46, %v616_v45 }
 0x254   :  { %4962 = vtanh.f32 %v6419_v47 }
 0x25a   :  { %v4963_v48 = vpop.eup %4962 }
 0x25b   :  { %629 = vrot.lane.b32.xlu2 %v4963_v48, %s5971_s20 }
 0x2b4   :  { %v589_v49 = vpop.permute.xlu1 %588 }
 0x2b5   :  { %v630_v50 = vpop.permute.xlu2 %629  ;;  %v591_v51 = vmul.f32 %v589_v49, %v568_v28 }
 0x2b6   :  { %v632_v52 = vmul.f32 %v630_v50, %v609_v29 }
 0x2b7   :  { %634 = vrot.lane.b32.xlu0 %v591_v51, %s5961_s0 }
 0x2b8   :  { %640 = vrot.lane.b32.xlu1 %v632_v52, %s5971_s20 }
 0x329   :  { %v635_v53 = vpop.permute.xlu0 %634 }
 0x32a   :  { %638 = vst.msk [vmem:[#allocation2] sm:$0x3] %vm637_vm11, %v635_v53  ;;  %v641_v54 = vpop.permute.xlu1 %640 }
 0x32b   :  { %644 = vst.msk [vmem:[#allocation2 + $0xe] sm:$0x3] %vm643_vm12, %v641_v54  ;;  %v645_v55 = vsel %vm8155_vm1, %v635_v53, %v641_v54 }
 0x32c   :  { %4848 = vmatmul.msk.f32.vlgmr.msrb.gmra.mxu0 %vm8158_vm2, %v645_v55  ;;  %4849 = vmatmul.msk.f32.vlgmr.msrb.gmra.mxu1 %vm8158_vm2, %v645_v55 }
 0x32d   :  { %1191 = vmatpush.msrb.mxu0 %v6240_v1  ;;  %1211 = vmatpush.msrb.mxu1 %v6242_v2 }
 0x32f   :  { %1192 = vmatpush.msrb.mxu0 %v6246_v3  ;;  %1212 = vmatpush.msrb.mxu1 %v6248_v4 }
 0x331   :  { %1193 = vmatpush.msrb.mxu0 %v6251_v5  ;;  %1213 = vmatpush.msrb.mxu1 %v6254_v7 }
 0x333   :  { %1194 = vmatpush.msrb.mxu0 %v6256_v8  ;;  %1214 = vmatpush.msrb.mxu1 %v6259_v10 }
 0x335   :  { %1195 = vmatpush.msrb.mxu0 %v6275_v15  ;;  %1215 = vmatpush.msrb.mxu1 %v6279_v16 }
 0x337   :  { %1196 = vmatpush.msrb.mxu0 %v6282_v17  ;;  %1216 = vmatpush.msrb.mxu1 %v6286_v18 }
 0x339   :  { %1197 = vmatpush.msrb.mxu0 %v6289_v19  ;;  %1217 = vmatpush.msrb.mxu1 %v6293_v20 }
 0x33b   :  { %1198 = vmatpush.msrb.mxu0 %v6315_v26  ;;  %1218 = vmatpush.msrb.mxu1 %v6317_v27 }
 0x3a9   :  { %v666_v59 = vpop.f32.mrf.mxu0  ;;  %v686_v60 = vpop.f32.mrf.mxu1 }
 0x3aa   :  { %v692_v61 = vadd.f32 %v690_v57, %v666_v59  ;;  %v695_v62 = vadd.f32 %v693_v58, %v686_v60 }
 0x3ac   :  { %4964 = vtanh.f32 %v692_v61  ;;  %v4850_v6 = vmul.f32 -1.442695, %v692_v61  ;;  %v4851_v13 = vmul.f32 -1.442695, %v695_v62 }
 0x3ad   :  { %4966 = vtanh.f32 %v695_v62 }
 0x3ae   :  { %4968 = vpow2.f32 %v4850_v6 }
 0x3b2   :  { %v4965_v63 = vpop.eup %4964 }
 0x3b3   :  { %v4967_v0 = vpop.eup %4966  ;;  %718 = vrot.lane.b32.xlu2 %v4965_v63, %s5971_s20 }
 0x3b4   :  { %755 = vrot.lane.b32.xlu0 %v4967_v0, %s5971_s20  ;;  %v4969_v9 = vpop.eup %4968 }
 0x3b5   :  { %v699_v11 = vadd.f32 1.0, %v4969_v9 }
 0x3b7   :  { %4970 = vrcp.f32 %v699_v11  ;;  %v711_v28 = vand.u32 2147483648, %v699_v11  ;;  %vm705_vm14 = vweird.f32 %v699_v11  ;;  %v709_v29 = vand.u32 2147483647, %v699_v11 }
 0x3b8   :  { %4972 = vpow2.f32 %v4851_v13  ;;  %v824_v13 = vrot.slane %v6403_v42, 4 }
 0x3b9   :  { %v712_v31 = vor.u32 1.1754944e-38, %v711_v28  ;;  %vm710_vm3 = vcmp.eq.f32.partialorder %v709_v29, 8.507059e+37 }
 0x3bd   :  { %v4971_v12 = vpop.eup %4970 }
 0x3be   :  { %v701_v14 = vmul.f32 %v4971_v12, %v699_v11  ;;  %v4973_v23 = vpop.eup %4972  ;;  %vm706_vm13 = vweird.f32 %v4971_v12 }
 0x3bf   :  { %v736_v24 = vadd.f32 1.0, %v4973_v23  ;;  %vm707_vm15 = vmor %vm705_vm14, %vm706_vm13 }
 0x3c0   :  { %v702_v21 = vsub.f32 1.0, %v701_v14  ;;  %v827_v14 = vrot.slane %v6398_v39, 2 }
 0x3c1   :  { %4974 = vrcp.f32 %v736_v24  ;;  %v748_v48 = vand.u32 2147483648, %v736_v24  ;;  %vm742_vm5 = vweird.f32 %v736_v24  ;;  %v746_v49 = vand.u32 2147483647, %v736_v24 }
 0x3c2   :  { %v703_v22 = vmul.f32 %v4971_v12, %v702_v21 }
 0x3c3   :  { %v749_v51 = vor.u32 1.1754944e-38, %v748_v48  ;;  %vm747_vm7 = vcmp.eq.f32.partialorder %v746_v49, 8.507059e+37 }
 0x3c4   :  { %v704_v25 = vadd.f32 %v4971_v12, %v703_v22 }
 0x3c6   :  { %v708_v30 = vsel %vm707_vm15, %v4971_v12, %v704_v25 }
 0x3c7   :  { %v713_v33 = vsel %vm710_vm3, %v712_v31, %v708_v30  ;;  %v4975_v37 = vpop.eup %4974 }
 0x3c8   :  { %v738_v41 = vmul.f32 %v4975_v37, %v736_v24  ;;  %vm743_vm4 = vweird.f32 %v4975_v37  ;;  %v716_v55 = vmul.f32 %v713_v33, %v6415_v43 }
 0x3c9   :  { %vm744_vm6 = vmor %vm742_vm5, %vm743_vm4 }
 0x3ca   :  { %v739_v44 = vsub.f32 1.0, %v738_v41 }
 0x3cc   :  { %v740_v45 = vmul.f32 %v4975_v37, %v739_v44 }
 0x3ce   :  { %v741_v46 = vadd.f32 %v4975_v37, %v740_v45 }
 0x3d0   :  { %v745_v50 = vsel %vm744_vm6, %v4975_v37, %v741_v46 }
 0x3d1   :  { %v750_v53 = vsel %vm747_vm7, %v749_v51, %v745_v50 }
 0x3d2   :  { %v753_v57 = vmul.f32 %v750_v53, %v6419_v47 }
 0x40d   :  { %v719_v32 = vpop.permute.xlu2 %718 }
 0x40e   :  { %v721_v34 = vmul.f32 %v719_v32, %v713_v33 }
 0x410   :  { %723 = vrot.lane.b32.xlu1 %v721_v34, %s5961_s0 }
 0x426   :  { %v756_v52 = vpop.permute.xlu0 %755 }
 0x427   :  { %v758_v54 = vmul.f32 %v756_v52, %v750_v53 }
 0x429   :  { %760 = vrot.lane.b32.xlu2 %v758_v54, %s5961_s0 }
 0x482   :  { %v724_v58 = vpop.permute.xlu1 %723 }
 0x483   :  { %v761_v59 = vpop.permute.xlu2 %760  ;;  %v6456_v60 = vadd.f32 %v724_v58, %v716_v55 }
 0x484   :  { %v6458_v61 = vadd.f32 %v761_v59, %v753_v57 }
 0x485   :  { %4976 = vtanh.f32 %v6456_v60 }
 0x486   :  { %4978 = vtanh.f32 %v6458_v61 }
 0x48b   :  { %v4977_v62 = vpop.eup %4976 }
 0x48c   :  { %v4979_v63 = vpop.eup %4978  ;;  %729 = vrot.lane.b32.xlu0 %v4977_v62, %s5971_s20 }
 0x48d   :  { %766 = vrot.lane.b32.xlu1 %v4979_v63, %s5971_s20 }
 0x4fe   :  { %v730_v0 = vpop.permute.xlu0 %729 }
 0x4ff   :  { %v767_v43 = vpop.permute.xlu1 %766  ;;  %v732_v6 = vmul.f32 %v730_v0, %v713_v33 }
 0x500   :  { %v769_v47 = vmul.f32 %v767_v43, %v750_v53 }
 0x501   :  { %771 = vrot.lane.b32.xlu2 %v732_v6, %s5961_s0 }
 0x502   :  { %776 = vrot.lane.b32.xlu0 %v769_v47, %s5971_s20 }
 0x55b   :  { %v772_v9 = vpop.permute.xlu2 %771 }
 0x55c   :  { %774 = vst.msk [vmem:[#allocation2 + $0x2] sm:$0x3] %vm637_vm11, %v772_v9 }
 0x574   :  { %v777_v11 = vpop.permute.xlu0 %776 }
 0x575   :  { %779 = vst.msk [vmem:[#allocation2 + $0xc] sm:$0x3] %vm643_vm12, %v777_v11  ;;  %v780_v12 = vsel %vm8155_vm1, %v772_v9, %v777_v11 }
 0x576   :  { %4852 = vmatmul.msk.f32.vlgmr.msrb.gmra.mxu2 %vm8158_vm2, %v780_v12  ;;  %4853 = vmatmul.msk.f32.vlgmr.msrb.gmra.mxu3 %vm8158_vm2, %v780_v12 }
 0x577   :  { %1326 = vmatpush.msrb.mxu2 %v6240_v1  ;;  %1346 = vmatpush.msrb.mxu3 %v6242_v2 }
 0x579   :  { %1327 = vmatpush.msrb.mxu2 %v6246_v3  ;;  %1347 = vmatpush.msrb.mxu3 %v6248_v4 }
 0x57b   :  { %1328 = vmatpush.msrb.mxu2 %v6251_v5  ;;  %1348 = vmatpush.msrb.mxu3 %v6254_v7 }
 0x57d   :  { %1329 = vmatpush.msrb.mxu2 %v6256_v8  ;;  %1349 = vmatpush.msrb.mxu3 %v6259_v10 }
 0x57f   :  { %1330 = vmatpush.msrb.mxu2 %v6275_v15  ;;  %1350 = vmatpush.msrb.mxu3 %v6279_v16 }
 0x581   :  { %1331 = vmatpush.msrb.mxu2 %v6282_v17  ;;  %1351 = vmatpush.msrb.mxu3 %v6286_v18 }
 0x583   :  { %1332 = vmatpush.msrb.mxu2 %v6289_v19  ;;  %1352 = vmatpush.msrb.mxu3 %v6293_v20 }
 0x585   :  { %1333 = vmatpush.msrb.mxu2 %v6315_v26  ;;  %1353 = vmatpush.msrb.mxu3 %v6317_v27 }
 0x5f9   :  { %v801_v21 = vpop.f32.mrf.mxu2  ;;  %v821_v22 = vpop.f32.mrf.mxu3 }
 0x5fa   :  { %v826_v23 = vadd.f32 %v824_v13, %v801_v21  ;;  %v829_v24 = vadd.f32 %v827_v14, %v821_v22 }
 0x5fc   :  { %4980 = vtanh.f32 %v826_v23  ;;  %v4855_v29 = vmul.f32 -1.442695, %v829_v24  ;;  %v4854_v33 = vmul.f32 -1.442695, %v826_v23 }
 0x5fd   :  { %4982 = vtanh.f32 %v829_v24 }
 0x5fe   :  { %4984 = vpow2.f32 %v4855_v29 }
 0x602   :  { %v4981_v25 = vpop.eup %4980 }
 0x603   :  { %v4983_v28 = vpop.eup %4982  ;;  %852 = vrot.lane.b32.xlu1 %v4981_v25, %s5971_s20 }
 0x604   :  { %889 = vrot.lane.b32.xlu2 %v4983_v28, %s5971_s20  ;;  %v4985_v30 = vpop.eup %4984 }
 0x605   :  { %v870_v31 = vadd.f32 1.0, %v4985_v30 }
 0x607   :  { %4986 = vrcp.f32 %v870_v31  ;;  %v882_v48 = vand.u32 2147483648, %v870_v31  ;;  %vm876_vm9 = vweird.f32 %v870_v31  ;;  %v880_v49 = vand.u32 2147483647, %v870_v31 }
 0x608   :  { %4988 = vpow2.f32 %v4854_v33 }
 0x609   :  { %v883_v51 = vor.u32 1.1754944e-38, %v882_v48  ;;  %vm881_vm13 = vcmp.eq.f32.partialorder %v880_v49, 8.507059e+37 }
 0x60d   :  { %v4987_v32 = vpop.eup %4986 }
 0x60e   :  { %v872_v34 = vmul.f32 %v4987_v32, %v870_v31  ;;  %v4989_v41 = vpop.eup %4988  ;;  %vm877_vm8 = vweird.f32 %v4987_v32 }
 0x60f   :  { %v833_v45 = vadd.f32 1.0, %v4989_v41  ;;  %vm878_vm10 = vmor %vm876_vm9, %vm877_vm8 }
 0x610   :  { %v873_v37 = vsub.f32 1.0, %v872_v34 }
 0x611   :  { %4990 = vrcp.f32 %v833_v45  ;;  %v845_v63 = vand.u32 2147483648, %v833_v45  ;;  %vm839_vm15 = vweird.f32 %v833_v45  ;;  %v843_v0 = vand.u32 2147483647, %v833_v45 }
 0x612   :  { %v874_v44 = vmul.f32 %v4987_v32, %v873_v37 }
 0x613   :  { %v846_v6 = vor.u32 1.1754944e-38, %v845_v63  ;;  %vm844_vm4 = vcmp.eq.f32.partialorder %v843_v0, 8.507059e+37 }
 0x614   :  { %v875_v46 = vadd.f32 %v4987_v32, %v874_v44 }
 0x616   :  { %v879_v50 = vsel %vm878_vm10, %v4987_v32, %v875_v46 }
 0x617   :  { %v884_v53 = vsel %vm881_vm13, %v883_v51, %v879_v50  ;;  %v4991_v54 = vpop.eup %4990 }
 0x618   :  { %v835_v57 = vmul.f32 %v4991_v54, %v833_v45  ;;  %vm840_vm14 = vweird.f32 %v4991_v54  ;;  %v887_v12 = vmul.f32 %v884_v53, %v6458_v61 }
 0x619   :  { %vm841_vm3 = vmor %vm839_vm15, %vm840_vm14 }
 0x61a   :  { %v836_v58 = vsub.f32 1.0, %v835_v57 }
 0x61c   :  { %v837_v59 = vmul.f32 %v4991_v54, %v836_v58 }
 0x61e   :  { %v838_v62 = vadd.f32 %v4991_v54, %v837_v59 }
 0x620   :  { %v842_v43 = vsel %vm841_vm3, %v4991_v54, %v838_v62 }
 0x621   :  { %v847_v9 = vsel %vm844_vm4, %v846_v6, %v842_v43 }
 0x622   :  { %v850_v22 = vmul.f32 %v847_v9, %v6456_v60 }
 0x65e   :  { %v890_v52 = vpop.permute.xlu2 %889 }
 0x65f   :  { %v892_v55 = vmul.f32 %v890_v52, %v884_v53 }
 0x661   :  { %894 = vrot.lane.b32.xlu1 %v892_v55, %s5961_s0 }
 0x675   :  { %v853_v47 = vpop.permute.xlu1 %852 }
 0x676   :  { %v855_v11 = vmul.f32 %v853_v47, %v847_v9 }
 0x678   :  { %857 = vrot.lane.b32.xlu0 %v855_v11, %s5961_s0 }
 0x6d3   :  { %v895_v13 = vpop.permute.xlu1 %894 }
 0x6d4   :  { %v6494_v14 = vadd.f32 %v895_v13, %v887_v12 }
 0x6d6   :  { %4992 = vtanh.f32 %v6494_v14 }
 0x6dc   :  { %v4993_v21 = vpop.eup %4992 }
 0x6dd   :  { %900 = vrot.lane.b32.xlu0 %v4993_v21, %s5971_s20 }
 0x6ea   :  { %v858_v23 = vpop.permute.xlu0 %857 }
 0x6eb   :  { %v6499_v24 = vadd.f32 %v858_v23, %v850_v22 }
 0x6ed   :  { %4994 = vtanh.f32 %v6499_v24 }
 0x6f3   :  { %v4995_v25 = vpop.eup %4994 }
 0x6f4   :  { %863 = vrot.lane.b32.xlu2 %v4995_v25, %s5971_s20 }
 0x74e   :  { %v864_v28 = vpop.permute.xlu2 %863 }
 0x74f   :  { %v901_v61 = vpop.permute.xlu0 %900  ;;  %v866_v29 = vmul.f32 %v864_v28, %v847_v9  ;;  %v6552_v28 = vadd.f32 %v6388_v35, %v395_v38 }
 0x750   :  { %v903_v30 = vmul.f32 %v901_v61, %v884_v53  ;;  %v6557_v61 = vadd.f32 %v6446_v56, %v394_v40 }
 0x751   :  { %905 = vrot.lane.b32.xlu1 %v866_v29, %s5961_s0  ;;  %v1092_v29 = vrot.slane %v6552_v28, 6 }
 0x752   :  { %910 = vrot.lane.b32.xlu2 %v903_v30, %s5971_s20 }
 0x7ac   :  { %v911_v31 = vpop.permute.xlu2 %910 }
 0x7ad   :  { %913 = vst.msk [vmem:[#allocation2 + $0xa] sm:$0x3] %vm643_vm12, %v911_v31 }
 0x7c3   :  { %v906_v60 = vpop.permute.xlu1 %905 }
 0x7c4   :  { %908 = vst.msk [vmem:[#allocation2 + $0x4] sm:$0x3] %vm637_vm11, %v906_v60  ;;  %v914_v32 = vsel %vm8155_vm1, %v906_v60, %v911_v31 }
 0x7c5   :  { %4856 = vmatmul.msk.f32.vlgmr.msra.gmra.mxu0 %vm8158_vm2, %v914_v32  ;;  %4857 = vmatmul.msk.f32.vlgmr.msra.gmra.mxu1 %vm8158_vm2, %v914_v32 }
 0x7c6   :  { %1460 = vmatpush.msra.mxu0 %v6240_v1  ;;  %1480 = vmatpush.msra.mxu1 %v6242_v2  ;;  %v958_v1 = vrot.slane %v6403_v42, 6 }
 0x7c8   :  { %1461 = vmatpush.msra.mxu0 %v6246_v3  ;;  %1481 = vmatpush.msra.mxu1 %v6248_v4 }
 0x7ca   :  { %1462 = vmatpush.msra.mxu0 %v6251_v5  ;;  %1482 = vmatpush.msra.mxu1 %v6254_v7 }
 0x7cc   :  { %1463 = vmatpush.msra.mxu0 %v6256_v8  ;;  %1483 = vmatpush.msra.mxu1 %v6259_v10 }
 0x7ce   :  { %1464 = vmatpush.msra.mxu0 %v6275_v15  ;;  %1484 = vmatpush.msra.mxu1 %v6279_v16 }
 0x7d0   :  { %1465 = vmatpush.msra.mxu0 %v6282_v17  ;;  %1485 = vmatpush.msra.mxu1 %v6286_v18 }
 0x7d2   :  { %1466 = vmatpush.msra.mxu0 %v6289_v19  ;;  %1486 = vmatpush.msra.mxu1 %v6293_v20 }
 0x7d4   :  { %1467 = vmatpush.msra.mxu0 %v6315_v26  ;;  %1487 = vmatpush.msra.mxu1 %v6317_v27 }
 0x842   :  { %v935_v2 = vpop.f32.mrf.mxu0  ;;  %v955_v3 = vpop.f32.mrf.mxu1 }
 0x843   :  { %v960_v4 = vadd.f32 %v958_v1, %v935_v2  ;;  %v961_v5 = vadd.f32 %v955_v3, %v6398_v39 }
 0x845   :  { %4996 = vtanh.f32 %v960_v4  ;;  %v4858_v10 = vmul.f32 -1.442695, %v960_v4  ;;  %v4859_v15 = vmul.f32 -1.442695, %v961_v5 }
 0x846   :  { %4998 = vtanh.f32 %v961_v5 }
 0x847   :  { %5000 = vpow2.f32 %v4858_v10 }
 0x848   :  { %5002 = vpow2.f32 %v4859_v15 }
 0x84b   :  { %v4997_v7 = vpop.eup %4996 }
 0x84c   :  { %v4999_v8 = vpop.eup %4998  ;;  %984 = vrot.lane.b32.xlu0 %v4997_v7, %s5971_s20 }
 0x84d   :  { %1021 = vrot.lane.b32.xlu1 %v4999_v8, %s5971_s20  ;;  %v5001_v16 = vpop.eup %5000 }
 0x84e   :  { %v5003_v17 = vpop.eup %5002  ;;  %v965_v18 = vadd.f32 1.0, %v5001_v16 }
 0x84f   :  { %v1002_v19 = vadd.f32 1.0, %v5003_v17 }
 0x850   :  { %5004 = vrcp.f32 %v965_v18  ;;  %v977_v45 = vand.u32 2147483648, %v965_v18  ;;  %vm971_vm7 = vweird.f32 %v965_v18  ;;  %v975_v48 = vand.u32 2147483647, %v965_v18 }
 0x851   :  { %5006 = vrcp.f32 %v1002_v19  ;;  %v1014_v46 = vand.u32 2147483648, %v1002_v19  ;;  %vm1008_vm8 = vweird.f32 %v1002_v19  ;;  %v1012_v49 = vand.u32 2147483647, %v1002_v19 }
 0x852   :  { %v978_v52 = vor.u32 1.1754944e-38, %v977_v45  ;;  %vm976_vm13 = vcmp.eq.f32.partialorder %v975_v48, 8.507059e+37 }
 0x853   :  { %v1015_v53 = vor.u32 1.1754944e-38, %v1014_v46  ;;  %vm1013_vm14 = vcmp.eq.f32.partialorder %v1012_v49, 8.507059e+37 }
 0x856   :  { %v5005_v20 = vpop.eup %5004 }
 0x857   :  { %v5007_v26 = vpop.eup %5006  ;;  %v967_v27 = vmul.f32 %v5005_v20, %v965_v18  ;;  %vm972_vm5 = vweird.f32 %v5005_v20 }
 0x858   :  { %v1004_v39 = vmul.f32 %v5007_v26, %v1002_v19  ;;  %vm1009_vm6 = vweird.f32 %v5007_v26  ;;  %vm973_vm9 = vmor %vm971_vm7, %vm972_vm5 }
 0x859   :  { %v968_v42 = vsub.f32 1.0, %v967_v27  ;;  %vm1010_vm10 = vmor %vm1008_vm8, %vm1009_vm6 }
 0x85a   :  { %v1005_v33 = vsub.f32 1.0, %v1004_v39 }
 0x85b   :  { %v969_v34 = vmul.f32 %v5005_v20, %v968_v42 }
 0x85c   :  { %v1006_v37 = vmul.f32 %v5007_v26, %v1005_v33 }
 0x85d   :  { %v970_v41 = vadd.f32 %v5005_v20, %v969_v34 }
 0x85e   :  { %v1007_v44 = vadd.f32 %v5007_v26, %v1006_v37 }
 0x85f   :  { %v974_v50 = vsel %vm973_vm9, %v5005_v20, %v970_v41 }
 0x860   :  { %v1011_v51 = vsel %vm1010_vm10, %v5007_v26, %v1007_v44  ;;  %v979_v55 = vsel %vm976_vm13, %v978_v52, %v974_v50 }
 0x861   :  { %v1016_v58 = vsel %vm1013_vm14, %v1015_v53, %v1011_v51  ;;  %v982_v63 = vmul.f32 %v979_v55, %v6499_v24 }
 0x862   :  { %v1019_v47 = vmul.f32 %v1016_v58, %v6494_v14 }
 0x8be   :  { %v985_v54 = vpop.permute.xlu0 %984 }
 0x8bf   :  { %v1022_v57 = vpop.permute.xlu1 %1021  ;;  %v987_v59 = vmul.f32 %v985_v54, %v979_v55 }
 0x8c0   :  { %v1024_v62 = vmul.f32 %v1022_v57, %v1016_v58 }
 0x8c1   :  { %989 = vrot.lane.b32.xlu2 %v987_v59, %s5961_s0 }
 0x8c2   :  { %1026 = vrot.lane.b32.xlu0 %v1024_v62, %s5961_s0 }
 0x91b   :  { %v990_v0 = vpop.permute.xlu2 %989 }
 0x91c   :  { %v6533_v43 = vadd.f32 %v990_v0, %v982_v63 }
 0x91e   :  { %5008 = vtanh.f32 %v6533_v43 }
 0x924   :  { %v5009_v6 = vpop.eup %5008 }
 0x925   :  { %995 = vrot.lane.b32.xlu1 %v5009_v6, %s5971_s20 }
 0x934   :  { %v1027_v9 = vpop.permute.xlu0 %1026 }
 0x935   :  { %v6538_v11 = vadd.f32 %v1027_v9, %v1019_v47  ;;  %v1224_v9 = vrot.slane %v6557_v61, 2 }
 0x937   :  { %5010 = vtanh.f32 %v6538_v11 }
 0x93d   :  { %v5011_v12 = vpop.eup %5010 }
 0x93e   :  { %1032 = vrot.lane.b32.xlu2 %v5011_v12, %s5971_s20 }
 0x997   :  { %v996_v13 = vpop.permute.xlu1 %995 }
 0x998   :  { %v1033_v21 = vpop.permute.xlu2 %1032  ;;  %v998_v22 = vmul.f32 %v996_v13, %v979_v55 }
 0x999   :  { %v1035_v23 = vmul.f32 %v1033_v21, %v1016_v58 }
 0x99a   :  { %1037 = vrot.lane.b32.xlu0 %v998_v22, %s5961_s0 }
 0x99b   :  { %1042 = vrot.lane.b32.xlu1 %v1035_v23, %s5971_s20 }
 0xa0c   :  { %v1038_v24 = vpop.permute.xlu0 %1037 }
 0xa0d   :  { %1040 = vst.msk [vmem:[#allocation2 + $0x6] sm:$0x3] %vm637_vm11, %v1038_v24  ;;  %v1043_v14 = vpop.permute.xlu1 %1042 }
 0xa0e   :  { %1045 = vst.msk [vmem:[#allocation2 + $0x8] sm:$0x3] %vm643_vm12, %v1043_v14  ;;  %v1046_v25 = vsel %vm8155_vm1, %v1038_v24, %v1043_v14 }
 0xa0f   :  { %4860 = vmatmul.msk.f32.vlgmr.msra.gmra.mxu2 %vm8158_vm2, %v1046_v25  ;;  %4861 = vmatmul.msk.f32.vlgmr.msra.gmra.mxu3 %vm8158_vm2, %v1046_v25 }
 0xa92   :  { %v1067_v30 = vpop.f32.mrf.mxu2  ;;  %v1087_v31 = vpop.f32.mrf.mxu3 }
 0xa93   :  { %v1090_v60 = vadd.f32 %v1067_v30, %v6557_v61  ;;  %v1094_v32 = vadd.f32 %v1092_v29, %v1087_v31 }
 0xa95   :  { %5012 = vtanh.f32 %v1090_v60  ;;  %v4862_v35 = vmul.f32 -1.442695, %v1090_v60  ;;  %v4863_v56 = vmul.f32 -1.442695, %v1094_v32 }
 0xa96   :  { %5014 = vtanh.f32 %v1094_v32 }
 0xa97   :  { %5016 = vpow2.f32 %v4862_v35 }
 0xa9b   :  { %v5013_v1 = vpop.eup %5012 }
 0xa9c   :  { %v5015_v2 = vpop.eup %5014  ;;  %1117 = vrot.lane.b32.xlu2 %v5013_v1, %s5971_s20 }
 0xa9d   :  { %1154 = vrot.lane.b32.xlu0 %v5015_v2, %s5971_s20  ;;  %v5017_v36 = vpop.eup %5016 }
 0xa9e   :  { %v1098_v38 = vadd.f32 1.0, %v5017_v36 }
 0xaa0   :  { %5018 = vrcp.f32 %v1098_v38  ;;  %v1110_v15 = vand.u32 2147483648, %v1098_v38  ;;  %vm1104_vm3 = vweird.f32 %v1098_v38  ;;  %v1108_v16 = vand.u32 2147483647, %v1098_v38 }
 0xaa1   :  { %5020 = vpow2.f32 %v4863_v56 }
 0xaa2   :  { %v1111_v18 = vor.u32 1.1754944e-38, %v1110_v15  ;;  %vm1109_vm5 = vcmp.eq.f32.partialorder %v1108_v16, 8.507059e+37 }
 0xaa6   :  { %v5019_v40 = vpop.eup %5018 }
 0xaa7   :  { %v1100_v3 = vmul.f32 %v5019_v40, %v1098_v38  ;;  %v5021_v7 = vpop.eup %5020  ;;  %vm1105_vm15 = vweird.f32 %v5019_v40 }
 0xaa8   :  { %v1135_v8 = vadd.f32 1.0, %v5021_v7  ;;  %vm1106_vm4 = vmor %vm1104_vm3, %vm1105_vm15 }
 0xaa9   :  { %v1101_v4 = vsub.f32 1.0, %v1100_v3 }
 0xaaa   :  { %5022 = vrcp.f32 %v1135_v8  ;;  %v1147_v37 = vand.u32 2147483648, %v1135_v8  ;;  %vm1141_vm7 = vweird.f32 %v1135_v8  ;;  %v1145_v41 = vand.u32 2147483647, %v1135_v8 }
 0xaab   :  { %v1102_v5 = vmul.f32 %v5019_v40, %v1101_v4 }
 0xaac   :  { %v1148_v45 = vor.u32 1.1754944e-38, %v1147_v37  ;;  %vm1146_vm9 = vcmp.eq.f32.partialorder %v1145_v41, 8.507059e+37 }
 0xaad   :  { %v1103_v10 = vadd.f32 %v5019_v40, %v1102_v5 }
 0xaaf   :  { %v1107_v17 = vsel %vm1106_vm4, %v5019_v40, %v1103_v10 }
 0xab0   :  { %v1112_v20 = vsel %vm1109_vm5, %v1111_v18, %v1107_v17  ;;  %v5023_v27 = vpop.eup %5022 }
 0xab1   :  { %v1137_v39 = vmul.f32 %v5023_v27, %v1135_v8  ;;  %vm1142_vm6 = vweird.f32 %v5023_v27  ;;  %v1115_v50 = vmul.f32 %v1112_v20, %v6533_v43 }
 0xab2   :  { %vm1143_vm8 = vmor %vm1141_vm7, %vm1142_vm6 }
 0xab3   :  { %v1138_v42 = vsub.f32 1.0, %v1137_v39 }
 0xab5   :  { %v1139_v33 = vmul.f32 %v5023_v27, %v1138_v42 }
 0xab7   :  { %v1140_v34 = vadd.f32 %v5023_v27, %v1139_v33 }
 0xab9   :  { %v1144_v44 = vsel %vm1143_vm8, %v5023_v27, %v1140_v34 }
 0xaba   :  { %v1149_v48 = vsel %vm1146_vm9, %v1148_v45, %v1144_v44 }
 0xabb   :  { %v1152_v51 = vmul.f32 %v1149_v48, %v6538_v11  ;;  %v1227_v11 = vrot.slane %v6552_v28, 4 }
 0xaf6   :  { %v1118_v19 = vpop.permute.xlu2 %1117 }
 0xaf7   :  { %v1120_v26 = vmul.f32 %v1118_v19, %v1112_v20 }
 0xaf9   :  { %1122 = vrot.lane.b32.xlu1 %v1120_v26, %s5961_s0 }
 0xb0f   :  { %v1155_v46 = vpop.permute.xlu0 %1154 }
 0xb10   :  { %v1157_v49 = vmul.f32 %v1155_v46, %v1149_v48 }
 0xb12   :  { %1159 = vrot.lane.b32.xlu2 %v1157_v49, %s5961_s0 }
 0xb6b   :  { %v1123_v52 = vpop.permute.xlu1 %1122 }
 0xb6c   :  { %v1160_v53 = vpop.permute.xlu2 %1159  ;;  %v6567_v54 = vadd.f32 %v1123_v52, %v1115_v50 }
 0xb6d   :  { %v6569_v55 = vadd.f32 %v1160_v53, %v1152_v51 }
 0xb6e   :  { %5024 = vtanh.f32 %v6567_v54 }
 0xb6f   :  { %5026 = vtanh.f32 %v6569_v55 }
 0xb74   :  { %v5025_v57 = vpop.eup %5024 }
 0xb75   :  { %v5027_v58 = vpop.eup %5026  ;;  %1128 = vrot.lane.b32.xlu0 %v5025_v57, %s5971_s20  ;;  %v1358_v57 = vrot.slane %v6557_v61, 4 }
 0xb76   :  { %1165 = vrot.lane.b32.xlu1 %v5027_v58, %s5971_s20  ;;  %v1361_v58 = vrot.slane %v6552_v28, 2 }
 0xbe7   :  { %v1129_v59 = vpop.permute.xlu0 %1128 }
 0xbe8   :  { %v1166_v62 = vpop.permute.xlu1 %1165  ;;  %v1131_v63 = vmul.f32 %v1129_v59, %v1112_v20 }
 0xbe9   :  { %v1168_v0 = vmul.f32 %v1166_v62, %v1149_v48 }
 0xbea   :  { %1170 = vrot.lane.b32.xlu2 %v1131_v63, %s5961_s0 }
 0xbeb   :  { %1175 = vrot.lane.b32.xlu0 %v1168_v0, %s5971_s20 }
 0xc44   :  { %v1171_v43 = vpop.permute.xlu2 %1170 }
 0xc45   :  { %1173 = vst.msk [vmem:[#allocation2 + $0x8] sm:$0x3] %vm637_vm11, %v1171_v43 }
 0xc5d   :  { %v1176_v6 = vpop.permute.xlu0 %1175 }
 0xc5e   :  { %1178 = vst.msk [vmem:[#allocation2 + $0x6] sm:$0x3] %vm643_vm12, %v1176_v6  ;;  %v1179_v47 = vsel %vm8155_vm1, %v1171_v43, %v1176_v6 }
 0xc5f   :  { %4864 = vmatmul.msk.f32.vlgmr.msrb.gmra.mxu0 %vm8158_vm2, %v1179_v47  ;;  %4865 = vmatmul.msk.f32.vlgmr.msrb.gmra.mxu1 %vm8158_vm2, %v1179_v47 }
 0xcdc   :  { %v1200_v12 = vpop.f32.mrf.mxu0  ;;  %v1220_v13 = vpop.f32.mrf.mxu1 }
 0xcdd   :  { %v1226_v21 = vadd.f32 %v1224_v9, %v1200_v12  ;;  %v1229_v22 = vadd.f32 %v1227_v11, %v1220_v13 }
 0xcdf   :  { %5028 = vtanh.f32 %v1226_v21  ;;  %v4867_v14 = vmul.f32 -1.442695, %v1229_v22  ;;  %v4866_v31 = vmul.f32 -1.442695, %v1226_v21 }
 0xce0   :  { %5030 = vtanh.f32 %v1229_v22 }
 0xce1   :  { %5032 = vpow2.f32 %v4867_v14 }
 0xce5   :  { %v5029_v23 = vpop.eup %5028 }
 0xce6   :  { %v5031_v24 = vpop.eup %5030  ;;  %1252 = vrot.lane.b32.xlu1 %v5029_v23, %s5971_s20 }
 0xce7   :  { %1289 = vrot.lane.b32.xlu2 %v5031_v24, %s5971_s20  ;;  %v5033_v25 = vpop.eup %5032 }
 0xce8   :  { %v1270_v29 = vadd.f32 1.0, %v5033_v25 }
 0xcea   :  { %5034 = vrcp.f32 %v1270_v29  ;;  %v1282_v38 = vand.u32 2147483648, %v1270_v29  ;;  %vm1276_vm13 = vweird.f32 %v1270_v29  ;;  %v1280_v40 = vand.u32 2147483647, %v1270_v29 }
 0xceb   :  { %5036 = vpow2.f32 %v4866_v31 }
 0xcec   :  { %v1283_v3 = vor.u32 1.1754944e-38, %v1282_v38  ;;  %vm1281_vm15 = vcmp.eq.f32.partialorder %v1280_v40, 8.507059e+37 }
 0xcf0   :  { %v5035_v30 = vpop.eup %5034 }
 0xcf1   :  { %v1272_v60 = vmul.f32 %v5035_v30, %v1270_v29  ;;  %v5037_v1 = vpop.eup %5036  ;;  %vm1277_vm10 = vweird.f32 %v5035_v30 }
 0xcf2   :  { %v1233_v35 = vadd.f32 1.0, %v5037_v1  ;;  %vm1278_vm14 = vmor %vm1276_vm13, %vm1277_vm10 }
 0xcf3   :  { %v1273_v32 = vsub.f32 1.0, %v1272_v60 }
 0xcf4   :  { %5038 = vrcp.f32 %v1233_v35  ;;  %v1245_v18 = vand.u32 2147483648, %v1233_v35  ;;  %vm1239_vm4 = vweird.f32 %v1233_v35  ;;  %v1243_v19 = vand.u32 2147483647, %v1233_v35 }
 0xcf5   :  { %v1274_v2 = vmul.f32 %v5035_v30, %v1273_v32 }
 0xcf6   :  { %v1246_v26 = vor.u32 1.1754944e-38, %v1245_v18  ;;  %vm1244_vm6 = vcmp.eq.f32.partialorder %v1243_v19, 8.507059e+37 }
 0xcf7   :  { %v1275_v36 = vadd.f32 %v5035_v30, %v1274_v2 }
 0xcf9   :  { %v1279_v56 = vsel %vm1278_vm14, %v5035_v30, %v1275_v36 }
 0xcfa   :  { %v1284_v5 = vsel %vm1281_vm15, %v1283_v3, %v1279_v56  ;;  %v5039_v7 = vpop.eup %5038 }
 0xcfb   :  { %v1235_v10 = vmul.f32 %v5039_v7, %v1233_v35  ;;  %vm1240_vm3 = vweird.f32 %v5039_v7  ;;  %v1287_v33 = vmul.f32 %v1284_v5, %v6569_v55 }
 0xcfc   :  { %vm1241_vm5 = vmor %vm1239_vm4, %vm1240_vm3 }
 0xcfd   :  { %v1236_v15 = vsub.f32 1.0, %v1235_v10 }
 0xcff   :  { %v1237_v16 = vmul.f32 %v5039_v7, %v1236_v15 }
 0xd01   :  { %v1238_v17 = vadd.f32 %v5039_v7, %v1237_v16 }
 0xd03   :  { %v1242_v20 = vsel %vm1241_vm5, %v5039_v7, %v1238_v17 }
 0xd04   :  { %v1247_v39 = vsel %vm1244_vm6, %v1246_v26, %v1242_v20 }
 0xd05   :  { %v1250_v44 = vmul.f32 %v1247_v39, %v6567_v54 }
 0xd41   :  { %v1290_v4 = vpop.permute.xlu2 %1289 }
 0xd42   :  { %v1292_v8 = vmul.f32 %v1290_v4, %v1284_v5 }
 0xd44   :  { %1294 = vrot.lane.b32.xlu1 %v1292_v8, %s5961_s0 }
 0xd58   :  { %v1253_v27 = vpop.permute.xlu1 %1252 }
 0xd59   :  { %v1255_v42 = vmul.f32 %v1253_v27, %v1247_v39 }
 0xd5b   :  { %1257 = vrot.lane.b32.xlu0 %v1255_v42, %s5961_s0 }
 0xdb6   :  { %v1295_v34 = vpop.permute.xlu1 %1294 }
 0xdb7   :  { %v6589_v37 = vadd.f32 %v1295_v34, %v1287_v33 }
 0xdb9   :  { %5040 = vtanh.f32 %v6589_v37 }
 0xdbf   :  { %v5041_v41 = vpop.eup %5040 }
 0xdc0   :  { %1300 = vrot.lane.b32.xlu0 %v5041_v41, %s5971_s20 }
 0xdcd   :  { %v1258_v45 = vpop.permute.xlu0 %1257 }
 0xdce   :  { %v6594_v46 = vadd.f32 %v1258_v45, %v1250_v44 }
 0xdd0   :  { %5042 = vtanh.f32 %v6594_v46 }
 0xdd6   :  { %v5043_v48 = vpop.eup %5042 }
 0xdd7   :  { %1263 = vrot.lane.b32.xlu2 %v5043_v48, %s5971_s20 }
 0xe31   :  { %v1264_v49 = vpop.permute.xlu2 %1263 }
 0xe32   :  { %v1301_v50 = vpop.permute.xlu0 %1300  ;;  %v1266_v51 = vmul.f32 %v1264_v49, %v1247_v39 }
 0xe33   :  { %v1303_v52 = vmul.f32 %v1301_v50, %v1284_v5 }
 0xe34   :  { %1305 = vrot.lane.b32.xlu1 %v1266_v51, %s5961_s0 }
 0xe35   :  { %1310 = vrot.lane.b32.xlu2 %v1303_v52, %s5971_s20 }
 0xe8f   :  { %v1311_v53 = vpop.permute.xlu2 %1310 }
 0xe90   :  { %1313 = vst.msk [vmem:[#allocation2 + $0x4] sm:$0x3] %vm643_vm12, %v1311_v53 }
 0xea6   :  { %v1306_v54 = vpop.permute.xlu1 %1305 }
 0xea7   :  { %1308 = vst.msk [vmem:[#allocation2 + $0xa] sm:$0x3] %vm637_vm11, %v1306_v54  ;;  %v1314_v55 = vsel %vm8155_vm1, %v1306_v54, %v1311_v53 }
 0xea8   :  { %4868 = vmatmul.msk.f32.vlgmr.msrb.gmra.mxu2 %vm8158_vm2, %v1314_v55  ;;  %4869 = vmatmul.msk.f32.vlgmr.msrb.gmra.mxu3 %vm8158_vm2, %v1314_v55 }
 0xf2b   :  { %v1335_v59 = vpop.f32.mrf.mxu2  ;;  %v1355_v62 = vpop.f32.mrf.mxu3 }
 0xf2c   :  { %v1360_v63 = vadd.f32 %v1358_v57, %v1335_v59  ;;  %v1363_v0 = vadd.f32 %v1361_v58, %v1355_v62 }
 0xf2e   :  { %5044 = vtanh.f32 %v1360_v63  ;;  %v4870_v47 = vmul.f32 -1.442695, %v1360_v63  ;;  %v4871_v9 = vmul.f32 -1.442695, %v1363_v0 }
 0xf2f   :  { %5046 = vtanh.f32 %v1363_v0 }
 0xf30   :  { %5048 = vpow2.f32 %v4870_v47 }
 0xf31   :  { %5050 = vpow2.f32 %v4871_v9 }
 0xf34   :  { %v5045_v43 = vpop.eup %5044 }
 0xf35   :  { %v5047_v6 = vpop.eup %5046  ;;  %1386 = vrot.lane.b32.xlu0 %v5045_v43, %s5971_s20 }
 0xf36   :  { %1423 = vrot.lane.b32.xlu1 %v5047_v6, %s5971_s20  ;;  %v5049_v11 = vpop.eup %5048 }
 0xf37   :  { %v5051_v12 = vpop.eup %5050  ;;  %v1367_v13 = vadd.f32 1.0, %v5049_v11 }
 0xf38   :  { %v1404_v21 = vadd.f32 1.0, %v5051_v12 }
 0xf39   :  { %5052 = vrcp.f32 %v1367_v13  ;;  %v1379_v1 = vand.u32 2147483648, %v1367_v13  ;;  %vm1373_vm9 = vweird.f32 %v1367_v13  ;;  %v1377_v35 = vand.u32 2147483647, %v1367_v13 }
 0xf3a   :  { %5054 = vrcp.f32 %v1404_v21  ;;  %v1416_v2 = vand.u32 2147483648, %v1404_v21  ;;  %vm1410_vm10 = vweird.f32 %v1404_v21  ;;  %v1414_v36 = vand.u32 2147483647, %v1404_v21 }
 0xf3b   :  { %v1380_v56 = vor.u32 1.1754944e-38, %v1379_v1  ;;  %vm1378_vm15 = vcmp.eq.f32.partialorder %v1377_v35, 8.507059e+37 }
 0xf3c   :  { %v1417_v3 = vor.u32 1.1754944e-38, %v1416_v2  ;;  %vm1415_vm3 = vcmp.eq.f32.partialorder %v1414_v36, 8.507059e+37 }
 0xf3f   :  { %v5053_v22 = vpop.eup %5052 }
 0xf40   :  { %v5055_v23 = vpop.eup %5054  ;;  %v1369_v24 = vmul.f32 %v5053_v22, %v1367_v13  ;;  %vm1374_vm7 = vweird.f32 %v5053_v22 }
 0xf41   :  { %v1406_v14 = vmul.f32 %v5055_v23, %v1404_v21  ;;  %vm1411_vm8 = vweird.f32 %v5055_v23  ;;  %vm1375_vm13 = vmor %vm1373_vm9, %vm1374_vm7 }
 0xf42   :  { %v1370_v25 = vsub.f32 1.0, %v1369_v24  ;;  %vm1412_vm14 = vmor %vm1410_vm10, %vm1411_vm8 }
 0xf43   :  { %v1407_v29 = vsub.f32 1.0, %v1406_v14 }
 0xf44   :  { %v1371_v30 = vmul.f32 %v5053_v22, %v1370_v25 }
 0xf45   :  { %v1408_v31 = vmul.f32 %v5055_v23, %v1407_v29 }
 0xf46   :  { %v1372_v60 = vadd.f32 %v5053_v22, %v1371_v30 }
 0xf47   :  { %v1409_v32 = vadd.f32 %v5055_v23, %v1408_v31 }
 0xf48   :  { %v1376_v38 = vsel %vm1375_vm13, %v5053_v22, %v1372_v60 }
 0xf49   :  { %v1413_v40 = vsel %vm1412_vm14, %v5055_v23, %v1409_v32  ;;  %v1381_v5 = vsel %vm1378_vm15, %v1380_v56, %v1376_v38  ;;  %vm1702_vm14 = vcmask 17408  }
 0xf4a   :  { %v1418_v8 = vsel %vm1415_vm3, %v1417_v3, %v1413_v40  ;;  %v1384_v16 = vmul.f32 %v1381_v5, %v6594_v46  ;;  %v1492_v46 = vrot.slane %v6557_v61, 6 }
 0xf4b   :  { %v1421_v20 = vmul.f32 %v1418_v8, %v6589_v37 }
 0xfa7   :  { %v1387_v4 = vpop.permute.xlu0 %1386 }
 0xfa8   :  { %v1424_v7 = vpop.permute.xlu1 %1423  ;;  %v1389_v10 = vmul.f32 %v1387_v4, %v1381_v5 }
 0xfa9   :  { %v1426_v15 = vmul.f32 %v1424_v7, %v1418_v8  ;;  %v1627_v7 = vld [vmem:[#allocation9 + $0x38] sm:$0xff] }
 0xfaa   :  { %1391 = vrot.lane.b32.xlu2 %v1389_v10, %s5961_s0  ;;  %1640 = vmatpush.msra.mxu2 %v1627_v7  ;;  %v1625_v10 = vld [vmem:[#allocation9 + $0x28] sm:$0xff] }
 0xfab   :  { %1428 = vrot.lane.b32.xlu0 %v1426_v15, %s5961_s0  ;;  %v1624_v15 = vld [vmem:[#allocation9 + $0x20] sm:$0xff] }
0x1004   :  { %v1392_v17 = vpop.permute.xlu2 %1391 }
0x1005   :  { %v6612_v18 = vadd.f32 %v1392_v17, %v1384_v16 }
0x1007   :  { %5056 = vtanh.f32 %v6612_v18 }
0x100d   :  { %v5057_v19 = vpop.eup %5056 }
0x100e   :  { %1397 = vrot.lane.b32.xlu1 %v5057_v19, %s5971_s20 }
0x101d   :  { %v1429_v26 = vpop.permute.xlu0 %1428 }
0x101e   :  { %v6617_v27 = vadd.f32 %v1429_v26, %v1421_v20  ;;  %v1623_v20 = vld [vmem:[#allocation9 + $0x18] sm:$0xff]  ;;  %v1622_v26 = vld [vmem:[#allocation9 + $0x10] sm:$0xff] }
0x1020   :  { %5058 = vtanh.f32 %v6617_v27 }
0x1026   :  { %v5059_v39 = vpop.eup %5058 }
0x1027   :  { %1434 = vrot.lane.b32.xlu2 %v5059_v39, %s5971_s20  ;;  %v1620_v39 = vld [vmem:[#allocation9] sm:$0xff] }
0x1080   :  { %v1398_v42 = vpop.permute.xlu1 %1397 }
0x1081   :  { %v1435_v33 = vpop.permute.xlu2 %1434  ;;  %v1400_v34 = vmul.f32 %v1398_v42, %v1381_v5  ;;  %v2028_v42 = vld [vmem:[#allocation11 + $0x38] sm:$0xff] }
0x1082   :  { %v1437_v41 = vmul.f32 %v1435_v33, %v1418_v8  ;;  %v1626_v8 = vld [vmem:[#allocation9 + $0x30] sm:$0xff]  ;;  %2071 = vmatpush.msrb.mxu1 %v2028_v42 }
0x1083   :  { %1439 = vrot.lane.b32.xlu0 %v1400_v34, %s5961_s0  ;;  %1641 = vmatpush.msra.mxu2 %v1626_v8  ;;  %v2027_v33 = vld [vmem:[#allocation11 + $0x30] sm:$0xff] }
0x1084   :  { %1444 = vrot.lane.b32.xlu1 %v1437_v41, %s5971_s20  ;;  %2072 = vmatpush.msrb.mxu1 %v2027_v33  ;;  %v2026_v41 = vld [vmem:[#allocation11 + $0x28] sm:$0xff] }
0x1085   :  { %1642 = vmatpush.msra.mxu2 %v1625_v10 }
0x1086   :  { %2073 = vmatpush.msrb.mxu1 %v2026_v41 }
0x1087   :  { %1643 = vmatpush.msra.mxu2 %v1624_v15 }
0x1089   :  { %1644 = vmatpush.msra.mxu2 %v1623_v20 }
0x108b   :  { %1645 = vmatpush.msra.mxu2 %v1622_v26 }
0x10f5   :  { %v1440_v44 = vpop.permute.xlu0 %1439 }
0x10f6   :  { %1442 = vst.msk [vmem:[#allocation2 + $0xc] sm:$0x3] %vm637_vm11, %v1440_v44  ;;  %v1445_v37 = vpop.permute.xlu1 %1444 }
0x10f7   :  { %1447 = vst.msk [vmem:[#allocation2 + $0x2] sm:$0x3] %vm643_vm12, %v1445_v37  ;;  %v1448_v45 = vsel %vm8155_vm1, %v1440_v44, %v1445_v37  ;;  %v2025_v44 = vld [vmem:[#allocation11 + $0x20] sm:$0xff]  ;;  %v2024_v37 = vld [vmem:[#allocation11 + $0x18] sm:$0xff] }
0x10f8   :  { %4872 = vmatmul.msk.f32.vlgmr.msra.gmra.mxu0 %vm8158_vm2, %v1448_v45  ;;  %4873 = vmatmul.msk.f32.vlgmr.msra.gmra.mxu1 %vm8158_vm2, %v1448_v45  ;;  %v2023_v45 = vld [vmem:[#allocation11 + $0x10] sm:$0xff] }
0x10f9   :  { %2074 = vmatpush.msrb.mxu1 %v2025_v44 }
0x10fb   :  { %2075 = vmatpush.msrb.mxu1 %v2024_v37 }
0x10fd   :  { %2076 = vmatpush.msrb.mxu1 %v2023_v45 }
0x1175   :  { %v1469_v48 = vpop.f32.mrf.mxu0  ;;  %v1489_v49 = vpop.f32.mrf.mxu1 }
0x1176   :  { %v1494_v50 = vadd.f32 %v1492_v46, %v1469_v48  ;;  %v1495_v51 = vadd.f32 %v1489_v49, %v6552_v28  ;;  %v2022_v46 = vld [vmem:[#allocation11 + $0x8] sm:$0xff]  ;;  %v2021_v49 = vld [vmem:[#allocation11] sm:$0xff] }
0x1177   :  { %2077 = vmatpush.msrb.mxu1 %v2022_v46 }
0x1178   :  { %5060 = vtanh.f32 %v1494_v50  ;;  %v4875_v54 = vmul.f32 -1.442695, %v1495_v51  ;;  %v4874_v61 = vmul.f32 -1.442695, %v1494_v50  ;;  %v5972_v50 = vmov 8.0  }
0x1179   :  { %5062 = vtanh.f32 %v1495_v51  ;;  %2078 = vmatpush.msrb.mxu1 %v2021_v49 }
0x117a   :  { %5064 = vpow2.f32 %v4875_v54 }
0x117e   :  { %v5061_v52 = vpop.eup %5060 }
0x117f   :  { %v5063_v53 = vpop.eup %5062  ;;  %1518 = vrot.lane.b32.xlu0 %v5061_v52, %s5971_s20 }
0x1180   :  { %1555 = vrot.lane.b32.xlu2 %v5063_v53, %s5971_s20  ;;  %v5065_v55 = vpop.eup %5064 }
0x1181   :  { %v1536_v57 = vadd.f32 1.0, %v5065_v55 }
0x1183   :  { %5066 = vrcp.f32 %v1536_v57  ;;  %v1548_v6 = vand.u32 2147483648, %v1536_v57  ;;  %vm1542_vm5 = vweird.f32 %v1536_v57  ;;  %v1546_v47 = vand.u32 2147483647, %v1536_v57 }
0x1184   :  { %5068 = vpow2.f32 %v4874_v61 }
0x1185   :  { %v1549_v11 = vor.u32 1.1754944e-38, %v1548_v6  ;;  %vm1547_vm7 = vcmp.eq.f32.partialorder %v1546_v47, 8.507059e+37 }
0x1189   :  { %v5067_v58 = vpop.eup %5066 }
0x118a   :  { %v1538_v59 = vmul.f32 %v5067_v58, %v1536_v57  ;;  %v5069_v63 = vpop.eup %5068  ;;  %vm1543_vm4 = vweird.f32 %v5067_v58 }
0x118b   :  { %v1499_v0 = vadd.f32 1.0, %v5069_v63  ;;  %vm1544_vm6 = vmor %vm1542_vm5, %vm1543_vm4 }
0x118c   :  { %v1539_v62 = vsub.f32 1.0, %v1538_v59 }
0x118d   :  { %5070 = vrcp.f32 %v1499_v0  ;;  %v1511_v29 = vand.u32 2147483648, %v1499_v0  ;;  %vm1505_vm9 = vweird.f32 %v1499_v0  ;;  %v1509_v30 = vand.u32 2147483647, %v1499_v0 }
0x118e   :  { %v1540_v28 = vmul.f32 %v5067_v58, %v1539_v62 }
0x118f   :  { %v1512_v60 = vor.u32 1.1754944e-38, %v1511_v29  ;;  %vm1510_vm13 = vcmp.eq.f32.partialorder %v1509_v30, 8.507059e+37 }
0x1190   :  { %v1541_v43 = vadd.f32 %v5067_v58, %v1540_v28 }
0x1192   :  { %v1545_v9 = vsel %vm1544_vm6, %v5067_v58, %v1541_v43 }
0x1193   :  { %v1550_v13 = vsel %vm1547_vm7, %v1549_v11, %v1545_v9  ;;  %v5071_v21 = vpop.eup %5070 }
0x1194   :  { %v1501_v23 = vmul.f32 %v5071_v21, %v1499_v0  ;;  %vm1506_vm8 = vweird.f32 %v5071_v21  ;;  %v1553_v36 = vmul.f32 %v1550_v13, %v6617_v27  ;;  %v1621_v27 = vld [vmem:[#allocation9 + $0x8] sm:$0xff] }
0x1195   :  { %vm1507_vm10 = vmor %vm1505_vm9, %vm1506_vm8  ;;  %1646 = vmatpush.msra.mxu2 %v1621_v27 }
0x1196   :  { %v1502_v24 = vsub.f32 1.0, %v1501_v23 }
0x1197   :  { %1647 = vmatpush.msra.mxu2 %v1620_v39 }
0x1198   :  { %v1503_v14 = vmul.f32 %v5071_v21, %v1502_v24 }
0x119a   :  { %v1504_v25 = vadd.f32 %v5071_v21, %v1503_v14 }
0x119c   :  { %v1508_v31 = vsel %vm1507_vm10, %v5071_v21, %v1504_v25 }
0x119d   :  { %v1513_v1 = vsel %vm1510_vm13, %v1512_v60, %v1508_v31 }
0x119e   :  { %v1516_v35 = vmul.f32 %v1513_v1, %v6612_v18 }
0x11da   :  { %v1556_v12 = vpop.permute.xlu2 %1555 }
0x11db   :  { %v1558_v22 = vmul.f32 %v1556_v12, %v1550_v13 }
0x11dd   :  { %1560 = vrot.lane.b32.xlu1 %v1558_v22, %s5961_s0 }
0x11f1   :  { %v1519_v32 = vpop.permute.xlu0 %1518 }
0x11f2   :  { %v1521_v2 = vmul.f32 %v1519_v32, %v1513_v1  ;;  %v1658_v32 = vld [vmem:[%s8187_s8 + $0x8] sm:$0xff] }
0x11f3   :  { %1679 = vmatpush.msra.mxu3 %v1658_v32 }
0x11f4   :  { %1523 = vrot.lane.b32.xlu2 %v1521_v2, %s5961_s0 }
0x124e   :  { %v1524_v38 = vpop.permute.xlu2 %1523 }
0x124f   :  { %v1561_v40 = vpop.permute.xlu1 %1560  ;;  %v1526_v56 = vadd.f32 %v1524_v38, %v1516_v35 }
0x1250   :  { %v1563_v3 = vadd.f32 %v1561_v40, %v1553_v36 }
0x1251   :  { %5072 = vtanh.f32 %v1526_v56 }
0x1252   :  { %5074 = vtanh.f32 %v1563_v3 }
0x1253   :  { %5076 = vrcp.f32 %v5972_v50 }
0x1257   :  { %v5073_v4 = vpop.eup %5072 }
0x1258   :  { %v5075_v5 = vpop.eup %5074  ;;  %1529 = vrot.lane.b32.xlu1 %v5073_v4, %s5971_s20 }
0x1259   :  { %1566 = vrot.lane.b32.xlu0 %v5075_v5, %s5971_s20  ;;  %v5077_v52 = vpop.eup %5076 }
0x125a   :  { %v1613_v57 = vmul.f32 8.0, %v5077_v52 }
0x125c   :  { %v1614_v63 = vsub.f32 1.0, %v1613_v57 }
0x125e   :  { %v1615_v43 = vmul.f32 %v5077_v52, %v1614_v63 }
0x1260   :  { %v1616_v23 = vadd.f32 %v5077_v52, %v1615_v43 }
0x12ca   :  { %v1530_v16 = vpop.permute.xlu1 %1529 }
0x12cb   :  { %v1567_v17 = vpop.permute.xlu0 %1566  ;;  %v1532_v18 = vmul.f32 %v1530_v16, %v1513_v1  ;;  %v1657_v1 = vld [vmem:[%s8187_s8] sm:$0xff] }
0x12cc   :  { %v1569_v19 = vmul.f32 %v1567_v17, %v1550_v13  ;;  %1680 = vmatpush.msra.mxu3 %v1657_v1 }
0x12cd   :  { %1571 = vrot.lane.b32.xlu0 %v1532_v18, %s5961_s0  ;;  %s5980_s0 = smov [#allocation36]  }
0x12ce   :  { %1576 = vrot.lane.b32.xlu2 %v1569_v19, %s5971_s20  ;;  %s4778_s4 = sshll.u32 %s5980_s0, 4  ;;  %s4779_s4 = int_to_ptr.vmem [resolvable:$true] %s4778_s4 }
0x1328   :  { %v1577_v34 = vpop.permute.xlu2 %1576 }
0x1329   :  { %1579 = vst.msk [vmem:[#allocation2] sm:$0x3] %vm643_vm12, %v1577_v34  ;;  %vm8156_vm12 = vcmask 517120  }
0x1330   :  { %v6641_v48 = vld [vmem:[#allocation2] sm:$0xff] }
0x1331   :  { %4876 = vmatmul.msk.f32.vlgmr.msra.gmra.mxu2 %vm8158_vm2, %v6641_v48  ;;  %v6646_v51 = vrot.slane %v6641_v48, 2  ;;  %v6651_v54 = vrot.slane %v6641_v48, 4  ;;  %v1597_v55 = vsel %vm8156_vm12, %v6641_v48, 0.0  ;;  %v6657_v59 = vrot.slane %v6641_v48, 6 }
0x1333   :  { %v1598_v53 = vsel %vm8156_vm12, %v6646_v51, 0.0  ;;  %v1600_v62 = vsel %vm8156_vm12, %v6651_v54, 0.0  ;;  %v1602_v0 = vsel %vm8156_vm12, %v6657_v59, 0.0 }
0x1334   :  { %v1599_v61 = vadd.f32 %v1598_v53, %v1597_v55 }
0x1336   :  { %v1601_v28 = vadd.f32 %v1600_v62, %v1599_v61 }
0x1338   :  { %v1603_v47 = vadd.f32 %v1602_v0, %v1601_v28 }
0x133f   :  { %v1572_v58 = vpop.permute.xlu0 %1571 }
0x1340   :  { %1574 = vst.msk [vmem:[#allocation2 + $0xe] sm:$0x3] %vm637_vm11, %v1572_v58  ;;  %vm1617_vm11 = vweird.f32 %v5077_v52 }
0x1341   :  { %v1618_v30 = vsel %vm1617_vm11, %v5077_v52, %v1616_v23 }
0x1347   :  { %v6663_v6 = vld [vmem:[#allocation2 + $0x8] sm:$0xff] }
0x1348   :  { %4877 = vmatmul.msk.f32.gmra.mxu2 %vm8158_vm2, %v6663_v6  ;;  %v6668_v9 = vrot.slane %v6663_v6, 2  ;;  %v6671_v11 = vrot.slane %v6663_v6, 4  ;;  %v1604_v12 = vsel %vm8156_vm12, %v6663_v6, 0.0  ;;  %v6676_v21 = vrot.slane %v6663_v6, 6 }
0x1349   :  { %v1605_v13 = vadd.f32 %v1604_v12, %v1603_v47 }
0x134a   :  { %v1606_v22 = vsel %vm8156_vm12, %v6668_v9, 0.0  ;;  %v1608_v14 = vsel %vm8156_vm12, %v6671_v11, 0.0  ;;  %v1610_v29 = vsel %vm8156_vm12, %v6676_v21, 0.0 }
0x134b   :  { %v1607_v24 = vadd.f32 %v1606_v22, %v1605_v13 }
0x134d   :  { %v1609_v25 = vadd.f32 %v1608_v14, %v1607_v24 }
0x134f   :  { %v1611_v31 = vadd.f32 %v1610_v29, %v1609_v25 }
0x1351   :  { %v6684_v60 = vmul.f32 %v1618_v30, %v1611_v31 }
0x1353   :  { %4881 = vmatmul.msk.f32.vlgmr.msrb.gmra.mxu1 %vm8158_vm2, %v6684_v60 }
0x13b4   :  { %v1649_v2 = vpop.f32.mrf.mxu2 }
0x13b5   :  { %5078 = vtanh.f32 %v1649_v2 }
0x13bb   :  { %v5079_v35 = vpop.eup %5078 }
0x13bc   :  { %4878 = vmatmul.msk.f32.vlgmr.msra.gmra.mxu3 %vm8157_vm0, %v5079_v35 }
0x13cb   :  { %v1652_v36 = vpop.f32.mrf.mxu2 }
0x13cc   :  { %5080 = vtanh.f32 %v1652_v36 }
0x13d2   :  { %v5081_v38 = vpop.eup %5080 }
0x13d3   :  { %4879 = vmatmul.msk.f32.gmra.mxu3 %vm8157_vm0, %v5081_v38 }
0x143f   :  { %v1682_v40 = vpop.f32.mrf.mxu3 }
0x1440   :  { %v1690_v56 = vrot.slane %v1682_v40, 2  ;;  %v1691_v3 = vrot.slane %v1682_v40, 4  ;;  %v1692_v4 = vrot.slane %v1682_v40, 6  ;;  %v1703_v5 = vsel %vm1702_vm14, %v1682_v40, -inf }
0x1441   :  { %v1704_v7 = vrot.slane %v1703_v5, 4 }
0x1442   :  { %v1710_v8 = vsel %vm1702_vm14, %v1690_v56, -inf  ;;  %v1717_v10 = vsel %vm1702_vm14, %v1691_v3, -inf  ;;  %v1724_v15 = vsel %vm1702_vm14, %v1692_v4, -inf }
0x1443   :  { %v1705_v16 = vmax.f32 %v1703_v5, %v1704_v7  ;;  %v1711_v17 = vrot.slane %v1710_v8, 4  ;;  %v1718_v18 = vrot.slane %v1717_v10, 4  ;;  %v1725_v19 = vrot.slane %v1724_v15, 4 }
0x1445   :  { %v1706_v20 = vrot.slane %v1705_v16, 2  ;;  %v1712_v26 = vmax.f32 %v1710_v8, %v1711_v17  ;;  %v1719_v27 = vmax.f32 %v1717_v10, %v1718_v18  ;;  %v1726_v39 = vmax.f32 %v1724_v15, %v1725_v19 }
0x1447   :  { %v1707_v42 = vmax.f32 %v1705_v16, %v1706_v20  ;;  %v1713_v33 = vrot.slane %v1712_v26, 2  ;;  %v1720_v34 = vrot.slane %v1719_v27, 2  ;;  %v1727_v41 = vrot.slane %v1726_v39, 2 }
0x1449   :  { %v1708_v44 = vrot.slane %v1707_v42, 1  ;;  %v1714_v37 = vmax.f32 %v1712_v26, %v1713_v33  ;;  %v1721_v45 = vmax.f32 %v1719_v27, %v1720_v34  ;;  %v1728_v46 = vmax.f32 %v1726_v39, %v1727_v41 }
0x144b   :  { %v1709_v49 = vmax.f32 %v1707_v42, %v1708_v44  ;;  %v1722_v50 = vrot.slane %v1721_v45, 1  ;;  %v1715_v52 = vrot.slane %v1714_v37, 1  ;;  %v1729_v53 = vrot.slane %v1728_v46, 1 }
0x144d   :  { %v1759_v55 = vsub.f32 %v1682_v40, %v1709_v49  ;;  %v1723_v57 = vmax.f32 %v1721_v45, %v1722_v50  ;;  %v1716_v58 = vmax.f32 %v1714_v37, %v1715_v52  ;;  %v1730_v61 = vmax.f32 %v1728_v46, %v1729_v53 }
0x144f   :  { %v1767_v62 = vmul.f32 1.442695, %v1759_v55  ;;  %v1761_v63 = vsub.f32 %v1691_v3, %v1723_v57  ;;  %v1760_v28 = vsub.f32 %v1690_v56, %v1716_v58  ;;  %v1762_v0 = vsub.f32 %v1692_v4, %v1730_v61 }
0x1451   :  { %5082 = vpow2.f32 %v1767_v62  ;;  %v1771_v43 = vmul.f32 1.442695, %v1761_v63  ;;  %v1769_v47 = vmul.f32 1.442695, %v1760_v28  ;;  %v1773_v12 = vmul.f32 1.442695, %v1762_v0 }
0x1453   :  { %5084 = vpow2.f32 %v1771_v43 }
0x1454   :  { %5086 = vpow2.f32 %v1769_v47 }
0x1455   :  { %5088 = vpow2.f32 %v1773_v12 }
0x1456   :  { %v6700_v13 = vpop.f32.mrf.mxu3 }
0x1457   :  { %v6702_v22 = vpop.eup %5082  ;;  %v1693_v23 = vrot.slane %v6700_v13, 2  ;;  %v1694_v24 = vrot.slane %v6700_v13, 4  ;;  %v1695_v14 = vrot.slane %v6700_v13, 6  ;;  %v1731_v25 = vsel %vm1702_vm14, %v6700_v13, -inf }
0x1458   :  { %v1732_v29 = vrot.slane %v1731_v25, 4  ;;  %v1783_v30 = vsel %vm1702_vm14, %v6702_v22, 0.0 }
0x1459   :  { %v6711_v31 = vpop.eup %5084  ;;  %v1738_v32 = vsel %vm1702_vm14, %v1693_v23, -inf  ;;  %v1745_v1 = vsel %vm1702_vm14, %v1694_v24, -inf  ;;  %v1752_v2 = vsel %vm1702_vm14, %v1695_v14, -inf  ;;  %v1784_v35 = vrot.slane %v1783_v30, 4 }
0x145a   :  { %v6718_v36 = vpop.eup %5086  ;;  %v1733_v38 = vmax.f32 %v1731_v25, %v1732_v29  ;;  %v1739_v40 = vrot.slane %v1738_v32, 4  ;;  %v1746_v56 = vrot.slane %v1745_v1, 4  ;;  %v1753_v3 = vrot.slane %v1752_v2, 4 }
0x145b   :  { %v6720_v4 = vpop.eup %5088  ;;  %v1785_v5 = vadd.f32 %v1784_v35, %v1783_v30  ;;  %v1797_v7 = vsel %vm1702_vm14, %v6711_v31, 0.0  ;;  %v1790_v8 = vsel %vm1702_vm14, %v6718_v36, 0.0 }
0x145c   :  { %v1734_v10 = vrot.slane %v1733_v38, 2  ;;  %v1740_v15 = vmax.f32 %v1738_v32, %v1739_v40  ;;  %v1747_v16 = vmax.f32 %v1745_v1, %v1746_v56  ;;  %v1754_v17 = vmax.f32 %v1752_v2, %v1753_v3 }
0x145d   :  { %v1786_v18 = vrot.slane %v1785_v5, 2  ;;  %v1798_v19 = vrot.slane %v1797_v7, 4  ;;  %v1791_v20 = vrot.slane %v1790_v8, 4  ;;  %v1804_v26 = vsel %vm1702_vm14, %v6720_v4, 0.0 }
0x145e   :  { %v1735_v27 = vmax.f32 %v1733_v38, %v1734_v10  ;;  %v1741_v39 = vrot.slane %v1740_v15, 2  ;;  %v1748_v42 = vrot.slane %v1747_v16, 2  ;;  %v1755_v33 = vrot.slane %v1754_v17, 2 }
0x145f   :  { %v1787_v34 = vadd.f32 %v1786_v18, %v1785_v5  ;;  %v1799_v41 = vadd.f32 %v1798_v19, %v1797_v7  ;;  %v1792_v44 = vadd.f32 %v1791_v20, %v1790_v8  ;;  %v1805_v37 = vrot.slane %v1804_v26, 4 }
0x1460   :  { %v1736_v45 = vrot.slane %v1735_v27, 1  ;;  %v1742_v46 = vmax.f32 %v1740_v15, %v1741_v39  ;;  %v1749_v49 = vmax.f32 %v1747_v16, %v1748_v42  ;;  %v1756_v50 = vmax.f32 %v1754_v17, %v1755_v33 }
0x1461   :  { %v1788_v52 = vrot.slane %v1787_v34, 1  ;;  %v1800_v53 = vrot.slane %v1799_v41, 2  ;;  %v1793_v55 = vrot.slane %v1792_v44, 2  ;;  %v1806_v57 = vadd.f32 %v1805_v37, %v1804_v26 }
0x1462   :  { %v1737_v58 = vmax.f32 %v1735_v27, %v1736_v45  ;;  %v1750_v61 = vrot.slane %v1749_v49, 1  ;;  %v1743_v62 = vrot.slane %v1742_v46, 1  ;;  %v1757_v63 = vrot.slane %v1756_v50, 1 }
0x1463   :  { %v1789_v28 = vadd.f32 %v1788_v52, %v1787_v34  ;;  %v1801_v0 = vadd.f32 %v1800_v53, %v1799_v41  ;;  %v1794_v43 = vadd.f32 %v1793_v55, %v1792_v44  ;;  %v1807_v47 = vrot.slane %v1806_v57, 2 }
0x1464   :  { %v1763_v12 = vsub.f32 %v6700_v13, %v1737_v58  ;;  %v1751_v25 = vmax.f32 %v1749_v49, %v1750_v61  ;;  %v1744_v29 = vmax.f32 %v1742_v46, %v1743_v62  ;;  %v1758_v30 = vmax.f32 %v1756_v50, %v1757_v63 }
0x1465   :  { %5090 = vrcp.f32 %v1789_v28  ;;  %v1802_v1 = vrot.slane %v1801_v0, 1  ;;  %v1795_v2 = vrot.slane %v1794_v43, 1  ;;  %v1808_v35 = vadd.f32 %v1807_v47, %v1806_v57 }
0x1466   :  { %v1775_v32 = vmul.f32 1.442695, %v1763_v12  ;;  %v1765_v38 = vsub.f32 %v1694_v24, %v1751_v25  ;;  %v1764_v40 = vsub.f32 %v1693_v23, %v1744_v29  ;;  %v1766_v10 = vsub.f32 %v1695_v14, %v1758_v30 }
0x1467   :  { %v6729_v56 = vadd.f32 %v1802_v1, %v1801_v0  ;;  %v6731_v3 = vadd.f32 %v1795_v2, %v1794_v43  ;;  %v1809_v5 = vrot.slane %v1808_v35, 1  ;;  %v1848_v16 = vand.u32 2147483647, %v1789_v28 }
0x1468   :  { %5092 = vpow2.f32 %v1775_v32  ;;  %v1779_v7 = vmul.f32 1.442695, %v1765_v38  ;;  %v1777_v8 = vmul.f32 1.442695, %v1764_v40  ;;  %v1850_v17 = vand.u32 2147483648, %v1789_v28 }
0x1469   :  { %5094 = vrcp.f32 %v6729_v56  ;;  %vm1844_vm15 = vweird.f32 %v1789_v28  ;;  %v1878_v23 = vand.u32 2147483647, %v6729_v56  ;;  %v1880_v18 = vand.u32 2147483648, %v6729_v56 }
0x146a   :  { %5096 = vrcp.f32 %v6731_v3  ;;  %v1865_v19 = vand.u32 2147483648, %v6731_v3  ;;  %v6740_v20 = vadd.f32 %v1809_v5, %v1808_v35  ;;  %v1863_v14 = vand.u32 2147483647, %v6731_v3 }
0x146b   :  { %v5091_v15 = vpop.eup %5090  ;;  %5098 = vpow2.f32 %v1779_v7  ;;  %v1781_v27 = vmul.f32 1.442695, %v1766_v10  ;;  %vm6745_vm3 = vcmp.eq.f32.partialorder %v1848_v16, 8.507059e+37  ;;  %v1851_v42 = vor.u32 1.1754944e-38, %v1850_v17 }
0x146c   :  { %v1840_v24 = vmul.f32 %v5091_v15, %v1789_v28  ;;  %5100 = vpow2.f32 %v1777_v8  ;;  %vm1874_vm4 = vweird.f32 %v6729_v56  ;;  %vm1845_vm5 = vweird.f32 %v5091_v15 }
0x146d   :  { %5102 = vrcp.f32 %v6740_v20  ;;  %vm1859_vm6 = vweird.f32 %v6731_v3  ;;  %vm6755_vm7 = vcmp.eq.f32.partialorder %v1878_v23, 8.507059e+37  ;;  %v1881_v46 = vor.u32 1.1754944e-38, %v1880_v18  ;;  %vm1846_vm9 = vmor %vm1844_vm15, %vm1845_vm5 }
0x146e   :  { %v6742_v26 = vpop.eup %5092  ;;  %v1841_v13 = vsub.f32 1.0, %v1840_v24  ;;  %5104 = vpow2.f32 %v1781_v27  ;;  %v1866_v49 = vor.u32 1.1754944e-38, %v1865_v19  ;;  %vm6760_vm8 = vcmp.eq.f32.partialorder %v1863_v14, 8.507059e+37 }
0x146f   :  { %v5095_v33 = vpop.eup %5094  ;;  %v1811_v41 = vsel %vm1702_vm14, %v6742_v26, 0.0  ;;  %v1893_v55 = vand.u32 2147483647, %v6740_v20  ;;  %v1895_v62 = vand.u32 2147483648, %v6740_v20  ;;  %vm1889_vm11 = vweird.f32 %v6740_v20 }
0x1470   :  { %v1842_v34 = vmul.f32 %v5091_v15, %v1841_v13  ;;  %v5097_v44 = vpop.eup %5096  ;;  %v1870_v37 = vmul.f32 %v5095_v33, %v6729_v56  ;;  %v1812_v57 = vrot.slane %v1811_v41, 4  ;;  %vm1875_vm10 = vweird.f32 %v5095_v33 }
0x1471   :  { %v1855_v52 = vmul.f32 %v5097_v44, %v6731_v3  ;;  %v6765_v58 = vpop.eup %5098  ;;  %vm1860_vm13 = vweird.f32 %v5097_v44  ;;  %vm6785_vm5 = vcmp.eq.f32.partialorder %v1893_v55, 8.507059e+37 }
0x1472   :  { %v1843_v50 = vadd.f32 %v5091_v15, %v1842_v34  ;;  %v1871_v61 = vsub.f32 1.0, %v1870_v37  ;;  %v6770_v63 = vpop.eup %5100  ;;  %v1813_v47 = vadd.f32 %v1812_v57, %v1811_v41  ;;  %v1825_v12 = vsel %vm1702_vm14, %v6765_v58, 0.0 }
0x1473   :  { %v1856_v43 = vsub.f32 1.0, %v1855_v52  ;;  %v5103_v25 = vpop.eup %5102  ;;  %v1826_v30 = vrot.slane %v1825_v12, 4  ;;  %v1818_v32 = vsel %vm1702_vm14, %v6770_v63, 0.0 }
0x1474   :  { %v1847_v0 = vsel %vm1846_vm9, %v5091_v15, %v1843_v50  ;;  %v1872_v29 = vmul.f32 %v5095_v33, %v1871_v61  ;;  %v6779_v1 = vpop.eup %5104  ;;  %v1885_v38 = vmul.f32 %v5103_v25, %v6740_v20  ;;  %vm1890_vm15 = vweird.f32 %v5103_v25  ;;  %vm1861_vm9 = vmor %vm1859_vm6, %vm1860_vm13 }
0x1475   :  { %v1852_v28 = vsel %vm6745_vm3, %v1851_v42, %v1847_v0  ;;  %v1857_v35 = vmul.f32 %v5097_v44, %v1856_v43  ;;  %v1814_v7 = vrot.slane %v1813_v47, 2  ;;  %v1827_v8 = vadd.f32 %v1826_v30, %v1825_v12  ;;  %vm1876_vm3 = vmor %vm1874_vm4, %vm1875_vm10 }
0x1476   :  { %v6782_v2 = vmul.f32 %v6702_v22, %v1852_v28  ;;  %v1873_v5 = vadd.f32 %v5095_v33, %v1872_v29  ;;  %v1819_v10 = vrot.slane %v1818_v32, 4  ;;  %v1886_v16 = vsub.f32 1.0, %v1885_v38  ;;  %vm1891_vm4 = vmor %vm1889_vm11, %vm1890_vm15 }
0x1477   :  { %v1858_v22 = vadd.f32 %v5097_v44, %v1857_v35  ;;  %v1832_v17 = vsel %vm1702_vm14, %v6779_v1, 0.0  ;;  %v1815_v23 = vadd.f32 %v1814_v7, %v1813_v47  ;;  %v1828_v18 = vrot.slane %v1827_v8, 2 }
0x1478   :  { %v1959_v15 = vsel %vm1702_vm14, %v6782_v2, 0.0  ;;  %v1877_v24 = vsel %vm1876_vm3, %v5095_v33, %v1873_v5  ;;  %v1820_v19 = vadd.f32 %v1819_v10, %v1818_v32  ;;  %v1887_v56 = vmul.f32 %v5103_v25, %v1886_v16 }
0x1479   :  { %1960 = vadd.xlane.f32.xlu1 %v1959_v15  ;;  %v1882_v13 = vsel %vm6755_vm7, %v1881_v46, %v1877_v24  ;;  %v1862_v14 = vsel %vm1861_vm9, %v5097_v44, %v1858_v22  ;;  %v1833_v27 = vrot.slane %v1832_v17, 4  ;;  %v1816_v33 = vrot.slane %v1815_v23, 1 }
0x147a   :  { %v6802_v39 = vmul.f32 %v6711_v31, %v1882_v13  ;;  %v1867_v42 = vsel %vm6760_vm8, %v1866_v49, %v1862_v14  ;;  %v1829_v34 = vadd.f32 %v1828_v18, %v1827_v8  ;;  %v1888_v41 = vadd.f32 %v5103_v25, %v1887_v56 }
0x147b   :  { %v6807_v3 = vmul.f32 %v6718_v36, %v1867_v42  ;;  %v1821_v37 = vrot.slane %v1820_v19, 2  ;;  %v1834_v50 = vadd.f32 %v1833_v27, %v1832_v17  ;;  %v1896_v31 = vor.u32 1.1754944e-38, %v1895_v62 }
0x147c   :  { %v1965_v45 = vsel %vm1702_vm14, %v6802_v39, 0.0  ;;  %v1817_v44 = vadd.f32 %v1816_v33, %v1815_v23  ;;  %v1830_v46 = vrot.slane %v1829_v34, 1  ;;  %v1892_v52 = vsel %vm1891_vm4, %v5103_v25, %v1888_v41 }
0x147d   :  { %1966 = vadd.xlane.f32.xlu0 %v1965_v45  ;;  %v1962_v49 = vsel %vm1702_vm14, %v6807_v3, 0.0  ;;  %v1822_v36 = vadd.f32 %v1821_v37, %v1820_v19  ;;  %v1835_v53 = vrot.slane %v1834_v50, 2  ;;  %v1897_v55 = vsel %vm6785_vm5, %v1896_v31, %v1892_v52 }
0x147e   :  { %1963 = vadd.xlane.f32.xlu2 %v1962_v49  ;;  %5106 = vrcp.f32 %v1817_v44  ;;  %v1831_v57 = vadd.f32 %v1830_v46, %v1829_v34  ;;  %v6819_v20 = vmul.f32 %v6720_v4, %v1897_v55  ;;  %v1908_v32 = vand.u32 2147483647, %v1817_v44 }
0x147f   :  { %v1823_v61 = vrot.slane %v1822_v36, 1  ;;  %v1836_v0 = vadd.f32 %v1835_v53, %v1834_v50  ;;  %v1910_v35 = vand.u32 2147483648, %v1817_v44  ;;  %vm1904_vm7 = vweird.f32 %v1817_v44 }
0x1480   :  { %5108 = vrcp.f32 %v1831_v57  ;;  %v1968_v12 = vsel %vm1702_vm14, %v6819_v20, 0.0  ;;  %v1940_v40 = vand.u32 2147483648, %v1831_v57  ;;  %vm1909_vm8 = vcmp.eq.f32.partialorder %v1908_v32, 8.507059e+37  ;;  %v2035_v32 = vld [vmem:[#allocation11 + $0x70] sm:$0xff] }
0x1481   :  { %v1824_v62 = vadd.f32 %v1823_v61, %v1822_v36  ;;  %v1837_v43 = vrot.slane %v1836_v0, 1  ;;  %v1911_v15 = vor.u32 1.1754944e-38, %v1910_v35  ;;  %v1938_v16 = vand.u32 2147483647, %v1831_v57  ;;  %v2034_v35 = vld [vmem:[#allocation11 + $0x68] sm:$0xff] }
0x1482   :  { %vm1934_vm11 = vweird.f32 %v1831_v57  ;;  %v1941_v24 = vor.u32 1.1754944e-38, %v1940_v40  ;;  %v2032_v40 = vld [vmem:[#allocation11 + $0x58] sm:$0xff] }
0x1483   :  { %5110 = vrcp.f32 %v1824_v62  ;;  %v6823_v28 = vadd.f32 %v1837_v43, %v1836_v0  ;;  %v1923_v14 = vand.u32 2147483647, %v1824_v62  ;;  %v1925_v56 = vand.u32 2147483648, %v1824_v62 }
0x1484   :  { %v5107_v47 = vpop.eup %5106  ;;  %vm1939_vm3 = vcmp.eq.f32.partialorder %v1938_v16, 8.507059e+37  ;;  %vm1919_vm9 = vweird.f32 %v1824_v62  ;;  %v2085_v16 = vld [vmem:[#allocation12 + $0x8] sm:$0xff] }
0x1485   :  { %v1900_v25 = vmul.f32 %v5107_v47, %v1817_v44  ;;  %5112 = vrcp.f32 %v6823_v28  ;;  %vm1905_vm6 = vweird.f32 %v5107_v47  ;;  %v1955_v44 = vand.u32 2147483648, %v6823_v28 }
0x1486   :  { %1969 = vadd.xlane.f32.xlu2 %v1968_v12  ;;  %v5109_v29 = vpop.eup %5108  ;;  %vm1906_vm10 = vmor %vm1904_vm7, %vm1905_vm6  ;;  %vm1924_vm6 = vcmp.eq.f32.partialorder %v1923_v14, 8.507059e+37  ;;  %v1953_v52 = vand.u32 2147483647, %v6823_v28 }
0x1487   :  { %v1901_v30 = vsub.f32 1.0, %v1900_v25  ;;  %v1930_v38 = vmul.f32 %v5109_v29, %v1831_v57  ;;  %vm1935_vm13 = vweird.f32 %v5109_v29  ;;  %v1956_v57 = vor.u32 1.1754944e-38, %v1955_v44 }
0x1488   :  { %vm1936_vm15 = vmor %vm1934_vm11, %vm1935_vm13  ;;  %vm1954_vm13 = vcmp.eq.f32.partialorder %v1953_v52, 8.507059e+37 }
0x1489   :  { %v1902_v4 = vmul.f32 %v5107_v47, %v1901_v30  ;;  %v5111_v5 = vpop.eup %5110  ;;  %v1931_v7 = vsub.f32 1.0, %v1930_v38 }
0x148a   :  { %v1915_v10 = vmul.f32 %v5111_v5, %v1824_v62  ;;  %vm1920_vm5 = vweird.f32 %v5111_v5 }
0x148b   :  { %v1903_v8 = vadd.f32 %v5107_v47, %v1902_v4  ;;  %v1932_v22 = vmul.f32 %v5109_v29, %v1931_v7  ;;  %v5113_v18 = vpop.eup %5112  ;;  %vm1921_vm4 = vmor %vm1919_vm9, %vm1920_vm5  ;;  %v2033_v4 = vld [vmem:[#allocation11 + $0x60] sm:$0xff]  ;;  %v2087_v7 = vld [vmem:[#allocation12 + $0x18] sm:$0xff] }
0x148c   :  { %v1916_v23 = vsub.f32 1.0, %v1915_v10  ;;  %v1945_v33 = vmul.f32 %v5113_v18, %v6823_v28  ;;  %vm1950_vm7 = vweird.f32 %v5113_v18  ;;  %2103 = vmatpush.msrb.mxu3 %v2087_v7  ;;  %v2864_v7 = vld [vmem:[#allocation17 + $0x18] sm:$0xff] }
0x148d   :  { %v1907_v17 = vsel %vm1906_vm10, %v5107_v47, %v1903_v8  ;;  %v1933_v13 = vadd.f32 %v5109_v29, %v1932_v22  ;;  %v2086_v8 = vld [vmem:[#allocation12 + $0x10] sm:$0xff]  ;;  %v2030_v22 = vld [vmem:[#allocation11 + $0x48] sm:$0xff] }
0x148e   :  { %v1912_v19 = vsel %vm1909_vm8, %v1911_v15, %v1907_v17  ;;  %v1917_v42 = vmul.f32 %v5111_v5, %v1916_v23  ;;  %v1946_v45 = vsub.f32 1.0, %v1945_v33  ;;  %vm1949_vm8 = vweird.f32 %v6823_v28  ;;  %v2036_v28 = vld [vmem:[#allocation11 + $0x78] sm:$0xff]  ;;  %2104 = vmatpush.msrb.mxu3 %v2086_v8  ;;  %v2084_v23 = vld [vmem:[#allocation12] sm:$0xff] }
0x148f   :  { %v6827_v27 = vmul.f32 %v6742_v26, %v1912_v19  ;;  %v1937_v34 = vsel %vm1936_vm15, %v5109_v29, %v1933_v13  ;;  %v1926_v26 = vor.u32 1.1754944e-38, %v1925_v56  ;;  %vm1951_vm10 = vmor %vm1949_vm8, %vm1950_vm7  ;;  %2048 = vmatpush.msrb.mxu0 %v2036_v28  ;;  %v2868_v19 = vld [vmem:[#allocation17 + $0x38] sm:$0xff]  ;;  %v2863_v8 = vld [vmem:[#allocation17 + $0x10] sm:$0xff] }
0x1490   :  { %v1942_v37 = vsel %vm1939_vm3, %v1941_v24, %v1937_v34  ;;  %v1918_v50 = vadd.f32 %v5111_v5, %v1917_v42  ;;  %v1947_v49 = vmul.f32 %v5113_v18, %v1946_v45  ;;  %v2029_v24 = vld [vmem:[#allocation11 + $0x40] sm:$0xff]  ;;  %2105 = vmatpush.msrb.mxu3 %v2085_v16  ;;  %v2080_v16 = vpop.f32.mrf.mxu1 }
0x1491   :  { %v1971_v41 = vsel %vm1702_vm14, %v6827_v27, 0.0  ;;  %v6833_v31 = vmul.f32 %v6765_v58, %v1942_v37  ;;  %2049 = vmatpush.msrb.mxu0 %v2035_v32 }
0x1492   :  { %1972 = vadd.xlane.f32.xlu1 %v1971_v41  ;;  %v1922_v46 = vsel %vm1921_vm4, %v5111_v5, %v1918_v50  ;;  %v1948_v58 = vadd.f32 %v5113_v18, %v1947_v49  ;;  %v2031_v5 = vld [vmem:[#allocation11 + $0x50] sm:$0xff]  ;;  %2106 = vmatpush.msrb.mxu3 %v2084_v23 }
0x1493   :  { %v1977_v36 = vsel %vm1702_vm14, %v6833_v31, 0.0  ;;  %v1927_v53 = vsel %vm1924_vm6, %v1926_v26, %v1922_v46  ;;  %2050 = vmatpush.msrb.mxu0 %v2034_v35 }
0x1494   :  { %1978 = vadd.xlane.f32.xlu0 %v1977_v36  ;;  %v6840_v55 = vmul.f32 %v6770_v63, %v1927_v53  ;;  %v1952_v0 = vsel %vm1951_vm10, %v5113_v18, %v1948_v58  ;;  %v5973_v63 = vmov 3.0   ;;  %2908 = vmatpush.msra.mxu3 %v2868_v19 }
0x1495   :  { %v1957_v62 = vsel %vm1954_vm13, %v1956_v57, %v1952_v0  ;;  %5114 = vrcp.f32 %v5973_v63  ;;  %2051 = vmatpush.msrb.mxu0 %v2033_v4 }
0x1496   :  { %v1974_v61 = vsel %vm1702_vm14, %v6840_v55, 0.0  ;;  %v6846_v43 = vmul.f32 %v6779_v1, %v1957_v62 }
0x1497   :  { %1975 = vadd.xlane.f32.xlu2 %v1974_v61  ;;  %2052 = vmatpush.msrb.mxu0 %v2032_v40  ;;  %v2866_v40 = vld [vmem:[#allocation17 + $0x28] sm:$0xff] }
0x1498   :  { %v1980_v47 = vsel %vm1702_vm14, %v6846_v43, 0.0 }
0x1499   :  { %2053 = vmatpush.msrb.mxu0 %v2031_v5  ;;  %v2865_v5 = vld [vmem:[#allocation17 + $0x20] sm:$0xff] }
0x149a   :  { %1981 = vadd.xlane.f32.xlu1 %v1980_v47 }
0x149b   :  { %v5115_v12 = vpop.eup %5114  ;;  %2054 = vmatpush.msrb.mxu0 %v2030_v22  ;;  %v2861_v22 = vld [vmem:[#allocation17] sm:$0xff] }
0x149c   :  { %v1984_v25 = vmul.f32 3.0, %v5115_v12  ;;  %vm1988_vm11 = vweird.f32 %v5115_v12 }
0x149d   :  { %2055 = vmatpush.msrb.mxu0 %v2029_v24 }
0x149e   :  { %v1985_v29 = vsub.f32 1.0, %v1984_v25 }
0x14a0   :  { %v1986_v30 = vmul.f32 %v5115_v12, %v1985_v29 }
0x14a2   :  { %v1987_v1 = vadd.f32 %v5115_v12, %v1986_v30 }
0x14a4   :  { %v6850_v10 = vsel %vm1988_vm11, %v5115_v12, %v1987_v1  ;;  %v2867_v1 = vld [vmem:[#allocation17 + $0x30] sm:$0xff] }
0x14a5   :  { %2909 = vmatpush.msra.mxu3 %v2867_v1 }
0x14a7   :  { %2910 = vmatpush.msra.mxu3 %v2866_v40 }
0x14a9   :  { %2911 = vmatpush.msra.mxu3 %v2865_v5 }
0x14ab   :  { %2912 = vmatpush.msra.mxu3 %v2864_v7 }
0x14ad   :  { %2913 = vmatpush.msra.mxu3 %v2863_v8 }
0x14ec   :  { %v1961_v15 = vpop.xlane.xlu1 %1960 }
0x14ed   :  { %v1990_v18 = vmul.f32 %v6850_v10, %v1961_v15  ;;  %v2862_v15 = vld [vmem:[#allocation17 + $0x8] sm:$0xff] }
0x14ee   :  { %2914 = vmatpush.msra.mxu3 %v2862_v15 }
0x14ef   :  { %v1998_v42 = vmul.f32 %v1990_v18, %v6641_v48 }
0x14f0   :  { %v1967_v13 = vpop.xlane.xlu0 %1966  ;;  %2915 = vmatpush.msra.mxu3 %v2861_v22 }
0x14f1   :  { %v1964_v38 = vpop.xlane.xlu2 %1963  ;;  %v1992_v33 = vmul.f32 %v6850_v10, %v1967_v13  ;;  %v2006_v37 = vsel %vm8156_vm12, %v1998_v42, 0.0 }
0x14f2   :  { %v1991_v17 = vmul.f32 %v6850_v10, %v1964_v38 }
0x14f3   :  { %v2000_v50 = vmul.f32 %v1992_v33, %v6651_v54 }
0x14f4   :  { %v1999_v56 = vmul.f32 %v1991_v17, %v6646_v51 }
0x14f5   :  { %v2009_v49 = vsel %vm8156_vm12, %v2000_v50, 0.0 }
0x14f6   :  { %v2007_v41 = vsel %vm8156_vm12, %v1999_v56, 0.0 }
0x14f7   :  { %v2008_v26 = vadd.f32 %v2007_v41, %v2006_v37 }
0x14f9   :  { %v1970_v14 = vpop.xlane.xlu2 %1969  ;;  %v2010_v53 = vadd.f32 %v2009_v49, %v2008_v26 }
0x14fa   :  { %v1993_v34 = vmul.f32 %v6850_v10, %v1970_v14 }
0x14fc   :  { %v2001_v45 = vmul.f32 %v1993_v34, %v6657_v59 }
0x14fe   :  { %v2011_v48 = vsel %vm8156_vm12, %v2001_v45, 0.0 }
0x14ff   :  { %v2012_v61 = vadd.f32 %v2011_v48, %v2010_v53 }
0x1505   :  { %v1973_v44 = vpop.xlane.xlu1 %1972 }
0x1506   :  { %v1994_v46 = vmul.f32 %v6850_v10, %v1973_v44 }
0x1507   :  { %v1979_v36 = vpop.xlane.xlu0 %1978 }
0x1508   :  { %v2002_v52 = vmul.f32 %v1994_v46, %v6663_v6  ;;  %v1996_v57 = vmul.f32 %v6850_v10, %v1979_v36 }
0x150a   :  { %v2013_v58 = vsel %vm8156_vm12, %v2002_v52, 0.0  ;;  %v1976_v0 = vpop.xlane.xlu2 %1975  ;;  %v2004_v63 = vmul.f32 %v1996_v57, %v6671_v11 }
0x150b   :  { %v1995_v62 = vmul.f32 %v6850_v10, %v1976_v0  ;;  %v2014_v47 = vadd.f32 %v2013_v58, %v2012_v61 }
0x150c   :  { %v2017_v30 = vsel %vm8156_vm12, %v2004_v63, 0.0 }
0x150d   :  { %v2003_v12 = vmul.f32 %v1995_v62, %v6668_v9  ;;  %v1982_v25 = vpop.xlane.xlu1 %1981 }
0x150e   :  { %v1997_v6 = vmul.f32 %v6850_v10, %v1982_v25 }
0x150f   :  { %v2015_v28 = vsel %vm8156_vm12, %v2003_v12, 0.0 }
0x1510   :  { %v2016_v29 = vadd.f32 %v2015_v28, %v2014_v47  ;;  %v2005_v32 = vmul.f32 %v1997_v6, %v6676_v21 }
0x1512   :  { %v2018_v35 = vadd.f32 %v2017_v30, %v2016_v29  ;;  %v2019_v38 = vsel %vm8156_vm12, %v2005_v32, 0.0 }
0x1514   :  { %v2020_v4 = vadd.f32 %v2019_v38, %v2018_v35 }
0x1516   :  { %4880 = vmatmul.msk.f32.vlgmr.msrb.gmra.mxu0 %vm8158_vm2, %v2020_v4 }
0x1593   :  { %v2057_v17 = vpop.f32.mrf.mxu0 }
0x1594   :  { %v6877_v24 = vadd.f32 %v2080_v16, %v2057_v17 }
0x1596   :  { %v2083_v23 = vmax.f32 %v6877_v24, 0.0  ;;  %v4725_v24 = vld [vmem:[%s8144_s23 + $0x18] sm:$0xff] }
0x1598   :  { %4882 = vmatmul.msk.f32.vlgmr.msrb.gmra.mxu3 %vm8155_vm1, %v2083_v23 }
0x15a0   :  { %4889 = vmatmul.msk.f32.vlgmr.msra.gmra.mxu3 %vm8158_vm2, %v6684_v60 }
0x161b   :  { %v2108_v18 = vpop.f32.mrf.mxu3 }
0x161c   :  { %2111 = vst.msk [vmem:[#allocation33] sm:$0x3] %vm1702_vm14, %v2108_v18  ;;  %v4883_v19 = vmul.f32 -1.442695, %v2108_v18 }
0x161d   :  { %4761 = dma.vmem_to_hbm [thread:$0]  %s4757_s25, 32, %s4759_s30, [#allocation5]  }
0x161e   :  { %5116 = vpow2.f32 %v4883_v19 }
0x1624   :  { %v5117_v13 = vpop.eup %5116 }
0x1625   :  { %v2115_v14 = vadd.f32 1.0, %v5117_v13 }
0x1627   :  { %5118 = vrcp.f32 %v2115_v14  ;;  %v2127_v34 = vand.u32 2147483648, %v2115_v14  ;;  %v2125_v37 = vand.u32 2147483647, %v2115_v14  ;;  %vm2121_vm5 = vweird.f32 %v2115_v14 }
0x1629   :  { %v2128_v45 = vor.u32 1.1754944e-38, %v2127_v34  ;;  %vm2126_vm9 = vcmp.eq.f32.partialorder %v2125_v37, 8.507059e+37 }
0x162d   :  { %v5119_v56 = vpop.eup %5118 }
0x162e   :  { %v2117_v42 = vmul.f32 %v5119_v56, %v2115_v14  ;;  %vm2122_vm15 = vweird.f32 %v5119_v56 }
0x162f   :  { %vm2123_vm3 = vmor %vm2121_vm5, %vm2122_vm15 }
0x1630   :  { %v2118_v33 = vsub.f32 1.0, %v2117_v42 }
0x1632   :  { %v2119_v41 = vmul.f32 %v5119_v56, %v2118_v33 }
0x1634   :  { %v2120_v50 = vadd.f32 %v5119_v56, %v2119_v41 }
0x1636   :  { %v2124_v26 = vsel %vm2123_vm3, %v5119_v56, %v2120_v50 }
0x1637   :  { %v2129_v44 = vsel %vm2126_vm9, %v2128_v45, %v2124_v26 }
0x1638   :  { %v6887_v46 = vmul.f32 %v2129_v44, %v6802_v39  ;;  %v6890_v49 = vmul.f32 %v2129_v44, %v6807_v3  ;;  %v6893_v48 = vmul.f32 %v2129_v44, %v6782_v2  ;;  %v6896_v52 = vmul.f32 %v2129_v44, %v6840_v55 }
0x1639   :  { %v6899_v36 = vmul.f32 %v2129_v44, %v6827_v27  ;;  %v6902_v53 = vmul.f32 %v2129_v44, %v6819_v20  ;;  %v6905_v58 = vmul.f32 %v2129_v44, %v6846_v43  ;;  %v6908_v39 = vmul.f32 %v2129_v44, %v6833_v31 }
0x163a   :  { %v2153_v3 = vsel %vm1702_vm14, %v6887_v46, -inf  ;;  %v2146_v2 = vsel %vm1702_vm14, %v6890_v49, -inf  ;;  %v2139_v55 = vsel %vm1702_vm14, %v6893_v48, -inf  ;;  %v2174_v27 = vsel %vm1702_vm14, %v6896_v52, -inf }
0x163b   :  { %v2154_v20 = vrot.slane %v2153_v3, 4  ;;  %v2147_v57 = vrot.slane %v2146_v2, 4  ;;  %v2140_v61 = vrot.slane %v2139_v55, 4  ;;  %v2175_v43 = vrot.slane %v2174_v27, 4 }
0x163c   :  { %v2167_v31 = vsel %vm1702_vm14, %v6899_v36, -inf  ;;  %v2160_v0 = vsel %vm1702_vm14, %v6902_v53, -inf  ;;  %v2188_v62 = vsel %vm1702_vm14, %v6905_v58, -inf  ;;  %v2181_v47 = vsel %vm1702_vm14, %v6908_v39, -inf }
0x163d   :  { %v2155_v63 = vmax.f32 %v2153_v3, %v2154_v20  ;;  %v2148_v12 = vmax.f32 %v2146_v2, %v2147_v57  ;;  %v2141_v25 = vmax.f32 %v2139_v55, %v2140_v61  ;;  %v2176_v28 = vmax.f32 %v2174_v27, %v2175_v43 }
0x163e   :  { %v2168_v6 = vrot.slane %v2167_v31, 4  ;;  %v2161_v29 = vrot.slane %v2160_v0, 4  ;;  %v2189_v30 = vrot.slane %v2188_v62, 4  ;;  %v2182_v32 = vrot.slane %v2181_v47, 4 }
0x163f   :  { %v2156_v35 = vrot.slane %v2155_v63, 2  ;;  %v2149_v38 = vrot.slane %v2148_v12, 2  ;;  %v2142_v4 = vrot.slane %v2141_v25, 2  ;;  %v2177_v1 = vrot.slane %v2176_v28, 2 }
0x1640   :  { %v2169_v40 = vmax.f32 %v2167_v31, %v2168_v6  ;;  %v2162_v5 = vmax.f32 %v2160_v0, %v2161_v29  ;;  %v2190_v7 = vmax.f32 %v2188_v62, %v2189_v30  ;;  %v2183_v8 = vmax.f32 %v2181_v47, %v2182_v32 }
0x1641   :  { %v2157_v15 = vmax.f32 %v2155_v63, %v2156_v35  ;;  %v2150_v22 = vmax.f32 %v2148_v12, %v2149_v38  ;;  %v2143_v16 = vmax.f32 %v2141_v25, %v2142_v4  ;;  %v2178_v17 = vmax.f32 %v2176_v28, %v2177_v1 }
0x1642   :  { %v2170_v18 = vrot.slane %v2169_v40, 2  ;;  %v2163_v19 = vrot.slane %v2162_v5, 2  ;;  %v2191_v13 = vrot.slane %v2190_v7, 2  ;;  %v2184_v14 = vrot.slane %v2183_v8, 2 }
0x1643   :  { %v2158_v56 = vrot.slane %v2157_v15, 1  ;;  %v2151_v42 = vrot.slane %v2150_v22, 1  ;;  %v2144_v33 = vrot.slane %v2143_v16, 1  ;;  %v2179_v34 = vrot.slane %v2178_v17, 1 }
0x1644   :  { %v2171_v41 = vmax.f32 %v2169_v40, %v2170_v18  ;;  %v2164_v37 = vmax.f32 %v2162_v5, %v2163_v19  ;;  %v2192_v50 = vmax.f32 %v2190_v7, %v2191_v13  ;;  %v2185_v45 = vmax.f32 %v2183_v8, %v2184_v14 }
0x1645   :  { %v2159_v26 = vmax.f32 %v2157_v15, %v2158_v56  ;;  %v2152_v44 = vmax.f32 %v2150_v22, %v2151_v42  ;;  %v2145_v3 = vmax.f32 %v2143_v16, %v2144_v33  ;;  %v2180_v2 = vmax.f32 %v2178_v17, %v2179_v34 }
0x1646   :  { %v2172_v55 = vrot.slane %v2171_v41, 1  ;;  %v2165_v27 = vrot.slane %v2164_v37, 1  ;;  %v2193_v20 = vrot.slane %v2192_v50, 1  ;;  %v2186_v57 = vrot.slane %v2185_v45, 1 }
0x1647   :  { %v2197_v61 = vsub.f32 %v6887_v46, %v2159_v26  ;;  %v2196_v43 = vsub.f32 %v6890_v49, %v2152_v44  ;;  %v2195_v31 = vsub.f32 %v6893_v48, %v2145_v3  ;;  %v2200_v0 = vsub.f32 %v6896_v52, %v2180_v2 }
0x1648   :  { %v2173_v62 = vmax.f32 %v2171_v41, %v2172_v55  ;;  %v2166_v47 = vmax.f32 %v2164_v37, %v2165_v27  ;;  %v2194_v63 = vmax.f32 %v2192_v50, %v2193_v20  ;;  %v2187_v12 = vmax.f32 %v2185_v45, %v2186_v57 }
0x1649   :  { %v2207_v25 = vmul.f32 1.442695, %v2197_v61  ;;  %v2205_v28 = vmul.f32 1.442695, %v2196_v43  ;;  %v2203_v6 = vmul.f32 1.442695, %v2195_v31 }
0x164a   :  { %v2213_v29 = vmul.f32 1.442695, %v2200_v0  ;;  %v2199_v30 = vsub.f32 %v6899_v36, %v2173_v62  ;;  %v2198_v32 = vsub.f32 %v6902_v53, %v2166_v47  ;;  %v2202_v46 = vsub.f32 %v6905_v58, %v2194_v63 }
0x164b   :  { %5120 = vpow2.f32 %v2207_v25  ;;  %v2201_v52 = vsub.f32 %v6908_v39, %v2187_v12 }
0x164c   :  { %5122 = vpow2.f32 %v2205_v28  ;;  %v2211_v49 = vmul.f32 1.442695, %v2199_v30  ;;  %v2209_v48 = vmul.f32 1.442695, %v2198_v32  ;;  %v2217_v35 = vmul.f32 1.442695, %v2202_v46 }
0x164d   :  { %5124 = vpow2.f32 %v2203_v6  ;;  %v2215_v38 = vmul.f32 1.442695, %v2201_v52 }
0x164e   :  { %5126 = vpow2.f32 %v2213_v29 }
0x164f   :  { %5128 = vpow2.f32 %v2211_v49 }
0x1650   :  { %5130 = vpow2.f32 %v2209_v48 }
0x1651   :  { %v6934_v4 = vpop.eup %5120  ;;  %5132 = vpow2.f32 %v2217_v35 }
0x1652   :  { %v6936_v36 = vpop.eup %5122  ;;  %v2233_v53 = vsel %vm1702_vm14, %v6934_v4, 0.0  ;;  %5134 = vpow2.f32 %v2215_v38 }
0x1653   :  { %v6940_v58 = vpop.eup %5124  ;;  %v2234_v1 = vrot.slane %v2233_v53, 4  ;;  %v2226_v39 = vsel %vm1702_vm14, %v6936_v36, 0.0 }
0x1654   :  { %v6944_v40 = vpop.eup %5126  ;;  %v2227_v5 = vrot.slane %v2226_v39, 4  ;;  %v2219_v7 = vsel %vm1702_vm14, %v6940_v58, 0.0 }
0x1655   :  { %v6948_v8 = vpop.eup %5128  ;;  %v2235_v15 = vadd.f32 %v2234_v1, %v2233_v53  ;;  %v2220_v22 = vrot.slane %v2219_v7, 4  ;;  %v2254_v16 = vsel %vm1702_vm14, %v6944_v40, 0.0 }
0x1656   :  { %v6952_v17 = vpop.eup %5130  ;;  %v2228_v18 = vadd.f32 %v2227_v5, %v2226_v39  ;;  %v2255_v19 = vrot.slane %v2254_v16, 4  ;;  %v2247_v13 = vsel %vm1702_vm14, %v6948_v8, 0.0 }
0x1657   :  { %v6956_v14 = vpop.eup %5132  ;;  %v2236_v56 = vrot.slane %v2235_v15, 2  ;;  %v2221_v42 = vadd.f32 %v2220_v22, %v2219_v7  ;;  %v2248_v33 = vrot.slane %v2247_v13, 4  ;;  %v2240_v34 = vsel %vm1702_vm14, %v6952_v17, 0.0 }
0x1658   :  { %v2229_v41 = vrot.slane %v2228_v18, 2  ;;  %v2256_v37 = vadd.f32 %v2255_v19, %v2254_v16  ;;  %v2241_v50 = vrot.slane %v2240_v34, 4  ;;  %v2268_v45 = vsel %vm1702_vm14, %v6956_v14, 0.0  ;;  %v6962_v2 = vpop.eup %5134 }
0x1659   :  { %v2237_v26 = vadd.f32 %v2236_v56, %v2235_v15  ;;  %v2222_v44 = vrot.slane %v2221_v42, 2  ;;  %v2249_v3 = vadd.f32 %v2248_v33, %v2247_v13  ;;  %v2269_v31 = vrot.slane %v2268_v45, 4 }
0x165a   :  { %v2230_v55 = vadd.f32 %v2229_v41, %v2228_v18  ;;  %v2257_v27 = vrot.slane %v2256_v37, 2  ;;  %v2242_v20 = vadd.f32 %v2241_v50, %v2240_v34  ;;  %v2261_v25 = vsel %vm1702_vm14, %v6962_v2, 0.0 }
0x165b   :  { %v2238_v57 = vrot.slane %v2237_v26, 1  ;;  %v2223_v61 = vadd.f32 %v2222_v44, %v2221_v42  ;;  %v2250_v43 = vrot.slane %v2249_v3, 2  ;;  %v6971_v32 = vadd.f32 %v2269_v31, %v2268_v45 }
0x165c   :  { %v2231_v0 = vrot.slane %v2230_v55, 1  ;;  %v2258_v62 = vadd.f32 %v2257_v27, %v2256_v37  ;;  %v2243_v47 = vrot.slane %v2242_v20, 2  ;;  %v2262_v46 = vrot.slane %v2261_v25, 4 }
0x165d   :  { %v6964_v63 = vadd.f32 %v2238_v57, %v2237_v26  ;;  %v2224_v12 = vrot.slane %v2223_v61, 1  ;;  %v2251_v29 = vadd.f32 %v2250_v43, %v2249_v3  ;;  %v2271_v5 = vrot.slane %v6971_v32, 2 }
0x165e   :  { %v6968_v28 = vadd.f32 %v2231_v0, %v2230_v55  ;;  %v2259_v6 = vrot.slane %v2258_v62, 1  ;;  %v2244_v30 = vadd.f32 %v2243_v47, %v2242_v20  ;;  %v6987_v15 = vadd.f32 %v2262_v46, %v2261_v25 }
0x165f   :  { %5136 = vrcp.f32 %v6964_v63  ;;  %v6974_v49 = vadd.f32 %v2224_v12, %v2223_v61  ;;  %v2314_v52 = vand.u32 2147483647, %v6964_v63  ;;  %v2316_v35 = vand.u32 2147483648, %v6964_v63 }
0x1660   :  { %5138 = vrcp.f32 %v6968_v28  ;;  %v6976_v48 = vadd.f32 %v2259_v6, %v2258_v62  ;;  %v2252_v38 = vrot.slane %v2251_v29, 1  ;;  %v2245_v53 = vrot.slane %v2244_v30, 1 }
0x1661   :  { %v2299_v1 = vand.u32 2147483647, %v6968_v28  ;;  %v2301_v39 = vand.u32 2147483648, %v6968_v28  ;;  %5140 = vrcp.f32 %v6974_v49  ;;  %vm2310_vm4 = vweird.f32 %v6964_v63 }
0x1662   :  { %v2286_v7 = vand.u32 2147483648, %v6974_v49  ;;  %5142 = vrcp.f32 %v6976_v48  ;;  %vm2295_vm6 = vweird.f32 %v6968_v28  ;;  %v2361_v16 = vand.u32 2147483648, %v6976_v48 }
0x1663   :  { %v6991_v18 = vadd.f32 %v2252_v38, %v2251_v29  ;;  %v6993_v19 = vadd.f32 %v2245_v53, %v2244_v30  ;;  %vm6996_vm7 = vcmp.eq.f32.partialorder %v2314_v52, 8.507059e+37  ;;  %v2317_v33 = vor.u32 1.1754944e-38, %v2316_v35 }
0x1664   :  { %v2284_v34 = vand.u32 2147483647, %v6974_v49  ;;  %vm7002_vm8 = vcmp.eq.f32.partialorder %v2299_v1, 8.507059e+37  ;;  %v2302_v50 = vor.u32 1.1754944e-38, %v2301_v39  ;;  %v2359_v45 = vand.u32 2147483647, %v6976_v48 }
0x1665   :  { %v5137_v22 = vpop.eup %5136  ;;  %5144 = vrcp.f32 %v6991_v18  ;;  %vm2280_vm10 = vweird.f32 %v6974_v49  ;;  %v2287_v44 = vor.u32 1.1754944e-38, %v2286_v7  ;;  %v2362_v27 = vor.u32 1.1754944e-38, %v2361_v16 }
0x1666   :  { %v5139_v13 = vpop.eup %5138  ;;  %v2306_v56 = vmul.f32 %v5137_v22, %v6964_v63  ;;  %5146 = vrcp.f32 %v6993_v19  ;;  %vm2311_vm13 = vweird.f32 %v5137_v22  ;;  %vm7012_vm5 = vcmp.eq.f32.partialorder %v2284_v34, 8.507059e+37 }
0x1667   :  { %v2291_v41 = vmul.f32 %v5139_v13, %v6968_v28  ;;  %v5141_v3 = vpop.eup %5140  ;;  %vm2296_vm11 = vweird.f32 %v5139_v13  ;;  %v2344_v31 = vand.u32 2147483647, %v6991_v18  ;;  %v2346_v0 = vand.u32 2147483648, %v6991_v18  ;;  %vm2312_vm0 = vmor %vm2310_vm4, %vm2311_vm13 }
0x1668   :  { %v2307_v26 = vsub.f32 1.0, %v2306_v56  ;;  %v5143_v20 = vpop.eup %5142  ;;  %v2276_v61 = vmul.f32 %v5141_v3, %v6974_v49  ;;  %vm7019_vm3 = vcmp.eq.f32.partialorder %v2359_v45, 8.507059e+37  ;;  %v2329_v25 = vand.u32 2147483647, %v6993_v19  ;;  %vm2297_vm15 = vmor %vm2295_vm6, %vm2296_vm11 }
0x1669   :  { %v2292_v55 = vsub.f32 1.0, %v2291_v41  ;;  %v2351_v47 = vmul.f32 %v5143_v20, %v6976_v48  ;;  %v2331_v6 = vand.u32 2147483648, %v6993_v19  ;;  %vm2281_vm9 = vweird.f32 %v5141_v3 }
0x166a   :  { %v2308_v57 = vmul.f32 %v5137_v22, %v2307_v26  ;;  %v2277_v30 = vsub.f32 1.0, %v2276_v61  ;;  %vm2325_vm2 = vweird.f32 %v6993_v19  ;;  %v2272_v38 = vadd.f32 %v2271_v5, %v6971_v32 }
0x166b   :  { %v2293_v62 = vmul.f32 %v5139_v13, %v2292_v55  ;;  %v5145_v46 = vpop.eup %5144  ;;  %v2352_v35 = vsub.f32 1.0, %v2351_v47  ;;  %v2264_v53 = vrot.slane %v6987_v15, 2  ;;  %vm7036_vm1 = vcmp.eq.f32.partialorder %v2344_v31, 8.507059e+37 }
0x166c   :  { %v2309_v29 = vadd.f32 %v5137_v22, %v2308_v57  ;;  %v5147_v1 = vpop.eup %5146  ;;  %v2278_v7 = vmul.f32 %v5141_v3, %v2277_v30  ;;  %v2336_v16 = vmul.f32 %v5145_v46, %v6991_v18  ;;  %vm2341_vm12 = vweird.f32 %v5145_v46 }
0x166d   :  { %v2294_v52 = vadd.f32 %v5139_v13, %v2293_v62  ;;  %v2353_v5 = vmul.f32 %v5143_v20, %v2352_v35  ;;  %v2321_v34 = vmul.f32 %v5147_v1, %v6993_v19  ;;  %vm2326_vm4 = vweird.f32 %v5147_v1 }
0x166e   :  { %v2313_v39 = vsel %vm2312_vm0, %v5137_v22, %v2309_v29  ;;  %v2279_v41 = vadd.f32 %v5141_v3, %v2278_v7  ;;  %v2337_v45 = vsub.f32 1.0, %v2336_v16  ;;  %vm2282_vm0 = vmor %vm2280_vm10, %vm2281_vm9  ;;  %vm8206_vm6 = vweird.f32 %v5143_v20 }
0x166f   :  { %v2318_v56 = vsel %vm6996_vm7, %v2317_v33, %v2313_v39  ;;  %v2298_v32 = vsel %vm2297_vm15, %v5139_v13, %v2294_v52  ;;  %v2354_v55 = vadd.f32 %v5143_v20, %v2353_v5  ;;  %v2322_v42 = vsub.f32 1.0, %v2321_v34  ;;  %vm2327_vm11 = vmor %vm2325_vm2, %vm2326_vm4 }
0x1670   :  { %v2319_v22 = vmul.f32 %v6934_v4, %v2318_v56  ;;  %v2303_v28 = vsel %vm7002_vm8, %v2302_v50, %v2298_v32  ;;  %v2283_v33 = vsel %vm2282_vm0, %v5141_v3, %v2279_v41  ;;  %vm8207_vm7 = vweird.f32 %v6976_v48 }
0x1671   :  { %v2304_v26 = vmul.f32 %v6936_v36, %v2303_v28  ;;  %vm2357_vm13 = vmor %vm8207_vm7, %vm8206_vm6  ;;  %v2338_v4 = vmul.f32 %v5145_v46, %v2337_v45  ;;  %v2273_v37 = vrot.slane %v2272_v38, 1  ;;  %v2288_v36 = vsel %vm7012_vm5, %v2287_v44, %v2283_v33  ;;  %v2442_v33 = vld [vmem:[#allocation14 + $0x38] sm:$0xff] }
0x1672   :  { %v2401_v13 = vsel %vm1702_vm14, %v2319_v22, 0.0  ;;  %v2358_v49 = vsel %vm2357_vm13, %v5143_v20, %v2354_v55  ;;  %v2323_v57 = vmul.f32 %v5147_v1, %v2322_v42  ;;  %v2289_v61 = vmul.f32 %v6940_v58, %v2288_v36  ;;  %2480 = vmatpush.msrb.mxu2 %v2442_v33  ;;  %v2437_v36 = vld [vmem:[#allocation14 + $0x10] sm:$0xff] }
0x1673   :  { %2402 = vadd.xlane.f32.xlu1 %v2401_v13  ;;  %v2398_v50 = vsel %vm1702_vm14, %v2304_v26, 0.0  ;;  %v2363_v3 = vsel %vm7019_vm3, %v2362_v27, %v2358_v49  ;;  %v2339_v31 = vadd.f32 %v5145_v46, %v2338_v4  ;;  %v2274_v62 = vadd.f32 %v2273_v37, %v2272_v38  ;;  %v2440_v4 = vld [vmem:[#allocation14 + $0x28] sm:$0xff]  ;;  %v2439_v37 = vld [vmem:[#allocation14 + $0x20] sm:$0xff] }
0x1674   :  { %2399 = vadd.xlane.f32.xlu0 %v2398_v50  ;;  %vm8208_vm8 = vweird.f32 %v6991_v18  ;;  %v2347_v48 = vor.u32 1.1754944e-38, %v2346_v0  ;;  %v2324_v47 = vadd.f32 %v5147_v1, %v2323_v57  ;;  %v2332_v29 = vor.u32 1.1754944e-38, %v2331_v6  ;;  %v2438_v50 = vld [vmem:[#allocation14 + $0x18] sm:$0xff] }
0x1675   :  { %vm2342_vm10 = vmor %vm8208_vm8, %vm2341_vm12  ;;  %v2265_v43 = vadd.f32 %v2264_v53, %v6987_v15  ;;  %v2395_v44 = vsel %vm1702_vm14, %v2289_v61, 0.0  ;;  %v2364_v20 = vmul.f32 %v6944_v40, %v2363_v3  ;;  %5148 = vrcp.f32 %v2274_v62  ;;  %v2436_v3 = vld [vmem:[#allocation14 + $0x8] sm:$0xff] }
0x1676   :  { %v2343_v30 = vsel %vm2342_vm10, %v5145_v46, %v2339_v31  ;;  %2396 = vadd.xlane.f32.xlu2 %v2395_v44  ;;  %v2328_v18 = vsel %vm2327_vm11, %v5147_v1, %v2324_v47  ;;  %vm2330_vm12 = vcmp.eq.f32.partialorder %v2329_v25, 8.507059e+37  ;;  %v2391_v25 = vand.u32 2147483648, %v2274_v62  ;;  %v2435_v31 = vld [vmem:[#allocation14] sm:$0xff] }
0x1677   :  { %v2348_v58 = vsel %vm7036_vm1, %v2347_v48, %v2343_v30  ;;  %v2333_v27 = vsel %vm2330_vm12, %v2332_v29, %v2328_v18  ;;  %v2266_v0 = vrot.slane %v2265_v43, 1  ;;  %v2410_v40 = vsel %vm1702_vm14, %v2364_v20, 0.0 }
0x1678   :  { %v2349_v15 = vmul.f32 %v6948_v8, %v2348_v58  ;;  %v2334_v12 = vmul.f32 %v6952_v17, %v2333_v27  ;;  %v2389_v53 = vand.u32 2147483647, %v2274_v62  ;;  %vm2385_vm2 = vweird.f32 %v2274_v62  ;;  %v5339_v27 = vld [vmem:[#allocation2 + $0x8] sm:$0xff] }
0x1679   :  { %v2267_v6 = vadd.f32 %v2266_v0, %v2265_v43  ;;  %v2392_v7 = vor.u32 1.1754944e-38, %v2391_v25  ;;  %v5338_v43 = vld [vmem:[#allocation2] sm:$0xff]  ;;  %vm8211_vm7 = vcmask 130048   ;;  %vm2542_vm8 = vcmask 25600  }
0x167a   :  { %v2407_v46 = vsel %vm1702_vm14, %v2349_v15, 0.0  ;;  %v2404_v38 = vsel %vm1702_vm14, %v2334_v12, 0.0  ;;  %vm2390_vm5 = vcmp.eq.f32.partialorder %v2389_v53, 8.507059e+37  ;;  %vm8212_vm13 = vmmov %vm8211_vm7 }
0x167b   :  { %2411 = vadd.xlane.f32.xlu1 %v2410_v40  ;;  %v5149_v52 = vpop.eup %5148  ;;  %5150 = vrcp.f32 %v2267_v6  ;;  %v2376_v32 = vand.u32 2147483648, %v2267_v6  ;;  %v2374_v22 = vand.u32 2147483647, %v2267_v6  ;;  %vm2370_vm9 = vweird.f32 %v2267_v6 }
0x167c   :  { %2408 = vadd.xlane.f32.xlu0 %v2407_v46  ;;  %v2381_v35 = vmul.f32 %v5149_v52, %v2274_v62  ;;  %vm2386_vm1 = vweird.f32 %v5149_v52 }
0x167d   :  { %vm2387_vm15 = vmor %vm2385_vm2, %vm2386_vm1  ;;  %v2377_v45 = vor.u32 1.1754944e-38, %v2376_v32  ;;  %vm2375_vm4 = vcmp.eq.f32.partialorder %v2374_v22, 8.507059e+37 }
0x167e   :  { %2405 = vadd.xlane.f32.xlu2 %v2404_v38  ;;  %v2382_v19 = vsub.f32 1.0, %v2381_v35 }
0x1680   :  { %v2383_v8 = vmul.f32 %v5149_v52, %v2382_v19 }
0x1681   :  { %v5151_v1 = vpop.eup %5150 }
0x1682   :  { %v2384_v39 = vadd.f32 %v5149_v52, %v2383_v8  ;;  %v2366_v17 = vmul.f32 %v5151_v1, %v2267_v6  ;;  %vm2371_vm3 = vweird.f32 %v5151_v1 }
0x1683   :  { %vm2372_vm0 = vmor %vm2370_vm9, %vm2371_vm3 }
0x1684   :  { %v2388_v16 = vsel %vm2387_vm15, %v5149_v52, %v2384_v39  ;;  %v2367_v63 = vsub.f32 1.0, %v2366_v17  ;;  %v2497_v39 = vld [vmem:[#allocation15] sm:$0xff] }
0x1685   :  { %v2393_v56 = vsel %vm2390_vm5, %v2392_v7, %v2388_v16 }
0x1686   :  { %v2394_v5 = vmul.f32 %v6956_v14, %v2393_v56  ;;  %v2368_v34 = vmul.f32 %v5151_v1, %v2367_v63  ;;  %v2441_v14 = vld [vmem:[#allocation14 + $0x30] sm:$0xff] }
0x1687   :  { %2481 = vmatpush.msrb.mxu2 %v2441_v14 }
0x1688   :  { %v2416_v28 = vsel %vm1702_vm14, %v2394_v5, 0.0  ;;  %v2369_v41 = vadd.f32 %v5151_v1, %v2368_v34 }
0x1689   :  { %2417 = vadd.xlane.f32.xlu0 %v2416_v28  ;;  %2482 = vmatpush.msrb.mxu2 %v2440_v4 }
0x168a   :  { %v2373_v26 = vsel %vm2372_vm0, %v5151_v1, %v2369_v41  ;;  %v2498_v1 = vld [vmem:[#allocation15 + $0x8] sm:$0xff] }
0x168b   :  { %v2378_v55 = vsel %vm2375_vm4, %v2377_v45, %v2373_v26  ;;  %2483 = vmatpush.msrb.mxu2 %v2439_v37  ;;  %2519 = vmatpush.msra.mxu0 %v2498_v1 }
0x168c   :  { %v2379_v42 = vmul.f32 %v6962_v2, %v2378_v55 }
0x168d   :  { %2484 = vmatpush.msrb.mxu2 %v2438_v50  ;;  %2520 = vmatpush.msra.mxu0 %v2497_v39 }
0x168e   :  { %v2413_v13 = vsel %vm1702_vm14, %v2379_v42, 0.0  ;;  %vm8209_vm14 = vcmask 523264  }
0x168f   :  { %2414 = vadd.xlane.f32.xlu2 %v2413_v13  ;;  %2485 = vmatpush.msrb.mxu2 %v2437_v36  ;;  %vm8210_vm6 = vmmov %vm8209_vm14 }
0x1691   :  { %2486 = vmatpush.msrb.mxu2 %v2436_v3 }
0x1693   :  { %2487 = vmatpush.msrb.mxu2 %v2435_v31 }
0x16e6   :  { %v2403_v49 = vpop.xlane.xlu1 %2402 }
0x16e7   :  { %v2421_v57 = vmul.f32 %v2403_v49, %v6850_v10  ;;  %v2400_v61 = vpop.xlane.xlu0 %2399 }
0x16e8   :  { %v2420_v2 = vmul.f32 %v2400_v61, %v6850_v10 }
0x16e9   :  { %v7085_v62 = vmul.f32 %v2421_v57, %v6651_v54  ;;  %v2397_v47 = vpop.xlane.xlu2 %2396 }
0x16ea   :  { %v7088_v48 = vmul.f32 %v2420_v2, %v6646_v51  ;;  %v2419_v29 = vmul.f32 %v2397_v47, %v6850_v10 }
0x16eb   :  { %2455 = vst [vmem:[#allocation1 + $0x2] ss:$4 sm:$0xff] %v7085_v62 }
0x16ec   :  { %2453 = vst [vmem:[#allocation1 + $0x1] ss:$4 sm:$0xff] %v7088_v48  ;;  %v7093_v44 = vmul.f32 %v5338_v43, %v2419_v29 }
0x16ee   :  { %v2412_v20 = vpop.xlane.xlu1 %2411  ;;  %2451 = vst [vmem:[#allocation1] ss:$4 sm:$0xff] %v7093_v44 }
0x16ef   :  { %v2424_v30 = vmul.f32 %v2412_v20, %v6850_v10  ;;  %v2409_v58 = vpop.xlane.xlu0 %2408 }
0x16f0   :  { %v2423_v18 = vmul.f32 %v2409_v58, %v6850_v10 }
0x16f1   :  { %v7099_v15 = vmul.f32 %v2424_v30, %v6668_v9  ;;  %v2406_v40 = vpop.xlane.xlu2 %2405 }
0x16f2   :  { %v7101_v0 = vmul.f32 %v5339_v27, %v2423_v18  ;;  %v2422_v12 = vmul.f32 %v2406_v40, %v6850_v10 }
0x16f3   :  { %2461 = vst [vmem:[#allocation1 + $0x21] ss:$4 sm:$0xff] %v7099_v15 }
0x16f4   :  { %2459 = vst [vmem:[#allocation1 + $0x20] ss:$4 sm:$0xff] %v7101_v0  ;;  %v7107_v6 = vmul.f32 %v2422_v12, %v6657_v59 }
0x16f6   :  { %2457 = vst [vmem:[#allocation1 + $0x3] ss:$4 sm:$0xff] %v7107_v6 }
0x16fc   :  { %v2418_v46 = vpop.xlane.xlu0 %2417 }
0x16fd   :  { %v2426_v52 = vmul.f32 %v2418_v46, %v6850_v10  ;;  %v2466_v35 = vld.sshfl [vmem:[#allocation1] sm:$0xff pattern:$0x73625140] }
0x16fe   :  { %4884 = vmatmul.msk.f32.vlgmr.msrb.gmra.mxu2 %vm8209_vm14, %v2466_v35 }
0x16ff   :  { %v7113_v38 = vmul.f32 %v2426_v52, %v6676_v21 }
0x1701   :  { %2465 = vst [vmem:[#allocation1 + $0x23] ss:$4 sm:$0xff] %v7113_v38 }
0x1702   :  { %v2415_v19 = vpop.xlane.xlu2 %2414 }
0x1703   :  { %v2425_v25 = vmul.f32 %v2415_v19, %v6850_v10 }
0x1705   :  { %v7118_v8 = vmul.f32 %v2425_v25, %v6671_v11 }
0x1707   :  { %2463 = vst [vmem:[#allocation1 + $0x22] ss:$4 sm:$0xff] %v7118_v8 }
0x170e   :  { %v2467_v53 = vld.sshfl [vmem:[#allocation1 + $0x20] sm:$0xff pattern:$0x73625140] }
0x170f   :  { %4885 = vmatmul.msk.f32.gmra.mxu2 %vm8210_vm6, %v2467_v53 }
0x1781   :  { %v2489_v17 = vpop.f32.mrf.mxu2 }
0x1782   :  { %5152 = vtanh.f32 %v2489_v17 }
0x1788   :  { %v5153_v7 = vpop.eup %5152 }
0x1789   :  { %4886 = vmatmul.msk.f32.vlgmr.msra.gmra.mxu0 %vm8211_vm7, %v5153_v7 }
0x1792   :  { %v2492_v16 = vpop.f32.mrf.mxu2 }
0x1793   :  { %5154 = vtanh.f32 %v2492_v16 }
0x1799   :  { %v5155_v10 = vpop.eup %5154 }
0x179a   :  { %4887 = vmatmul.msk.f32.gmra.mxu0 %vm8212_vm13, %v5155_v10 }
0x1806   :  { %v2522_v63 = vpop.f32.mrf.mxu0 }
0x1807   :  { %v2530_v56 = vrot.slane %v2522_v63, 2  ;;  %v2531_v32 = vrot.slane %v2522_v63, 4  ;;  %v2532_v5 = vrot.slane %v2522_v63, 6  ;;  %v2543_v34 = vsel %vm2542_vm8, %v2522_v63, -inf }
0x1808   :  { %v2544_v22 = vrot.slane %v2543_v34, 4 }
0x1809   :  { %v2550_v28 = vsel %vm2542_vm8, %v2530_v56, -inf  ;;  %v2557_v41 = vsel %vm2542_vm8, %v2531_v32, -inf  ;;  %v2564_v45 = vsel %vm2542_vm8, %v2532_v5, -inf }
0x180a   :  { %v2545_v26 = vmax.f32 %v2543_v34, %v2544_v22  ;;  %v2551_v55 = vrot.slane %v2550_v28, 4  ;;  %v2558_v42 = vrot.slane %v2557_v41, 4  ;;  %v2565_v13 = vrot.slane %v2564_v45, 4 }
0x180c   :  { %v2546_v33 = vrot.slane %v2545_v26, 2  ;;  %v2552_v14 = vmax.f32 %v2550_v28, %v2551_v55  ;;  %v2559_v4 = vmax.f32 %v2557_v41, %v2558_v42  ;;  %v2566_v37 = vmax.f32 %v2564_v45, %v2565_v13 }
0x180e   :  { %v2547_v50 = vmax.f32 %v2545_v26, %v2546_v33  ;;  %v2553_v36 = vrot.slane %v2552_v14, 2  ;;  %v2560_v49 = vrot.slane %v2559_v4, 2  ;;  %v2567_v57 = vrot.slane %v2566_v37, 2 }
0x1810   :  { %v2548_v61 = vrot.slane %v2547_v50, 1  ;;  %v2554_v2 = vmax.f32 %v2552_v14, %v2553_v36  ;;  %v2561_v3 = vmax.f32 %v2559_v4, %v2560_v49  ;;  %v2568_v31 = vmax.f32 %v2566_v37, %v2567_v57 }
0x1812   :  { %v2549_v47 = vmax.f32 %v2547_v50, %v2548_v61  ;;  %v2562_v29 = vrot.slane %v2561_v3, 1  ;;  %v2555_v43 = vrot.slane %v2554_v2, 1  ;;  %v2569_v20 = vrot.slane %v2568_v31, 1 }
0x1814   :  { %v2599_v30 = vsub.f32 %v2522_v63, %v2549_v47  ;;  %v2563_v58 = vmax.f32 %v2561_v3, %v2562_v29  ;;  %v2556_v18 = vmax.f32 %v2554_v2, %v2555_v43  ;;  %v2570_v27 = vmax.f32 %v2568_v31, %v2569_v20 }
0x1816   :  { %v2607_v40 = vmul.f32 1.442695, %v2599_v30  ;;  %v2601_v12 = vsub.f32 %v2531_v32, %v2563_v58  ;;  %v2600_v46 = vsub.f32 %v2530_v56, %v2556_v18  ;;  %v2602_v35 = vsub.f32 %v2532_v5, %v2570_v27 }
0x1817   :  { %v7128_v52 = vpop.f32.mrf.mxu0 }
0x1818   :  { %v2533_v19 = vrot.slane %v7128_v52, 2  ;;  %v2534_v25 = vrot.slane %v7128_v52, 4  ;;  %v2535_v53 = vrot.slane %v7128_v52, 6  ;;  %v2571_v1 = vsel %vm2542_vm8, %v7128_v52, -inf }
0x1819   :  { %v2572_v39 = vrot.slane %v2571_v1, 4  ;;  %5156 = vpow2.f32 %v2607_v40  ;;  %v2611_v17 = vmul.f32 1.442695, %v2601_v12  ;;  %v2609_v63 = vmul.f32 1.442695, %v2600_v46 }
0x181a   :  { %v2578_v7 = vsel %vm2542_vm8, %v2533_v19, -inf  ;;  %v2585_v16 = vsel %vm2542_vm8, %v2534_v25, -inf  ;;  %v2592_v10 = vsel %vm2542_vm8, %v2535_v53, -inf  ;;  %v2613_v22 = vmul.f32 1.442695, %v2602_v35 }
0x181b   :  { %v2573_v56 = vmax.f32 %v2571_v1, %v2572_v39  ;;  %v2579_v32 = vrot.slane %v2578_v7, 4  ;;  %v2586_v5 = vrot.slane %v2585_v16, 4  ;;  %v2593_v34 = vrot.slane %v2592_v10, 4 }
0x181c   :  { %5158 = vpow2.f32 %v2611_v17 }
0x181d   :  { %v2574_v28 = vrot.slane %v2573_v56, 2  ;;  %v2580_v41 = vmax.f32 %v2578_v7, %v2579_v32  ;;  %v2587_v45 = vmax.f32 %v2585_v16, %v2586_v5  ;;  %v2594_v26 = vmax.f32 %v2592_v10, %v2593_v34 }
0x181e   :  { %5160 = vpow2.f32 %v2609_v63 }
0x181f   :  { %v7138_v55 = vpop.eup %5156  ;;  %v2575_v42 = vmax.f32 %v2573_v56, %v2574_v28  ;;  %v2581_v13 = vrot.slane %v2580_v41, 2  ;;  %v2588_v33 = vrot.slane %v2587_v45, 2  ;;  %v2595_v14 = vrot.slane %v2594_v26, 2 }
0x1820   :  { %v2623_v4 = vsel %vm2542_vm8, %v7138_v55, 0.0  ;;  %5162 = vpow2.f32 %v2613_v22 }
0x1821   :  { %v2576_v37 = vrot.slane %v2575_v42, 1  ;;  %v2582_v50 = vmax.f32 %v2580_v41, %v2581_v13  ;;  %v2589_v36 = vmax.f32 %v2587_v45, %v2588_v33  ;;  %v2596_v49 = vmax.f32 %v2594_v26, %v2595_v14 }
0x1822   :  { %v7142_v57 = vpop.eup %5158  ;;  %v2624_v61 = vrot.slane %v2623_v4, 4 }
0x1823   :  { %v2577_v2 = vmax.f32 %v2575_v42, %v2576_v37  ;;  %v2637_v3 = vsel %vm2542_vm8, %v7142_v57, 0.0  ;;  %v2583_v31 = vrot.slane %v2582_v50, 1  ;;  %v2590_v47 = vrot.slane %v2589_v36, 1 }
0x1824   :  { %v7146_v29 = vpop.eup %5160  ;;  %v2625_v43 = vadd.f32 %v2624_v61, %v2623_v4  ;;  %v2638_v20 = vrot.slane %v2637_v3, 4  ;;  %v2597_v30 = vrot.slane %v2596_v49, 1 }
0x1825   :  { %v2603_v58 = vsub.f32 %v7128_v52, %v2577_v2  ;;  %v2630_v18 = vsel %vm2542_vm8, %v7146_v29, 0.0  ;;  %v2584_v27 = vmax.f32 %v2582_v50, %v2583_v31  ;;  %v2591_v40 = vmax.f32 %v2589_v36, %v2590_v47 }
0x1826   :  { %v7151_v12 = vpop.eup %5162  ;;  %v2626_v46 = vrot.slane %v2625_v43, 2  ;;  %v2639_v35 = vadd.f32 %v2638_v20, %v2637_v3  ;;  %v2631_v1 = vrot.slane %v2630_v18, 4  ;;  %v2598_v39 = vmax.f32 %v2596_v49, %v2597_v30 }
0x1827   :  { %v2615_v17 = vmul.f32 1.442695, %v2603_v58  ;;  %v2644_v7 = vsel %vm2542_vm8, %v7151_v12, 0.0  ;;  %v2604_v16 = vsub.f32 %v2533_v19, %v2584_v27  ;;  %v2605_v10 = vsub.f32 %v2534_v25, %v2591_v40 }
0x1828   :  { %v2627_v63 = vadd.f32 %v2626_v46, %v2625_v43  ;;  %v2640_v56 = vrot.slane %v2639_v35, 2  ;;  %v2632_v52 = vadd.f32 %v2631_v1, %v2630_v18  ;;  %v2645_v32 = vrot.slane %v2644_v7, 4 }
0x1829   :  { %5164 = vpow2.f32 %v2615_v17  ;;  %v2617_v5 = vmul.f32 1.442695, %v2604_v16  ;;  %v2619_v34 = vmul.f32 1.442695, %v2605_v10  ;;  %v2606_v22 = vsub.f32 %v2535_v53, %v2598_v39 }
0x182a   :  { %v2628_v28 = vrot.slane %v2627_v63, 1  ;;  %v2641_v41 = vadd.f32 %v2640_v56, %v2639_v35  ;;  %v2633_v45 = vrot.slane %v2632_v52, 2  ;;  %v2646_v26 = vadd.f32 %v2645_v32, %v2644_v7 }
0x182b   :  { %5166 = vpow2.f32 %v2617_v5  ;;  %v2621_v42 = vmul.f32 1.442695, %v2606_v22 }
0x182c   :  { %v2629_v13 = vadd.f32 %v2628_v28, %v2627_v63  ;;  %v2642_v33 = vrot.slane %v2641_v41, 1  ;;  %v2634_v14 = vadd.f32 %v2633_v45, %v2632_v52  ;;  %v2647_v4 = vrot.slane %v2646_v26, 2 }
0x182d   :  { %5168 = vpow2.f32 %v2619_v34 }
0x182e   :  { %5170 = vrcp.f32 %v2629_v13  ;;  %v7157_v25 = vadd.f32 %v2642_v33, %v2641_v41  ;;  %v2635_v37 = vrot.slane %v2634_v14, 1  ;;  %v2648_v50 = vadd.f32 %v2647_v4, %v2646_v26 }
0x182f   :  { %v7155_v19 = vpop.eup %5164  ;;  %5172 = vpow2.f32 %v2621_v42  ;;  %v2688_v49 = vand.u32 2147483647, %v2629_v13  ;;  %v2690_v43 = vand.u32 2147483648, %v2629_v13  ;;  %vm2684_vm10 = vweird.f32 %v2629_v13 }
0x1830   :  { %v2651_v53 = vsel %vm2542_vm8, %v7155_v19, 0.0  ;;  %5174 = vrcp.f32 %v7157_v25  ;;  %v7164_v61 = vadd.f32 %v2635_v37, %v2634_v14  ;;  %v2649_v2 = vrot.slane %v2648_v50, 1 }
0x1831   :  { %v7161_v36 = vpop.eup %5166  ;;  %v2652_v3 = vrot.slane %v2651_v53, 4  ;;  %v2718_v58 = vand.u32 2147483647, %v7157_v25  ;;  %v2720_v18 = vand.u32 2147483648, %v7157_v25  ;;  %vm7177_vm11 = vcmp.eq.f32.partialorder %v2688_v49, 8.507059e+37 }
0x1832   :  { %v2658_v31 = vsel %vm2542_vm8, %v7161_v36, 0.0  ;;  %5176 = vrcp.f32 %v7164_v61  ;;  %v7173_v40 = vadd.f32 %v2649_v2, %v2648_v50  ;;  %v2705_v39 = vand.u32 2147483648, %v7164_v61 }
0x1833   :  { %v7168_v47 = vpop.eup %5168  ;;  %v2659_v20 = vrot.slane %v2658_v31, 4  ;;  %v2653_v46 = vadd.f32 %v2652_v3, %v2651_v53  ;;  %v2691_v63 = vor.u32 1.1754944e-38, %v2690_v43  ;;  %vm2714_vm12 = vweird.f32 %v7157_v25 }
0x1834   :  { %v5171_v30 = vpop.eup %5170  ;;  %v2665_v7 = vsel %vm2542_vm8, %v7168_v47, 0.0  ;;  %5178 = vrcp.f32 %v7173_v40  ;;  %vm7187_vm1 = vcmp.eq.f32.partialorder %v2718_v58, 8.507059e+37  ;;  %v2721_v32 = vor.u32 1.1754944e-38, %v2720_v18 }
0x1835   :  { %v2680_v27 = vmul.f32 %v5171_v30, %v2629_v13  ;;  %v7175_v35 = vpop.eup %5172  ;;  %v2660_v17 = vadd.f32 %v2659_v20, %v2658_v31  ;;  %v2703_v5 = vand.u32 2147483647, %v7164_v61  ;;  %v2654_v34 = vrot.slane %v2653_v46, 2 }
0x1836   :  { %v5175_v16 = vpop.eup %5174  ;;  %vm2685_vm2 = vweird.f32 %v5171_v30  ;;  %vm2699_vm15 = vweird.f32 %v7164_v61  ;;  %v2666_v41 = vrot.slane %v2665_v7, 4  ;;  %v2706_v42 = vor.u32 1.1754944e-38, %v2705_v39 }
0x1837   :  { %v2681_v10 = vsub.f32 1.0, %v2680_v27  ;;  %v2710_v56 = vmul.f32 %v5175_v16, %v7157_v25  ;;  %v2661_v28 = vrot.slane %v2660_v17, 2  ;;  %v2733_v33 = vand.u32 2147483647, %v7173_v40  ;;  %vm2686_vm5 = vmor %vm2684_vm10, %vm2685_vm2 }
0x1838   :  { %v5177_v45 = vpop.eup %5176  ;;  %v2655_v14 = vadd.f32 %v2654_v34, %v2653_v46  ;;  %v2672_v53 = vsel %vm2542_vm8, %v7175_v35, 0.0  ;;  %vm2715_vm3 = vweird.f32 %v5175_v16  ;;  %v2667_v58 = vadd.f32 %v2666_v41, %v2665_v7 }
0x1839   :  { %v2682_v22 = vmul.f32 %v5171_v30, %v2681_v10  ;;  %v2711_v26 = vsub.f32 1.0, %v2710_v56  ;;  %v2695_v37 = vmul.f32 %v5177_v45, %v7164_v61  ;;  %v2662_v50 = vadd.f32 %v2661_v28, %v2660_v17  ;;  %vm2716_vm0 = vmor %vm2714_vm12, %vm2715_vm3 }
0x183a   :  { %vm2700_vm9 = vweird.f32 %v5177_v45  ;;  %v2656_v2 = vrot.slane %v2655_v14, 1  ;;  %v5179_v3 = vpop.eup %5178  ;;  %v2673_v39 = vrot.slane %v2672_v53, 4  ;;  %v2735_v1 = vand.u32 2147483648, %v7173_v40 }
0x183b   :  { %v2683_v4 = vadd.f32 %v5171_v30, %v2682_v22  ;;  %v2712_v49 = vmul.f32 %v5175_v16, %v2711_v26  ;;  %v2696_v43 = vsub.f32 1.0, %v2695_v37  ;;  %v2663_v20 = vrot.slane %v2662_v50, 1  ;;  %vm2701_vm14 = vmor %vm2699_vm15, %vm2700_vm9 }
0x183c   :  { %v2725_v46 = vmul.f32 %v5179_v3, %v7173_v40  ;;  %v7206_v10 = vadd.f32 %v2656_v2, %v2655_v14  ;;  %vm2730_vm4 = vweird.f32 %v5179_v3  ;;  %v2668_v22 = vrot.slane %v2667_v58, 2 }
0x183d   :  { %v2687_v31 = vsel %vm2686_vm5, %v5171_v30, %v2683_v4  ;;  %v2713_v27 = vadd.f32 %v5175_v16, %v2712_v49  ;;  %v2697_v13 = vmul.f32 %v5177_v45, %v2696_v43  ;;  %v7208_v30 = vadd.f32 %v2663_v20, %v2662_v50 }
0x183e   :  { %v2692_v18 = vsel %vm7177_vm11, %v2691_v63, %v2687_v31  ;;  %v2726_v7 = vsub.f32 1.0, %v2725_v46  ;;  %5180 = vrcp.f32 %v7206_v10  ;;  %v2674_v28 = vadd.f32 %v2673_v39, %v2672_v53 }
0x183f   :  { %v7202_v17 = vmul.f32 %v7138_v55, %v2692_v18  ;;  %v2717_v56 = vsel %vm2716_vm0, %v5175_v16, %v2713_v27  ;;  %v2698_v34 = vadd.f32 %v5177_v45, %v2697_v13  ;;  %vm2704_vm6 = vcmp.eq.f32.partialorder %v2703_v5, 8.507059e+37 }
0x1840   :  { %v2722_v55 = vsel %vm7187_vm1, %v2721_v32, %v2717_v56  ;;  %v2727_v16 = vmul.f32 %v5179_v3, %v2726_v7  ;;  %5182 = vrcp.f32 %v7208_v30  ;;  %vm2729_vm7 = vweird.f32 %v7173_v40 }
0x1841   :  { %v2799_v63 = vsel %vm2542_vm8, %v7202_v17, 0.0  ;;  %v7217_v25 = vmul.f32 %v7142_v57, %v2722_v55  ;;  %v2702_v41 = vsel %vm2701_vm14, %v5177_v45, %v2698_v34  ;;  %vm2731_vm13 = vmor %vm2729_vm7, %vm2730_vm4  ;;  %v2736_v61 = vor.u32 1.1754944e-38, %v2735_v1 }
0x1842   :  { %2800 = vadd.xlane.f32.xlu1 %v2799_v63  ;;  %v2707_v32 = vsel %vm2704_vm6, %v2706_v42, %v2702_v41  ;;  %v2728_v26 = vadd.f32 %v5179_v3, %v2727_v16  ;;  %vm2734_vm10 = vcmp.eq.f32.partialorder %v2733_v33, 8.507059e+37  ;;  %v2669_v45 = vadd.f32 %v2668_v22, %v2667_v58 }
0x1843   :  { %v2805_v52 = vsel %vm2542_vm8, %v7217_v25, 0.0  ;;  %v7227_v57 = vmul.f32 %v7146_v29, %v2707_v32  ;;  %v2675_v5 = vrot.slane %v2674_v28, 2  ;;  %v2750_v31 = vand.u32 2147483648, %v7206_v10 }
0x1844   :  { %2806 = vadd.xlane.f32.xlu0 %v2805_v52  ;;  %v2732_v14 = vsel %vm2731_vm13, %v5179_v3, %v2728_v26  ;;  %v5181_v4 = vpop.eup %5180  ;;  %v2670_v29 = vrot.slane %v2669_v45, 1  ;;  %vm2744_vm12 = vweird.f32 %v7206_v10  ;;  %v2763_v27 = vand.u32 2147483647, %v7208_v30 }
0x1845   :  { %v2802_v37 = vsel %vm2542_vm8, %v7227_v57, 0.0  ;;  %v2737_v50 = vsel %vm2734_vm10, %v2736_v61, %v2732_v14  ;;  %v2740_v40 = vmul.f32 %v5181_v4, %v7206_v10  ;;  %v2676_v49 = vadd.f32 %v2675_v5, %v2674_v28 }
0x1846   :  { %2803 = vadd.xlane.f32.xlu2 %v2802_v37  ;;  %v7233_v42 = vmul.f32 %v7151_v12, %v2737_v50  ;;  %v5183_v53 = vpop.eup %5182  ;;  %v2671_v43 = vadd.f32 %v2670_v29, %v2669_v45  ;;  %vm2745_vm11 = vweird.f32 %v5181_v4  ;;  %v2748_v12 = vand.u32 2147483647, %v7206_v10 }
0x1847   :  { %v2741_v33 = vsub.f32 1.0, %v2740_v40  ;;  %v2755_v3 = vmul.f32 %v5183_v53, %v7208_v30  ;;  %v2677_v20 = vrot.slane %v2676_v49, 1  ;;  %v2765_v46 = vand.u32 2147483648, %v7208_v30  ;;  %vm2746_vm2 = vmor %vm2744_vm12, %vm2745_vm11 }
0x1848   :  { %v2808_v2 = vsel %vm2542_vm8, %v7233_v42, 0.0  ;;  %5184 = vrcp.f32 %v2671_v43  ;;  %vm2760_vm1 = vweird.f32 %v5183_v53  ;;  %v2751_v7 = vor.u32 1.1754944e-38, %v2750_v31 }
0x1849   :  { %v2742_v58 = vmul.f32 %v5181_v4, %v2741_v33  ;;  %v2756_v18 = vsub.f32 1.0, %v2755_v3  ;;  %v2678_v56 = vadd.f32 %v2677_v20, %v2676_v49  ;;  %vm2759_vm15 = vweird.f32 %v7208_v30 }
0x184a   :  { %2809 = vadd.xlane.f32.xlu1 %v2808_v2  ;;  %vm2749_vm5 = vcmp.eq.f32.partialorder %v2748_v12, 8.507059e+37  ;;  %vm2761_vm3 = vmor %vm2759_vm15, %vm2760_vm1  ;;  %v2766_v10 = vor.u32 1.1754944e-38, %v2765_v46  ;;  %vm2764_vm9 = vcmp.eq.f32.partialorder %v2763_v27, 8.507059e+37  ;;  %v2778_v5 = vand.u32 2147483647, %v2671_v43  ;;  %v2876_v46 = vld [vmem:[#allocation17 + $0x78] sm:$0xff] }
0x184b   :  { %v2743_v39 = vadd.f32 %v5181_v4, %v2742_v58  ;;  %v2757_v13 = vmul.f32 %v5183_v53, %v2756_v18  ;;  %5186 = vrcp.f32 %v2678_v56  ;;  %vm2774_vm4 = vweird.f32 %v2671_v43  ;;  %2888 = vmatpush.msra.mxu1 %v2876_v46 }
0x184c   :  { %v2795_v50 = vand.u32 2147483648, %v2678_v56  ;;  %v2793_v29 = vand.u32 2147483647, %v2678_v56  ;;  %vm2779_vm7 = vcmp.eq.f32.partialorder %v2778_v5, 8.507059e+37  ;;  %vm2789_vm13 = vweird.f32 %v2678_v56 }
0x184d   :  { %v2747_v1 = vsel %vm2746_vm2, %v5181_v4, %v2743_v39  ;;  %v2758_v63 = vadd.f32 %v5183_v53, %v2757_v13  ;;  %v5974_v18 = vmov 4.0   ;;  %v2875_v39 = vld [vmem:[#allocation17 + $0x70] sm:$0xff]  ;;  %v2874_v13 = vld [vmem:[#allocation17 + $0x68] sm:$0xff]  ;;  %vm8217_vm1 = vcmask 517120  }
0x184e   :  { %v2752_v55 = vsel %vm2749_vm5, %v2751_v7, %v2747_v1  ;;  %v5185_v22 = vpop.eup %5184  ;;  %v2796_v3 = vor.u32 1.1754944e-38, %v2795_v50  ;;  %vm2794_vm11 = vcmp.eq.f32.partialorder %v2793_v29, 8.507059e+37  ;;  %5188 = vrcp.f32 %v5974_v18  ;;  %2889 = vmatpush.msra.mxu1 %v2875_v39  ;;  %vm8218_vm2 = vmmov %vm8217_vm1 }
0x184f   :  { %v7246_v34 = vmul.f32 %v7155_v19, %v2752_v55  ;;  %v2762_v16 = vsel %vm2761_vm3, %v5183_v53, %v2758_v63  ;;  %v2770_v30 = vmul.f32 %v5185_v22, %v2671_v43  ;;  %v2780_v19 = vand.u32 2147483648, %v2671_v43  ;;  %vm8219_vm15 = vmmov %vm8217_vm1 }
0x1850   :  { %v2767_v28 = vsel %vm2764_vm9, %v2766_v10, %v2762_v16  ;;  %vm2775_vm0 = vweird.f32 %v5185_v22  ;;  %2890 = vmatpush.msra.mxu1 %v2874_v13  ;;  %v2872_v10 = vld [vmem:[#allocation17 + $0x58] sm:$0xff]  ;;  %v2871_v16 = vld [vmem:[#allocation17 + $0x50] sm:$0xff]  ;;  %vm8220_vm5 = vmmov %vm8217_vm1 }
0x1851   :  { %v2811_v41 = vsel %vm2542_vm8, %v7246_v34, 0.0  ;;  %v7251_v52 = vmul.f32 %v7161_v36, %v2767_v28  ;;  %v5187_v32 = vpop.eup %5186  ;;  %v2771_v61 = vsub.f32 1.0, %v2770_v30  ;;  %vm2776_vm14 = vmor %vm2774_vm4, %vm2775_vm0  ;;  %v2781_v36 = vor.u32 1.1754944e-38, %v2780_v19  ;;  %v2924_v30 = vld [vmem:[#allocation18 + $0x18] sm:$0xff]  ;;  %v2922_v19 = vld [vmem:[#allocation18 + $0x8] sm:$0xff] }
0x1852   :  { %2812 = vadd.xlane.f32.xlu2 %v2811_v41  ;;  %v2785_v14 = vmul.f32 %v5187_v32, %v2678_v56  ;;  %vm2790_vm6 = vweird.f32 %v5187_v32  ;;  %v2870_v41 = vld [vmem:[#allocation17 + $0x48] sm:$0xff]  ;;  %2940 = vmatpush.msrb.mxu0 %v2924_v30  ;;  %vm8221_vm3 = vmmov %vm8217_vm1  ;;  %v3702_v30 = vld [vmem:[#allocation23 + $0x20] sm:$0xff] }
0x1853   :  { %v2814_v26 = vsel %vm2542_vm8, %v7251_v52, 0.0  ;;  %v2772_v45 = vmul.f32 %v5185_v22, %v2771_v61  ;;  %vm2791_vm10 = vmor %vm2789_vm13, %vm2790_vm6  ;;  %v2869_v61 = vld [vmem:[#allocation17 + $0x40] sm:$0xff]  ;;  %vm8226_vm6 = vcmask 261120  }
0x1854   :  { %2815 = vadd.xlane.f32.xlu0 %v2814_v26  ;;  %v2786_v4 = vsub.f32 1.0, %v2785_v14  ;;  %vm8222_vm9 = vmmov %vm8217_vm1 }
0x1855   :  { %v2773_v37 = vadd.f32 %v5185_v22, %v2772_v45  ;;  %vm8223_vm0 = vmmov %vm8217_vm1 }
0x1856   :  { %v2787_v40 = vmul.f32 %v5187_v32, %v2786_v4  ;;  %v2921_v4 = vld [vmem:[#allocation18] sm:$0xff]  ;;  %vm8224_vm4 = vmmov %vm8223_vm0 }
0x1857   :  { %v2777_v53 = vsel %vm2776_vm14, %v5185_v22, %v2773_v37  ;;  %v3705_v37 = vld [vmem:[#allocation23 + $0x38] sm:$0xff]  ;;  %vm8225_vm14 = vcmask 523264  }
0x1858   :  { %v2782_v49 = vsel %vm2779_vm7, %v2781_v36, %v2777_v53  ;;  %v2788_v2 = vadd.f32 %v5187_v32, %v2787_v40  ;;  %vm8227_vm7 = vmmov %vm8225_vm14 }
0x1859   :  { %v7256_v33 = vmul.f32 %v7168_v47, %v2782_v49  ;;  %v5189_v47 = vpop.eup %5188 }
0x185a   :  { %v2792_v31 = vsel %vm2791_vm10, %v5187_v32, %v2788_v2  ;;  %v2824_v27 = vmul.f32 4.0, %v5189_v47  ;;  %vm2828_vm12 = vweird.f32 %v5189_v47  ;;  %v2923_v32 = vld [vmem:[#allocation18 + $0x10] sm:$0xff] }
0x185b   :  { %v2817_v43 = vsel %vm2542_vm8, %v7256_v33, 0.0  ;;  %v2797_v20 = vsel %vm2794_vm11, %v2796_v3, %v2792_v31  ;;  %2941 = vmatpush.msrb.mxu0 %v2923_v32  ;;  %v3700_v32 = vld [vmem:[#allocation23 + $0x10] sm:$0xff] }
0x185c   :  { %2818 = vadd.xlane.f32.xlu1 %v2817_v43  ;;  %v7261_v58 = vmul.f32 %v7175_v35, %v2797_v20  ;;  %v2825_v56 = vsub.f32 1.0, %v2824_v27  ;;  %v2873_v35 = vld [vmem:[#allocation17 + $0x60] sm:$0xff] }
0x185d   :  { %2891 = vmatpush.msra.mxu1 %v2873_v35  ;;  %2942 = vmatpush.msrb.mxu0 %v2922_v19 }
0x185e   :  { %v2820_v12 = vsel %vm2542_vm8, %v7261_v58, 0.0  ;;  %v2826_v7 = vmul.f32 %v5189_v47, %v2825_v56 }
0x185f   :  { %2821 = vadd.xlane.f32.xlu2 %v2820_v12  ;;  %2892 = vmatpush.msra.mxu1 %v2872_v10 }
0x1860   :  { %v2827_v63 = vadd.f32 %v5189_v47, %v2826_v7  ;;  %2943 = vmatpush.msrb.mxu0 %v2921_v4 }
0x1861   :  { %2893 = vmatpush.msra.mxu1 %v2871_v16 }
0x1862   :  { %v7265_v22 = vsel %vm2828_vm12, %v5189_v47, %v2827_v63  ;;  %3745 = vmatpush.msra.mxu0 %v3705_v37 }
0x1863   :  { %2894 = vmatpush.msra.mxu1 %v2870_v41  ;;  %v3703_v41 = vld [vmem:[#allocation23 + $0x28] sm:$0xff] }
0x1865   :  { %2895 = vmatpush.msra.mxu1 %v2869_v61  ;;  %v3698_v61 = vld [vmem:[#allocation23] sm:$0xff] }
0x18b5   :  { %v2801_v1 = vpop.xlane.xlu1 %2800 }
0x18b6   :  { %v2830_v26 = vmul.f32 %v7265_v22, %v2801_v1 }
0x18b7   :  { %v2807_v14 = vpop.xlane.xlu0 %2806 }
0x18b8   :  { %v2838_v50 = vmul.f32 %v2830_v26, %v7093_v44  ;;  %v2832_v36 = vmul.f32 %v7265_v22, %v2807_v14  ;;  %v3699_v26 = vld [vmem:[#allocation23 + $0x8] sm:$0xff] }
0x18b9   :  { %v2804_v55 = vpop.xlane.xlu2 %2803 }
0x18ba   :  { %v2831_v28 = vmul.f32 %v7265_v22, %v2804_v55  ;;  %v2846_v49 = vsel %vm8218_vm2, %v2838_v50, 0.0  ;;  %v2840_v2 = vmul.f32 %v2832_v36, %v7085_v62 }
0x18bc   :  { %v2839_v5 = vmul.f32 %v2831_v28, %v7088_v48  ;;  %v2849_v44 = vsel %vm8219_vm15, %v2840_v2, 0.0  ;;  %v3704_v28 = vld [vmem:[#allocation23 + $0x30] sm:$0xff] }
0x18bd   :  { %v2810_v45 = vpop.xlane.xlu1 %2809  ;;  %3746 = vmatpush.msra.mxu0 %v3704_v28 }
0x18be   :  { %v2833_v40 = vmul.f32 %v7265_v22, %v2810_v45  ;;  %v2847_v29 = vsel %vm8217_vm1, %v2839_v5, 0.0 }
0x18bf   :  { %v2848_v31 = vadd.f32 %v2847_v29, %v2846_v49  ;;  %3747 = vmatpush.msra.mxu0 %v3703_v41 }
0x18c0   :  { %v2841_v48 = vmul.f32 %v2833_v40, %v7107_v6 }
0x18c1   :  { %v2850_v18 = vadd.f32 %v2849_v44, %v2848_v31  ;;  %3748 = vmatpush.msra.mxu0 %v3702_v30 }
0x18c2   :  { %v2851_v20 = vsel %vm8220_vm5, %v2841_v48, 0.0 }
0x18c3   :  { %v2852_v27 = vadd.f32 %v2851_v20, %v2850_v18 }
0x18c5   :  { %v2813_v53 = vpop.xlane.xlu2 %2812 }
0x18c6   :  { %v2834_v3 = vmul.f32 %v7265_v22, %v2813_v53 }
0x18c7   :  { %v2816_v43 = vpop.xlane.xlu0 %2815 }
0x18c8   :  { %v2842_v12 = vmul.f32 %v2834_v3, %v7101_v0  ;;  %v2835_v47 = vmul.f32 %v7265_v22, %v2816_v43 }
0x18ca   :  { %v2853_v46 = vsel %vm8221_vm3, %v2842_v12, 0.0  ;;  %v2843_v62 = vmul.f32 %v2835_v47, %v7099_v15 }
0x18cb   :  { %v2854_v39 = vadd.f32 %v2853_v46, %v2852_v27 }
0x18cc   :  { %v2855_v56 = vsel %vm8222_vm9, %v2843_v62, 0.0 }
0x18cd   :  { %v2856_v63 = vadd.f32 %v2855_v56, %v2854_v39 }
0x18cf   :  { %v2819_v6 = vpop.xlane.xlu1 %2818 }
0x18d0   :  { %v2836_v13 = vmul.f32 %v7265_v22, %v2819_v6 }
0x18d2   :  { %v2844_v7 = vmul.f32 %v2836_v13, %v7118_v8  ;;  %v2822_v1 = vpop.xlane.xlu2 %2821  ;;  %v3701_v8 = vld [vmem:[#allocation23 + $0x18] sm:$0xff] }
0x18d3   :  { %v2837_v0 = vmul.f32 %v7265_v22, %v2822_v1  ;;  %3749 = vmatpush.msra.mxu0 %v3701_v8 }
0x18d4   :  { %v2857_v35 = vsel %vm8223_vm0, %v2844_v7, 0.0 }
0x18d5   :  { %v2858_v55 = vadd.f32 %v2857_v35, %v2856_v63  ;;  %v2845_v10 = vmul.f32 %v2837_v0, %v7113_v38  ;;  %3750 = vmatpush.msra.mxu0 %v3700_v32  ;;  %v2917_v38 = vpop.f32.mrf.mxu3 }
0x18d7   :  { %v2859_v16 = vsel %vm8224_vm4, %v2845_v10, 0.0  ;;  %3751 = vmatpush.msra.mxu0 %v3699_v26 }
0x18d8   :  { %v2860_v15 = vadd.f32 %v2859_v16, %v2858_v55 }
0x18d9   :  { %3752 = vmatpush.msra.mxu0 %v3698_v61 }
0x18da   :  { %4888 = vmatmul.msk.f32.vlgmr.msra.gmra.mxu1 %vm8225_vm14, %v2860_v15 }
0x1957   :  { %v2897_v19 = vpop.f32.mrf.mxu1 }
0x1958   :  { %v7292_v14 = vadd.f32 %v2917_v38, %v2897_v19 }
0x195a   :  { %v2920_v45 = vmax.f32 %v7292_v14, 0.0 }
0x195c   :  { %4890 = vmatmul.msk.f32.vlgmr.msrb.gmra.mxu0 %vm8226_vm6, %v2920_v45 }
0x1964   :  { %4897 = vmatmul.msk.f32.vlgmr.msra.gmra.mxu0 %vm8227_vm7, %v6684_v60 }
0x19d9   :  { %v2945_v5 = vpop.f32.mrf.mxu0 }
0x19da   :  { %2948 = vst.msk [vmem:[#allocation34] sm:$0x3] %vm2542_vm8, %v2945_v5  ;;  %v4891_v4 = vmul.f32 -1.442695, %v2945_v5 }
0x19dc   :  { %5190 = vpow2.f32 %v4891_v4 }
0x19e2   :  { %v5191_v37 = vpop.eup %5190 }
0x19e3   :  { %v2952_v50 = vadd.f32 1.0, %v5191_v37 }
0x19e5   :  { %5192 = vrcp.f32 %v2952_v50  ;;  %v2964_v53 = vand.u32 2147483648, %v2952_v50  ;;  %v2962_v2 = vand.u32 2147483647, %v2952_v50  ;;  %vm2958_vm10 = vweird.f32 %v2952_v50 }
0x19e7   :  { %v2965_v3 = vor.u32 1.1754944e-38, %v2964_v53  ;;  %vm2963_vm12 = vcmp.eq.f32.partialorder %v2962_v2, 8.507059e+37 }
0x19eb   :  { %v5193_v36 = vpop.eup %5192 }
0x19ec   :  { %v2954_v40 = vmul.f32 %v5193_v36, %v2952_v50  ;;  %vm2959_vm13 = vweird.f32 %v5193_v36 }
0x19ed   :  { %vm2960_vm11 = vmor %vm2958_vm10, %vm2959_vm13 }
0x19ee   :  { %v2955_v29 = vsub.f32 1.0, %v2954_v40 }
0x19f0   :  { %v2956_v49 = vmul.f32 %v5193_v36, %v2955_v29 }
0x19f2   :  { %v2957_v48 = vadd.f32 %v5193_v36, %v2956_v49 }
0x19f4   :  { %v2961_v31 = vsel %vm2960_vm11, %v5193_v36, %v2957_v48 }
0x19f5   :  { %v2966_v43 = vsel %vm2963_vm12, %v2965_v3, %v2961_v31 }
0x19f6   :  { %v7302_v44 = vmul.f32 %v2966_v43, %v7217_v25  ;;  %v7305_v20 = vmul.f32 %v2966_v43, %v7227_v57  ;;  %v7308_v12 = vmul.f32 %v2966_v43, %v7202_v17  ;;  %v7311_v18 = vmul.f32 %v2966_v43, %v7251_v52 }
0x19f7   :  { %v7314_v47 = vmul.f32 %v2966_v43, %v7246_v34  ;;  %v7317_v27 = vmul.f32 %v2966_v43, %v7233_v42  ;;  %v7320_v46 = vmul.f32 %v2966_v43, %v7261_v58  ;;  %v7323_v25 = vmul.f32 %v2966_v43, %v7256_v33 }
0x19f8   :  { %v2990_v57 = vsel %vm2542_vm8, %v7302_v44, -inf  ;;  %v2983_v17 = vsel %vm2542_vm8, %v7305_v20, -inf  ;;  %v2976_v52 = vsel %vm2542_vm8, %v7308_v12, -inf  ;;  %v3011_v34 = vsel %vm2542_vm8, %v7311_v18, -inf }
0x19f9   :  { %v2991_v42 = vrot.slane %v2990_v57, 4  ;;  %v2984_v62 = vrot.slane %v2983_v17, 4  ;;  %v2977_v39 = vrot.slane %v2976_v52, 4  ;;  %v3012_v58 = vrot.slane %v3011_v34, 4 }
0x19fa   :  { %v3004_v33 = vsel %vm2542_vm8, %v7314_v47, -inf  ;;  %v2997_v6 = vsel %vm2542_vm8, %v7317_v27, -inf  ;;  %v3025_v13 = vsel %vm2542_vm8, %v7320_v46, -inf  ;;  %v3018_v56 = vsel %vm2542_vm8, %v7323_v25, -inf }
0x19fb   :  { %v2992_v7 = vmax.f32 %v2990_v57, %v2991_v42  ;;  %v2985_v1 = vmax.f32 %v2983_v17, %v2984_v62  ;;  %v2978_v63 = vmax.f32 %v2976_v52, %v2977_v39  ;;  %v3013_v0 = vmax.f32 %v3011_v34, %v3012_v58 }
0x19fc   :  { %v3005_v35 = vrot.slane %v3004_v33, 4  ;;  %v2998_v55 = vrot.slane %v2997_v6, 4  ;;  %v3026_v10 = vrot.slane %v3025_v13, 4  ;;  %v3019_v16 = vrot.slane %v3018_v56, 4 }
0x19fd   :  { %v2993_v15 = vrot.slane %v2992_v7, 2  ;;  %v2986_v28 = vrot.slane %v2985_v1, 2  ;;  %v2979_v41 = vrot.slane %v2978_v63, 2  ;;  %v3014_v30 = vrot.slane %v3013_v0, 2 }
0x19fe   :  { %v3006_v8 = vmax.f32 %v3004_v33, %v3005_v35  ;;  %v2999_v32 = vmax.f32 %v2997_v6, %v2998_v55  ;;  %v3027_v26 = vmax.f32 %v3025_v13, %v3026_v10  ;;  %v3020_v61 = vmax.f32 %v3018_v56, %v3019_v16 }
0x19ff   :  { %v2994_v38 = vmax.f32 %v2992_v7, %v2993_v15  ;;  %v2987_v19 = vmax.f32 %v2985_v1, %v2986_v28  ;;  %v2980_v5 = vmax.f32 %v2978_v63, %v2979_v41  ;;  %v3015_v4 = vmax.f32 %v3013_v0, %v3014_v30 }
0x1a00   :  { %v3007_v37 = vrot.slane %v3006_v8, 2  ;;  %v3000_v50 = vrot.slane %v2999_v32, 2  ;;  %v3028_v36 = vrot.slane %v3027_v26, 2  ;;  %v3021_v40 = vrot.slane %v3020_v61, 2 }
0x1a01   :  { %v2995_v29 = vrot.slane %v2994_v38, 1  ;;  %v2988_v53 = vrot.slane %v2987_v19, 1  ;;  %v2981_v49 = vrot.slane %v2980_v5, 1  ;;  %v3016_v2 = vrot.slane %v3015_v4, 1 }
0x1a02   :  { %v3008_v48 = vmax.f32 %v3006_v8, %v3007_v37  ;;  %v3001_v3 = vmax.f32 %v2999_v32, %v3000_v50  ;;  %v3029_v31 = vmax.f32 %v3027_v26, %v3028_v36  ;;  %v3022_v43 = vmax.f32 %v3020_v61, %v3021_v40 }
0x1a03   :  { %v2996_v57 = vmax.f32 %v2994_v38, %v2995_v29  ;;  %v2989_v17 = vmax.f32 %v2987_v19, %v2988_v53  ;;  %v2982_v52 = vmax.f32 %v2980_v5, %v2981_v49  ;;  %v3017_v34 = vmax.f32 %v3015_v4, %v3016_v2 }
0x1a04   :  { %v3009_v42 = vrot.slane %v3008_v48, 1  ;;  %v3002_v62 = vrot.slane %v3001_v3, 1  ;;  %v3030_v39 = vrot.slane %v3029_v31, 1  ;;  %v3023_v58 = vrot.slane %v3022_v43, 1 }
0x1a05   :  { %v3034_v33 = vsub.f32 %v7302_v44, %v2996_v57  ;;  %v3033_v6 = vsub.f32 %v7305_v20, %v2989_v17  ;;  %v3032_v13 = vsub.f32 %v7308_v12, %v2982_v52  ;;  %v3037_v56 = vsub.f32 %v7311_v18, %v3017_v34 }
0x1a06   :  { %v3010_v7 = vmax.f32 %v3008_v48, %v3009_v42  ;;  %v3003_v1 = vmax.f32 %v3001_v3, %v3002_v62  ;;  %v3031_v63 = vmax.f32 %v3029_v31, %v3030_v39  ;;  %v3024_v0 = vmax.f32 %v3022_v43, %v3023_v58 }
0x1a07   :  { %v3044_v35 = vmul.f32 1.442695, %v3034_v33  ;;  %v3042_v55 = vmul.f32 1.442695, %v3033_v6  ;;  %v3040_v10 = vmul.f32 1.442695, %v3032_v13 }
0x1a08   :  { %v3050_v16 = vmul.f32 1.442695, %v3037_v56  ;;  %v3036_v15 = vsub.f32 %v7314_v47, %v3010_v7  ;;  %v3035_v28 = vsub.f32 %v7317_v27, %v3003_v1  ;;  %v3039_v44 = vsub.f32 %v7320_v46, %v3031_v63 }
0x1a09   :  { %5194 = vpow2.f32 %v3044_v35  ;;  %v3038_v18 = vsub.f32 %v7323_v25, %v3024_v0 }
0x1a0a   :  { %5196 = vpow2.f32 %v3042_v55  ;;  %v3048_v20 = vmul.f32 1.442695, %v3036_v15  ;;  %v3046_v12 = vmul.f32 1.442695, %v3035_v28  ;;  %v3054_v41 = vmul.f32 1.442695, %v3039_v44 }
0x1a0b   :  { %5198 = vpow2.f32 %v3040_v10  ;;  %v3052_v30 = vmul.f32 1.442695, %v3038_v18 }
0x1a0c   :  { %5200 = vpow2.f32 %v3050_v16 }
0x1a0d   :  { %5202 = vpow2.f32 %v3048_v20 }
0x1a0e   :  { %5204 = vpow2.f32 %v3046_v12 }
0x1a0f   :  { %v7349_v8 = vpop.eup %5194  ;;  %5206 = vpow2.f32 %v3054_v41 }
0x1a10   :  { %v7351_v47 = vpop.eup %5196  ;;  %v3070_v27 = vsel %vm2542_vm8, %v7349_v8, 0.0  ;;  %5208 = vpow2.f32 %v3052_v30 }
0x1a11   :  { %v7355_v46 = vpop.eup %5198  ;;  %v3071_v32 = vrot.slane %v3070_v27, 4  ;;  %v3063_v25 = vsel %vm2542_vm8, %v7351_v47, 0.0 }
0x1a12   :  { %v7359_v26 = vpop.eup %5200  ;;  %v3064_v61 = vrot.slane %v3063_v25, 4  ;;  %v3056_v38 = vsel %vm2542_vm8, %v7355_v46, 0.0 }
0x1a13   :  { %v7363_v19 = vpop.eup %5202  ;;  %v3072_v5 = vadd.f32 %v3071_v32, %v3070_v27  ;;  %v3057_v4 = vrot.slane %v3056_v38, 4  ;;  %v3091_v37 = vsel %vm2542_vm8, %v7359_v26, 0.0 }
0x1a14   :  { %v7367_v50 = vpop.eup %5204  ;;  %v3065_v36 = vadd.f32 %v3064_v61, %v3063_v25  ;;  %v3092_v40 = vrot.slane %v3091_v37, 4  ;;  %v3084_v29 = vsel %vm2542_vm8, %v7363_v19, 0.0 }
0x1a15   :  { %v7371_v53 = vpop.eup %5206  ;;  %v3073_v49 = vrot.slane %v3072_v5, 2  ;;  %v3058_v2 = vadd.f32 %v3057_v4, %v3056_v38  ;;  %v3085_v48 = vrot.slane %v3084_v29, 4  ;;  %v3077_v3 = vsel %vm2542_vm8, %v7367_v50, 0.0 }
0x1a16   :  { %v3066_v31 = vrot.slane %v3065_v36, 2  ;;  %v3093_v43 = vadd.f32 %v3092_v40, %v3091_v37  ;;  %v3078_v57 = vrot.slane %v3077_v3, 4  ;;  %v3105_v17 = vsel %vm2542_vm8, %v7371_v53, 0.0  ;;  %v7377_v62 = vpop.eup %5208 }
0x1a17   :  { %v3074_v52 = vadd.f32 %v3073_v49, %v3072_v5  ;;  %v3059_v34 = vrot.slane %v3058_v2, 2  ;;  %v3086_v42 = vadd.f32 %v3085_v48, %v3084_v29  ;;  %v3106_v7 = vrot.slane %v3105_v17, 4 }
0x1a18   :  { %v3067_v39 = vadd.f32 %v3066_v31, %v3065_v36  ;;  %v3094_v58 = vrot.slane %v3093_v43, 2  ;;  %v3079_v33 = vadd.f32 %v3078_v57, %v3077_v3  ;;  %v3098_v10 = vsel %vm2542_vm8, %v7377_v62, 0.0 }
0x1a19   :  { %v3075_v6 = vrot.slane %v3074_v52, 1  ;;  %v3060_v13 = vadd.f32 %v3059_v34, %v3058_v2  ;;  %v3087_v56 = vrot.slane %v3086_v42, 2  ;;  %v7386_v20 = vadd.f32 %v3106_v7, %v3105_v17 }
0x1a1a   :  { %v3068_v1 = vrot.slane %v3067_v39, 1  ;;  %v3095_v63 = vadd.f32 %v3094_v58, %v3093_v43  ;;  %v3080_v0 = vrot.slane %v3079_v33, 2  ;;  %v3099_v12 = vrot.slane %v3098_v10, 4 }
0x1a1b   :  { %v7379_v35 = vadd.f32 %v3075_v6, %v3074_v52  ;;  %v3061_v55 = vrot.slane %v3060_v13, 1  ;;  %v3088_v28 = vadd.f32 %v3087_v56, %v3086_v42  ;;  %v3108_v5 = vrot.slane %v7386_v20, 2 }
0x1a1c   :  { %v7383_v16 = vadd.f32 %v3068_v1, %v3067_v39  ;;  %v3096_v15 = vrot.slane %v3095_v63, 1  ;;  %v3081_v44 = vadd.f32 %v3080_v0, %v3079_v33  ;;  %v7402_v37 = vadd.f32 %v3099_v12, %v3098_v10 }
0x1a1d   :  { %5210 = vrcp.f32 %v7379_v35  ;;  %v7389_v18 = vadd.f32 %v3061_v55, %v3060_v13  ;;  %v3151_v30 = vand.u32 2147483647, %v7379_v35  ;;  %v3153_v27 = vand.u32 2147483648, %v7379_v35 }
0x1a1e   :  { %5212 = vrcp.f32 %v7383_v16  ;;  %v7391_v41 = vadd.f32 %v3096_v15, %v3095_v63  ;;  %v3089_v32 = vrot.slane %v3088_v28, 1  ;;  %v3082_v25 = vrot.slane %v3081_v44, 1 }
0x1a1f   :  { %v3136_v61 = vand.u32 2147483647, %v7383_v16  ;;  %v3138_v38 = vand.u32 2147483648, %v7383_v16  ;;  %5214 = vrcp.f32 %v7389_v18  ;;  %vm3147_vm1 = vweird.f32 %v7379_v35 }
0x1a20   :  { %v3123_v4 = vand.u32 2147483648, %v7389_v18  ;;  %5216 = vrcp.f32 %v7391_v41  ;;  %vm3132_vm2 = vweird.f32 %v7383_v16  ;;  %v3198_v40 = vand.u32 2147483648, %v7391_v41 }
0x1a21   :  { %v7406_v29 = vadd.f32 %v3089_v32, %v3088_v28  ;;  %v7408_v49 = vadd.f32 %v3082_v25, %v3081_v44  ;;  %vm7411_vm15 = vcmp.eq.f32.partialorder %v3151_v30, 8.507059e+37  ;;  %v3154_v31 = vor.u32 1.1754944e-38, %v3153_v27 }
0x1a22   :  { %v3121_v43 = vand.u32 2147483647, %v7389_v18  ;;  %vm7417_vm5 = vcmp.eq.f32.partialorder %v3136_v61, 8.507059e+37  ;;  %v3139_v52 = vor.u32 1.1754944e-38, %v3138_v38  ;;  %v3196_v34 = vand.u32 2147483647, %v7391_v41 }
0x1a23   :  { %v5211_v36 = vpop.eup %5210  ;;  %5218 = vrcp.f32 %v7406_v29  ;;  %vm3117_vm3 = vweird.f32 %v7389_v18  ;;  %v3124_v39 = vor.u32 1.1754944e-38, %v3123_v4  ;;  %v3199_v6 = vor.u32 1.1754944e-38, %v3198_v40 }
0x1a24   :  { %v5213_v2 = vpop.eup %5212  ;;  %v3143_v48 = vmul.f32 %v5211_v36, %v7379_v35  ;;  %5220 = vrcp.f32 %v7408_v49  ;;  %vm3148_vm9 = vweird.f32 %v5211_v36  ;;  %vm7427_vm14 = vcmp.eq.f32.partialorder %v3121_v43, 8.507059e+37 }
0x1a25   :  { %v3128_v57 = vmul.f32 %v5213_v2, %v7383_v16  ;;  %v5215_v58 = vpop.eup %5214  ;;  %vm3133_vm0 = vweird.f32 %v5213_v2  ;;  %v3181_v63 = vand.u32 2147483647, %v7406_v29  ;;  %v3183_v0 = vand.u32 2147483648, %v7406_v29  ;;  %vm3149_vm11 = vmor %vm3147_vm1, %vm3148_vm9 }
0x1a26   :  { %v3144_v42 = vsub.f32 1.0, %v3143_v48  ;;  %v5217_v13 = vpop.eup %5216  ;;  %v3113_v7 = vmul.f32 %v5215_v58, %v7389_v18  ;;  %vm7434_vm6 = vcmp.eq.f32.partialorder %v3196_v34, 8.507059e+37  ;;  %v3166_v28 = vand.u32 2147483647, %v7408_v49  ;;  %vm3134_vm4 = vmor %vm3132_vm2, %vm3133_vm0 }
0x1a27   :  { %v3129_v33 = vsub.f32 1.0, %v3128_v57  ;;  %v3188_v10 = vmul.f32 %v5217_v13, %v7391_v41  ;;  %v3168_v44 = vand.u32 2147483648, %v7408_v49  ;;  %vm3118_vm7 = vweird.f32 %v5215_v58 }
0x1a28   :  { %v3145_v56 = vmul.f32 %v5211_v36, %v3144_v42  ;;  %v3114_v30 = vsub.f32 1.0, %v3113_v7  ;;  %vm3162_vm12 = vweird.f32 %v7408_v49  ;;  %v3109_v61 = vadd.f32 %v3108_v5, %v7386_v20  ;;  %vm3119_vm1 = vmor %vm3117_vm3, %vm3118_vm7 }
0x1a29   :  { %v3130_v55 = vmul.f32 %v5213_v2, %v3129_v33  ;;  %v5219_v27 = vpop.eup %5218  ;;  %v3189_v25 = vsub.f32 1.0, %v3188_v10  ;;  %v3101_v38 = vrot.slane %v7402_v37, 2  ;;  %vm7451_vm13 = vcmp.eq.f32.partialorder %v3181_v63, 8.507059e+37 }
0x1a2a   :  { %v3146_v12 = vadd.f32 %v5211_v36, %v3145_v56  ;;  %v5221_v4 = vpop.eup %5220  ;;  %v3115_v48 = vmul.f32 %v5215_v58, %v3114_v30  ;;  %v3173_v43 = vmul.f32 %v5219_v27, %v7406_v29  ;;  %vm3178_vm10 = vweird.f32 %v5219_v27 }
0x1a2b   :  { %v3131_v32 = vadd.f32 %v5213_v2, %v3130_v55  ;;  %v3190_v5 = vmul.f32 %v5217_v13, %v3189_v25  ;;  %v3158_v34 = vmul.f32 %v5221_v4, %v7408_v49  ;;  %vm3163_vm2 = vweird.f32 %v5221_v4 }
0x1a2c   :  { %v3150_v40 = vsel %vm3149_vm11, %v5211_v36, %v3146_v12  ;;  %v3116_v42 = vadd.f32 %v5215_v58, %v3115_v48  ;;  %v3174_v33 = vsub.f32 1.0, %v3173_v43  ;;  %vm8239_vm9 = vweird.f32 %v7391_v41 }
0x1a2d   :  { %v3155_v57 = vsel %vm7411_vm15, %v3154_v31, %v3150_v40  ;;  %v3135_v20 = vsel %vm3134_vm4, %v5213_v2, %v3131_v32  ;;  %v3191_v7 = vadd.f32 %v5217_v13, %v3190_v5  ;;  %v3159_v3 = vsub.f32 1.0, %v3158_v34  ;;  %vm3164_vm4 = vmor %vm3162_vm12, %vm3163_vm2 }
0x1a2e   :  { %v3156_v36 = vmul.f32 %v7349_v8, %v3155_v57  ;;  %v3140_v16 = vsel %vm7417_vm5, %v3139_v52, %v3135_v20  ;;  %v3120_v31 = vsel %vm3119_vm1, %v5215_v58, %v3116_v42  ;;  %vm8238_vm15 = vweird.f32 %v5217_v13 }
0x1a2f   :  { %v3141_v56 = vmul.f32 %v7351_v47, %v3140_v16  ;;  %vm3194_vm0 = vmor %vm8239_vm9, %vm8238_vm15  ;;  %v3175_v8 = vmul.f32 %v5219_v27, %v3174_v33  ;;  %v3110_v17 = vrot.slane %v3109_v61, 1  ;;  %v3125_v47 = vsel %vm7427_vm14, %v3124_v39, %v3120_v31 }
0x1a30   :  { %v3238_v2 = vsel %vm2542_vm8, %v3156_v36, 0.0  ;;  %v3195_v18 = vsel %vm3194_vm0, %v5217_v13, %v3191_v7  ;;  %v3160_v63 = vmul.f32 %v5221_v4, %v3159_v3  ;;  %v3126_v55 = vmul.f32 %v7355_v46, %v3125_v47  ;;  %v3276_v47 = vld [vmem:[#allocation20 + $0x20] sm:$0xff] }
0x1a31   :  { %3239 = vadd.xlane.f32.xlu2 %v3238_v2  ;;  %v3235_v52 = vsel %vm2542_vm8, %v3141_v56, 0.0  ;;  %v3200_v58 = vsel %vm7434_vm6, %v3199_v6, %v3195_v18  ;;  %v3176_v10 = vadd.f32 %v5219_v27, %v3175_v8  ;;  %v3111_v12 = vadd.f32 %v3110_v17, %v3109_v61  ;;  %v3279_v17 = vld [vmem:[#allocation20 + $0x38] sm:$0xff] }
0x1a32   :  { %3236 = vadd.xlane.f32.xlu1 %v3235_v52  ;;  %vm8240_vm5 = vweird.f32 %v7406_v29  ;;  %v3184_v41 = vor.u32 1.1754944e-38, %v3183_v0  ;;  %v3161_v30 = vadd.f32 %v5221_v4, %v3160_v63  ;;  %v3169_v32 = vor.u32 1.1754944e-38, %v3168_v44  ;;  %3317 = vmatpush.msra.mxu2 %v3279_v17  ;;  %v3277_v52 = vld [vmem:[#allocation20 + $0x28] sm:$0xff]  ;;  %v3275_v18 = vld [vmem:[#allocation20 + $0x18] sm:$0xff]  ;;  %v3274_v63 = vld [vmem:[#allocation20 + $0x10] sm:$0xff] }
0x1a33   :  { %vm3179_vm3 = vmor %vm8240_vm5, %vm3178_vm10  ;;  %v3102_v1 = vadd.f32 %v3101_v38, %v7402_v37  ;;  %v3232_v39 = vsel %vm2542_vm8, %v3126_v55, 0.0  ;;  %v3201_v13 = vmul.f32 %v7359_v26, %v3200_v58  ;;  %5222 = vrcp.f32 %v3111_v12 }
0x1a34   :  { %v3180_v25 = vsel %vm3179_vm3, %v5219_v27, %v3176_v10  ;;  %3233 = vadd.xlane.f32.xlu0 %v3232_v39  ;;  %v3165_v29 = vsel %vm3164_vm4, %v5221_v4, %v3161_v30  ;;  %vm3167_vm14 = vcmp.eq.f32.partialorder %v3166_v28, 8.507059e+37  ;;  %v3228_v28 = vand.u32 2147483648, %v3111_v12 }
0x1a35   :  { %v3185_v46 = vsel %vm7451_vm13, %v3184_v41, %v3180_v25  ;;  %v3170_v6 = vsel %vm3167_vm14, %v3169_v32, %v3165_v29  ;;  %v3103_v0 = vrot.slane %v3102_v1, 1  ;;  %v3247_v26 = vsel %vm2542_vm8, %v3201_v13, 0.0  ;;  %v3272_v41 = vld [vmem:[#allocation20] sm:$0xff] }
0x1a36   :  { %v3186_v37 = vmul.f32 %v7363_v19, %v3185_v46  ;;  %v3171_v15 = vmul.f32 %v7367_v50, %v3170_v6  ;;  %v3226_v40 = vand.u32 2147483647, %v3111_v12  ;;  %vm3222_vm7 = vweird.f32 %v3111_v12  ;;  %v5340_v13 = vld [vmem:[#allocation2] sm:$0xff] }
0x1a37   :  { %v3104_v44 = vadd.f32 %v3103_v0, %v3102_v1  ;;  %v3229_v35 = vor.u32 1.1754944e-38, %v3228_v28  ;;  %vm8243_vm9 = vcmask 130048   ;;  %vm3379_vm5 = vcmask 33792  }
0x1a38   :  { %v3244_v27 = vsel %vm2542_vm8, %v3186_v37, 0.0  ;;  %v3241_v4 = vsel %vm2542_vm8, %v3171_v15, 0.0  ;;  %vm3227_vm10 = vcmp.eq.f32.partialorder %v3226_v40, 8.507059e+37  ;;  %vm8244_vm0 = vmmov %vm8243_vm9 }
0x1a39   :  { %3248 = vadd.xlane.f32.xlu2 %v3247_v26  ;;  %v5223_v61 = vpop.eup %5222  ;;  %5224 = vrcp.f32 %v3104_v44  ;;  %v3213_v34 = vand.u32 2147483648, %v3104_v44  ;;  %v3211_v42 = vand.u32 2147483647, %v3104_v44  ;;  %vm3207_vm12 = vweird.f32 %v3104_v44  ;;  %v5341_v26 = vld [vmem:[#allocation2 + $0x8] sm:$0xff] }
0x1a3a   :  { %3245 = vadd.xlane.f32.xlu1 %v3244_v27  ;;  %v3218_v38 = vmul.f32 %v5223_v61, %v3111_v12  ;;  %vm3223_vm6 = vweird.f32 %v5223_v61  ;;  %v3273_v12 = vld [vmem:[#allocation20 + $0x8] sm:$0xff] }
0x1a3b   :  { %vm3224_vm13 = vmor %vm3222_vm7, %vm3223_vm6  ;;  %v3214_v7 = vor.u32 1.1754944e-38, %v3213_v34  ;;  %vm3212_vm2 = vcmp.eq.f32.partialorder %v3211_v42, 8.507059e+37 }
0x1a3c   :  { %3242 = vadd.xlane.f32.xlu0 %v3241_v4  ;;  %v3219_v49 = vsub.f32 1.0, %v3218_v38 }
0x1a3e   :  { %v3220_v19 = vmul.f32 %v5223_v61, %v3219_v49 }
0x1a3f   :  { %v5225_v48 = vpop.eup %5224 }
0x1a40   :  { %v3221_v43 = vadd.f32 %v5223_v61, %v3220_v19  ;;  %v3203_v50 = vmul.f32 %v5225_v48, %v3104_v44  ;;  %vm3208_vm11 = vweird.f32 %v5225_v48 }
0x1a41   :  { %vm3209_vm1 = vmor %vm3207_vm12, %vm3208_vm11 }
0x1a42   :  { %v3225_v57 = vsel %vm3224_vm13, %v5223_v61, %v3221_v43  ;;  %v3204_v20 = vsub.f32 1.0, %v3203_v50  ;;  %v3335_v50 = vld [vmem:[#allocation21 + $0x8] sm:$0xff] }
0x1a43   :  { %v3230_v5 = vsel %vm3227_vm10, %v3229_v35, %v3225_v57  ;;  %v3334_v35 = vld [vmem:[#allocation21] sm:$0xff]  ;;  %3356 = vmatpush.msrb.mxu1 %v3335_v50 }
0x1a44   :  { %v3231_v36 = vmul.f32 %v7371_v53, %v3230_v5  ;;  %v3205_v16 = vmul.f32 %v5225_v48, %v3204_v20  ;;  %v3278_v53 = vld [vmem:[#allocation20 + $0x30] sm:$0xff] }
0x1a45   :  { %3318 = vmatpush.msra.mxu2 %v3278_v53  ;;  %3357 = vmatpush.msrb.mxu1 %v3334_v35 }
0x1a46   :  { %v3253_v33 = vsel %vm2542_vm8, %v3231_v36, 0.0  ;;  %v3206_v56 = vadd.f32 %v5225_v48, %v3205_v16 }
0x1a47   :  { %3254 = vadd.xlane.f32.xlu1 %v3253_v33  ;;  %3319 = vmatpush.msra.mxu2 %v3277_v52 }
0x1a48   :  { %v3210_v3 = vsel %vm3209_vm1, %v5225_v48, %v3206_v56 }
0x1a49   :  { %v3215_v2 = vsel %vm3212_vm2, %v3214_v7, %v3210_v3  ;;  %3320 = vmatpush.msra.mxu2 %v3276_v47 }
0x1a4a   :  { %v3216_v31 = vmul.f32 %v7377_v62, %v3215_v2 }
0x1a4b   :  { %3321 = vmatpush.msra.mxu2 %v3275_v18 }
0x1a4c   :  { %v3250_v8 = vsel %vm2542_vm8, %v3216_v31, 0.0  ;;  %vm8241_vm8 = vcmask 523264  }
0x1a4d   :  { %3251 = vadd.xlane.f32.xlu0 %v3250_v8  ;;  %3322 = vmatpush.msra.mxu2 %v3274_v63  ;;  %vm8242_vm15 = vmmov %vm8241_vm8 }
0x1a4f   :  { %3323 = vmatpush.msra.mxu2 %v3273_v12 }
0x1a51   :  { %3324 = vmatpush.msra.mxu2 %v3272_v41 }
0x1aa4   :  { %v3240_v55 = vpop.xlane.xlu2 %3239 }
0x1aa5   :  { %v3258_v58 = vmul.f32 %v3240_v55, %v7265_v22  ;;  %v3237_v10 = vpop.xlane.xlu1 %3236 }
0x1aa6   :  { %v3257_v62 = vmul.f32 %v3237_v10, %v7265_v22 }
0x1aa7   :  { %v7500_v30 = vmul.f32 %v3258_v58, %v6651_v54  ;;  %v3234_v1 = vpop.xlane.xlu0 %3233 }
0x1aa8   :  { %v7503_v32 = vmul.f32 %v3257_v62, %v6646_v51  ;;  %v3256_v39 = vmul.f32 %v3234_v1, %v7265_v22 }
0x1aa9   :  { %3292 = vst [vmem:[#allocation1 + $0x2] ss:$4 sm:$0xff] %v7500_v30 }
0x1aaa   :  { %3290 = vst [vmem:[#allocation1 + $0x1] ss:$4 sm:$0xff] %v7503_v32  ;;  %v7508_v25 = vmul.f32 %v5340_v13, %v3256_v39 }
0x1aac   :  { %v3249_v46 = vpop.xlane.xlu2 %3248  ;;  %3288 = vst [vmem:[#allocation1] ss:$4 sm:$0xff] %v7508_v25 }
0x1aad   :  { %v3261_v29 = vmul.f32 %v3249_v46, %v7265_v22  ;;  %v3246_v37 = vpop.xlane.xlu1 %3245 }
0x1aae   :  { %v3260_v6 = vmul.f32 %v3246_v37, %v7265_v22 }
0x1aaf   :  { %v7514_v0 = vmul.f32 %v3261_v29, %v6668_v9  ;;  %v3243_v44 = vpop.xlane.xlu0 %3242 }
0x1ab0   :  { %v7516_v15 = vmul.f32 %v5341_v26, %v3260_v6  ;;  %v3259_v27 = vmul.f32 %v3243_v44, %v7265_v22 }
0x1ab1   :  { %3298 = vst [vmem:[#allocation1 + $0x21] ss:$4 sm:$0xff] %v7514_v0 }
0x1ab2   :  { %3296 = vst [vmem:[#allocation1 + $0x20] ss:$4 sm:$0xff] %v7516_v15  ;;  %v7522_v61 = vmul.f32 %v3259_v27, %v6657_v59 }
0x1ab4   :  { %3294 = vst [vmem:[#allocation1 + $0x3] ss:$4 sm:$0xff] %v7522_v61 }
0x1aba   :  { %v3255_v38 = vpop.xlane.xlu1 %3254 }
0x1abb   :  { %v3263_v4 = vmul.f32 %v3255_v38, %v7265_v22  ;;  %v3303_v49 = vld.sshfl [vmem:[#allocation1] sm:$0xff pattern:$0x73625140] }
0x1abc   :  { %4892 = vmatmul.msk.f32.vlgmr.msra.gmra.mxu2 %vm8241_vm8, %v3303_v49 }
0x1abd   :  { %v7528_v28 = vmul.f32 %v3263_v4, %v6676_v21 }
0x1abf   :  { %3302 = vst [vmem:[#allocation1 + $0x23] ss:$4 sm:$0xff] %v7528_v28 }
0x1ac0   :  { %v3252_v19 = vpop.xlane.xlu0 %3251 }
0x1ac1   :  { %v3262_v40 = vmul.f32 %v3252_v19, %v7265_v22 }
0x1ac3   :  { %v7533_v48 = vmul.f32 %v3262_v40, %v6671_v11 }
0x1ac5   :  { %3300 = vst [vmem:[#allocation1 + $0x22] ss:$4 sm:$0xff] %v7533_v48 }
0x1acc   :  { %v3304_v43 = vld.sshfl [vmem:[#allocation1 + $0x20] sm:$0xff pattern:$0x73625140] }
0x1acd   :  { %4893 = vmatmul.msk.f32.gmra.mxu2 %vm8242_vm15, %v3304_v43 }
0x1b3f   :  { %v3326_v57 = vpop.f32.mrf.mxu2 }
0x1b40   :  { %5226 = vtanh.f32 %v3326_v57 }
0x1b46   :  { %v5227_v20 = vpop.eup %5226 }
0x1b47   :  { %4894 = vmatmul.msk.f32.vlgmr.msrb.gmra.mxu1 %vm8243_vm9, %v5227_v20 }
0x1b50   :  { %v3329_v5 = vpop.f32.mrf.mxu2 }
0x1b51   :  { %5228 = vtanh.f32 %v3329_v5 }
0x1b57   :  { %v5229_v22 = vpop.eup %5228 }
0x1b58   :  { %4895 = vmatmul.msk.f32.gmra.mxu1 %vm8244_vm0, %v5229_v22 }
0x1bc4   :  { %v3359_v34 = vpop.f32.mrf.mxu1 }
0x1bc5   :  { %v3367_v36 = vrot.slane %v3359_v34, 2  ;;  %v3368_v16 = vrot.slane %v3359_v34, 4  ;;  %v3369_v42 = vrot.slane %v3359_v34, 6  ;;  %v3380_v33 = vsel %vm3379_vm5, %v3359_v34, -inf }
0x1bc6   :  { %v3381_v56 = vrot.slane %v3380_v33, 4 }
0x1bc7   :  { %v3387_v7 = vsel %vm3379_vm5, %v3367_v36, -inf  ;;  %v3394_v3 = vsel %vm3379_vm5, %v3368_v16, -inf  ;;  %v3401_v2 = vsel %vm3379_vm5, %v3369_v42, -inf }
0x1bc8   :  { %v3382_v31 = vmax.f32 %v3380_v33, %v3381_v56  ;;  %v3388_v8 = vrot.slane %v3387_v7, 4  ;;  %v3395_v17 = vrot.slane %v3394_v3, 4  ;;  %v3402_v53 = vrot.slane %v3401_v2, 4 }
0x1bca   :  { %v3383_v52 = vrot.slane %v3382_v31, 2  ;;  %v3389_v47 = vmax.f32 %v3387_v7, %v3388_v8  ;;  %v3396_v18 = vmax.f32 %v3394_v3, %v3395_v17  ;;  %v3403_v63 = vmax.f32 %v3401_v2, %v3402_v53 }
0x1bcc   :  { %v3384_v55 = vmax.f32 %v3382_v31, %v3383_v52  ;;  %v3390_v58 = vrot.slane %v3389_v47, 2  ;;  %v3397_v10 = vrot.slane %v3396_v18, 2  ;;  %v3404_v62 = vrot.slane %v3403_v63, 2 }
0x1bce   :  { %v3385_v12 = vrot.slane %v3384_v55, 1  ;;  %v3391_v41 = vmax.f32 %v3389_v47, %v3390_v58  ;;  %v3398_v1 = vmax.f32 %v3396_v18, %v3397_v10  ;;  %v3405_v39 = vmax.f32 %v3403_v63, %v3404_v62 }
0x1bd0   :  { %v3386_v13 = vmax.f32 %v3384_v55, %v3385_v12  ;;  %v3399_v46 = vrot.slane %v3398_v1, 1  ;;  %v3392_v29 = vrot.slane %v3391_v41, 1  ;;  %v3406_v37 = vrot.slane %v3405_v39, 1 }
0x1bd2   :  { %v3436_v6 = vsub.f32 %v3359_v34, %v3386_v13  ;;  %v3400_v26 = vmax.f32 %v3398_v1, %v3399_v46  ;;  %v3393_v44 = vmax.f32 %v3391_v41, %v3392_v29  ;;  %v3407_v27 = vmax.f32 %v3405_v39, %v3406_v37 }
0x1bd4   :  { %v3444_v38 = vmul.f32 1.442695, %v3436_v6  ;;  %v3438_v4 = vsub.f32 %v3368_v16, %v3400_v26  ;;  %v3437_v49 = vsub.f32 %v3367_v36, %v3393_v44  ;;  %v3439_v40 = vsub.f32 %v3369_v42, %v3407_v27 }
0x1bd5   :  { %v7543_v19 = vpop.f32.mrf.mxu1 }
0x1bd6   :  { %v3370_v43 = vrot.slane %v7543_v19, 2  ;;  %v3371_v50 = vrot.slane %v7543_v19, 4  ;;  %v3372_v35 = vrot.slane %v7543_v19, 6  ;;  %v3408_v57 = vsel %vm3379_vm5, %v7543_v19, -inf }
0x1bd7   :  { %v3409_v20 = vrot.slane %v3408_v57, 4  ;;  %5230 = vpow2.f32 %v3444_v38  ;;  %v3448_v5 = vmul.f32 1.442695, %v3438_v4  ;;  %v3446_v16 = vmul.f32 1.442695, %v3437_v49 }
0x1bd8   :  { %v3415_v22 = vsel %vm3379_vm5, %v3370_v43, -inf  ;;  %v3422_v34 = vsel %vm3379_vm5, %v3371_v50, -inf  ;;  %v3429_v36 = vsel %vm3379_vm5, %v3372_v35, -inf  ;;  %v3450_v3 = vmul.f32 1.442695, %v3439_v40 }
0x1bd9   :  { %v3410_v42 = vmax.f32 %v3408_v57, %v3409_v20  ;;  %v3416_v33 = vrot.slane %v3415_v22, 4  ;;  %v3423_v56 = vrot.slane %v3422_v34, 4  ;;  %v3430_v7 = vrot.slane %v3429_v36, 4 }
0x1bda   :  { %5232 = vpow2.f32 %v3448_v5 }
0x1bdb   :  { %v3411_v2 = vrot.slane %v3410_v42, 2  ;;  %v3417_v31 = vmax.f32 %v3415_v22, %v3416_v33  ;;  %v3424_v8 = vmax.f32 %v3422_v34, %v3423_v56  ;;  %v3431_v17 = vmax.f32 %v3429_v36, %v3430_v7 }
0x1bdc   :  { %5234 = vpow2.f32 %v3446_v16 }
0x1bdd   :  { %v7553_v53 = vpop.eup %5230  ;;  %v3412_v52 = vmax.f32 %v3410_v42, %v3411_v2  ;;  %v3418_v47 = vrot.slane %v3417_v31, 2  ;;  %v3425_v18 = vrot.slane %v3424_v8, 2  ;;  %v3432_v63 = vrot.slane %v3431_v17, 2 }
0x1bde   :  { %v3460_v55 = vsel %vm3379_vm5, %v7553_v53, 0.0  ;;  %5236 = vpow2.f32 %v3450_v3 }
0x1bdf   :  { %v3413_v58 = vrot.slane %v3412_v52, 1  ;;  %v3419_v10 = vmax.f32 %v3417_v31, %v3418_v47  ;;  %v3426_v62 = vmax.f32 %v3424_v8, %v3425_v18  ;;  %v3433_v12 = vmax.f32 %v3431_v17, %v3432_v63 }
0x1be0   :  { %v7557_v41 = vpop.eup %5232  ;;  %v3461_v1 = vrot.slane %v3460_v55, 4 }
0x1be1   :  { %v3414_v39 = vmax.f32 %v3412_v52, %v3413_v58  ;;  %v3474_v13 = vsel %vm3379_vm5, %v7557_v41, 0.0  ;;  %v3420_v46 = vrot.slane %v3419_v10, 1  ;;  %v3427_v29 = vrot.slane %v3426_v62, 1 }
0x1be2   :  { %v7561_v37 = vpop.eup %5234  ;;  %v3462_v6 = vadd.f32 %v3461_v1, %v3460_v55  ;;  %v3475_v26 = vrot.slane %v3474_v13, 4  ;;  %v3434_v44 = vrot.slane %v3433_v12, 1 }
0x1be3   :  { %v3440_v27 = vsub.f32 %v7543_v19, %v3414_v39  ;;  %v3467_v38 = vsel %vm3379_vm5, %v7561_v37, 0.0  ;;  %v3421_v4 = vmax.f32 %v3419_v10, %v3420_v46  ;;  %v3428_v49 = vmax.f32 %v3426_v62, %v3427_v29 }
0x1be4   :  { %v7566_v40 = vpop.eup %5236  ;;  %v3463_v57 = vrot.slane %v3462_v6, 2  ;;  %v3476_v20 = vadd.f32 %v3475_v26, %v3474_v13  ;;  %v3468_v5 = vrot.slane %v3467_v38, 4  ;;  %v3435_v22 = vmax.f32 %v3433_v12, %v3434_v44 }
0x1be5   :  { %v3452_v34 = vmul.f32 1.442695, %v3440_v27  ;;  %v3481_v36 = vsel %vm3379_vm5, %v7566_v40, 0.0  ;;  %v3441_v16 = vsub.f32 %v3370_v43, %v3421_v4  ;;  %v3442_v42 = vsub.f32 %v3371_v50, %v3428_v49 }
0x1be6   :  { %v3464_v33 = vadd.f32 %v3463_v57, %v3462_v6  ;;  %v3477_v56 = vrot.slane %v3476_v20, 2  ;;  %v3469_v19 = vadd.f32 %v3468_v5, %v3467_v38  ;;  %v3482_v7 = vrot.slane %v3481_v36, 4 }
0x1be7   :  { %5238 = vpow2.f32 %v3452_v34  ;;  %v3454_v3 = vmul.f32 1.442695, %v3441_v16  ;;  %v3456_v2 = vmul.f32 1.442695, %v3442_v42  ;;  %v3443_v31 = vsub.f32 %v3372_v35, %v3435_v22 }
0x1be8   :  { %v3465_v8 = vrot.slane %v3464_v33, 1  ;;  %v3478_v17 = vadd.f32 %v3477_v56, %v3476_v20  ;;  %v3470_v52 = vrot.slane %v3469_v19, 2  ;;  %v3483_v47 = vadd.f32 %v3482_v7, %v3481_v36 }
0x1be9   :  { %5240 = vpow2.f32 %v3454_v3  ;;  %v3458_v18 = vmul.f32 1.442695, %v3443_v31 }
0x1bea   :  { %v3466_v63 = vadd.f32 %v3465_v8, %v3464_v33  ;;  %v3479_v55 = vrot.slane %v3478_v17, 1  ;;  %v3471_v58 = vadd.f32 %v3470_v52, %v3469_v19  ;;  %v3484_v10 = vrot.slane %v3483_v47, 2 }
0x1beb   :  { %5242 = vpow2.f32 %v3456_v2 }
0x1bec   :  { %5244 = vrcp.f32 %v3466_v63  ;;  %v7572_v50 = vadd.f32 %v3479_v55, %v3478_v17  ;;  %v3472_v62 = vrot.slane %v3471_v58, 1  ;;  %v3485_v12 = vadd.f32 %v3484_v10, %v3483_v47 }
0x1bed   :  { %v7570_v43 = vpop.eup %5238  ;;  %5246 = vpow2.f32 %v3458_v18  ;;  %v3525_v39 = vand.u32 2147483647, %v3466_v63  ;;  %v3527_v44 = vand.u32 2147483648, %v3466_v63  ;;  %vm3521_vm3 = vweird.f32 %v3466_v63 }
0x1bee   :  { %v3488_v35 = vsel %vm3379_vm5, %v7570_v43, 0.0  ;;  %5248 = vrcp.f32 %v7572_v50  ;;  %v7579_v13 = vadd.f32 %v3472_v62, %v3471_v58  ;;  %v3486_v46 = vrot.slane %v3485_v12, 1 }
0x1bef   :  { %v7576_v1 = vpop.eup %5240  ;;  %v3489_v29 = vrot.slane %v3488_v35, 4  ;;  %v3555_v4 = vand.u32 2147483647, %v7572_v50  ;;  %v3557_v49 = vand.u32 2147483648, %v7572_v50  ;;  %vm7592_vm4 = vcmp.eq.f32.partialorder %v3525_v39, 8.507059e+37 }
0x1bf0   :  { %v3495_v6 = vsel %vm3379_vm5, %v7576_v1, 0.0  ;;  %5250 = vrcp.f32 %v7579_v13  ;;  %v7588_v20 = vadd.f32 %v3486_v46, %v3485_v12  ;;  %v3542_v36 = vand.u32 2147483648, %v7579_v13 }
0x1bf1   :  { %v7583_v26 = vpop.eup %5242  ;;  %v3496_v27 = vrot.slane %v3495_v6, 4  ;;  %v3490_v5 = vadd.f32 %v3489_v29, %v3488_v35  ;;  %v3528_v19 = vor.u32 1.1754944e-38, %v3527_v44  ;;  %vm3551_vm14 = vweird.f32 %v7572_v50 }
0x1bf2   :  { %v5245_v38 = vpop.eup %5244  ;;  %v3502_v42 = vsel %vm3379_vm5, %v7583_v26, 0.0  ;;  %5252 = vrcp.f32 %v7588_v20  ;;  %vm7602_vm6 = vcmp.eq.f32.partialorder %v3555_v4, 8.507059e+37  ;;  %v3558_v2 = vor.u32 1.1754944e-38, %v3557_v49 }
0x1bf3   :  { %v3517_v57 = vmul.f32 %v5245_v38, %v3466_v63  ;;  %v7590_v22 = vpop.eup %5246  ;;  %v3497_v16 = vadd.f32 %v3496_v27, %v3495_v6  ;;  %v3540_v31 = vand.u32 2147483647, %v7579_v13  ;;  %v3491_v8 = vrot.slane %v3490_v5, 2 }
0x1bf4   :  { %v5249_v33 = vpop.eup %5248  ;;  %vm3522_vm7 = vweird.f32 %v5245_v38  ;;  %vm3536_vm13 = vweird.f32 %v7579_v13  ;;  %v3503_v47 = vrot.slane %v3502_v42, 4  ;;  %v3543_v58 = vor.u32 1.1754944e-38, %v3542_v36 }
0x1bf5   :  { %v3518_v56 = vsub.f32 1.0, %v3517_v57  ;;  %v3547_v7 = vmul.f32 %v5249_v33, %v7572_v50  ;;  %v3498_v52 = vrot.slane %v3497_v16, 2  ;;  %v3570_v10 = vand.u32 2147483647, %v7588_v20  ;;  %vm3523_vm10 = vmor %vm3521_vm3, %vm3522_vm7 }
0x1bf6   :  { %v5251_v18 = vpop.eup %5250  ;;  %v3492_v62 = vadd.f32 %v3491_v8, %v3490_v5  ;;  %v3509_v46 = vsel %vm3379_vm5, %v7590_v22, 0.0  ;;  %vm3552_vm11 = vweird.f32 %v5249_v33  ;;  %v3504_v57 = vadd.f32 %v3503_v47, %v3502_v42 }
0x1bf7   :  { %v3519_v17 = vmul.f32 %v5245_v38, %v3518_v56  ;;  %v3548_v55 = vsub.f32 1.0, %v3547_v7  ;;  %v3532_v35 = vmul.f32 %v5251_v18, %v7579_v13  ;;  %v3499_v39 = vadd.f32 %v3498_v52, %v3497_v16  ;;  %vm3553_vm1 = vmor %vm3551_vm14, %vm3552_vm11 }
0x1bf8   :  { %vm3537_vm12 = vweird.f32 %v5251_v18  ;;  %v3493_v6 = vrot.slane %v3492_v62, 1  ;;  %v5253_v44 = vpop.eup %5252  ;;  %v3510_v56 = vrot.slane %v3509_v46, 4  ;;  %v3572_v34 = vand.u32 2147483648, %v7588_v20 }
0x1bf9   :  { %v3520_v12 = vadd.f32 %v5245_v38, %v3519_v17  ;;  %v3549_v29 = vmul.f32 %v5249_v33, %v3548_v55  ;;  %v3533_v4 = vsub.f32 1.0, %v3532_v35  ;;  %v3500_v49 = vrot.slane %v3499_v39, 1  ;;  %vm3538_vm8 = vmor %vm3536_vm13, %vm3537_vm12 }
0x1bfa   :  { %v3562_v16 = vmul.f32 %v5253_v44, %v7588_v20  ;;  %v7621_v8 = vadd.f32 %v3493_v6, %v3492_v62  ;;  %vm3567_vm2 = vweird.f32 %v5253_v44  ;;  %v3505_v47 = vrot.slane %v3504_v57, 2 }
0x1bfb   :  { %v3524_v27 = vsel %vm3523_vm10, %v5245_v38, %v3520_v12  ;;  %v3550_v36 = vadd.f32 %v5249_v33, %v3549_v29  ;;  %v3534_v63 = vmul.f32 %v5251_v18, %v3533_v4  ;;  %v7623_v38 = vadd.f32 %v3500_v49, %v3499_v39 }
0x1bfc   :  { %v3529_v5 = vsel %vm7592_vm4, %v3528_v19, %v3524_v27  ;;  %v3563_v42 = vsub.f32 1.0, %v3562_v16  ;;  %5254 = vrcp.f32 %v7621_v8  ;;  %v3511_v55 = vadd.f32 %v3510_v56, %v3509_v46 }
0x1bfd   :  { %v7617_v7 = vmul.f32 %v7553_v53, %v3529_v5  ;;  %v3554_v17 = vsel %vm3553_vm1, %v5249_v33, %v3550_v36  ;;  %v3535_v52 = vadd.f32 %v5251_v18, %v3534_v63  ;;  %vm3541_vm15 = vcmp.eq.f32.partialorder %v3540_v31, 8.507059e+37 }
0x1bfe   :  { %v3559_v53 = vsel %vm7602_vm6, %v3558_v2, %v3554_v17  ;;  %v3564_v33 = vmul.f32 %v5253_v44, %v3563_v42  ;;  %5256 = vrcp.f32 %v7623_v38  ;;  %vm3566_vm9 = vweird.f32 %v7588_v20 }
0x1bff   :  { %v3636_v19 = vsel %vm3379_vm5, %v7617_v7, 0.0  ;;  %v7632_v50 = vmul.f32 %v7557_v41, %v3559_v53  ;;  %v3539_v62 = vsel %vm3538_vm8, %v5251_v18, %v3535_v52  ;;  %vm3568_vm0 = vmor %vm3566_vm9, %vm3567_vm2  ;;  %v3573_v13 = vor.u32 1.1754944e-38, %v3572_v34 }
0x1c00   :  { %3637 = vadd.xlane.f32.xlu2 %v3636_v19  ;;  %v3544_v2 = vsel %vm3541_vm15, %v3543_v58, %v3539_v62  ;;  %v3565_v12 = vadd.f32 %v5253_v44, %v3564_v33  ;;  %vm3571_vm3 = vcmp.eq.f32.partialorder %v3570_v10, 8.507059e+37  ;;  %v3506_v18 = vadd.f32 %v3505_v47, %v3504_v57 }
0x1c01   :  { %v3642_v3 = vsel %vm3379_vm5, %v7632_v50, 0.0  ;;  %v7642_v41 = vmul.f32 %v7561_v37, %v3544_v2  ;;  %v3512_v31 = vrot.slane %v3511_v55, 2  ;;  %v3587_v49 = vand.u32 2147483648, %v7621_v8 }
0x1c02   :  { %3643 = vadd.xlane.f32.xlu1 %v3642_v3  ;;  %v3569_v35 = vsel %vm3568_vm0, %v5253_v44, %v3565_v12  ;;  %v5255_v39 = vpop.eup %5254  ;;  %v3507_v37 = vrot.slane %v3506_v18, 1  ;;  %vm3581_vm14 = vweird.f32 %v7621_v8  ;;  %v3600_v56 = vand.u32 2147483647, %v7623_v38 }
0x1c03   :  { %v3639_v46 = vsel %vm3379_vm5, %v7642_v41, 0.0  ;;  %v3574_v29 = vsel %vm3571_vm3, %v3573_v13, %v3569_v35  ;;  %v3577_v20 = vmul.f32 %v5255_v39, %v7621_v8  ;;  %v3513_v27 = vadd.f32 %v3512_v31, %v3511_v55 }
0x1c04   :  { %3640 = vadd.xlane.f32.xlu0 %v3639_v46  ;;  %v7648_v58 = vmul.f32 %v7566_v40, %v3574_v29  ;;  %v5257_v6 = vpop.eup %5256  ;;  %v3508_v57 = vadd.f32 %v3507_v37, %v3506_v18  ;;  %vm3582_vm4 = vweird.f32 %v5255_v39  ;;  %v3585_v40 = vand.u32 2147483647, %v7621_v8 }
0x1c05   :  { %v3578_v10 = vsub.f32 1.0, %v3577_v20  ;;  %v3592_v4 = vmul.f32 %v5257_v6, %v7623_v38  ;;  %v3514_v5 = vrot.slane %v3513_v27, 1  ;;  %v3602_v63 = vand.u32 2147483648, %v7623_v38  ;;  %vm3583_vm7 = vmor %vm3581_vm14, %vm3582_vm4 }
0x1c06   :  { %v3645_v44 = vsel %vm3379_vm5, %v7648_v58, 0.0  ;;  %5258 = vrcp.f32 %v3508_v57  ;;  %vm3597_vm6 = vweird.f32 %v5257_v6  ;;  %v3588_v19 = vor.u32 1.1754944e-38, %v3587_v49 }
0x1c07   :  { %v3579_v36 = vmul.f32 %v5255_v39, %v3578_v10  ;;  %v3593_v16 = vsub.f32 1.0, %v3592_v4  ;;  %v3515_v34 = vadd.f32 %v3514_v5, %v3513_v27  ;;  %vm3596_vm13 = vweird.f32 %v7623_v38 }
0x1c08   :  { %3646 = vadd.xlane.f32.xlu2 %v3645_v44  ;;  %vm3586_vm10 = vcmp.eq.f32.partialorder %v3585_v40, 8.507059e+37  ;;  %vm3598_vm11 = vmor %vm3596_vm13, %vm3597_vm6  ;;  %v3603_v8 = vor.u32 1.1754944e-38, %v3602_v63  ;;  %vm3601_vm12 = vcmp.eq.f32.partialorder %v3600_v56, 8.507059e+37  ;;  %v3615_v46 = vand.u32 2147483647, %v3508_v57 }
0x1c09   :  { %v3580_v17 = vadd.f32 %v5255_v39, %v3579_v36  ;;  %v3594_v42 = vmul.f32 %v5257_v6, %v3593_v16  ;;  %5260 = vrcp.f32 %v3515_v34  ;;  %vm3611_vm2 = vweird.f32 %v3508_v57 }
0x1c0a   :  { %v3632_v37 = vand.u32 2147483648, %v3515_v34  ;;  %v3630_v27 = vand.u32 2147483647, %v3515_v34  ;;  %vm3616_vm9 = vcmp.eq.f32.partialorder %v3615_v46, 8.507059e+37  ;;  %vm3626_vm0 = vweird.f32 %v3515_v34 }
0x1c0b   :  { %v3584_v53 = vsel %vm3583_vm7, %v5255_v39, %v3580_v17  ;;  %v3595_v52 = vadd.f32 %v5257_v6, %v3594_v42  ;;  %v5975_v63 = vmov 5.0   ;;  %v3713_v42 = vld [vmem:[#allocation23 + $0x78] sm:$0xff]  ;;  %vm8249_vm6 = vcmask 517120  }
0x1c0c   :  { %v3589_v33 = vsel %vm3586_vm10, %v3588_v19, %v3584_v53  ;;  %v5259_v62 = vpop.eup %5258  ;;  %v3633_v5 = vor.u32 1.1754944e-38, %v3632_v37  ;;  %vm3631_vm4 = vcmp.eq.f32.partialorder %v3630_v27, 8.507059e+37  ;;  %5262 = vrcp.f32 %v5975_v63  ;;  %3725 = vmatpush.msrb.mxu3 %v3713_v42  ;;  %v3711_v19 = vld [vmem:[#allocation23 + $0x68] sm:$0xff]  ;;  %v3758_v37 = vld [vmem:[#allocation24] sm:$0xff]  ;;  %vm8250_vm7 = vmmov %vm8249_vm6 }
0x1c0d   :  { %v7661_v47 = vmul.f32 %v7570_v43, %v3589_v33  ;;  %v3599_v55 = vsel %vm3598_vm11, %v5257_v6, %v3595_v52  ;;  %v3607_v38 = vmul.f32 %v5259_v62, %v3508_v57  ;;  %v3617_v43 = vand.u32 2147483648, %v3508_v57  ;;  %vm8251_vm13 = vmmov %vm8249_vm6 }
0x1c0e   :  { %v3604_v3 = vsel %vm3601_vm12, %v3603_v8, %v3599_v55  ;;  %vm3612_vm1 = vweird.f32 %v5259_v62  ;;  %vm8252_vm10 = vmmov %vm8249_vm6 }
0x1c0f   :  { %v3648_v2 = vsel %vm3379_vm5, %v7661_v47, 0.0  ;;  %v7666_v12 = vmul.f32 %v7576_v1, %v3604_v3  ;;  %v5261_v13 = vpop.eup %5260  ;;  %v3608_v18 = vsub.f32 1.0, %v3607_v38  ;;  %vm3613_vm8 = vmor %vm3611_vm2, %vm3612_vm1  ;;  %v3618_v1 = vor.u32 1.1754944e-38, %v3617_v43  ;;  %v3708_v3 = vld [vmem:[#allocation23 + $0x50] sm:$0xff] }
0x1c10   :  { %3649 = vadd.xlane.f32.xlu0 %v3648_v2  ;;  %v3622_v31 = vmul.f32 %v5261_v13, %v3515_v34  ;;  %vm3627_vm15 = vweird.f32 %v5261_v13  ;;  %v3712_v34 = vld [vmem:[#allocation23 + $0x70] sm:$0xff]  ;;  %vm8253_vm11 = vmmov %vm8249_vm6 }
0x1c11   :  { %v3651_v35 = vsel %vm3379_vm5, %v7666_v12, 0.0  ;;  %v3609_v39 = vmul.f32 %v5259_v62, %v3608_v18  ;;  %vm3628_vm3 = vmor %vm3626_vm0, %vm3627_vm15  ;;  %3726 = vmatpush.msrb.mxu3 %v3712_v34  ;;  %v3760_v18 = vld [vmem:[#allocation24 + $0x10] sm:$0xff]  ;;  %vm8258_vm15 = vcmask 261120  }
0x1c12   :  { %3652 = vadd.xlane.f32.xlu1 %v3651_v35  ;;  %v3623_v29 = vsub.f32 1.0, %v3622_v31  ;;  %v3761_v35 = vld [vmem:[#allocation24 + $0x18] sm:$0xff]  ;;  %v3706_v31 = vld [vmem:[#allocation23 + $0x40] sm:$0xff]  ;;  %vm8254_vm12 = vmmov %vm8249_vm6 }
0x1c13   :  { %v3610_v20 = vadd.f32 %v5259_v62, %v3609_v39  ;;  %3727 = vmatpush.msrb.mxu3 %v3711_v19  ;;  %3777 = vmatpush.msra.mxu1 %v3761_v35  ;;  %v3759_v39 = vld [vmem:[#allocation24 + $0x8] sm:$0xff]  ;;  %vm8255_vm1 = vmmov %vm8249_vm6  ;;  %v4541_v35 = vld [vmem:[#allocation29 + $0x30] sm:$0xff] }
0x1c14   :  { %v3624_v6 = vmul.f32 %v5261_v13, %v3623_v29  ;;  %vm8256_vm2 = vmmov %vm8255_vm1 }
0x1c15   :  { %v3614_v44 = vsel %vm3613_vm8, %v5259_v62, %v3610_v20  ;;  %v3709_v62 = vld [vmem:[#allocation23 + $0x58] sm:$0xff]  ;;  %3778 = vmatpush.msra.mxu1 %v3760_v18  ;;  %vm8257_vm8 = vcmask 523264   ;;  %vm8260_vm0 = vmmov %vm8258_vm15 }
0x1c16   :  { %v3619_v10 = vsel %vm3616_vm9, %v3618_v1, %v3614_v44  ;;  %v3625_v4 = vadd.f32 %v5261_v13, %v3624_v6  ;;  %v4542_v1 = vld [vmem:[#allocation29 + $0x38] sm:$0xff]  ;;  %v4540_v18 = vld [vmem:[#allocation29 + $0x28] sm:$0xff]  ;;  %vm8259_vm9 = vmmov %vm8257_vm8 }
0x1c17   :  { %v7671_v49 = vmul.f32 %v7583_v26, %v3619_v10  ;;  %v5263_v26 = vpop.eup %5262  ;;  %3779 = vmatpush.msra.mxu1 %v3759_v39  ;;  %v4536_v39 = vld [vmem:[#allocation29 + $0x8] sm:$0xff] }
0x1c18   :  { %v3629_v36 = vsel %vm3628_vm3, %v5261_v13, %v3625_v4  ;;  %v3661_v17 = vmul.f32 5.0, %v5263_v26  ;;  %vm3665_vm14 = vweird.f32 %v5263_v26  ;;  %v3707_v13 = vld [vmem:[#allocation23 + $0x48] sm:$0xff] }
0x1c19   :  { %v3654_v57 = vsel %vm3379_vm5, %v7671_v49, 0.0  ;;  %v3634_v40 = vsel %vm3631_vm4, %v3633_v5, %v3629_v36  ;;  %3780 = vmatpush.msra.mxu1 %v3758_v37 }
0x1c1a   :  { %3655 = vadd.xlane.f32.xlu2 %v3654_v57  ;;  %v7676_v16 = vmul.f32 %v7590_v22, %v3634_v40  ;;  %v3662_v53 = vsub.f32 1.0, %v3661_v17  ;;  %v3710_v22 = vld [vmem:[#allocation23 + $0x60] sm:$0xff] }
0x1c1b   :  { %3728 = vmatpush.msrb.mxu3 %v3710_v22  ;;  %4582 = vmatpush.msrb.mxu1 %v4542_v1  ;;  %v4634_v1 = vld [vmem:[#allocation32 + $0x58] sm:$0xff] }
0x1c1c   :  { %v3657_v56 = vsel %vm3379_vm5, %v7676_v16, 0.0  ;;  %v3663_v52 = vmul.f32 %v5263_v26, %v3662_v53 }
0x1c1d   :  { %3658 = vadd.xlane.f32.xlu0 %v3657_v56  ;;  %3729 = vmatpush.msrb.mxu3 %v3709_v62 }
0x1c1e   :  { %v3664_v8 = vadd.f32 %v5263_v26, %v3663_v52  ;;  %4583 = vmatpush.msrb.mxu1 %v4541_v35 }
0x1c1f   :  { %3730 = vmatpush.msrb.mxu3 %v3708_v3 }
0x1c20   :  { %v7680_v2 = vsel %vm3665_vm14, %v5263_v26, %v3664_v8  ;;  %4584 = vmatpush.msrb.mxu1 %v4540_v18 }
0x1c21   :  { %3731 = vmatpush.msrb.mxu3 %v3707_v13 }
0x1c23   :  { %3732 = vmatpush.msrb.mxu3 %v3706_v31  ;;  %v4537_v31 = vld [vmem:[#allocation29 + $0x10] sm:$0xff] }
0x1c73   :  { %v3638_v33 = vpop.xlane.xlu2 %3637 }
0x1c74   :  { %v3667_v43 = vmul.f32 %v7680_v2, %v3638_v33 }
0x1c75   :  { %v3644_v46 = vpop.xlane.xlu1 %3643 }
0x1c76   :  { %v3675_v6 = vmul.f32 %v3667_v43, %v7508_v25  ;;  %v3669_v27 = vmul.f32 %v7680_v2, %v3644_v46  ;;  %v4539_v43 = vld [vmem:[#allocation29 + $0x20] sm:$0xff] }
0x1c77   :  { %v3641_v55 = vpop.xlane.xlu0 %3640  ;;  %4585 = vmatpush.msrb.mxu1 %v4539_v43  ;;  %v4535_v46 = vld [vmem:[#allocation29] sm:$0xff] }
0x1c78   :  { %v3668_v38 = vmul.f32 %v7680_v2, %v3641_v55  ;;  %v3683_v5 = vsel %vm8250_vm7, %v3675_v6, 0.0  ;;  %v3677_v36 = vmul.f32 %v3669_v27, %v7500_v30  ;;  %v4633_v6 = vld [vmem:[#allocation32 + $0x50] sm:$0xff]  ;;  %v4632_v27 = vld [vmem:[#allocation32 + $0x48] sm:$0xff] }
0x1c7a   :  { %v3676_v20 = vmul.f32 %v3668_v38, %v7503_v32  ;;  %v3686_v25 = vsel %vm8251_vm13, %v3677_v36, 0.0 }
0x1c7b   :  { %v3647_v29 = vpop.xlane.xlu2 %3646 }
0x1c7c   :  { %v3670_v44 = vmul.f32 %v7680_v2, %v3647_v29  ;;  %v3684_v10 = vsel %vm8249_vm6, %v3676_v20, 0.0 }
0x1c7d   :  { %v3685_v40 = vadd.f32 %v3684_v10, %v3683_v5 }
0x1c7e   :  { %v3678_v32 = vmul.f32 %v3670_v44, %v7522_v61  ;;  %v4631_v44 = vld [vmem:[#allocation32 + $0x40] sm:$0xff] }
0x1c7f   :  { %v3687_v17 = vadd.f32 %v3686_v25, %v3685_v40 }
0x1c80   :  { %v3688_v63 = vsel %vm8252_vm10, %v3678_v32, 0.0 }
0x1c81   :  { %v3689_v34 = vadd.f32 %v3688_v63, %v3687_v17 }
0x1c83   :  { %v3650_v4 = vpop.xlane.xlu0 %3649 }
0x1c84   :  { %v3671_v57 = vmul.f32 %v7680_v2, %v3650_v4 }
0x1c85   :  { %v3653_v56 = vpop.xlane.xlu1 %3652 }
0x1c86   :  { %v3679_v26 = vmul.f32 %v3671_v57, %v7516_v15  ;;  %v3672_v42 = vmul.f32 %v7680_v2, %v3653_v56 }
0x1c88   :  { %v3690_v19 = vsel %vm8253_vm11, %v3679_v26, 0.0  ;;  %v3680_v30 = vmul.f32 %v3672_v42, %v7514_v0 }
0x1c89   :  { %v3691_v53 = vadd.f32 %v3690_v19, %v3689_v34 }
0x1c8a   :  { %v3692_v33 = vsel %vm8254_vm12, %v3680_v30, 0.0 }
0x1c8b   :  { %v3693_v55 = vadd.f32 %v3692_v33, %v3691_v53 }
0x1c8d   :  { %v3656_v61 = vpop.xlane.xlu2 %3655 }
0x1c8e   :  { %v3673_v52 = vmul.f32 %v7680_v2, %v3656_v61 }
0x1c90   :  { %v3681_v8 = vmul.f32 %v3673_v52, %v7533_v48  ;;  %v3659_v22 = vpop.xlane.xlu0 %3658  ;;  %v4538_v48 = vld [vmem:[#allocation29 + $0x18] sm:$0xff] }
0x1c91   :  { %v3674_v15 = vmul.f32 %v7680_v2, %v3659_v22  ;;  %4586 = vmatpush.msrb.mxu1 %v4538_v48 }
0x1c92   :  { %v3694_v62 = vsel %vm8255_vm1, %v3681_v8, 0.0 }
0x1c93   :  { %v3695_v3 = vadd.f32 %v3694_v62, %v3693_v55  ;;  %v3682_v38 = vmul.f32 %v3674_v15, %v7528_v28  ;;  %4587 = vmatpush.msrb.mxu1 %v4537_v31  ;;  %v3754_v28 = vpop.f32.mrf.mxu0 }
0x1c95   :  { %v3696_v13 = vsel %vm8256_vm2, %v3682_v38, 0.0  ;;  %4588 = vmatpush.msrb.mxu1 %v4536_v39 }
0x1c96   :  { %v3697_v0 = vadd.f32 %v3696_v13, %v3695_v3 }
0x1c97   :  { %4589 = vmatpush.msrb.mxu1 %v4535_v46 }
0x1c98   :  { %4896 = vmatmul.msk.f32.vlgmr.msrb.gmra.mxu3 %vm8257_vm8, %v3697_v0 }
0x1d1b   :  { %v3734_v29 = vpop.f32.mrf.mxu3 }
0x1d1c   :  { %v3755_v20 = vadd.f32 %v3754_v28, %v3734_v29 }
0x1d1e   :  { %v3757_v37 = vmax.f32 %v3755_v20, 0.0 }
0x1d20   :  { %4898 = vmatmul.msk.f32.vlgmr.msra.gmra.mxu1 %vm8258_vm15, %v3757_v37 }
0x1d21   :  { %4691 = vmatpush.msra.mxu1 %v4634_v1 }
0x1d23   :  { %4692 = vmatpush.msra.mxu1 %v4633_v6 }
0x1d25   :  { %4693 = vmatpush.msra.mxu1 %v4632_v27 }
0x1d27   :  { %4694 = vmatpush.msra.mxu1 %v4631_v44 }
0x1d28   :  { %4905 = vmatmul.msk.f32.vlgmr.msrb.gmra.mxu1 %vm8259_vm9, %v6684_v60 }
0x1d30   :  { %4909 = vmatmul.msk.f32.vlgmr.msra.gmra.mxu1 %vm8260_vm0, %v3757_v37 }
0x1d9d   :  { %v3782_v10 = vpop.f32.mrf.mxu1 }
0x1d9e   :  { %3785 = vst.msk [vmem:[#allocation36] sm:$0x3] %vm3379_vm5, %v3782_v10  ;;  %v4899_v4 = vmul.f32 -1.442695, %v3782_v10 }
0x1da0   :  { %5264 = vpow2.f32 %v4899_v4 }
0x1da6   :  { %v5265_v5 = vpop.eup %5264 }
0x1da7   :  { %v3789_v36 = vadd.f32 1.0, %v5265_v5 }
0x1da9   :  { %5266 = vrcp.f32 %v3789_v36  ;;  %v3801_v56 = vand.u32 2147483648, %v3789_v36  ;;  %v3799_v63 = vand.u32 2147483647, %v3789_v36  ;;  %vm3795_vm4 = vweird.f32 %v3789_v36 }
0x1dab   :  { %v3802_v60 = vor.u32 1.1754944e-38, %v3801_v56  ;;  %vm3800_vm6 = vcmp.eq.f32.partialorder %v3799_v63, 8.507059e+37 }
0x1daf   :  { %v5267_v32 = vpop.eup %5266 }
0x1db0   :  { %v3791_v57 = vmul.f32 %v5267_v32, %v3789_v36  ;;  %vm3796_vm3 = vweird.f32 %v5267_v32 }
0x1db1   :  { %vm3797_vm14 = vmor %vm3795_vm4, %vm3796_vm3 }
0x1db2   :  { %v3792_v40 = vsub.f32 1.0, %v3791_v57 }
0x1db4   :  { %v3793_v25 = vmul.f32 %v5267_v32, %v3792_v40 }
0x1db6   :  { %v3794_v26 = vadd.f32 %v5267_v32, %v3793_v25 }
0x1db8   :  { %v3798_v17 = vsel %vm3797_vm14, %v5267_v32, %v3794_v26 }
0x1db9   :  { %v3803_v42 = vsel %vm3800_vm6, %v3802_v60, %v3798_v17 }
0x1dba   :  { %v7713_v34 = vmul.f32 %v3803_v42, %v7632_v50  ;;  %v7716_v19 = vmul.f32 %v3803_v42, %v7642_v41  ;;  %v7719_v30 = vmul.f32 %v3803_v42, %v7617_v7  ;;  %v7722_v53 = vmul.f32 %v3803_v42, %v7666_v12 }
0x1dbb   :  { %v7725_v61 = vmul.f32 %v3803_v42, %v7661_v47  ;;  %v7728_v52 = vmul.f32 %v3803_v42, %v7648_v58  ;;  %v7731_v33 = vmul.f32 %v3803_v42, %v7676_v16  ;;  %v7734_v50 = vmul.f32 %v3803_v42, %v7671_v49 }
0x1dbc   :  { %v3827_v41 = vsel %vm3379_vm5, %v7713_v34, -inf  ;;  %v3820_v7 = vsel %vm3379_vm5, %v7716_v19, -inf  ;;  %v3813_v12 = vsel %vm3379_vm5, %v7719_v30, -inf  ;;  %v3848_v47 = vsel %vm3379_vm5, %v7722_v53, -inf }
0x1dbd   :  { %v3828_v58 = vrot.slane %v3827_v41, 4  ;;  %v3821_v8 = vrot.slane %v3820_v7, 4  ;;  %v3814_v22 = vrot.slane %v3813_v12, 4  ;;  %v3849_v16 = vrot.slane %v3848_v47, 4 }
0x1dbe   :  { %v3841_v49 = vsel %vm3379_vm5, %v7725_v61, -inf  ;;  %v3834_v55 = vsel %vm3379_vm5, %v7728_v52, -inf  ;;  %v3862_v15 = vsel %vm3379_vm5, %v7731_v33, -inf  ;;  %v3855_v62 = vsel %vm3379_vm5, %v7734_v50, -inf }
0x1dbf   :  { %v3829_v3 = vmax.f32 %v3827_v41, %v3828_v58  ;;  %v3822_v38 = vmax.f32 %v3820_v7, %v3821_v8  ;;  %v3815_v13 = vmax.f32 %v3813_v12, %v3814_v22  ;;  %v3850_v0 = vmax.f32 %v3848_v47, %v3849_v16 }
0x1dc0   :  { %v3842_v35 = vrot.slane %v3841_v49, 4  ;;  %v3835_v18 = vrot.slane %v3834_v55, 4  ;;  %v3863_v43 = vrot.slane %v3862_v15, 4  ;;  %v3856_v48 = vrot.slane %v3855_v62, 4 }
0x1dc1   :  { %v3830_v31 = vrot.slane %v3829_v3, 2  ;;  %v3823_v39 = vrot.slane %v3822_v38, 2  ;;  %v3816_v46 = vrot.slane %v3815_v13, 2  ;;  %v3851_v28 = vrot.slane %v3850_v0, 2 }
0x1dc2   :  { %v3843_v29 = vmax.f32 %v3841_v49, %v3842_v35  ;;  %v3836_v20 = vmax.f32 %v3834_v55, %v3835_v18  ;;  %v3864_v37 = vmax.f32 %v3862_v15, %v3863_v43  ;;  %v3857_v1 = vmax.f32 %v3855_v62, %v3856_v48 }
0x1dc3   :  { %v3831_v6 = vmax.f32 %v3829_v3, %v3830_v31  ;;  %v3824_v27 = vmax.f32 %v3822_v38, %v3823_v39  ;;  %v3817_v44 = vmax.f32 %v3815_v13, %v3816_v46  ;;  %v3852_v10 = vmax.f32 %v3850_v0, %v3851_v28 }
0x1dc4   :  { %v3844_v4 = vrot.slane %v3843_v29, 2  ;;  %v3837_v5 = vrot.slane %v3836_v20, 2  ;;  %v3865_v36 = vrot.slane %v3864_v37, 2  ;;  %v3858_v32 = vrot.slane %v3857_v1, 2 }
0x1dc5   :  { %v3832_v57 = vrot.slane %v3831_v6, 1  ;;  %v3825_v40 = vrot.slane %v3824_v27, 1  ;;  %v3818_v56 = vrot.slane %v3817_v44, 1  ;;  %v3853_v25 = vrot.slane %v3852_v10, 1 }
0x1dc6   :  { %v3845_v63 = vmax.f32 %v3843_v29, %v3844_v4  ;;  %v3838_v26 = vmax.f32 %v3836_v20, %v3837_v5  ;;  %v3866_v60 = vmax.f32 %v3864_v37, %v3865_v36  ;;  %v3859_v17 = vmax.f32 %v3857_v1, %v3858_v32 }
0x1dc7   :  { %v3833_v42 = vmax.f32 %v3831_v6, %v3832_v57  ;;  %v3826_v41 = vmax.f32 %v3824_v27, %v3825_v40  ;;  %v3819_v7 = vmax.f32 %v3817_v44, %v3818_v56  ;;  %v3854_v12 = vmax.f32 %v3852_v10, %v3853_v25 }
0x1dc8   :  { %v3846_v47 = vrot.slane %v3845_v63, 1  ;;  %v3839_v58 = vrot.slane %v3838_v26, 1  ;;  %v3867_v8 = vrot.slane %v3866_v60, 1  ;;  %v3860_v22 = vrot.slane %v3859_v17, 1 }
0x1dc9   :  { %v3871_v16 = vsub.f32 %v7713_v34, %v3833_v42  ;;  %v3870_v49 = vsub.f32 %v7716_v19, %v3826_v41  ;;  %v3869_v55 = vsub.f32 %v7719_v30, %v3819_v7  ;;  %v3874_v15 = vsub.f32 %v7722_v53, %v3854_v12 }
0x1dca   :  { %v3847_v62 = vmax.f32 %v3845_v63, %v3846_v47  ;;  %v3840_v3 = vmax.f32 %v3838_v26, %v3839_v58  ;;  %v3868_v38 = vmax.f32 %v3866_v60, %v3867_v8  ;;  %v3861_v13 = vmax.f32 %v3859_v17, %v3860_v22 }
0x1dcb   :  { %v3881_v0 = vmul.f32 1.442695, %v3871_v16  ;;  %v3879_v35 = vmul.f32 1.442695, %v3870_v49  ;;  %v3877_v18 = vmul.f32 1.442695, %v3869_v55 }
0x1dcc   :  { %v3887_v43 = vmul.f32 1.442695, %v3874_v15  ;;  %v3873_v48 = vsub.f32 %v7725_v61, %v3847_v62  ;;  %v3872_v31 = vsub.f32 %v7728_v52, %v3840_v3  ;;  %v3876_v34 = vsub.f32 %v7731_v33, %v3868_v38 }
0x1dcd   :  { %5268 = vpow2.f32 %v3881_v0  ;;  %v3875_v53 = vsub.f32 %v7734_v50, %v3861_v13 }
0x1dce   :  { %5270 = vpow2.f32 %v3879_v35  ;;  %v3885_v19 = vmul.f32 1.442695, %v3873_v48  ;;  %v3883_v30 = vmul.f32 1.442695, %v3872_v31  ;;  %v3891_v39 = vmul.f32 1.442695, %v3876_v34 }
0x1dcf   :  { %5272 = vpow2.f32 %v3877_v18  ;;  %v3889_v46 = vmul.f32 1.442695, %v3875_v53 }
0x1dd0   :  { %5274 = vpow2.f32 %v3887_v43 }
0x1dd1   :  { %5276 = vpow2.f32 %v3885_v19 }
0x1dd2   :  { %5278 = vpow2.f32 %v3883_v30 }
0x1dd3   :  { %v7760_v28 = vpop.eup %5268  ;;  %5280 = vpow2.f32 %v3891_v39 }
0x1dd4   :  { %v7762_v61 = vpop.eup %5270  ;;  %v3907_v52 = vsel %vm3379_vm5, %v7760_v28, 0.0  ;;  %5282 = vpow2.f32 %v3889_v46 }
0x1dd5   :  { %v7766_v33 = vpop.eup %5272  ;;  %v3908_v29 = vrot.slane %v3907_v52, 4  ;;  %v3900_v50 = vsel %vm3379_vm5, %v7762_v61, 0.0 }
0x1dd6   :  { %v7770_v20 = vpop.eup %5274  ;;  %v3901_v37 = vrot.slane %v3900_v50, 4  ;;  %v3893_v1 = vsel %vm3379_vm5, %v7766_v33, 0.0 }
0x1dd7   :  { %v7774_v6 = vpop.eup %5276  ;;  %v3909_v27 = vadd.f32 %v3908_v29, %v3907_v52  ;;  %v3894_v44 = vrot.slane %v3893_v1, 4  ;;  %v3928_v10 = vsel %vm3379_vm5, %v7770_v20, 0.0 }
0x1dd8   :  { %v7778_v4 = vpop.eup %5278  ;;  %v3902_v5 = vadd.f32 %v3901_v37, %v3900_v50  ;;  %v3929_v36 = vrot.slane %v3928_v10, 4  ;;  %v3921_v32 = vsel %vm3379_vm5, %v7774_v6, 0.0 }
0x1dd9   :  { %v7782_v57 = vpop.eup %5280  ;;  %v3910_v40 = vrot.slane %v3909_v27, 2  ;;  %v3895_v56 = vadd.f32 %v3894_v44, %v3893_v1  ;;  %v3922_v25 = vrot.slane %v3921_v32, 4  ;;  %v3914_v63 = vsel %vm3379_vm5, %v7778_v4, 0.0 }
0x1dda   :  { %v3903_v26 = vrot.slane %v3902_v5, 2  ;;  %v3930_v60 = vadd.f32 %v3929_v36, %v3928_v10  ;;  %v3915_v17 = vrot.slane %v3914_v63, 4  ;;  %v3942_v42 = vsel %vm3379_vm5, %v7782_v57, 0.0  ;;  %v7788_v47 = vpop.eup %5282 }
0x1ddb   :  { %v3911_v41 = vadd.f32 %v3910_v40, %v3909_v27  ;;  %v3896_v7 = vrot.slane %v3895_v56, 2  ;;  %v3923_v12 = vadd.f32 %v3922_v25, %v3921_v32  ;;  %v3943_v15 = vrot.slane %v3942_v42, 4 }
0x1ddc   :  { %v3904_v58 = vadd.f32 %v3903_v26, %v3902_v5  ;;  %v3931_v8 = vrot.slane %v3930_v60, 2  ;;  %v3916_v22 = vadd.f32 %v3915_v17, %v3914_v63  ;;  %v3935_v35 = vsel %vm3379_vm5, %v7788_v47, 0.0 }
0x1ddd   :  { %v3912_v16 = vrot.slane %v3911_v41, 1  ;;  %v3897_v49 = vadd.f32 %v3896_v7, %v3895_v56  ;;  %v3924_v55 = vrot.slane %v3923_v12, 2  ;;  %v7797_v34 = vadd.f32 %v3943_v15, %v3942_v42 }
0x1dde   :  { %v3905_v62 = vrot.slane %v3904_v58, 1  ;;  %v3932_v3 = vadd.f32 %v3931_v8, %v3930_v60  ;;  %v3917_v38 = vrot.slane %v3916_v22, 2  ;;  %v3936_v19 = vrot.slane %v3935_v35, 4 }
0x1ddf   :  { %v7790_v13 = vadd.f32 %v3912_v16, %v3911_v41  ;;  %v3898_v0 = vrot.slane %v3897_v49, 1  ;;  %v3925_v48 = vadd.f32 %v3924_v55, %v3923_v12  ;;  %v3945_v1 = vrot.slane %v7797_v34, 2 }
0x1de0   :  { %v7794_v18 = vadd.f32 %v3905_v62, %v3904_v58  ;;  %v3933_v43 = vrot.slane %v3932_v3, 1  ;;  %v3918_v31 = vadd.f32 %v3917_v38, %v3916_v22  ;;  %v7813_v44 = vadd.f32 %v3936_v19, %v3935_v35 }
0x1de1   :  { %5284 = vrcp.f32 %v7790_v13  ;;  %v7800_v30 = vadd.f32 %v3898_v0, %v3897_v49  ;;  %v3988_v39 = vand.u32 2147483647, %v7790_v13  ;;  %v3990_v46 = vand.u32 2147483648, %v7790_v13 }
0x1de2   :  { %5286 = vrcp.f32 %v7794_v18  ;;  %v7802_v53 = vadd.f32 %v3933_v43, %v3932_v3  ;;  %v3926_v52 = vrot.slane %v3925_v48, 1  ;;  %v3919_v29 = vrot.slane %v3918_v31, 1 }
0x1de3   :  { %v3973_v50 = vand.u32 2147483647, %v7794_v18  ;;  %v3975_v37 = vand.u32 2147483648, %v7794_v18  ;;  %5288 = vrcp.f32 %v7800_v30  ;;  %vm3984_vm7 = vweird.f32 %v7790_v13 }
0x1de4   :  { %v3960_v27 = vand.u32 2147483648, %v7800_v30  ;;  %5290 = vrcp.f32 %v7802_v53  ;;  %vm3969_vm13 = vweird.f32 %v7794_v18  ;;  %v4035_v5 = vand.u32 2147483648, %v7802_v53 }
0x1de5   :  { %v7817_v36 = vadd.f32 %v3926_v52, %v3925_v48  ;;  %v7819_v32 = vadd.f32 %v3919_v29, %v3918_v31  ;;  %vm7822_vm10 = vcmp.eq.f32.partialorder %v3988_v39, 8.507059e+37  ;;  %v3991_v63 = vor.u32 1.1754944e-38, %v3990_v46 }
0x1de6   :  { %v3958_v26 = vand.u32 2147483647, %v7800_v30  ;;  %vm7828_vm11 = vcmp.eq.f32.partialorder %v3973_v50, 8.507059e+37  ;;  %v3976_v42 = vor.u32 1.1754944e-38, %v3975_v37  ;;  %v4033_v41 = vand.u32 2147483647, %v7802_v53 }
0x1de7   :  { %v5285_v10 = vpop.eup %5284  ;;  %5292 = vrcp.f32 %v7817_v36  ;;  %vm3954_vm12 = vweird.f32 %v7800_v30  ;;  %v3961_v12 = vor.u32 1.1754944e-38, %v3960_v27  ;;  %v4036_v22 = vor.u32 1.1754944e-38, %v4035_v5 }
0x1de8   :  { %v5287_v40 = vpop.eup %5286  ;;  %v3980_v56 = vmul.f32 %v5285_v10, %v7790_v13  ;;  %5294 = vrcp.f32 %v7819_v32  ;;  %vm3985_vm1 = vweird.f32 %v5285_v10  ;;  %vm7838_vm15 = vcmp.eq.f32.partialorder %v3958_v26, 8.507059e+37 }
0x1de9   :  { %v3965_v60 = vmul.f32 %v5287_v40, %v7794_v18  ;;  %v5289_v58 = vpop.eup %5288  ;;  %vm3970_vm2 = vweird.f32 %v5287_v40  ;;  %v4018_v62 = vand.u32 2147483647, %v7817_v36  ;;  %v4020_v3 = vand.u32 2147483648, %v7817_v36  ;;  %vm3986_vm14 = vmor %vm3984_vm7, %vm3985_vm1 }
0x1dea   :  { %v3981_v7 = vsub.f32 1.0, %v3980_v56  ;;  %v5291_v16 = vpop.eup %5290  ;;  %v3950_v55 = vmul.f32 %v5289_v58, %v7800_v30  ;;  %vm7845_vm9 = vcmp.eq.f32.partialorder %v4033_v41, 8.507059e+37  ;;  %v4003_v43 = vand.u32 2147483647, %v7819_v32  ;;  %vm3971_vm8 = vmor %vm3969_vm13, %vm3970_vm2 }
0x1deb   :  { %v3966_v8 = vsub.f32 1.0, %v3965_v60  ;;  %v4025_v0 = vmul.f32 %v5291_v16, %v7802_v53  ;;  %v4005_v48 = vand.u32 2147483648, %v7819_v32  ;;  %vm3955_vm0 = vweird.f32 %v5289_v58 }
0x1dec   :  { %v3982_v49 = vmul.f32 %v5285_v10, %v3981_v7  ;;  %v3951_v19 = vsub.f32 1.0, %v3950_v55  ;;  %vm3999_vm6 = vweird.f32 %v7819_v32  ;;  %v3946_v29 = vadd.f32 %v3945_v1, %v7797_v34  ;;  %vm3956_vm7 = vmor %vm3954_vm12, %vm3955_vm0 }
0x1ded   :  { %v3967_v38 = vmul.f32 %v5287_v40, %v3966_v8  ;;  %v5293_v39 = vpop.eup %5292  ;;  %v4026_v52 = vsub.f32 1.0, %v4025_v0  ;;  %v3938_v50 = vrot.slane %v7813_v44, 2  ;;  %vm7862_vm3 = vcmp.eq.f32.partialorder %v4018_v62, 8.507059e+37 }
0x1dee   :  { %v3983_v31 = vadd.f32 %v5285_v10, %v3982_v49  ;;  %v5295_v37 = vpop.eup %5294  ;;  %v3952_v5 = vmul.f32 %v5289_v58, %v3951_v19  ;;  %v4010_v56 = vmul.f32 %v5293_v39, %v7817_v36  ;;  %vm4015_vm4 = vweird.f32 %v5293_v39 }
0x1def   :  { %v3968_v46 = vadd.f32 %v5287_v40, %v3967_v38  ;;  %v4027_v1 = vmul.f32 %v5291_v16, %v4026_v52  ;;  %v3995_v60 = vmul.f32 %v5295_v37, %v7819_v32  ;;  %vm4000_vm13 = vweird.f32 %v5295_v37 }
0x1df0   :  { %v3987_v27 = vsel %vm3986_vm14, %v5285_v10, %v3983_v31  ;;  %v3953_v41 = vadd.f32 %v5289_v58, %v3952_v5  ;;  %v4011_v7 = vsub.f32 1.0, %v4010_v56  ;;  %vm8272_vm1 = vweird.f32 %v7802_v53 }
0x1df1   :  { %v3992_v26 = vsel %vm7822_vm10, %v3991_v63, %v3987_v27  ;;  %v3972_v34 = vsel %vm3971_vm8, %v5287_v40, %v3968_v46  ;;  %v4028_v49 = vadd.f32 %v5291_v16, %v4027_v1  ;;  %v3996_v25 = vsub.f32 1.0, %v3995_v60  ;;  %vm4001_vm8 = vmor %vm3999_vm6, %vm4000_vm13 }
0x1df2   :  { %v3993_v10 = vmul.f32 %v7760_v28, %v3992_v26  ;;  %v3977_v18 = vsel %vm7828_vm11, %v3976_v42, %v3972_v34  ;;  %v3957_v63 = vsel %vm3956_vm7, %v5289_v58, %v3953_v41  ;;  %vm8271_vm10 = vweird.f32 %v5291_v16 }
0x1df3   :  { %v3978_v8 = vmul.f32 %v7762_v61, %v3977_v18  ;;  %vm4031_vm2 = vmor %vm8272_vm1, %vm8271_vm10  ;;  %v4012_v28 = vmul.f32 %v5293_v39, %v4011_v7  ;;  %v3947_v17 = vrot.slane %v3946_v29, 1  ;;  %v3962_v61 = vsel %vm7838_vm15, %v3961_v12, %v3957_v63 }
0x1df4   :  { %v4075_v40 = vsel %vm3379_vm5, %v3993_v10, 0.0  ;;  %v4032_v30 = vsel %vm4031_vm2, %v5291_v16, %v4028_v49  ;;  %v3997_v55 = vmul.f32 %v5295_v37, %v3996_v25  ;;  %v3963_v62 = vmul.f32 %v7766_v33, %v3962_v61  ;;  %v4112_v61 = vld [vmem:[#allocation26 + $0x18] sm:$0xff] }
0x1df5   :  { %4076 = vadd.xlane.f32.xlu0 %v4075_v40  ;;  %v4072_v42 = vsel %vm3379_vm5, %v3978_v8, 0.0  ;;  %v4037_v58 = vsel %vm7845_vm9, %v4036_v22, %v4032_v30  ;;  %v4013_v38 = vadd.f32 %v5293_v39, %v4012_v28  ;;  %v3948_v0 = vadd.f32 %v3947_v17, %v3946_v29  ;;  %v4116_v28 = vld [vmem:[#allocation26 + $0x38] sm:$0xff]  ;;  %v4114_v17 = vld [vmem:[#allocation26 + $0x28] sm:$0xff]  ;;  %v4111_v30 = vld [vmem:[#allocation26 + $0x10] sm:$0xff] }
0x1df6   :  { %4073 = vadd.xlane.f32.xlu2 %v4072_v42  ;;  %vm8273_vm11 = vweird.f32 %v7817_v36  ;;  %v4021_v53 = vor.u32 1.1754944e-38, %v4020_v3  ;;  %v3998_v31 = vadd.f32 %v5295_v37, %v3997_v55  ;;  %v4006_v19 = vor.u32 1.1754944e-38, %v4005_v48  ;;  %4154 = vmatpush.msrb.mxu2 %v4116_v28  ;;  %v4113_v42 = vld [vmem:[#allocation26 + $0x20] sm:$0xff] }
0x1df7   :  { %vm4016_vm12 = vmor %vm8273_vm11, %vm4015_vm4  ;;  %v3939_v15 = vadd.f32 %v3938_v50, %v7813_v44  ;;  %v4069_v12 = vsel %vm3379_vm5, %v3963_v62, 0.0  ;;  %v4038_v16 = vmul.f32 %v7770_v20, %v4037_v58  ;;  %5296 = vrcp.f32 %v3948_v0 }
0x1df8   :  { %v4017_v46 = vsel %vm4016_vm12, %v5293_v39, %v4013_v38  ;;  %4070 = vadd.xlane.f32.xlu1 %v4069_v12  ;;  %v4002_v36 = vsel %vm4001_vm8, %v5295_v37, %v3998_v31  ;;  %vm4004_vm15 = vcmp.eq.f32.partialorder %v4003_v43, 8.507059e+37  ;;  %v4065_v43 = vand.u32 2147483648, %v3948_v0  ;;  %v4110_v38 = vld [vmem:[#allocation26 + $0x8] sm:$0xff] }
0x1df9   :  { %v4022_v33 = vsel %vm7862_vm3, %v4021_v53, %v4017_v46  ;;  %v4007_v22 = vsel %vm4004_vm15, %v4006_v19, %v4002_v36  ;;  %v3940_v3 = vrot.slane %v3939_v15, 1  ;;  %v4084_v20 = vsel %vm3379_vm5, %v4038_v16, 0.0  ;;  %v5342_v12 = vld [vmem:[#allocation2] sm:$0xff] }
0x1dfa   :  { %v4023_v44 = vmul.f32 %v7774_v6, %v4022_v33  ;;  %v4008_v35 = vmul.f32 %v7778_v4, %v4007_v22  ;;  %v4063_v37 = vand.u32 2147483647, %v3948_v0  ;;  %vm4059_vm0 = vweird.f32 %v3948_v0 }
0x1dfb   :  { %v3941_v48 = vadd.f32 %v3940_v3, %v3939_v15  ;;  %v4066_v56 = vor.u32 1.1754944e-38, %v4065_v43  ;;  %v4172_v43 = vld [vmem:[#allocation27 + $0x8] sm:$0xff]  ;;  %vm8276_vm1 = vcmask 130048   ;;  %vm8278_vm11 = vcmask 261120  }
0x1dfc   :  { %v4081_v39 = vsel %vm3379_vm5, %v4023_v44, 0.0  ;;  %v4078_v50 = vsel %vm3379_vm5, %v4008_v35, 0.0  ;;  %vm4064_vm4 = vcmp.eq.f32.partialorder %v4063_v37, 8.507059e+37  ;;  %v5343_v44 = vld [vmem:[#allocation2 + $0x8] sm:$0xff]  ;;  %4193 = vmatpush.msra.mxu3 %v4172_v43  ;;  %v4630_v37 = vld [vmem:[#allocation32 + $0x38] sm:$0xff]  ;;  %vm8277_vm2 = vmmov %vm8276_vm1  ;;  %vm4216_vm12 = vcmask 41984  }
0x1dfd   :  { %4085 = vadd.xlane.f32.xlu0 %v4084_v20  ;;  %v5297_v52 = vpop.eup %5296  ;;  %5298 = vrcp.f32 %v3941_v48  ;;  %v4050_v1 = vand.u32 2147483648, %v3941_v48  ;;  %v4048_v18 = vand.u32 2147483647, %v3941_v48  ;;  %vm4044_vm6 = vweird.f32 %v3941_v48 }
0x1dfe   :  { %4082 = vadd.xlane.f32.xlu2 %v4081_v39  ;;  %v4055_v29 = vmul.f32 %v5297_v52, %v3948_v0  ;;  %vm4060_vm9 = vweird.f32 %v5297_v52  ;;  %v4109_v0 = vld [vmem:[#allocation26] sm:$0xff] }
0x1dff   :  { %vm4061_vm3 = vmor %vm4059_vm0, %vm4060_vm9  ;;  %v4051_v8 = vor.u32 1.1754944e-38, %v4050_v1  ;;  %vm4049_vm13 = vcmp.eq.f32.partialorder %v4048_v18, 8.507059e+37 }
0x1e00   :  { %4079 = vadd.xlane.f32.xlu1 %v4078_v50  ;;  %v4056_v32 = vsub.f32 1.0, %v4055_v29 }
0x1e02   :  { %v4057_v6 = vmul.f32 %v5297_v52, %v4056_v32 }
0x1e03   :  { %v5299_v27 = vpop.eup %5298 }
0x1e04   :  { %v4058_v5 = vadd.f32 %v5297_v52, %v4057_v6  ;;  %v4040_v4 = vmul.f32 %v5299_v27, %v3941_v48  ;;  %vm4045_vm14 = vweird.f32 %v5299_v27  ;;  %v4171_v6 = vld [vmem:[#allocation27] sm:$0xff] }
0x1e05   :  { %vm4046_vm7 = vmor %vm4044_vm6, %vm4045_vm14  ;;  %4194 = vmatpush.msra.mxu3 %v4171_v6 }
0x1e06   :  { %v4062_v13 = vsel %vm4061_vm3, %v5297_v52, %v4058_v5  ;;  %v4041_v26 = vsub.f32 1.0, %v4040_v4  ;;  %v4627_v5 = vld [vmem:[#allocation32 + $0x20] sm:$0xff] }
0x1e07   :  { %v4067_v34 = vsel %vm4064_vm4, %v4066_v56, %v4062_v13  ;;  %4651 = vmatpush.msrb.mxu3 %v4630_v37 }
0x1e08   :  { %v4068_v60 = vmul.f32 %v7782_v57, %v4067_v34  ;;  %v4042_v10 = vmul.f32 %v5299_v27, %v4041_v26  ;;  %v4115_v57 = vld [vmem:[#allocation26 + $0x30] sm:$0xff] }
0x1e09   :  { %4155 = vmatpush.msrb.mxu2 %v4115_v57 }
0x1e0a   :  { %v4090_v41 = vsel %vm3379_vm5, %v4068_v60, 0.0  ;;  %v4043_v7 = vadd.f32 %v5299_v27, %v4042_v10 }
0x1e0b   :  { %4091 = vadd.xlane.f32.xlu2 %v4090_v41  ;;  %4156 = vmatpush.msrb.mxu2 %v4114_v17 }
0x1e0c   :  { %v4047_v49 = vsel %vm4046_vm7, %v5299_v27, %v4043_v7  ;;  %v4628_v27 = vld [vmem:[#allocation32 + $0x28] sm:$0xff] }
0x1e0d   :  { %v4052_v25 = vsel %vm4049_vm13, %v4051_v8, %v4047_v49  ;;  %4157 = vmatpush.msrb.mxu2 %v4113_v42 }
0x1e0e   :  { %v4053_v40 = vmul.f32 %v7788_v47, %v4052_v25 }
0x1e0f   :  { %4158 = vmatpush.msrb.mxu2 %v4112_v61 }
0x1e10   :  { %v4087_v63 = vsel %vm3379_vm5, %v4053_v40, 0.0  ;;  %vm8274_vm5 = vcmask 523264  }
0x1e11   :  { %4088 = vadd.xlane.f32.xlu1 %v4087_v63  ;;  %4159 = vmatpush.msrb.mxu2 %v4111_v30  ;;  %vm8275_vm10 = vmmov %vm8274_vm5 }
0x1e13   :  { %4160 = vmatpush.msrb.mxu2 %v4110_v38 }
0x1e15   :  { %4161 = vmatpush.msrb.mxu2 %v4109_v0 }
0x1e68   :  { %v4077_v55 = vpop.xlane.xlu0 %4076 }
0x1e69   :  { %v4095_v62 = vmul.f32 %v4077_v55, %v7680_v2  ;;  %v4074_v58 = vpop.xlane.xlu2 %4073 }
0x1e6a   :  { %v4094_v47 = vmul.f32 %v4074_v58, %v7680_v2 }
0x1e6b   :  { %v7911_v53 = vmul.f32 %v4095_v62, %v6651_v54  ;;  %v4071_v19 = vpop.xlane.xlu1 %4070 }
0x1e6c   :  { %v7914_v31 = vmul.f32 %v4094_v47, %v6646_v51  ;;  %v4093_v15 = vmul.f32 %v4071_v19, %v7680_v2 }
0x1e6d   :  { %4129 = vst [vmem:[#allocation1 + $0x2] ss:$4 sm:$0xff] %v7911_v53 }
0x1e6e   :  { %4127 = vst [vmem:[#allocation1 + $0x1] ss:$4 sm:$0xff] %v7914_v31  ;;  %v7919_v16 = vmul.f32 %v5342_v12, %v4093_v15 }
0x1e70   :  { %v4086_v46 = vpop.xlane.xlu0 %4085  ;;  %4125 = vst [vmem:[#allocation1] ss:$4 sm:$0xff] %v7919_v16 }
0x1e71   :  { %v4098_v54 = vmul.f32 %v4086_v46, %v7680_v2  ;;  %v4083_v33 = vpop.xlane.xlu2 %4082 }
0x1e72   :  { %v4097_v51 = vmul.f32 %v4083_v33, %v7680_v2 }
0x1e73   :  { %v7925_v36 = vmul.f32 %v4098_v54, %v6668_v9  ;;  %v4080_v3 = vpop.xlane.xlu1 %4079 }
0x1e74   :  { %v7927_v22 = vmul.f32 %v5343_v44, %v4097_v51  ;;  %v4096_v20 = vmul.f32 %v4080_v3, %v7680_v2 }
0x1e75   :  { %4135 = vst [vmem:[#allocation1 + $0x21] ss:$4 sm:$0xff] %v7925_v36 }
0x1e76   :  { %4133 = vst [vmem:[#allocation1 + $0x20] ss:$4 sm:$0xff] %v7927_v22  ;;  %v7933_v35 = vmul.f32 %v4096_v20, %v6657_v59 }
0x1e78   :  { %4131 = vst [vmem:[#allocation1 + $0x3] ss:$4 sm:$0xff] %v7933_v35 }
0x1e7e   :  { %v4092_v48 = vpop.xlane.xlu2 %4091 }
0x1e7f   :  { %v4100_v39 = vmul.f32 %v4092_v48, %v7680_v2  ;;  %v4140_v9 = vld.sshfl [vmem:[#allocation1] sm:$0xff pattern:$0x73625140] }
0x1e80   :  { %4900 = vmatmul.msk.f32.vlgmr.msrb.gmra.mxu2 %vm8274_vm5, %v4140_v9 }
0x1e81   :  { %v7939_v52 = vmul.f32 %v4100_v39, %v6676_v21  ;;  %v4629_v21 = vld [vmem:[#allocation32 + $0x30] sm:$0xff] }
0x1e82   :  { %4652 = vmatpush.msrb.mxu3 %v4629_v21 }
0x1e83   :  { %4139 = vst [vmem:[#allocation1 + $0x23] ss:$4 sm:$0xff] %v7939_v52 }
0x1e84   :  { %v4089_v29 = vpop.xlane.xlu1 %4088  ;;  %4653 = vmatpush.msrb.mxu3 %v4628_v27 }
0x1e85   :  { %v4099_v50 = vmul.f32 %v4089_v29, %v7680_v2 }
0x1e86   :  { %4654 = vmatpush.msrb.mxu3 %v4627_v5 }
0x1e87   :  { %v7944_v32 = vmul.f32 %v4099_v50, %v6671_v11 }
0x1e89   :  { %4137 = vst [vmem:[#allocation1 + $0x22] ss:$4 sm:$0xff] %v7944_v32 }
0x1e90   :  { %v4141_v59 = vld.sshfl [vmem:[#allocation1 + $0x20] sm:$0xff pattern:$0x73625140] }
0x1e91   :  { %4901 = vmatmul.msk.f32.gmra.mxu2 %vm8275_vm10, %v4141_v59 }
0x1f03   :  { %v4163_v2 = vpop.f32.mrf.mxu2 }
0x1f04   :  { %5300 = vtanh.f32 %v4163_v2 }
0x1f0a   :  { %v5301_v11 = vpop.eup %5300 }
0x1f0b   :  { %4902 = vmatmul.msk.f32.vlgmr.msra.gmra.mxu3 %vm8276_vm1, %v5301_v11 }
0x1f0c   :  { %4741 = vmatpush.msra.mxu3 %v4725_v24 }
0x1f14   :  { %v4166_v4 = vpop.f32.mrf.mxu2 }
0x1f15   :  { %5302 = vtanh.f32 %v4166_v4 }
0x1f1b   :  { %v5303_v56 = vpop.eup %5302 }
0x1f1c   :  { %4903 = vmatmul.msk.f32.gmra.mxu3 %vm8277_vm2, %v5303_v56 }
0x1f24   :  { %4907 = vmatmul.msk.f32.vlgmr.msrb.gmra.mxu3 %vm8278_vm11, %v2920_v45 }
0x1f8e   :  { %v4196_v13 = vpop.f32.mrf.mxu3 }
0x1f8f   :  { %v4204_v26 = vrot.slane %v4196_v13, 2  ;;  %v4205_v34 = vrot.slane %v4196_v13, 4  ;;  %v4206_v1 = vrot.slane %v4196_v13, 6  ;;  %v4217_v60 = vsel %vm4216_vm12, %v4196_v13, -inf }
0x1f90   :  { %v4218_v10 = vrot.slane %v4217_v60, 4 }
0x1f91   :  { %v4224_v18 = vsel %vm4216_vm12, %v4204_v26, -inf  ;;  %v4231_v41 = vsel %vm4216_vm12, %v4205_v34, -inf  ;;  %v4238_v7 = vsel %vm4216_vm12, %v4206_v1, -inf }
0x1f92   :  { %v4219_v8 = vmax.f32 %v4217_v60, %v4218_v10  ;;  %v4225_v49 = vrot.slane %v4224_v18, 4  ;;  %v4232_v25 = vrot.slane %v4231_v41, 4  ;;  %v4239_v14 = vrot.slane %v4238_v7, 4 }
0x1f94   :  { %v4220_v40 = vrot.slane %v4219_v8, 2  ;;  %v4226_v45 = vmax.f32 %v4224_v18, %v4225_v49  ;;  %v4233_v63 = vmax.f32 %v4231_v41, %v4232_v25  ;;  %v4240_v28 = vmax.f32 %v4238_v7, %v4239_v14 }
0x1f96   :  { %v4221_v57 = vmax.f32 %v4219_v8, %v4220_v40  ;;  %v4227_v17 = vrot.slane %v4226_v45, 2  ;;  %v4234_v42 = vrot.slane %v4233_v63, 2  ;;  %v4241_v61 = vrot.slane %v4240_v28, 2 }
0x1f98   :  { %v4222_v30 = vrot.slane %v4221_v57, 1  ;;  %v4228_v55 = vmax.f32 %v4226_v45, %v4227_v17  ;;  %v4235_v62 = vmax.f32 %v4233_v63, %v4234_v42  ;;  %v4242_v58 = vmax.f32 %v4240_v28, %v4241_v61 }
0x1f9a   :  { %v4223_v47 = vmax.f32 %v4221_v57, %v4222_v30  ;;  %v4236_v38 = vrot.slane %v4235_v62, 1  ;;  %v4229_v0 = vrot.slane %v4228_v55, 1  ;;  %v4243_v19 = vrot.slane %v4242_v58, 1 }
0x1f9c   :  { %v4273_v15 = vsub.f32 %v4196_v13, %v4223_v47  ;;  %v4237_v12 = vmax.f32 %v4235_v62, %v4236_v38  ;;  %v4230_v46 = vmax.f32 %v4228_v55, %v4229_v0  ;;  %v4244_v54 = vmax.f32 %v4242_v58, %v4243_v19 }
0x1f9e   :  { %v4281_v33 = vmul.f32 1.442695, %v4273_v15  ;;  %v4275_v51 = vsub.f32 %v4205_v34, %v4237_v12  ;;  %v4274_v44 = vsub.f32 %v4204_v26, %v4230_v46  ;;  %v4276_v20 = vsub.f32 %v4206_v1, %v4244_v54 }
0x1f9f   :  { %v7957_v3 = vpop.f32.mrf.mxu3 }
0x1fa0   :  { %v4207_v48 = vrot.slane %v7957_v3, 2  ;;  %v4208_v39 = vrot.slane %v7957_v3, 4  ;;  %v4209_v9 = vrot.slane %v7957_v3, 6  ;;  %v4245_v29 = vsel %vm4216_vm12, %v7957_v3, -inf }
0x1fa1   :  { %v4246_v50 = vrot.slane %v4245_v29, 4  ;;  %5304 = vpow2.f32 %v4281_v33  ;;  %v4285_v59 = vmul.f32 1.442695, %v4275_v51  ;;  %v4283_v21 = vmul.f32 1.442695, %v4274_v44 }
0x1fa2   :  { %v4252_v43 = vsel %vm4216_vm12, %v4207_v48, -inf  ;;  %v4259_v6 = vsel %vm4216_vm12, %v4208_v39, -inf  ;;  %v4266_v37 = vsel %vm4216_vm12, %v4209_v9, -inf  ;;  %v4287_v4 = vmul.f32 1.442695, %v4276_v20 }
0x1fa3   :  { %v4247_v27 = vmax.f32 %v4245_v29, %v4246_v50  ;;  %v4253_v5 = vrot.slane %v4252_v43, 4  ;;  %v4260_v2 = vrot.slane %v4259_v6, 4  ;;  %v4267_v11 = vrot.slane %v4266_v37, 4 }
0x1fa4   :  { %5306 = vpow2.f32 %v4285_v59 }
0x1fa5   :  { %v4248_v56 = vrot.slane %v4247_v27, 2  ;;  %v4254_v13 = vmax.f32 %v4252_v43, %v4253_v5  ;;  %v4261_v26 = vmax.f32 %v4259_v6, %v4260_v2  ;;  %v4268_v34 = vmax.f32 %v4266_v37, %v4267_v11 }
0x1fa6   :  { %5308 = vpow2.f32 %v4283_v21 }
0x1fa7   :  { %v7967_v1 = vpop.eup %5304  ;;  %v4249_v60 = vmax.f32 %v4247_v27, %v4248_v56  ;;  %v4255_v10 = vrot.slane %v4254_v13, 2  ;;  %v4262_v18 = vrot.slane %v4261_v26, 2  ;;  %v4269_v41 = vrot.slane %v4268_v34, 2 }
0x1fa8   :  { %v4297_v7 = vsel %vm4216_vm12, %v7967_v1, 0.0  ;;  %5310 = vpow2.f32 %v4287_v4 }
0x1fa9   :  { %v4250_v8 = vrot.slane %v4249_v60, 1  ;;  %v4256_v49 = vmax.f32 %v4254_v13, %v4255_v10  ;;  %v4263_v25 = vmax.f32 %v4261_v26, %v4262_v18  ;;  %v4270_v14 = vmax.f32 %v4268_v34, %v4269_v41 }
0x1faa   :  { %v7971_v40 = vpop.eup %5306  ;;  %v4298_v45 = vrot.slane %v4297_v7, 4 }
0x1fab   :  { %v4251_v63 = vmax.f32 %v4249_v60, %v4250_v8  ;;  %v4311_v28 = vsel %vm4216_vm12, %v7971_v40, 0.0  ;;  %v4257_v57 = vrot.slane %v4256_v49, 1  ;;  %v4264_v17 = vrot.slane %v4263_v25, 1 }
0x1fac   :  { %v7975_v42 = vpop.eup %5308  ;;  %v4299_v61 = vadd.f32 %v4298_v45, %v4297_v7  ;;  %v4312_v30 = vrot.slane %v4311_v28, 4  ;;  %v4271_v55 = vrot.slane %v4270_v14, 1 }
0x1fad   :  { %v4277_v62 = vsub.f32 %v7957_v3, %v4251_v63  ;;  %v4304_v58 = vsel %vm4216_vm12, %v7975_v42, 0.0  ;;  %v4258_v47 = vmax.f32 %v4256_v49, %v4257_v57  ;;  %v4265_v38 = vmax.f32 %v4263_v25, %v4264_v17 }
0x1fae   :  { %v7980_v0 = vpop.eup %5310  ;;  %v4300_v19 = vrot.slane %v4299_v61, 2  ;;  %v4313_v15 = vadd.f32 %v4312_v30, %v4311_v28  ;;  %v4305_v12 = vrot.slane %v4304_v58, 4  ;;  %v4272_v46 = vmax.f32 %v4270_v14, %v4271_v55 }
0x1faf   :  { %v4289_v54 = vmul.f32 1.442695, %v4277_v62  ;;  %v4318_v33 = vsel %vm4216_vm12, %v7980_v0, 0.0  ;;  %v4278_v51 = vsub.f32 %v4207_v48, %v4258_v47  ;;  %v4279_v44 = vsub.f32 %v4208_v39, %v4265_v38 }
0x1fb0   :  { %v4301_v20 = vadd.f32 %v4300_v19, %v4299_v61  ;;  %v4314_v29 = vrot.slane %v4313_v15, 2  ;;  %v4306_v3 = vadd.f32 %v4305_v12, %v4304_v58  ;;  %v4319_v50 = vrot.slane %v4318_v33, 4 }
0x1fb1   :  { %5312 = vpow2.f32 %v4289_v54  ;;  %v4291_v59 = vmul.f32 1.442695, %v4278_v51  ;;  %v4293_v43 = vmul.f32 1.442695, %v4279_v44  ;;  %v4280_v6 = vsub.f32 %v4209_v9, %v4272_v46 }
0x1fb2   :  { %v4302_v37 = vrot.slane %v4301_v20, 1  ;;  %v4315_v21 = vadd.f32 %v4314_v29, %v4313_v15  ;;  %v4307_v27 = vrot.slane %v4306_v3, 2  ;;  %v4320_v5 = vadd.f32 %v4319_v50, %v4318_v33 }
0x1fb3   :  { %5314 = vpow2.f32 %v4291_v59  ;;  %v4295_v2 = vmul.f32 1.442695, %v4280_v6 }
0x1fb4   :  { %v4303_v11 = vadd.f32 %v4302_v37, %v4301_v20  ;;  %v4316_v4 = vrot.slane %v4315_v21, 1  ;;  %v4308_v56 = vadd.f32 %v4307_v27, %v4306_v3  ;;  %v4321_v13 = vrot.slane %v4320_v5, 2 }
0x1fb5   :  { %5316 = vpow2.f32 %v4293_v43 }
0x1fb6   :  { %5318 = vrcp.f32 %v4303_v11  ;;  %v7986_v39 = vadd.f32 %v4316_v4, %v4315_v21  ;;  %v4309_v26 = vrot.slane %v4308_v56, 1  ;;  %v4322_v34 = vadd.f32 %v4321_v13, %v4320_v5 }
0x1fb7   :  { %v7984_v48 = vpop.eup %5312  ;;  %5320 = vpow2.f32 %v4295_v2  ;;  %v4362_v10 = vand.u32 2147483647, %v4303_v11  ;;  %v4364_v25 = vand.u32 2147483648, %v4303_v11  ;;  %vm4358_vm8 = vweird.f32 %v4303_v11 }
0x1fb8   :  { %v4325_v9 = vsel %vm4216_vm12, %v7984_v48, 0.0  ;;  %5322 = vrcp.f32 %v7986_v39  ;;  %v7993_v18 = vadd.f32 %v4309_v26, %v4308_v56  ;;  %v4323_v41 = vrot.slane %v4322_v34, 1 }
0x1fb9   :  { %v7990_v60 = vpop.eup %5314  ;;  %v4326_v7 = vrot.slane %v4325_v9, 4  ;;  %v4392_v63 = vand.u32 2147483647, %v7986_v39  ;;  %v4394_v28 = vand.u32 2147483648, %v7986_v39  ;;  %vm8006_vm15 = vcmp.eq.f32.partialorder %v4362_v10, 8.507059e+37 }
0x1fba   :  { %v4332_v8 = vsel %vm4216_vm12, %v7990_v60, 0.0  ;;  %5324 = vrcp.f32 %v7993_v18  ;;  %v8002_v17 = vadd.f32 %v4323_v41, %v4322_v34  ;;  %v4379_v62 = vand.u32 2147483648, %v7993_v18 }
0x1fbb   :  { %v7997_v49 = vpop.eup %5316  ;;  %v4333_v14 = vrot.slane %v4332_v8, 4  ;;  %v4327_v61 = vadd.f32 %v4326_v7, %v4325_v9  ;;  %v4365_v15 = vor.u32 1.1754944e-38, %v4364_v25  ;;  %vm4388_vm9 = vweird.f32 %v7986_v39 }
0x1fbc   :  { %v5319_v45 = vpop.eup %5318  ;;  %v4339_v47 = vsel %vm4216_vm12, %v7997_v49, 0.0  ;;  %5326 = vrcp.f32 %v8002_v17  ;;  %vm8016_vm0 = vcmp.eq.f32.partialorder %v4392_v63, 8.507059e+37  ;;  %v4395_v54 = vor.u32 1.1754944e-38, %v4394_v28 }
0x1fbd   :  { %v4354_v57 = vmul.f32 %v5319_v45, %v4303_v11  ;;  %v8004_v30 = vpop.eup %5320  ;;  %v4334_v58 = vadd.f32 %v4333_v14, %v4332_v8  ;;  %v4377_v33 = vand.u32 2147483647, %v7993_v18  ;;  %v4328_v51 = vrot.slane %v4327_v61, 2 }
0x1fbe   :  { %v5323_v38 = vpop.eup %5322  ;;  %vm4359_vm3 = vweird.f32 %v5319_v45  ;;  %vm4373_vm4 = vweird.f32 %v7993_v18  ;;  %v4340_v29 = vrot.slane %v4339_v47, 4  ;;  %v4380_v59 = vor.u32 1.1754944e-38, %v4379_v62 }
0x1fbf   :  { %v4355_v19 = vsub.f32 1.0, %v4354_v57  ;;  %v4384_v12 = vmul.f32 %v5323_v38, %v7986_v39  ;;  %v4335_v20 = vrot.slane %v4334_v58, 2  ;;  %v4407_v43 = vand.u32 2147483647, %v8002_v17  ;;  %vm4360_vm14 = vmor %vm4358_vm8, %vm4359_vm3 }
0x1fc0   :  { %v5325_v3 = vpop.eup %5324  ;;  %v4329_v6 = vadd.f32 %v4328_v51, %v4327_v61  ;;  %v4346_v5 = vsel %vm4216_vm12, %v8004_v30, 0.0  ;;  %vm4389_vm6 = vweird.f32 %v5323_v38  ;;  %v4341_v9 = vadd.f32 %v4340_v29, %v4339_v47 }
0x1fc1   :  { %v4356_v44 = vmul.f32 %v5319_v45, %v4355_v19  ;;  %v4385_v50 = vsub.f32 1.0, %v4384_v12  ;;  %v4369_v21 = vmul.f32 %v5325_v3, %v7993_v18  ;;  %v4336_v27 = vadd.f32 %v4335_v20, %v4334_v58  ;;  %vm4390_vm13 = vmor %vm4388_vm9, %vm4389_vm6 }
0x1fc2   :  { %vm4374_vm7 = vweird.f32 %v5325_v3  ;;  %v4330_v4 = vrot.slane %v4329_v6, 1  ;;  %v5327_v56 = vpop.eup %5326  ;;  %v4347_v8 = vrot.slane %v4346_v5, 4  ;;  %v4409_v57 = vand.u32 2147483648, %v8002_v17 }
0x1fc3   :  { %v4357_v37 = vadd.f32 %v5319_v45, %v4356_v44  ;;  %v4386_v2 = vmul.f32 %v5323_v38, %v4385_v50  ;;  %v4370_v26 = vsub.f32 1.0, %v4369_v21  ;;  %v4337_v34 = vrot.slane %v4336_v27, 1  ;;  %vm4375_vm10 = vmor %vm4373_vm4, %vm4374_vm7 }
0x1fc4   :  { %v4399_v7 = vmul.f32 %v5327_v56, %v8002_v17  ;;  %v8033_v14 = vadd.f32 %v4330_v4, %v4329_v6  ;;  %vm4404_vm5 = vweird.f32 %v5327_v56  ;;  %v4342_v58 = vrot.slane %v4341_v9, 2 }
0x1fc5   :  { %v4361_v13 = vsel %vm4360_vm14, %v5319_v45, %v4357_v37  ;;  %v4387_v41 = vadd.f32 %v5323_v38, %v4386_v2  ;;  %v4371_v11 = vmul.f32 %v5325_v3, %v4370_v26  ;;  %v8035_v63 = vadd.f32 %v4337_v34, %v4336_v27 }
0x1fc6   :  { %v4366_v10 = vsel %vm8006_vm15, %v4365_v15, %v4361_v13  ;;  %v4400_v28 = vsub.f32 1.0, %v4399_v7  ;;  %5328 = vrcp.f32 %v8033_v14  ;;  %v4348_v47 = vadd.f32 %v4347_v8, %v4346_v5 }
0x1fc7   :  { %v4367_v25 = vmul.f32 %v7967_v1, %v4366_v10  ;;  %v4391_v45 = vsel %vm4390_vm13, %v5323_v38, %v4387_v41  ;;  %v4372_v62 = vadd.f32 %v5325_v3, %v4371_v11  ;;  %vm4378_vm1 = vcmp.eq.f32.partialorder %v4377_v33, 8.507059e+37 }
0x1fc8   :  { %v4396_v55 = vsel %vm8016_vm0, %v4395_v54, %v4391_v45  ;;  %v4401_v39 = vmul.f32 %v5327_v56, %v4400_v28  ;;  %5330 = vrcp.f32 %v8035_v63  ;;  %vm4403_vm2 = vweird.f32 %v8002_v17 }
0x1fc9   :  { %v4473_v61 = vsel %vm4216_vm12, %v4367_v25, 0.0  ;;  %v4397_v1 = vmul.f32 %v7971_v40, %v4396_v55  ;;  %v4376_v38 = vsel %vm4375_vm10, %v5325_v3, %v4372_v62  ;;  %vm4405_vm11 = vmor %vm4403_vm2, %vm4404_vm5  ;;  %v4410_v18 = vor.u32 1.1754944e-38, %v4409_v57 }
0x1fca   :  { %4474 = vadd.xlane.f32.xlu0 %v4473_v61  ;;  %v4381_v15 = vsel %vm4378_vm1, %v4380_v59, %v4376_v38  ;;  %v4402_v12 = vadd.f32 %v5327_v56, %v4401_v39  ;;  %vm4408_vm8 = vcmp.eq.f32.partialorder %v4407_v43, 8.507059e+37  ;;  %v4343_v54 = vadd.f32 %v4342_v58, %v4341_v9 }
0x1fcb   :  { %v4479_v19 = vsel %vm4216_vm12, %v4397_v1, 0.0  ;;  %v4382_v40 = vmul.f32 %v7975_v42, %v4381_v15  ;;  %v4349_v51 = vrot.slane %v4348_v47, 2  ;;  %v4424_v43 = vand.u32 2147483648, %v8033_v14 }
0x1fcc   :  { %4480 = vadd.xlane.f32.xlu2 %v4479_v19  ;;  %v4406_v46 = vsel %vm4405_vm11, %v5327_v56, %v4402_v12  ;;  %v5329_v44 = vpop.eup %5328  ;;  %v4344_v17 = vrot.slane %v4343_v54, 1  ;;  %v4422_v2 = vand.u32 2147483647, %v8033_v14  ;;  %vm4418_vm9 = vweird.f32 %v8033_v14 }
0x1fcd   :  { %v4476_v33 = vsel %vm4216_vm12, %v4382_v40, 0.0  ;;  %v4411_v20 = vsel %vm4408_vm8, %v4410_v18, %v4406_v46  ;;  %v4414_v3 = vmul.f32 %v5329_v44, %v8033_v14  ;;  %v4350_v59 = vadd.f32 %v4349_v51, %v4348_v47 }
0x1fce   :  { %4477 = vadd.xlane.f32.xlu1 %v4476_v33  ;;  %v4412_v29 = vmul.f32 %v7980_v0, %v4411_v20  ;;  %v5331_v50 = vpop.eup %5330  ;;  %v4345_v21 = vadd.f32 %v4344_v17, %v4343_v54  ;;  %vm4419_vm15 = vweird.f32 %v5329_v44  ;;  %v4437_v4 = vand.u32 2147483647, %v8035_v63 }
0x1fcf   :  { %v4415_v6 = vsub.f32 1.0, %v4414_v3  ;;  %v4429_v37 = vmul.f32 %v5331_v50, %v8035_v63  ;;  %v4351_v27 = vrot.slane %v4350_v59, 1  ;;  %v4439_v56 = vand.u32 2147483648, %v8035_v63  ;;  %vm4420_vm3 = vmor %vm4418_vm9, %vm4419_vm15 }
0x1fd0   :  { %v4482_v42 = vsel %vm4216_vm12, %v4412_v29, 0.0  ;;  %5332 = vrcp.f32 %v4345_v21  ;;  %vm4434_vm0 = vweird.f32 %v5331_v50  ;;  %v4425_v9 = vor.u32 1.1754944e-38, %v4424_v43 }
0x1fd1   :  { %v4416_v5 = vmul.f32 %v5329_v44, %v4415_v6  ;;  %v4430_v0 = vsub.f32 1.0, %v4429_v37  ;;  %v4352_v34 = vadd.f32 %v4351_v27, %v4350_v59  ;;  %vm4433_vm4 = vweird.f32 %v8035_v63  ;;  %v4549_v6 = vld [vmem:[#allocation29 + $0x70] sm:$0xff] }
0x1fd2   :  { %4483 = vadd.xlane.f32.xlu0 %v4482_v42  ;;  %vm4423_vm14 = vcmp.eq.f32.partialorder %v4422_v2, 8.507059e+37  ;;  %vm4435_vm6 = vmor %vm4433_vm4, %vm4434_vm0  ;;  %v4440_v8 = vor.u32 1.1754944e-38, %v4439_v56  ;;  %vm4438_vm7 = vcmp.eq.f32.partialorder %v4437_v4, 8.507059e+37  ;;  %v4454_v1 = vand.u32 2147483648, %v4345_v21  ;;  %v4550_v42 = vld [vmem:[#allocation29 + $0x78] sm:$0xff] }
0x1fd3   :  { %v4417_v13 = vadd.f32 %v5329_v44, %v4416_v5  ;;  %v4431_v26 = vmul.f32 %v5331_v50, %v4430_v0  ;;  %5334 = vrcp.f32 %v4352_v34  ;;  %vm4448_vm5 = vweird.f32 %v4345_v21  ;;  %4562 = vmatpush.msrb.mxu0 %v4550_v42  ;;  %v4547_v5 = vld [vmem:[#allocation29 + $0x60] sm:$0xff]  ;;  %v4546_v2 = vld [vmem:[#allocation29 + $0x58] sm:$0xff]  ;;  %v4545_v0 = vld [vmem:[#allocation29 + $0x50] sm:$0xff] }
0x1fd4   :  { %v4469_v19 = vand.u32 2147483648, %v4352_v34  ;;  %v4455_v15 = vor.u32 1.1754944e-38, %v4454_v1  ;;  %vm4463_vm11 = vweird.f32 %v4352_v34  ;;  %v5976_v17 = vmov 6.0   ;;  %v4636_v42 = vld [vmem:[#allocation32 + $0x68] sm:$0xff] }
0x1fd5   :  { %v4421_v10 = vsel %vm4420_vm3, %v5329_v44, %v4417_v13  ;;  %v4432_v41 = vadd.f32 %v5331_v50, %v4431_v26  ;;  %5336 = vrcp.f32 %v5976_v17  ;;  %4563 = vmatpush.msrb.mxu0 %v4549_v6  ;;  %v4544_v13 = vld [vmem:[#allocation29 + $0x48] sm:$0xff]  ;;  %vm8283_vm0 = vcmask 517120   ;;  %v4635_v6 = vld [vmem:[#allocation32 + $0x60] sm:$0xff] }
0x1fd6   :  { %v4426_v7 = vsel %vm4423_vm14, %v4425_v9, %v4421_v10  ;;  %v5333_v14 = vpop.eup %5332  ;;  %v4470_v51 = vor.u32 1.1754944e-38, %v4469_v19  ;;  %vm8284_vm3 = vmmov %vm8283_vm0 }
0x1fd7   :  { %v4427_v25 = vmul.f32 %v7984_v48, %v4426_v7  ;;  %v4436_v11 = vsel %vm4435_vm6, %v5331_v50, %v4432_v41  ;;  %v4444_v61 = vmul.f32 %v5333_v14, %v4345_v21  ;;  %vm4449_vm13 = vweird.f32 %v5333_v14  ;;  %v4626_v41 = vld [vmem:[#allocation32 + $0x18] sm:$0xff]  ;;  %vm8285_vm4 = vmmov %vm8283_vm0 }
0x1fd8   :  { %v4441_v45 = vsel %vm4438_vm7, %v4440_v8, %v4436_v11  ;;  %v4452_v48 = vand.u32 2147483647, %v4345_v21  ;;  %vm4450_vm10 = vmor %vm4448_vm5, %vm4449_vm13  ;;  %v4625_v8 = vld [vmem:[#allocation32 + $0x10] sm:$0xff] }
0x1fd9   :  { %v4485_v28 = vsel %vm4216_vm12, %v4427_v25, 0.0  ;;  %v4442_v57 = vmul.f32 %v7990_v60, %v4441_v45  ;;  %v5335_v63 = vpop.eup %5334  ;;  %v4445_v62 = vsub.f32 1.0, %v4444_v61  ;;  %v4467_v60 = vand.u32 2147483647, %v4352_v34  ;;  %v4624_v45 = vld [vmem:[#allocation32 + $0x8] sm:$0xff]  ;;  %v4597_v61 = vld [vmem:[#allocation30 + $0x10] sm:$0xff]  ;;  %vm8286_vm14 = vmmov %vm8283_vm0 }
0x1fda   :  { %4486 = vadd.xlane.f32.xlu1 %v4485_v28  ;;  %v4459_v39 = vmul.f32 %v5335_v63, %v4352_v34  ;;  %vm4464_vm1 = vweird.f32 %v5335_v63  ;;  %vm4453_vm2 = vcmp.eq.f32.partialorder %v4452_v48, 8.507059e+37  ;;  %v4543_v34 = vld [vmem:[#allocation29 + $0x40] sm:$0xff]  ;;  %vm8287_vm6 = vmmov %vm8283_vm0 }
0x1fdb   :  { %v4488_v55 = vsel %vm4216_vm12, %v4442_v57, 0.0  ;;  %v4446_v58 = vmul.f32 %v5333_v14, %v4445_v62  ;;  %vm4465_vm8 = vmor %vm4463_vm11, %vm4464_vm1  ;;  %vm4468_vm15 = vcmp.eq.f32.partialorder %v4467_v60, 8.507059e+37  ;;  %v5337_v50 = vpop.eup %5336  ;;  %v4598_v57 = vld [vmem:[#allocation30 + $0x18] sm:$0xff]  ;;  %vm8292_vm1 = vcmask 261120  }
0x1fdc   :  { %4489 = vadd.xlane.f32.xlu2 %v4488_v55  ;;  %v4460_v47 = vsub.f32 1.0, %v4459_v39  ;;  %v4498_v59 = vmul.f32 6.0, %v5337_v50  ;;  %vm4502_vm9 = vweird.f32 %v5337_v50  ;;  %v4623_v55 = vld [vmem:[#allocation32] sm:$0xff]  ;;  %4614 = vmatpush.msra.mxu2 %v4598_v57  ;;  %vm8288_vm7 = vmmov %vm8283_vm0 }
0x1fdd   :  { %v4447_v38 = vadd.f32 %v5333_v14, %v4446_v58  ;;  %vm8289_vm13 = vmmov %vm8283_vm0 }
0x1fde   :  { %v4461_v12 = vmul.f32 %v5335_v63, %v4460_v47  ;;  %v4499_v37 = vsub.f32 1.0, %v4498_v59  ;;  %4615 = vmatpush.msra.mxu2 %v4597_v61  ;;  %vm8290_vm5 = vmmov %vm8283_vm0  ;;  %v4637_v59 = vld [vmem:[#allocation32 + $0x70] sm:$0xff] }
0x1fdf   :  { %v4451_v40 = vsel %vm4450_vm10, %v5333_v14, %v4447_v38  ;;  %vm8291_vm10 = vcmask 523264   ;;  %vm8294_vm11 = vmmov %vm8292_vm1 }
0x1fe0   :  { %v4456_v18 = vsel %vm4453_vm2, %v4455_v15, %v4451_v40  ;;  %v4462_v46 = vadd.f32 %v5335_v63, %v4461_v12  ;;  %v4500_v43 = vmul.f32 %v5337_v50, %v4499_v37  ;;  %vm8293_vm2 = vmmov %vm8292_vm1 }
0x1fe1   :  { %v4457_v54 = vmul.f32 %v7997_v49, %v4456_v18  ;;  %v4548_v49 = vld [vmem:[#allocation29 + $0x68] sm:$0xff] }
0x1fe2   :  { %v4466_v44 = vsel %vm4465_vm8, %v5335_v63, %v4462_v46  ;;  %4564 = vmatpush.msrb.mxu0 %v4548_v49  ;;  %v4501_v27 = vadd.f32 %v5337_v50, %v4500_v43  ;;  %vm8295_vm8 = vmmov %vm8292_vm1 }
0x1fe3   :  { %v4491_v33 = vsel %vm4216_vm12, %v4457_v54, 0.0  ;;  %v4471_v20 = vsel %vm4468_vm15, %v4470_v51, %v4466_v44 }
0x1fe4   :  { %4492 = vadd.xlane.f32.xlu0 %v4491_v33  ;;  %v4472_v29 = vmul.f32 %v8004_v30, %v4471_v20  ;;  %4565 = vmatpush.msrb.mxu0 %v4547_v5  ;;  %v4503_v4 = vsel %vm4502_vm9, %v5337_v50, %v4501_v27  ;;  %v4722_v27 = vld [vmem:[%s8144_s23] sm:$0xff] }
0x1fe6   :  { %v4494_v3 = vsel %vm4216_vm12, %v4472_v29, 0.0  ;;  %4566 = vmatpush.msrb.mxu0 %v4546_v2  ;;  %v4656_v2 = vpop.f32.mrf.mxu3 }
0x1fe7   :  { %4495 = vadd.xlane.f32.xlu1 %v4494_v3 }
0x1fe8   :  { %4567 = vmatpush.msrb.mxu0 %v4545_v0 }
0x1fea   :  { %4568 = vmatpush.msrb.mxu0 %v4544_v13 }
0x1fec   :  { %4569 = vmatpush.msrb.mxu0 %v4543_v34 }
0x1fee   :  { %4671 = vmatpush.msra.mxu0 %v4626_v41 }
0x1ff0   :  { %4672 = vmatpush.msra.mxu0 %v4625_v8 }
0x1ff2   :  { %4673 = vmatpush.msra.mxu0 %v4624_v45 }
0x1ff4   :  { %4674 = vmatpush.msra.mxu0 %v4623_v55 }
0x203d   :  { %v4475_v21 = vpop.xlane.xlu0 %4474 }
0x203e   :  { %v4504_v26 = vmul.f32 %v4503_v4, %v4475_v21  ;;  %v4723_v21 = vld [vmem:[%s8144_s23 + $0x8] sm:$0xff] }
0x203f   :  { %v4481_v9 = vpop.xlane.xlu2 %4480 }
0x2040   :  { %v4512_v25 = vmul.f32 %v4504_v26, %v7919_v16  ;;  %v4506_v11 = vmul.f32 %v4503_v4, %v4481_v9  ;;  %v4596_v16 = vld [vmem:[#allocation30 + $0x8] sm:$0xff] }
0x2041   :  { %v4478_v30 = vpop.xlane.xlu1 %4477  ;;  %4616 = vmatpush.msra.mxu2 %v4596_v16 }
0x2042   :  { %v4505_v56 = vmul.f32 %v4503_v4, %v4478_v30  ;;  %v4520_v62 = vsel %vm8284_vm3, %v4512_v25, 0.0 }
0x2044   :  { %v4513_v7 = vmul.f32 %v4505_v56, %v7914_v31  ;;  %v4514_v31 = vmul.f32 %v4506_v11, %v7911_v53 }
0x2045   :  { %v4484_v10 = vpop.xlane.xlu0 %4483 }
0x2046   :  { %v4507_v14 = vmul.f32 %v4503_v4, %v4484_v10  ;;  %v4521_v28 = vsel %vm8283_vm0, %v4513_v7, 0.0  ;;  %v4523_v47 = vsel %vm8285_vm4, %v4514_v31, 0.0 }
0x2047   :  { %v4522_v58 = vadd.f32 %v4521_v28, %v4520_v62 }
0x2048   :  { %v4515_v1 = vmul.f32 %v4507_v14, %v7933_v35 }
0x2049   :  { %v4524_v15 = vadd.f32 %v4523_v47, %v4522_v58 }
0x204a   :  { %v4525_v38 = vsel %vm8286_vm14, %v4515_v1, 0.0 }
0x204b   :  { %v4526_v60 = vadd.f32 %v4525_v38, %v4524_v15 }
0x204d   :  { %v4487_v63 = vpop.xlane.xlu1 %4486 }
0x204e   :  { %v4508_v39 = vmul.f32 %v4503_v4, %v4487_v63 }
0x204f   :  { %v4490_v48 = vpop.xlane.xlu2 %4489 }
0x2050   :  { %v4516_v19 = vmul.f32 %v4508_v39, %v7927_v22  ;;  %v4509_v12 = vmul.f32 %v4503_v4, %v4490_v48 }
0x2052   :  { %v4527_v53 = vsel %vm8287_vm6, %v4516_v19, 0.0  ;;  %v4517_v35 = vmul.f32 %v4509_v12, %v7925_v36  ;;  %v4595_v36 = vld [vmem:[#allocation30] sm:$0xff] }
0x2053   :  { %v4528_v40 = vadd.f32 %v4527_v53, %v4526_v60  ;;  %4617 = vmatpush.msra.mxu2 %v4595_v36 }
0x2054   :  { %v4529_v54 = vsel %vm8288_vm7, %v4517_v35, 0.0 }
0x2055   :  { %v4530_v33 = vadd.f32 %v4529_v54, %v4528_v40 }
0x2057   :  { %v4493_v18 = vpop.xlane.xlu0 %4492 }
0x2058   :  { %v4510_v46 = vmul.f32 %v4503_v4, %v4493_v18 }
0x205a   :  { %v4518_v51 = vmul.f32 %v4510_v46, %v7944_v32  ;;  %v4496_v44 = vpop.xlane.xlu1 %4495  ;;  %v4638_v32 = vld [vmem:[#allocation32 + $0x78] sm:$0xff] }
0x205b   :  { %v4511_v20 = vmul.f32 %v4503_v4, %v4496_v44  ;;  %4712 = vmatpush.msrb.mxu2 %v4638_v32 }
0x205c   :  { %v4531_v29 = vsel %vm8289_vm13, %v4518_v51, 0.0 }
0x205d   :  { %v4532_v22 = vadd.f32 %v4531_v29, %v4530_v33  ;;  %v4519_v3 = vmul.f32 %v4511_v20, %v7939_v52  ;;  %4713 = vmatpush.msrb.mxu2 %v4637_v59  ;;  %v4591_v52 = vpop.f32.mrf.mxu1 }
0x205f   :  { %v4533_v17 = vsel %vm8290_vm5, %v4519_v3, 0.0  ;;  %4714 = vmatpush.msrb.mxu2 %v4636_v42 }
0x2060   :  { %v4534_v50 = vadd.f32 %v4533_v17, %v4532_v22 }
0x2061   :  { %4715 = vmatpush.msrb.mxu2 %v4635_v6 }
0x2062   :  { %4904 = vmatmul.msk.f32.vlgmr.msrb.gmra.mxu0 %vm8291_vm10, %v4534_v50 }
0x2065   :  { %v4696_v4 = vpop.f32.mrf.mxu1 }
0x206a   :  { %4908 = vmatmul.msk.f32.vlgmr.msra.gmra.mxu0 %vm8292_vm1, %v2083_v23  ;;  %v4724_v23 = vld [vmem:[%s8144_s23 + $0x10] sm:$0xff]  ;;  %s5977_s23 = smov [#allocation34]  }
0x206b   :  { %4742 = vmatpush.msra.mxu3 %v4724_v23  ;;  %s4767_s5 = sshll.u32 %s5977_s23, 4  ;;  %s4768_s5 = int_to_ptr.vmem [resolvable:$true] %s4767_s5 }
0x206c   :  { %4772 = dma.vmem_to_hbm [thread:$0]  %s4768_s5, 32, %s4770_s1, [#allocation35]  }
0x206d   :  { %4743 = vmatpush.msra.mxu3 %v4723_v21  ;;  %4783 = dma.vmem_to_hbm [thread:$0]  %s4779_s4, 32, %s4781_s13, [#allocation35]  }
0x206f   :  { %4744 = vmatpush.msra.mxu3 %v4722_v27 }
0x20df   :  { %v4571_v49 = vpop.f32.mrf.mxu0 }
0x20e0   :  { %v4592_v37 = vadd.f32 %v4591_v52, %v4571_v49 }
0x20e2   :  { %v4594_v43 = vmax.f32 %v4592_v37, 0.0 }
0x20e4   :  { %4906 = vmatmul.msk.f32.vlgmr.msra.gmra.mxu2 %vm8293_vm2, %v4594_v43 }
0x20e7   :  { %v4676_v5 = vpop.f32.mrf.mxu0 }
0x20e8   :  { %v4677_v0 = vadd.f32 %v4676_v5, %v4656_v2 }
0x20ea   :  { %v4699_v56 = vadd.f32 %v4696_v4, %v4677_v0 }
0x20ec   :  { %4910 = vmatmul.msk.f32.vlgmr.msrb.gmra.mxu2 %vm8294_vm11, %v4594_v43 }
0x2167   :  { %v4619_v30 = vpop.f32.mrf.mxu2 }
0x2168   :  { %4622 = vst.msk [vmem:[#allocation37] sm:$0x3] %vm4216_vm12, %v4619_v30  ;;  %vm4749_vm12 = vcmask 140288  }
0x2169   :  { %4794 = dma.vmem_to_hbm [thread:$0]  %s4790_s29, 32, %s4792_s28, [#allocation38]  }
0x216f   :  { %v4717_v13 = vpop.f32.mrf.mxu2 }
0x2170   :  { %v4720_v26 = vadd.f32 %v4717_v13, %v4699_v56 }
0x2172   :  { %v4721_v34 = vmax.f32 %v4720_v26, 0.0 }
0x2174   :  { %4911 = vmatmul.msk.f32.vlgmr.msra.gmra.mxu3 %vm8295_vm8, %v4721_v34 }
0x21f7   :  { %v4746_v9 = vpop.f32.mrf.mxu3 }
0x21f8   :  { %4750 = vst.msk [vmem:[#allocation39] sm:$0x3] %vm4749_vm12, %v4746_v9 }
0x21f9   :  { %4805 = dma.vmem_to_hbm [thread:$0]  %s4801_s11, 32, %s4803_s24, [#allocation38]  }
0x21fa   :  { %5940 = dma.done.wait [#allocation5], 32  }
0x21fb   :  { %5941 = vsyncadd [#allocation5], 4294967264 }
0x21fc   :  { %5942 = dma.done.wait [#allocation35], 64  }
0x21fd   :  { %5943 = vsyncadd [#allocation35], 4294967232 }
0x21fe   :  { %5944 = dma.done.wait [#allocation38], 64  }
0x21ff   :  { %5945 = vsyncadd [#allocation38], 4294967232 }
0x2200   :  { %4826 = vsyncpa [#allocation4], 1 }
0x2201   :  { %4827 = vsyncpa [#allocation7], 1 }
0x2202   :  { %4828 = vsyncpa [#allocation10], 1 }
0x2203   :  { %4829 = vsyncpa [#allocation13], 1 }
0x2204   :  { %4830 = vsyncpa [#allocation16], 1 }
0x2205   :  { %4831 = vsyncpa [#allocation19], 1 }
0x2206   :  { %4832 = vsyncpa [#allocation22], 1 }
0x2207   :  { %4833 = vsyncpa [#allocation25], 1 }
0x2208   :  { %4834 = vsyncpa [#allocation28], 1 }
0x2209   :  { %4835 = vsyncpa [#allocation31], 1 }
0x220a   :  { %4836 = vsyncpa [#allocation5], 1 }
0x220b   :  { %4837 = vsyncpa [#allocation35], 1 }
0x220c   :  { %4838 = vsyncpa [#allocation38], 1 }

</bundles_post_ra>
